<compile_context>
chip_gen: v6e
topology: v6e:2x2x1
jax: 0.10.0
libtpu: 0.0.40
codegen_flags: <defaults>
</compile_context>

<pallas_src>
import functools
import math

import jax
import jax.numpy as jnp
from jax.experimental import pallas as pl
from jax.experimental.pallas import tpu as pltpu


def _gelu_erf(v):
    # exact-erf gelu, f32.  A&S 7.1.26 polynomial, |erf err| < 1.5e-7.
    z = v * 0.7071067811865476
    az = jnp.abs(z)
    t = 1.0 / (1.0 + 0.3275911 * az)                      # exact divide (no approx vrcp)
    poly = ((((1.061405429 * t - 1.453152027) * t + 1.421413741) * t
             - 0.284496736) * t + 0.254829592) * t
    erf_abs = 1.0 - poly * jnp.exp(-az * az)
    erf_z = jnp.where(z >= 0.0, erf_abs, -erf_abs)
    return 0.5 * v * (1.0 + erf_z)


# ----------------------------------------------------------------------------
# Fused kernel: (project_in ∘ grouped dwconv3x3) as one MXU matmul, gelu gate,
# project_out.  Processes `bb` images per grid step.
# ----------------------------------------------------------------------------
def _mlp_base_kernel(x_ref, mask_ref, w1_ref, w2_ref, wout_ref, o_ref, xbig_ref,
                     *, W, HW, cin, hidden, bb):
    # Weight loads hoisted out of the per-image loop.
    w1 = w1_ref[...]                                       # (hidden, 9*Cin) bf16
    w2 = w2_ref[...]                                       # (hidden, 9*Cin) bf16
    wo = wout_ref[...]                                     # (Cin, hidden)   bf16
    # 9 boundary-validity masks, (1, HW) bool each, independent of the image.
    valids = [mask_ref[t:t + 1, :] != 0.0 for t in range(9)]

    for b in range(bb):                                    # static unroll (bb <= 4)
        xb = x_ref[b]                                      # (Cin, HW) bf16

        # Build the 9 spatially shifted, zero-padded copies of x in VMEM
        # scratch: Xbig[t*Cin + cin, p] = x[cin, (y+kh-1, x+kw-1)] or 0.
        for t in range(9):
            dy, dx = t // 3 - 1, t % 3 - 1
            shift = dy * W + dx
            xs = xb if shift == 0 else jnp.roll(xb, -shift, axis=1)
            xs = jnp.where(valids[t], xs, jnp.zeros_like(xs))
            xbig_ref[t * cin:(t + 1) * cin, :] = xs        # aligned (offset = t*Cin)

        xbig = xbig_ref[...]                               # (9*Cin, HW) bf16

        # project_in + grouped dwconv fused: two K = 9*Cin MXU matmuls
        # (x1 = first `hidden` output channels, x2 = last `hidden`).
        x1 = jax.lax.dot_general(w1, xbig, (((1,), (0,)), ((), ())),
                                 preferred_element_type=jnp.float32)   # (hidden, HW)
        x2 = jax.lax.dot_general(w2, xbig, (((1,), (0,)), ((), ())),
                                 preferred_element_type=jnp.float32)   # (hidden, HW)

        g = _gelu_erf(x1) * x2                             # f32, (hidden, HW)

        # project_out: (Cin, hidden) @ (hidden, HW) -> (Cin, HW), lane-dense store.
        out = jax.lax.dot_general(wo, g.astype(jnp.bfloat16),
                                  (((1,), (0,)), ((), ())),
                                  preferred_element_type=jnp.float32)
        o_ref[b] = out


# ----------------------------------------------------------------------------
# Wrapper: NCHW in, NCHW out (same semantics as the PyTorch module).
# ----------------------------------------------------------------------------
def mlp_base(x_nchw, params):
    w_in = params["project_in"]        # (2*hidden, Cin, 1, 1)
    w_dw = params["dwconv"]            # (2*hidden, 2, 3, 3)   groups = hidden
    w_out = params["project_out"]      # (Cin, hidden, 1, 1)

    B, Cin, H, W = x_nchw.shape
    C2 = w_dw.shape[0]
    hidden = C2 // 2
    HW = H * W
    K = 9 * Cin

    # ---- fold project_in + grouped dwconv into one dense (9*Cin -> C2) weight.
    win_t = jnp.transpose(w_in.reshape(C2, Cin))            # (Cin, C2): Wp[j,cin] -> [cin,j]
    base = (jnp.arange(C2) // 2) * 2
    w_p0 = win_t[:, base]                                    # column 2*(c//2)     (Cin, C2)
    w_p1 = win_t[:, base + 1]                                # column 2*(c//2)+1   (Cin, C2)
    wdw = w_dw.reshape(C2, 2, 9)
    wa = jnp.transpose(wdw[:, 0, :])                         # (9, C2) taps, partner 0
    wb = jnp.transpose(wdw[:, 1, :])                         # (9, C2) taps, partner 1
    wbig = wa[:, None, :] * w_p0[None] + wb[:, None, :] * w_p1[None]    # (9, Cin, C2)
    wbig_t = jnp.transpose(wbig.reshape(K, C2)).astype(jnp.bfloat16)    # (C2, 9*Cin)
    w1 = wbig_t[:hidden]                                     # output channels of x1
    w2 = wbig_t[hidden:]                                     # output channels of x2
    wout_mat = w_out.reshape(Cin, hidden).astype(jnp.bfloat16)

    # ---- per-tap boundary-validity masks over the flattened H*W axis.
    yy = jnp.arange(H)[:, None]
    xx = jnp.arange(W)[None, :]
    mask_rows = []
    for t in range(9):
        dy, dx = t // 3 - 1, t % 3 - 1
        m = ((yy + dy >= 0) & (yy + dy < H) & (xx + dx >= 0) & (xx + dx < W))
        mask_rows.append(m.reshape(HW))
    masks = jnp.stack(mask_rows).astype(jnp.float32)         # (9, HW)

    # x in channel-major (Cin, HW) per image, fed as bf16 (MXU consumes bf16).
    x3 = x_nchw.reshape(B, Cin, HW).astype(jnp.bfloat16)

    BB = math.gcd(B, 4)                                      # images per grid step
    grid = (B // BB,)

    kern = functools.partial(_mlp_base_kernel, W=W, HW=HW, cin=Cin,
                             hidden=hidden, bb=BB)
    out = pl.pallas_call(
        kern,
        out_shape=jax.ShapeDtypeStruct((B, Cin, HW), jnp.float32),
        grid=grid,
        in_specs=[
            pl.BlockSpec((BB, Cin, HW), lambda i: (i, 0, 0)),   # x block (bf16)
            pl.BlockSpec((9, HW), lambda i: (0, 0)),            # tap masks (f32)
            pl.BlockSpec((hidden, K), lambda i: (0, 0)),        # folded weight, x1 half
            pl.BlockSpec((hidden, K), lambda i: (0, 0)),        # folded weight, x2 half
            pl.BlockSpec((Cin, hidden), lambda i: (0, 0)),      # project_out weight
        ],
        out_specs=pl.BlockSpec((BB, Cin, HW), lambda i: (i, 0, 0)),
        scratch_shapes=[pltpu.VMEM((K, HW), jnp.bfloat16)],      # shifted-x stack
        compiler_params=pltpu.CompilerParams(
            dimension_semantics=("parallel",)),
    )(x3, masks, w1, w2, wout_mat)
    return out.reshape(B, Cin, H, W)


# ----------------------------------------------------------------------------
# Pure-XLA f32 reference (HIGHEST precision) — relative-error check vs kernel.
# ----------------------------------------------------------------------------
def mlp_base_reference(x, params):
    w_in, w_dw, w_out = params["project_in"], params["dwconv"], params["project_out"]
    hidden = w_dw.shape[0] // 2
    hi = jax.lax.Precision.HIGHEST
    h = jax.lax.conv_general_dilated(
        x, w_in, (1, 1), "VALID",
        dimension_numbers=("NCHW", "OIHW", "NCHW"), precision=hi)
    hd = jax.lax.conv_general_dilated(
        h, w_dw, (1, 1), ((1, 1), (1, 1)),
        dimension_numbers=("NCHW", "OIHW", "NCHW"),
        feature_group_count=hidden, precision=hi)
    x1, x2 = hd[:, :hidden], hd[:, hidden:]
    g = jax.nn.gelu(x1, approximate=False) * x2
    return jax.lax.conv_general_dilated(
        g, w_out, (1, 1), "VALID",
        dimension_numbers=("NCHW", "OIHW", "NCHW"), precision=hi)


# ----------------------------------------------------------------------------
# Deterministic demo (shapes mirror Mlp_base(in_features=64, ffn_expansion=2)).
# ----------------------------------------------------------------------------
if __name__ == "__main__":
    B, Cin, H, W = 2, 64, 16, 16
    ffn_expansion_factor = 2
    hidden = int(Cin * ffn_expansion_factor)                 # 128

    key = jax.random.PRNGKey(0)
    kx, k1, k2, k3 = jax.random.split(key, 4)

    def conv_init(k, shape):
        fan_in = shape[1] * shape[2] * shape[3]
        return jax.random.normal(k, shape, jnp.float32) / jnp.sqrt(float(fan_in))

    x = jax.random.normal(kx, (B, Cin, H, W), jnp.float32)
    params = {
        "project_in": conv_init(k1, (2 * hidden, Cin, 1, 1)),
        "dwconv": conv_init(k2, (2 * hidden, 2, 3, 3)),       # groups=hidden -> 2 in-ch/group
        "project_out": conv_init(k3, (Cin, hidden, 1, 1)),
    }

    y = jax.jit(mlp_base)(x, params)
    y = jax.block_until_ready(y)
    assert y.shape == (B, Cin, H, W) and y.dtype == jnp.float32

    ref = jax.block_until_ready(jax.jit(mlp_base_reference)(x, params))
    scale = float(jnp.max(jnp.abs(ref)))
    err = float(jnp.max(jnp.abs(y - ref)))
    # Kernel feeds bf16 operands to the MXU (f32 accumulation), so ~1e-2
    # relative-to-max error is the expected quantization floor.
    assert err <= 3e-2 * scale + 1e-6, f"relative error {err / scale:.3e}"

    print("KERNEL_OK")
</pallas_src>

<mosaic_0001>
module attributes {stable_mosaic.version = 11 : i64} {
  func.func @_mlp_base_kernel(%arg0: i32, %arg1: memref<2x64x256xbf16, #tpu.memory_space<vmem>>, %arg2: memref<9x256xf32, #tpu.memory_space<vmem>>, %arg3: memref<128x576xbf16, #tpu.memory_space<vmem>>, %arg4: memref<128x576xbf16, #tpu.memory_space<vmem>>, %arg5: memref<64x128xbf16, #tpu.memory_space<vmem>>, %arg6: memref<2x64x256xf32, #tpu.memory_space<vmem>>, %arg7: memref<576x256xbf16, #tpu.memory_space<vmem>>) attributes {dimension_semantics = [#tpu.dimension_semantics<parallel>], iteration_bounds = array<i64: 1>, scalar_prefetch = 0 : i64, scratch_operands = 1 : i64, tpu.core_type = #tpu.core_type<tc>, window_params = [{transform_indices = @transform_0, window_bounds = array<i64: 2, 64, 256>}, {pipeline_mode = #tpu.pipeline_mode<synchronous>, transform_indices = @transform_1, window_bounds = array<i64: 9, 256>}, {pipeline_mode = #tpu.pipeline_mode<synchronous>, transform_indices = @transform_2, window_bounds = array<i64: 128, 576>}, {pipeline_mode = #tpu.pipeline_mode<synchronous>, transform_indices = @transform_3, window_bounds = array<i64: 128, 576>}, {pipeline_mode = #tpu.pipeline_mode<synchronous>, transform_indices = @transform_4, window_bounds = array<i64: 64, 128>}, {transform_indices = @transform_5, window_bounds = array<i64: 2, 64, 256>}]} {
    %c0 = arith.constant 0 : index
    %c0_0 = arith.constant 0 : index
    %0 = vector.load %arg3[%c0, %c0_0] : memref<128x576xbf16, #tpu.memory_space<vmem>>, vector<128x576xbf16>
    %c0_1 = arith.constant 0 : index
    %c0_2 = arith.constant 0 : index
    %1 = vector.load %arg4[%c0_1, %c0_2] : memref<128x576xbf16, #tpu.memory_space<vmem>>, vector<128x576xbf16>
    %c0_3 = arith.constant 0 : index
    %c0_4 = arith.constant 0 : index
    %2 = vector.load %arg5[%c0_3, %c0_4] : memref<64x128xbf16, #tpu.memory_space<vmem>>, vector<64x128xbf16>
    %c0_5 = arith.constant 0 : index
    %c0_6 = arith.constant 0 : index
    %3 = vector.load %arg2[%c0_5, %c0_6] : memref<9x256xf32, #tpu.memory_space<vmem>>, vector<1x256xf32>
    %cst = arith.constant 0.000000e+00 : f32
    %4 = vector.broadcast %cst : f32 to vector<1x256xf32>
    %5 = arith.cmpf one, %3, %4 : vector<1x256xf32>
    %c1 = arith.constant 1 : index
    %c0_7 = arith.constant 0 : index
    %6 = vector.load %arg2[%c1, %c0_7] : memref<9x256xf32, #tpu.memory_space<vmem>>, vector<1x256xf32>
    %cst_8 = arith.constant 0.000000e+00 : f32
    %7 = vector.broadcast %cst_8 : f32 to vector<1x256xf32>
    %8 = arith.cmpf one, %6, %7 : vector<1x256xf32>
    %c2 = arith.constant 2 : index
    %c0_9 = arith.constant 0 : index
    %9 = vector.load %arg2[%c2, %c0_9] : memref<9x256xf32, #tpu.memory_space<vmem>>, vector<1x256xf32>
    %cst_10 = arith.constant 0.000000e+00 : f32
    %10 = vector.broadcast %cst_10 : f32 to vector<1x256xf32>
    %11 = arith.cmpf one, %9, %10 : vector<1x256xf32>
    %c3 = arith.constant 3 : index
    %c0_11 = arith.constant 0 : index
    %12 = vector.load %arg2[%c3, %c0_11] : memref<9x256xf32, #tpu.memory_space<vmem>>, vector<1x256xf32>
    %cst_12 = arith.constant 0.000000e+00 : f32
    %13 = vector.broadcast %cst_12 : f32 to vector<1x256xf32>
    %14 = arith.cmpf one, %12, %13 : vector<1x256xf32>
    %c4 = arith.constant 4 : index
    %c0_13 = arith.constant 0 : index
    %15 = vector.load %arg2[%c4, %c0_13] : memref<9x256xf32, #tpu.memory_space<vmem>>, vector<1x256xf32>
    %cst_14 = arith.constant 0.000000e+00 : f32
    %16 = vector.broadcast %cst_14 : f32 to vector<1x256xf32>
    %17 = arith.cmpf one, %15, %16 : vector<1x256xf32>
    %c5 = arith.constant 5 : index
    %c0_15 = arith.constant 0 : index
    %18 = vector.load %arg2[%c5, %c0_15] : memref<9x256xf32, #tpu.memory_space<vmem>>, vector<1x256xf32>
    %cst_16 = arith.constant 0.000000e+00 : f32
    %19 = vector.broadcast %cst_16 : f32 to vector<1x256xf32>
    %20 = arith.cmpf one, %18, %19 : vector<1x256xf32>
    %c6 = arith.constant 6 : index
    %c0_17 = arith.constant 0 : index
    %21 = vector.load %arg2[%c6, %c0_17] : memref<9x256xf32, #tpu.memory_space<vmem>>, vector<1x256xf32>
    %cst_18 = arith.constant 0.000000e+00 : f32
    %22 = vector.broadcast %cst_18 : f32 to vector<1x256xf32>
    %23 = arith.cmpf one, %21, %22 : vector<1x256xf32>
    %c7 = arith.constant 7 : index
    %c0_19 = arith.constant 0 : index
    %24 = vector.load %arg2[%c7, %c0_19] : memref<9x256xf32, #tpu.memory_space<vmem>>, vector<1x256xf32>
    %cst_20 = arith.constant 0.000000e+00 : f32
    %25 = vector.broadcast %cst_20 : f32 to vector<1x256xf32>
    %26 = arith.cmpf one, %24, %25 : vector<1x256xf32>
    %c8 = arith.constant 8 : index
    %c0_21 = arith.constant 0 : index
    %27 = vector.load %arg2[%c8, %c0_21] : memref<9x256xf32, #tpu.memory_space<vmem>>, vector<1x256xf32>
    %cst_22 = arith.constant 0.000000e+00 : f32
    %28 = vector.broadcast %cst_22 : f32 to vector<1x256xf32>
    %29 = arith.cmpf one, %27, %28 : vector<1x256xf32>
    %c0_23 = arith.constant 0 : index
    %c0_24 = arith.constant 0 : index
    %c0_25 = arith.constant 0 : index
    %30 = vector.load %arg1[%c0_23, %c0_24, %c0_25] : memref<2x64x256xbf16, #tpu.memory_space<vmem>>, vector<1x64x256xbf16>
    %31 = vector.shape_cast %30 : vector<1x64x256xbf16> to vector<64x256xbf16>
    %32 = vector.extract_strided_slice %31 {offsets = [0, 239], sizes = [64, 17], strides = [1, 1]} : vector<64x256xbf16> to vector<64x17xbf16>
    %33 = vector.extract_strided_slice %31 {offsets = [0, 0], sizes = [64, 239], strides = [1, 1]} : vector<64x256xbf16> to vector<64x239xbf16>
    %34 = tpu.concatenate %32, %33 in 1 : vector<64x17xbf16>, vector<64x239xbf16> -> vector<64x256xbf16>
    %cst_26 = arith.constant 0.000000e+00 : bf16
    %35 = vector.broadcast %cst_26 : bf16 to vector<64x256xbf16>
    %36 = vector.shape_cast %5 : vector<1x256xi1> to vector<1x256xi1>
    %37 = vector.broadcast %36 : vector<1x256xi1> to vector<64x256xi1>
    %38 = arith.select %37, %34, %35 : vector<64x256xi1>, vector<64x256xbf16>
    %c0_27 = arith.constant 0 : index
    %c0_28 = arith.constant 0 : index
    %39 = vector.load %arg7[%c0_27, %c0_28] : memref<576x256xbf16, #tpu.memory_space<vmem>>, vector<64x256xbf16>
    tpu.vector_store %arg7[%c0_27, %c0_28], %38 {strides = array<i32>} : memref<576x256xbf16, #tpu.memory_space<vmem>>, vector<64x256xbf16>,
    %40 = vector.extract_strided_slice %31 {offsets = [0, 240], sizes = [64, 16], strides = [1, 1]} : vector<64x256xbf16> to vector<64x16xbf16>
    %41 = vector.extract_strided_slice %31 {offsets = [0, 0], sizes = [64, 240], strides = [1, 1]} : vector<64x256xbf16> to vector<64x240xbf16>
    %42 = tpu.concatenate %40, %41 in 1 : vector<64x16xbf16>, vector<64x240xbf16> -> vector<64x256xbf16>
    %cst_29 = arith.constant 0.000000e+00 : bf16
    %43 = vector.broadcast %cst_29 : bf16 to vector<64x256xbf16>
    %44 = vector.shape_cast %8 : vector<1x256xi1> to vector<1x256xi1>
    %45 = vector.broadcast %44 : vector<1x256xi1> to vector<64x256xi1>
    %46 = arith.select %45, %42, %43 : vector<64x256xi1>, vector<64x256xbf16>
    %c64 = arith.constant 64 : index
    %c0_30 = arith.constant 0 : index
    %47 = vector.load %arg7[%c64, %c0_30] : memref<576x256xbf16, #tpu.memory_space<vmem>>, vector<64x256xbf16>
    tpu.vector_store %arg7[%c64, %c0_30], %46 {strides = array<i32>} : memref<576x256xbf16, #tpu.memory_space<vmem>>, vector<64x256xbf16>,
    %48 = vector.extract_strided_slice %31 {offsets = [0, 241], sizes = [64, 15], strides = [1, 1]} : vector<64x256xbf16> to vector<64x15xbf16>
    %49 = vector.extract_strided_slice %31 {offsets = [0, 0], sizes = [64, 241], strides = [1, 1]} : vector<64x256xbf16> to vector<64x241xbf16>
    %50 = tpu.concatenate %48, %49 in 1 : vector<64x15xbf16>, vector<64x241xbf16> -> vector<64x256xbf16>
    %cst_31 = arith.constant 0.000000e+00 : bf16
    %51 = vector.broadcast %cst_31 : bf16 to vector<64x256xbf16>
    %52 = vector.shape_cast %11 : vector<1x256xi1> to vector<1x256xi1>
    %53 = vector.broadcast %52 : vector<1x256xi1> to vector<64x256xi1>
    %54 = arith.select %53, %50, %51 : vector<64x256xi1>, vector<64x256xbf16>
    %c128 = arith.constant 128 : index
    %c0_32 = arith.constant 0 : index
    %55 = vector.load %arg7[%c128, %c0_32] : memref<576x256xbf16, #tpu.memory_space<vmem>>, vector<64x256xbf16>
    tpu.vector_store %arg7[%c128, %c0_32], %54 {strides = array<i32>} : memref<576x256xbf16, #tpu.memory_space<vmem>>, vector<64x256xbf16>,
    %56 = vector.extract_strided_slice %31 {offsets = [0, 255], sizes = [64, 1], strides = [1, 1]} : vector<64x256xbf16> to vector<64x1xbf16>
    %57 = vector.extract_strided_slice %31 {offsets = [0, 0], sizes = [64, 255], strides = [1, 1]} : vector<64x256xbf16> to vector<64x255xbf16>
    %58 = tpu.concatenate %56, %57 in 1 : vector<64x1xbf16>, vector<64x255xbf16> -> vector<64x256xbf16>
    %cst_33 = arith.constant 0.000000e+00 : bf16
    %59 = vector.broadcast %cst_33 : bf16 to vector<64x256xbf16>
    %60 = vector.shape_cast %14 : vector<1x256xi1> to vector<1x256xi1>
    %61 = vector.broadcast %60 : vector<1x256xi1> to vector<64x256xi1>
    %62 = arith.select %61, %58, %59 : vector<64x256xi1>, vector<64x256xbf16>
    %c192 = arith.constant 192 : index
    %c0_34 = arith.constant 0 : index
    %63 = vector.load %arg7[%c192, %c0_34] : memref<576x256xbf16, #tpu.memory_space<vmem>>, vector<64x256xbf16>
    tpu.vector_store %arg7[%c192, %c0_34], %62 {strides = array<i32>} : memref<576x256xbf16, #tpu.memory_space<vmem>>, vector<64x256xbf16>,
    %cst_35 = arith.constant 0.000000e+00 : bf16
    %64 = vector.broadcast %cst_35 : bf16 to vector<64x256xbf16>
    %65 = vector.shape_cast %17 : vector<1x256xi1> to vector<1x256xi1>
    %66 = vector.broadcast %65 : vector<1x256xi1> to vector<64x256xi1>
    %67 = arith.select %66, %31, %64 : vector<64x256xi1>, vector<64x256xbf16>
    %c256 = arith.constant 256 : index
    %c0_36 = arith.constant 0 : index
    %68 = vector.load %arg7[%c256, %c0_36] : memref<576x256xbf16, #tpu.memory_space<vmem>>, vector<64x256xbf16>
    tpu.vector_store %arg7[%c256, %c0_36], %67 {strides = array<i32>} : memref<576x256xbf16, #tpu.memory_space<vmem>>, vector<64x256xbf16>,
    %69 = vector.extract_strided_slice %31 {offsets = [0, 1], sizes = [64, 255], strides = [1, 1]} : vector<64x256xbf16> to vector<64x255xbf16>
    %70 = vector.extract_strided_slice %31 {offsets = [0, 0], sizes = [64, 1], strides = [1, 1]} : vector<64x256xbf16> to vector<64x1xbf16>
    %71 = tpu.concatenate %69, %70 in 1 : vector<64x255xbf16>, vector<64x1xbf16> -> vector<64x256xbf16>
    %cst_37 = arith.constant 0.000000e+00 : bf16
    %72 = vector.broadcast %cst_37 : bf16 to vector<64x256xbf16>
    %73 = vector.shape_cast %20 : vector<1x256xi1> to vector<1x256xi1>
    %74 = vector.broadcast %73 : vector<1x256xi1> to vector<64x256xi1>
    %75 = arith.select %74, %71, %72 : vector<64x256xi1>, vector<64x256xbf16>
    %c320 = arith.constant 320 : index
    %c0_38 = arith.constant 0 : index
    %76 = vector.load %arg7[%c320, %c0_38] : memref<576x256xbf16, #tpu.memory_space<vmem>>, vector<64x256xbf16>
    tpu.vector_store %arg7[%c320, %c0_38], %75 {strides = array<i32>} : memref<576x256xbf16, #tpu.memory_space<vmem>>, vector<64x256xbf16>,
    %77 = vector.extract_strided_slice %31 {offsets = [0, 15], sizes = [64, 241], strides = [1, 1]} : vector<64x256xbf16> to vector<64x241xbf16>
    %78 = vector.extract_strided_slice %31 {offsets = [0, 0], sizes = [64, 15], strides = [1, 1]} : vector<64x256xbf16> to vector<64x15xbf16>
    %79 = tpu.concatenate %77, %78 in 1 : vector<64x241xbf16>, vector<64x15xbf16> -> vector<64x256xbf16>
    %cst_39 = arith.constant 0.000000e+00 : bf16
    %80 = vector.broadcast %cst_39 : bf16 to vector<64x256xbf16>
    %81 = vector.shape_cast %23 : vector<1x256xi1> to vector<1x256xi1>
    %82 = vector.broadcast %81 : vector<1x256xi1> to vector<64x256xi1>
    %83 = arith.select %82, %79, %80 : vector<64x256xi1>, vector<64x256xbf16>
    %c384 = arith.constant 384 : index
    %c0_40 = arith.constant 0 : index
    %84 = vector.load %arg7[%c384, %c0_40] : memref<576x256xbf16, #tpu.memory_space<vmem>>, vector<64x256xbf16>
    tpu.vector_store %arg7[%c384, %c0_40], %83 {strides = array<i32>} : memref<576x256xbf16, #tpu.memory_space<vmem>>, vector<64x256xbf16>,
    %85 = vector.extract_strided_slice %31 {offsets = [0, 16], sizes = [64, 240], strides = [1, 1]} : vector<64x256xbf16> to vector<64x240xbf16>
    %86 = vector.extract_strided_slice %31 {offsets = [0, 0], sizes = [64, 16], strides = [1, 1]} : vector<64x256xbf16> to vector<64x16xbf16>
    %87 = tpu.concatenate %85, %86 in 1 : vector<64x240xbf16>, vector<64x16xbf16> -> vector<64x256xbf16>
    %cst_41 = arith.constant 0.000000e+00 : bf16
    %88 = vector.broadcast %cst_41 : bf16 to vector<64x256xbf16>
    %89 = vector.shape_cast %26 : vector<1x256xi1> to vector<1x256xi1>
    %90 = vector.broadcast %89 : vector<1x256xi1> to vector<64x256xi1>
    %91 = arith.select %90, %87, %88 : vector<64x256xi1>, vector<64x256xbf16>
    %c448 = arith.constant 448 : index
    %c0_42 = arith.constant 0 : index
    %92 = vector.load %arg7[%c448, %c0_42] : memref<576x256xbf16, #tpu.memory_space<vmem>>, vector<64x256xbf16>
    tpu.vector_store %arg7[%c448, %c0_42], %91 {strides = array<i32>} : memref<576x256xbf16, #tpu.memory_space<vmem>>, vector<64x256xbf16>,
    %93 = vector.extract_strided_slice %31 {offsets = [0, 17], sizes = [64, 239], strides = [1, 1]} : vector<64x256xbf16> to vector<64x239xbf16>
    %94 = vector.extract_strided_slice %31 {offsets = [0, 0], sizes = [64, 17], strides = [1, 1]} : vector<64x256xbf16> to vector<64x17xbf16>
    %95 = tpu.concatenate %93, %94 in 1 : vector<64x239xbf16>, vector<64x17xbf16> -> vector<64x256xbf16>
    %cst_43 = arith.constant 0.000000e+00 : bf16
    %96 = vector.broadcast %cst_43 : bf16 to vector<64x256xbf16>
    %97 = vector.shape_cast %29 : vector<1x256xi1> to vector<1x256xi1>
    %98 = vector.broadcast %97 : vector<1x256xi1> to vector<64x256xi1>
    %99 = arith.select %98, %95, %96 : vector<64x256xi1>, vector<64x256xbf16>
    %c512 = arith.constant 512 : index
    %c0_44 = arith.constant 0 : index
    %100 = vector.load %arg7[%c512, %c0_44] : memref<576x256xbf16, #tpu.memory_space<vmem>>, vector<64x256xbf16>
    tpu.vector_store %arg7[%c512, %c0_44], %99 {strides = array<i32>} : memref<576x256xbf16, #tpu.memory_space<vmem>>, vector<64x256xbf16>,
    %c0_45 = arith.constant 0 : index
    %c0_46 = arith.constant 0 : index
    %101 = vector.load %arg7[%c0_45, %c0_46] : memref<576x256xbf16, #tpu.memory_space<vmem>>, vector<576x256xbf16>
    %cst_47 = arith.constant dense<0.000000e+00> : vector<128x256xf32>
    %102 = tpu.matmul %0, %101, %cst_47 {dimension_numbers = #tpu.dot_dimension_numbers<[1], [0], [0], [1], [0, 0, 1, 1], [], []>} : vector<128x576xbf16>, vector<576x256xbf16>, vector<128x256xf32> -> vector<128x256xf32>
    %cst_48 = arith.constant dense<0.000000e+00> : vector<128x256xf32>
    %103 = tpu.matmul %1, %101, %cst_48 {dimension_numbers = #tpu.dot_dimension_numbers<[1], [0], [0], [1], [0, 0, 1, 1], [], []>} : vector<128x576xbf16>, vector<576x256xbf16>, vector<128x256xf32> -> vector<128x256xf32>
    %cst_49 = arith.constant 0.707106769 : f32
    %104 = vector.broadcast %cst_49 : f32 to vector<128x256xf32>
    %105 = arith.mulf %102, %104 : vector<128x256xf32>
    %106 = math.absf %105 : vector<128x256xf32>
    %cst_50 = arith.constant 0.327591091 : f32
    %107 = vector.broadcast %cst_50 : f32 to vector<128x256xf32>
    %108 = arith.mulf %107, %106 : vector<128x256xf32>
    %cst_51 = arith.constant 1.000000e+00 : f32
    %109 = vector.broadcast %cst_51 : f32 to vector<128x256xf32>
    %110 = arith.addf %109, %108 : vector<128x256xf32>
    %cst_52 = arith.constant 1.000000e+00 : f32
    %111 = vector.broadcast %cst_52 : f32 to vector<128x256xf32>
    %112 = arith.divf %111, %110 : vector<128x256xf32>
    %cst_53 = arith.constant 1.06140542 : f32
    %113 = vector.broadcast %cst_53 : f32 to vector<128x256xf32>
    %114 = arith.mulf %113, %112 : vector<128x256xf32>
    %cst_54 = arith.constant 1.45315206 : f32
    %115 = vector.broadcast %cst_54 : f32 to vector<128x256xf32>
    %116 = arith.subf %114, %115 : vector<128x256xf32>
    %117 = arith.mulf %116, %112 : vector<128x256xf32>
    %cst_55 = arith.constant 1.42141378 : f32
    %118 = vector.broadcast %cst_55 : f32 to vector<128x256xf32>
    %119 = arith.addf %117, %118 : vector<128x256xf32>
    %120 = arith.mulf %119, %112 : vector<128x256xf32>
    %cst_56 = arith.constant 0.284496725 : f32
    %121 = vector.broadcast %cst_56 : f32 to vector<128x256xf32>
    %122 = arith.subf %120, %121 : vector<128x256xf32>
    %123 = arith.mulf %122, %112 : vector<128x256xf32>
    %cst_57 = arith.constant 0.254829586 : f32
    %124 = vector.broadcast %cst_57 : f32 to vector<128x256xf32>
    %125 = arith.addf %123, %124 : vector<128x256xf32>
    %126 = arith.mulf %125, %112 : vector<128x256xf32>
    %cst_58 = arith.constant 0.000000e+00 : f32
    %127 = vector.broadcast %cst_58 : f32 to vector<128x256xf32>
    %128 = arith.subf %127, %106 : vector<128x256xf32>
    %129 = arith.mulf %128, %106 : vector<128x256xf32>
    %130 = math.exp %129 : vector<128x256xf32>
    %131 = arith.mulf %126, %130 : vector<128x256xf32>
    %cst_59 = arith.constant 1.000000e+00 : f32
    %132 = vector.broadcast %cst_59 : f32 to vector<128x256xf32>
    %133 = arith.subf %132, %131 : vector<128x256xf32>
    %cst_60 = arith.constant 0.000000e+00 : f32
    %134 = vector.broadcast %cst_60 : f32 to vector<128x256xf32>
    %135 = arith.cmpf oge, %105, %134 : vector<128x256xf32>
    %cst_61 = arith.constant 0.000000e+00 : f32
    %136 = vector.broadcast %cst_61 : f32 to vector<128x256xf32>
    %137 = arith.subf %136, %133 : vector<128x256xf32>
    %138 = arith.select %135, %133, %137 : vector<128x256xi1>, vector<128x256xf32>
    %cst_62 = arith.constant 5.000000e-01 : f32
    %139 = vector.broadcast %cst_62 : f32 to vector<128x256xf32>
    %140 = arith.mulf %139, %102 : vector<128x256xf32>
    %cst_63 = arith.constant 1.000000e+00 : f32
    %141 = vector.broadcast %cst_63 : f32 to vector<128x256xf32>
    %142 = arith.addf %141, %138 : vector<128x256xf32>
    %143 = arith.mulf %140, %142 : vector<128x256xf32>
    %144 = arith.mulf %143, %103 : vector<128x256xf32>
    %145 = arith.truncf %144 : vector<128x256xf32> to vector<128x256xbf16>
    %cst_64 = arith.constant dense<0.000000e+00> : vector<64x256xf32>
    %146 = tpu.matmul %2, %145, %cst_64 {dimension_numbers = #tpu.dot_dimension_numbers<[1], [0], [0], [1], [0, 0, 1, 1], [], []>} : vector<64x128xbf16>, vector<128x256xbf16>, vector<64x256xf32> -> vector<64x256xf32>
    %c0_65 = arith.constant 0 : index
    %c0_66 = arith.constant 0 : index
    %c0_67 = arith.constant 0 : index
    %147 = vector.load %arg6[%c0_65, %c0_66, %c0_67] : memref<2x64x256xf32, #tpu.memory_space<vmem>>, vector<1x64x256xf32>
    %148 = vector.shape_cast %147 : vector<1x64x256xf32> to vector<64x256xf32>
    %149 = vector.shape_cast %146 : vector<64x256xf32> to vector<1x64x256xf32>
    tpu.vector_store %arg6[%c0_65, %c0_66, %c0_67], %149 {strides = array<i32>} : memref<2x64x256xf32, #tpu.memory_space<vmem>>, vector<1x64x256xf32>,
    %c1_68 = arith.constant 1 : index
    %c0_69 = arith.constant 0 : index
    %c0_70 = arith.constant 0 : index
    %150 = vector.load %arg1[%c1_68, %c0_69, %c0_70] : memref<2x64x256xbf16, #tpu.memory_space<vmem>>, vector<1x64x256xbf16>
    %151 = vector.shape_cast %150 : vector<1x64x256xbf16> to vector<64x256xbf16>
    %152 = vector.extract_strided_slice %151 {offsets = [0, 239], sizes = [64, 17], strides = [1, 1]} : vector<64x256xbf16> to vector<64x17xbf16>
    %153 = vector.extract_strided_slice %151 {offsets = [0, 0], sizes = [64, 239], strides = [1, 1]} : vector<64x256xbf16> to vector<64x239xbf16>
    %154 = tpu.concatenate %152, %153 in 1 : vector<64x17xbf16>, vector<64x239xbf16> -> vector<64x256xbf16>
    %cst_71 = arith.constant 0.000000e+00 : bf16
    %155 = vector.broadcast %cst_71 : bf16 to vector<64x256xbf16>
    %156 = vector.shape_cast %5 : vector<1x256xi1> to vector<1x256xi1>
    %157 = vector.broadcast %156 : vector<1x256xi1> to vector<64x256xi1>
    %158 = arith.select %157, %154, %155 : vector<64x256xi1>, vector<64x256xbf16>
    %c0_72 = arith.constant 0 : index
    %c0_73 = arith.constant 0 : index
    %159 = vector.load %arg7[%c0_72, %c0_73] : memref<576x256xbf16, #tpu.memory_space<vmem>>, vector<64x256xbf16>
    tpu.vector_store %arg7[%c0_72, %c0_73], %158 {strides = array<i32>} : memref<576x256xbf16, #tpu.memory_space<vmem>>, vector<64x256xbf16>,
    %160 = vector.extract_strided_slice %151 {offsets = [0, 240], sizes = [64, 16], strides = [1, 1]} : vector<64x256xbf16> to vector<64x16xbf16>
    %161 = vector.extract_strided_slice %151 {offsets = [0, 0], sizes = [64, 240], strides = [1, 1]} : vector<64x256xbf16> to vector<64x240xbf16>
    %162 = tpu.concatenate %160, %161 in 1 : vector<64x16xbf16>, vector<64x240xbf16> -> vector<64x256xbf16>
    %cst_74 = arith.constant 0.000000e+00 : bf16
    %163 = vector.broadcast %cst_74 : bf16 to vector<64x256xbf16>
    %164 = vector.shape_cast %8 : vector<1x256xi1> to vector<1x256xi1>
    %165 = vector.broadcast %164 : vector<1x256xi1> to vector<64x256xi1>
    %166 = arith.select %165, %162, %163 : vector<64x256xi1>, vector<64x256xbf16>
    %c64_75 = arith.constant 64 : index
    %c0_76 = arith.constant 0 : index
    %167 = vector.load %arg7[%c64_75, %c0_76] : memref<576x256xbf16, #tpu.memory_space<vmem>>, vector<64x256xbf16>
    tpu.vector_store %arg7[%c64_75, %c0_76], %166 {strides = array<i32>} : memref<576x256xbf16, #tpu.memory_space<vmem>>, vector<64x256xbf16>,
    %168 = vector.extract_strided_slice %151 {offsets = [0, 241], sizes = [64, 15], strides = [1, 1]} : vector<64x256xbf16> to vector<64x15xbf16>
    %169 = vector.extract_strided_slice %151 {offsets = [0, 0], sizes = [64, 241], strides = [1, 1]} : vector<64x256xbf16> to vector<64x241xbf16>
    %170 = tpu.concatenate %168, %169 in 1 : vector<64x15xbf16>, vector<64x241xbf16> -> vector<64x256xbf16>
    %cst_77 = arith.constant 0.000000e+00 : bf16
    %171 = vector.broadcast %cst_77 : bf16 to vector<64x256xbf16>
    %172 = vector.shape_cast %11 : vector<1x256xi1> to vector<1x256xi1>
    %173 = vector.broadcast %172 : vector<1x256xi1> to vector<64x256xi1>
    %174 = arith.select %173, %170, %171 : vector<64x256xi1>, vector<64x256xbf16>
    %c128_78 = arith.constant 128 : index
    %c0_79 = arith.constant 0 : index
    %175 = vector.load %arg7[%c128_78, %c0_79] : memref<576x256xbf16, #tpu.memory_space<vmem>>, vector<64x256xbf16>
    tpu.vector_store %arg7[%c128_78, %c0_79], %174 {strides = array<i32>} : memref<576x256xbf16, #tpu.memory_space<vmem>>, vector<64x256xbf16>,
    %176 = vector.extract_strided_slice %151 {offsets = [0, 255], sizes = [64, 1], strides = [1, 1]} : vector<64x256xbf16> to vector<64x1xbf16>
    %177 = vector.extract_strided_slice %151 {offsets = [0, 0], sizes = [64, 255], strides = [1, 1]} : vector<64x256xbf16> to vector<64x255xbf16>
    %178 = tpu.concatenate %176, %177 in 1 : vector<64x1xbf16>, vector<64x255xbf16> -> vector<64x256xbf16>
    %cst_80 = arith.constant 0.000000e+00 : bf16
    %179 = vector.broadcast %cst_80 : bf16 to vector<64x256xbf16>
    %180 = vector.shape_cast %14 : vector<1x256xi1> to vector<1x256xi1>
    %181 = vector.broadcast %180 : vector<1x256xi1> to vector<64x256xi1>
    %182 = arith.select %181, %178, %179 : vector<64x256xi1>, vector<64x256xbf16>
    %c192_81 = arith.constant 192 : index
    %c0_82 = arith.constant 0 : index
    %183 = vector.load %arg7[%c192_81, %c0_82] : memref<576x256xbf16, #tpu.memory_space<vmem>>, vector<64x256xbf16>
    tpu.vector_store %arg7[%c192_81, %c0_82], %182 {strides = array<i32>} : memref<576x256xbf16, #tpu.memory_space<vmem>>, vector<64x256xbf16>,
    %cst_83 = arith.constant 0.000000e+00 : bf16
    %184 = vector.broadcast %cst_83 : bf16 to vector<64x256xbf16>
    %185 = vector.shape_cast %17 : vector<1x256xi1> to vector<1x256xi1>
    %186 = vector.broadcast %185 : vector<1x256xi1> to vector<64x256xi1>
    %187 = arith.select %186, %151, %184 : vector<64x256xi1>, vector<64x256xbf16>
    %c256_84 = arith.constant 256 : index
    %c0_85 = arith.constant 0 : index
    %188 = vector.load %arg7[%c256_84, %c0_85] : memref<576x256xbf16, #tpu.memory_space<vmem>>, vector<64x256xbf16>
    tpu.vector_store %arg7[%c256_84, %c0_85], %187 {strides = array<i32>} : memref<576x256xbf16, #tpu.memory_space<vmem>>, vector<64x256xbf16>,
    %189 = vector.extract_strided_slice %151 {offsets = [0, 1], sizes = [64, 255], strides = [1, 1]} : vector<64x256xbf16> to vector<64x255xbf16>
    %190 = vector.extract_strided_slice %151 {offsets = [0, 0], sizes = [64, 1], strides = [1, 1]} : vector<64x256xbf16> to vector<64x1xbf16>
    %191 = tpu.concatenate %189, %190 in 1 : vector<64x255xbf16>, vector<64x1xbf16> -> vector<64x256xbf16>
    %cst_86 = arith.constant 0.000000e+00 : bf16
    %192 = vector.broadcast %cst_86 : bf16 to vector<64x256xbf16>
    %193 = vector.shape_cast %20 : vector<1x256xi1> to vector<1x256xi1>
    %194 = vector.broadcast %193 : vector<1x256xi1> to vector<64x256xi1>
    %195 = arith.select %194, %191, %192 : vector<64x256xi1>, vector<64x256xbf16>
    %c320_87 = arith.constant 320 : index
    %c0_88 = arith.constant 0 : index
    %196 = vector.load %arg7[%c320_87, %c0_88] : memref<576x256xbf16, #tpu.memory_space<vmem>>, vector<64x256xbf16>
    tpu.vector_store %arg7[%c320_87, %c0_88], %195 {strides = array<i32>} : memref<576x256xbf16, #tpu.memory_space<vmem>>, vector<64x256xbf16>,
    %197 = vector.extract_strided_slice %151 {offsets = [0, 15], sizes = [64, 241], strides = [1, 1]} : vector<64x256xbf16> to vector<64x241xbf16>
    %198 = vector.extract_strided_slice %151 {offsets = [0, 0], sizes = [64, 15], strides = [1, 1]} : vector<64x256xbf16> to vector<64x15xbf16>
    %199 = tpu.concatenate %197, %198 in 1 : vector<64x241xbf16>, vector<64x15xbf16> -> vector<64x256xbf16>
    %cst_89 = arith.constant 0.000000e+00 : bf16
    %200 = vector.broadcast %cst_89 : bf16 to vector<64x256xbf16>
    %201 = vector.shape_cast %23 : vector<1x256xi1> to vector<1x256xi1>
    %202 = vector.broadcast %201 : vector<1x256xi1> to vector<64x256xi1>
    %203 = arith.select %202, %199, %200 : vector<64x256xi1>, vector<64x256xbf16>
    %c384_90 = arith.constant 384 : index
    %c0_91 = arith.constant 0 : index
    %204 = vector.load %arg7[%c384_90, %c0_91] : memref<576x256xbf16, #tpu.memory_space<vmem>>, vector<64x256xbf16>
    tpu.vector_store %arg7[%c384_90, %c0_91], %203 {strides = array<i32>} : memref<576x256xbf16, #tpu.memory_space<vmem>>, vector<64x256xbf16>,
    %205 = vector.extract_strided_slice %151 {offsets = [0, 16], sizes = [64, 240], strides = [1, 1]} : vector<64x256xbf16> to vector<64x240xbf16>
    %206 = vector.extract_strided_slice %151 {offsets = [0, 0], sizes = [64, 16], strides = [1, 1]} : vector<64x256xbf16> to vector<64x16xbf16>
    %207 = tpu.concatenate %205, %206 in 1 : vector<64x240xbf16>, vector<64x16xbf16> -> vector<64x256xbf16>
    %cst_92 = arith.constant 0.000000e+00 : bf16
    %208 = vector.broadcast %cst_92 : bf16 to vector<64x256xbf16>
    %209 = vector.shape_cast %26 : vector<1x256xi1> to vector<1x256xi1>
    %210 = vector.broadcast %209 : vector<1x256xi1> to vector<64x256xi1>
    %211 = arith.select %210, %207, %208 : vector<64x256xi1>, vector<64x256xbf16>
    %c448_93 = arith.constant 448 : index
    %c0_94 = arith.constant 0 : index
    %212 = vector.load %arg7[%c448_93, %c0_94] : memref<576x256xbf16, #tpu.memory_space<vmem>>, vector<64x256xbf16>
    tpu.vector_store %arg7[%c448_93, %c0_94], %211 {strides = array<i32>} : memref<576x256xbf16, #tpu.memory_space<vmem>>, vector<64x256xbf16>,
    %213 = vector.extract_strided_slice %151 {offsets = [0, 17], sizes = [64, 239], strides = [1, 1]} : vector<64x256xbf16> to vector<64x239xbf16>
    %214 = vector.extract_strided_slice %151 {offsets = [0, 0], sizes = [64, 17], strides = [1, 1]} : vector<64x256xbf16> to vector<64x17xbf16>
    %215 = tpu.concatenate %213, %214 in 1 : vector<64x239xbf16>, vector<64x17xbf16> -> vector<64x256xbf16>
    %cst_95 = arith.constant 0.000000e+00 : bf16
    %216 = vector.broadcast %cst_95 : bf16 to vector<64x256xbf16>
    %217 = vector.shape_cast %29 : vector<1x256xi1> to vector<1x256xi1>
    %218 = vector.broadcast %217 : vector<1x256xi1> to vector<64x256xi1>
    %219 = arith.select %218, %215, %216 : vector<64x256xi1>, vector<64x256xbf16>
    %c512_96 = arith.constant 512 : index
    %c0_97 = arith.constant 0 : index
    %220 = vector.load %arg7[%c512_96, %c0_97] : memref<576x256xbf16, #tpu.memory_space<vmem>>, vector<64x256xbf16>
    tpu.vector_store %arg7[%c512_96, %c0_97], %219 {strides = array<i32>} : memref<576x256xbf16, #tpu.memory_space<vmem>>, vector<64x256xbf16>,
    %c0_98 = arith.constant 0 : index
    %c0_99 = arith.constant 0 : index
    %221 = vector.load %arg7[%c0_98, %c0_99] : memref<576x256xbf16, #tpu.memory_space<vmem>>, vector<576x256xbf16>
    %cst_100 = arith.constant dense<0.000000e+00> : vector<128x256xf32>
    %222 = tpu.matmul %0, %221, %cst_100 {dimension_numbers = #tpu.dot_dimension_numbers<[1], [0], [0], [1], [0, 0, 1, 1], [], []>} : vector<128x576xbf16>, vector<576x256xbf16>, vector<128x256xf32> -> vector<128x256xf32>
    %cst_101 = arith.constant dense<0.000000e+00> : vector<128x256xf32>
    %223 = tpu.matmul %1, %221, %cst_101 {dimension_numbers = #tpu.dot_dimension_numbers<[1], [0], [0], [1], [0, 0, 1, 1], [], []>} : vector<128x576xbf16>, vector<576x256xbf16>, vector<128x256xf32> -> vector<128x256xf32>
    %cst_102 = arith.constant 0.707106769 : f32
    %224 = vector.broadcast %cst_102 : f32 to vector<128x256xf32>
    %225 = arith.mulf %222, %224 : vector<128x256xf32>
    %226 = math.absf %225 : vector<128x256xf32>
    %cst_103 = arith.constant 0.327591091 : f32
    %227 = vector.broadcast %cst_103 : f32 to vector<128x256xf32>
    %228 = arith.mulf %227, %226 : vector<128x256xf32>
    %cst_104 = arith.constant 1.000000e+00 : f32
    %229 = vector.broadcast %cst_104 : f32 to vector<128x256xf32>
    %230 = arith.addf %229, %228 : vector<128x256xf32>
    %cst_105 = arith.constant 1.000000e+00 : f32
    %231 = vector.broadcast %cst_105 : f32 to vector<128x256xf32>
    %232 = arith.divf %231, %230 : vector<128x256xf32>
    %cst_106 = arith.constant 1.06140542 : f32
    %233 = vector.broadcast %cst_106 : f32 to vector<128x256xf32>
    %234 = arith.mulf %233, %232 : vector<128x256xf32>
    %cst_107 = arith.constant 1.45315206 : f32
    %235 = vector.broadcast %cst_107 : f32 to vector<128x256xf32>
    %236 = arith.subf %234, %235 : vector<128x256xf32>
    %237 = arith.mulf %236, %232 : vector<128x256xf32>
    %cst_108 = arith.constant 1.42141378 : f32
    %238 = vector.broadcast %cst_108 : f32 to vector<128x256xf32>
    %239 = arith.addf %237, %238 : vector<128x256xf32>
    %240 = arith.mulf %239, %232 : vector<128x256xf32>
    %cst_109 = arith.constant 0.284496725 : f32
    %241 = vector.broadcast %cst_109 : f32 to vector<128x256xf32>
    %242 = arith.subf %240, %241 : vector<128x256xf32>
    %243 = arith.mulf %242, %232 : vector<128x256xf32>
    %cst_110 = arith.constant 0.254829586 : f32
    %244 = vector.broadcast %cst_110 : f32 to vector<128x256xf32>
    %245 = arith.addf %243, %244 : vector<128x256xf32>
    %246 = arith.mulf %245, %232 : vector<128x256xf32>
    %cst_111 = arith.constant 0.000000e+00 : f32
    %247 = vector.broadcast %cst_111 : f32 to vector<128x256xf32>
    %248 = arith.subf %247, %226 : vector<128x256xf32>
    %249 = arith.mulf %248, %226 : vector<128x256xf32>
    %250 = math.exp %249 : vector<128x256xf32>
    %251 = arith.mulf %246, %250 : vector<128x256xf32>
    %cst_112 = arith.constant 1.000000e+00 : f32
    %252 = vector.broadcast %cst_112 : f32 to vector<128x256xf32>
    %253 = arith.subf %252, %251 : vector<128x256xf32>
    %cst_113 = arith.constant 0.000000e+00 : f32
    %254 = vector.broadcast %cst_113 : f32 to vector<128x256xf32>
    %255 = arith.cmpf oge, %225, %254 : vector<128x256xf32>
    %cst_114 = arith.constant 0.000000e+00 : f32
    %256 = vector.broadcast %cst_114 : f32 to vector<128x256xf32>
    %257 = arith.subf %256, %253 : vector<128x256xf32>
    %258 = arith.select %255, %253, %257 : vector<128x256xi1>, vector<128x256xf32>
    %cst_115 = arith.constant 5.000000e-01 : f32
    %259 = vector.broadcast %cst_115 : f32 to vector<128x256xf32>
    %260 = arith.mulf %259, %222 : vector<128x256xf32>
    %cst_116 = arith.constant 1.000000e+00 : f32
    %261 = vector.broadcast %cst_116 : f32 to vector<128x256xf32>
    %262 = arith.addf %261, %258 : vector<128x256xf32>
    %263 = arith.mulf %260, %262 : vector<128x256xf32>
    %264 = arith.mulf %263, %223 : vector<128x256xf32>
    %265 = arith.truncf %264 : vector<128x256xf32> to vector<128x256xbf16>
    %cst_117 = arith.constant dense<0.000000e+00> : vector<64x256xf32>
    %266 = tpu.matmul %2, %265, %cst_117 {dimension_numbers = #tpu.dot_dimension_numbers<[1], [0], [0], [1], [0, 0, 1, 1], [], []>} : vector<64x128xbf16>, vector<128x256xbf16>, vector<64x256xf32> -> vector<64x256xf32>
    %c1_118 = arith.constant 1 : index
    %c0_119 = arith.constant 0 : index
    %c0_120 = arith.constant 0 : index
    %267 = vector.load %arg6[%c1_118, %c0_119, %c0_120] : memref<2x64x256xf32, #tpu.memory_space<vmem>>, vector<1x64x256xf32>
    %268 = vector.shape_cast %267 : vector<1x64x256xf32> to vector<64x256xf32>
    %269 = vector.shape_cast %266 : vector<64x256xf32> to vector<1x64x256xf32>
    tpu.vector_store %arg6[%c1_118, %c0_119, %c0_120], %269 {strides = array<i32>} : memref<2x64x256xf32, #tpu.memory_space<vmem>>, vector<1x64x256xf32>,
    return
  }
  func.func @transform_0(%arg0: i32) -> (i32, i32, i32) {
    %c0_i32 = arith.constant 0 : i32
    %c0_i32_0 = arith.constant 0 : i32
    %c0_i32_1 = arith.constant 0 : i32
    return %arg0, %c0_i32, %c0_i32_0 : i32, i32, i32
  }
  func.func @transform_1(%arg0: i32) -> (i32, i32) {
    %c0_i32 = arith.constant 0 : i32
    %c0_i32_0 = arith.constant 0 : i32
    %c0_i32_1 = arith.constant 0 : i32
    return %c0_i32, %c0_i32_0 : i32, i32
  }
  func.func @transform_2(%arg0: i32) -> (i32, i32) {
    %c0_i32 = arith.constant 0 : i32
    %c0_i32_0 = arith.constant 0 : i32
    %c0_i32_1 = arith.constant 0 : i32
    return %c0_i32, %c0_i32_0 : i32, i32
  }
  func.func @transform_3(%arg0: i32) -> (i32, i32) {
    %c0_i32 = arith.constant 0 : i32
    %c0_i32_0 = arith.constant 0 : i32
    %c0_i32_1 = arith.constant 0 : i32
    return %c0_i32, %c0_i32_0 : i32, i32
  }
  func.func @transform_4(%arg0: i32) -> (i32, i32) {
    %c0_i32 = arith.constant 0 : i32
    %c0_i32_0 = arith.constant 0 : i32
    %c0_i32_1 = arith.constant 0 : i32
    return %c0_i32, %c0_i32_0 : i32, i32
  }
  func.func @transform_5(%arg0: i32) -> (i32, i32, i32) {
    %c0_i32 = arith.constant 0 : i32
    %c0_i32_0 = arith.constant 0 : i32
    %c0_i32_1 = arith.constant 0 : i32
    return %arg0, %c0_i32, %c0_i32_0 : i32, i32, i32
  }
}

</mosaic_0001>

<bundles_post_ra>
// kernel: mlp_base.1
= control target key start
LH: loop header
LB: loop body
LE: loop exit
PB: predicated region body
PF: predicated region fallthrough
CT: control target
= control target key end

     0   :  { %v236_v0 = vlaneseq  ;;  %s7927_s26 = smov 127   ;;  %v13441_v19 = vmov 0   ;;  %v13764_v25 = vmov 0  ;;  %s7929_s12 = smov 16   ;;  %vm13448_vm9 = vcmask 1039360   ;;  %s13434_s0 = inlined_call_operand.vmem [shape: bf16[2,64,256], index: 0, kind: input, shape index: {}]   ;;  %s13435_s1 = inlined_call_operand.vmem [shape: f32[9,256], index: 1, kind: input, shape index: {}]   ;;  %s13436_s2 = inlined_call_operand.vmem [shape: bf16[128,576], index: 2, kind: input, shape index: {}]   ;;  %s13437_s3 = inlined_call_operand.vmem [shape: bf16[128,576], index: 3, kind: input, shape index: {}]   ;;  %s13438_s4 = inlined_call_operand.vmem [shape: bf16[64,128], index: 4, kind: input, shape index: {}]   ;;  %s13439_s5 = inlined_call_operand.vmem [shape: f32[2,64,256], index: 5, kind: output, shape index: {}]  }
   0x1   :  { %v159_v1 = vld [vmem:[%s13434_s0 + $0x30] sm:$0xff]  ;;  %v160_v2 = vld [vmem:[%s13434_s0 + $0x38] sm:$0xff]  ;;  %v157_v3 = vld [vmem:[%s13434_s0 + $0x20] sm:$0xff]  ;;  %s7930_s13 = smov 112   ;;  %s7931_s14 = smov 17   ;;  %v13767_v59 = vmov 0 }
   0x2   :  { %v7975_v4 = vcombine.low %v159_v1, %v160_v2  ;;  %v158_v5 = vld [vmem:[%s13434_s0 + $0x28] sm:$0xff]  ;;  %v7984_v7 = vcombine.high %v159_v1, %v160_v2  ;;  %v7986_v8 = vshrl.u32 %v236_v0, 7  ;;  %v155_v10 = vld [vmem:[%s13434_s0 + $0x10] sm:$0xff]  ;;  %v156_v11 = vld [vmem:[%s13434_s0 + $0x18] sm:$0xff]  ;;  %s7932_s15 = smov 113   ;;  %s7933_s18 = smov 1  }
   0x3   :  { %v7980_v6 = vcombine.low %v157_v3, %v158_v5  ;;  %v7990_v9 = vcombine.high %v157_v3, %v158_v5  ;;  %v6717_v12 = vld [vmem:[%s13435_s1 + $0x4] ss:$8 sm:$0x3]  ;;  %v8003_v13 = vcombine.low %v155_v10, %v156_v11  ;;  %v8013_v16 = vcombine.high %v155_v10, %v156_v11  ;;  %v6718_v43 = vld [vmem:[%s13435_s1 + $0x5] ss:$8 sm:$0x3] }
   0x4   :  { %717 = vrot.lane.b32.xlu0 %v7975_v4, %s7927_s26  ;;  %v8006_v14 = vsub.s32 0, %v7986_v8  ;;  %v8009_v15 = vsub.s32 1, %v7986_v8  ;;  %vm140_vm0 = vcmp.ne.f32.partialorder %v6717_v12, 0.0  ;;  %v153_v17 = vld [vmem:[%s13434_s0] sm:$0xff]  ;;  %v154_v18 = vld [vmem:[%s13434_s0 + $0x8] sm:$0xff]  ;;  %vm143_vm4 = vcmp.ne.f32.partialorder %v6718_v43, 0.0 }
   0x5   :  { %713 = vrot.lane.b32.xlu1 %v7980_v6, %s7927_s26  ;;  %v677_v20 = vsel %vm140_vm0, 1, %v13441_v19  ;;  %v8026_v23 = vcombine.low %v153_v17, %v154_v18  ;;  %v8030_v24 = vcombine.high %v153_v17, %v154_v18  ;;  %v7457_v42 = vld [vmem:[%s13436_s2 + $0xc] ss:$20 sps:$4 sm:$0xff]   ;;  %s7934_s21 = smov 15   ;;  %v747_v44 = vsel %vm143_vm4, 1, %v13441_v19  ;;  %s7935_s27 = smov 111  }
   0x6   :  { %v681_v21 = vrot.slane %v677_v20, %v8006_v14  ;;  %v685_v22 = vrot.slane %v677_v20, %v8009_v15  ;;  %1991 = vmatprep.mubr.bf16.mxu1 %v7457_v42  ;;  %v7469_v45 = vld [vmem:[%s13436_s2 + $0x4] ss:$20 sps:$4 sm:$0xff]   ;;  %v751_v46 = vrot.slane %v747_v44, %v8006_v14  ;;  %v755_v47 = vrot.slane %v747_v44, %v8009_v15  ;;  %v6714_v48 = vld [vmem:[%s13435_s1 + $0x1] ss:$8 sm:$0x3] }
   0x7   :  { %1878 = vmatprep.mubr.bf16.mxu0 %v7469_v45  ;;  %vm131_vm8 = vcmp.ne.f32.partialorder %v6714_v48, 0.0  ;;  %v8184_v49 = vsub.s32 4, %v7986_v8  ;;  %v6720_v58 = vld [vmem:[%s13435_s1 + $0x7] ss:$8 sm:$0x3]  ;;  %v13770_v60 = vmov 0 }
   0x8   :  { %719 = vrot.lane.b32.xlu0 %v7984_v7, %s7927_s26  ;;  %vm686_vm1 = vcmp.eq.s32.totalorder %v681_v21, 1  ;;  %vm687_vm2 = vcmp.eq.s32.totalorder %v685_v22, 1  ;;  %vm756_vm5 = vcmp.eq.s32.totalorder %v751_v46, 1  ;;  %vm757_vm6 = vcmp.eq.s32.totalorder %v755_v47, 1 }
   0x9   :  { %715 = vrot.lane.b32.xlu1 %v7990_v9, %s7927_s26  ;;  %vm8032_vm3 = vmpackc.low %vm687_vm2, %vm686_vm1  ;;  %v356_v51 = vsel %vm131_vm8, 1, %v13441_v19  ;;  %vm149_vm14 = vcmp.ne.f32.partialorder %v6720_v58, 0.0  ;;  %vm13445_vm0 = vcmask 130048   ;;  %v127_v43 = vld [vmem:[%s13435_s1] ss:$8 sm:$0x3] }
   0xa   :  { %v13765_v25 = vsel %vm8032_vm3, 4294967295, %v13764_v25  ;;  %v695_v26 = vsel %vm8032_vm3, %v159_v1, 0  ;;  %v696_v27 = vsel %vm8032_vm3, %v160_v2, 0  ;;  %v693_v30 = vsel %vm8032_vm3, %v157_v3, 0  ;;  %vm758_vm7 = vmpackc.low %vm757_vm6, %vm756_vm5 }
   0xb   :  { %13766 = vst [vmem:[#allocation3_spill] sm:$0xff] %v13765_v25  ;;  %v8042_v28 = vcombine.high %v695_v26, %v696_v27  ;;  %v8044_v29 = vcombine.low %v695_v26, %v696_v27  ;;  %v694_v31 = vsel %vm8032_vm3, %v158_v5, 0  ;;  %v691_v34 = vsel %vm8032_vm3, %v155_v10, 0 }
   0xc   :  { %709 = vrot.lane.b32.xlu0 %v8003_v13, %s7927_s26  ;;  %v8052_v32 = vcombine.high %v693_v30, %v694_v31  ;;  %v8054_v33 = vcombine.low %v693_v30, %v694_v31  ;;  %v692_v35 = vsel %vm8032_vm3, %v156_v11, 0  ;;  %v689_v38 = vsel %vm8032_vm3, %v153_v17, 0 }
   0xd   :  { %711 = vrot.lane.b32.xlu1 %v8013_v16, %s7927_s26  ;;  %v8060_v36 = vcombine.high %v691_v34, %v692_v35  ;;  %v8062_v37 = vcombine.low %v691_v34, %v692_v35  ;;  %v690_v39 = vsel %vm8032_vm3, %v154_v18, 0  ;;  %v759_v50 = vsel %vm758_vm7, 65537, %v13441_v19 }
   0xe   :  { %v8072_v40 = vcombine.high %v689_v38, %v690_v39  ;;  %v8076_v41 = vcombine.low %v689_v38, %v690_v39  ;;  %v767_v52 = vrot.slane %v759_v50, %v8184_v49  ;;  %v763_v53 = vrot.slane %v759_v50, %v8006_v14 }
   0xf   :  { %v360_v54 = vrot.slane %v356_v51, %v8006_v14  ;;  %v364_v55 = vrot.slane %v356_v51, %v8009_v15  ;;  %v13781_v31 = vmov 0  ;;  %v13784_v34 = vmov 0  ;;  %v6719_v51 = vld [vmem:[%s13435_s1 + $0x6] ss:$8 sm:$0x3] }
  0x10   :  { %705 = vrot.lane.b32.xlu0 %v8026_v23, %s7927_s26  ;;  %vm8203_vm10 = vcmp.ne.s16.totalorder %v767_v52, 0  ;;  %vm8207_vm11 = vcmp.ne.s16.totalorder %v763_v53, 0  ;;  %vm128_vm7 = vcmp.ne.f32.partialorder %v127_v43, 0.0  ;;  %vm146_vm8 = vcmp.ne.f32.partialorder %v6719_v51, 0.0 }
  0x11   :  { %707 = vrot.lane.b32.xlu1 %v8030_v24, %s7927_s26  ;;  %v13768_v59 = vsel %vm8203_vm10, 4294967295, %v13767_v59  ;;  %v13771_v60 = vsel %vm8207_vm11, 4294967295, %v13770_v60  ;;  %vm8211_vm12 = vcmp.eq.s32.totalorder %v360_v54, 1  ;;  %vm8215_vm13 = vcmp.eq.s32.totalorder %v364_v55, 1 }
  0x12   :  { %13769 = vst [vmem:[#allocation4_spill] sm:$0xff] %v13768_v59  ;;  %13772 = vst [vmem:[#allocation5_spill] sm:$0xff] %v13771_v60  ;;  %v235_v54 = vsel %vm128_vm7, 1, %v13441_v19  ;;  %v7035_v60 = vld [vmem:[%s13434_s0 + $0x68] sm:$0xff] }
  0x13   :  { %vm367_vm15 = vmpackc.low %vm8215_vm13, %vm8211_vm12  ;;  %v239_v62 = vrot.slane %v235_v54, %v8006_v14  ;;  %vm13440_vm12 = vcmask 916480  }
  0x14   :  { %320 = vrot.lane.b32.xlu0 %v7984_v7, %s7929_s12 }
  0x15   :  { %328 = vrot.lane.b32.xlu1 %v7975_v4, %s7929_s12 }
  0x18   :  { %959 = vrot.lane.b32.xlu0 %v7975_v4, %s7930_s13 }
  0x19   :  { %961 = vrot.lane.b32.xlu1 %v7984_v7, %s7930_s13 }
  0x1c   :  { %318 = vrot.lane.b32.xlu0 %v7990_v9, %s7929_s12 }
  0x1d   :  { %326 = vrot.lane.b32.xlu1 %v7980_v6, %s7929_s12 }
  0x20   :  { %955 = vrot.lane.b32.xlu0 %v7980_v6, %s7930_s13 }
  0x21   :  { %957 = vrot.lane.b32.xlu1 %v7990_v9, %s7930_s13 }
  0x24   :  { %316 = vrot.lane.b32.xlu0 %v8013_v16, %s7929_s12 }
  0x25   :  { %324 = vrot.lane.b32.xlu1 %v8003_v13, %s7929_s12 }
  0x28   :  { %951 = vrot.lane.b32.xlu0 %v8003_v13, %s7930_s13 }
  0x29   :  { %953 = vrot.lane.b32.xlu1 %v8013_v16, %s7930_s13 }
  0x2c   :  { %314 = vrot.lane.b32.xlu0 %v8030_v24, %s7929_s12 }
  0x2d   :  { %322 = vrot.lane.b32.xlu1 %v8026_v23, %s7929_s12 }
  0x30   :  { %947 = vrot.lane.b32.xlu0 %v8026_v23, %s7930_s13 }
  0x31   :  { %949 = vrot.lane.b32.xlu1 %v8030_v24, %s7930_s13 }
  0x34   :  { %187 = vrot.lane.b32.xlu0 %v7984_v7, %s7931_s14 }
  0x35   :  { %207 = vrot.lane.b32.xlu1 %v7975_v4, %s7931_s14 }
  0x38   :  { %838 = vrot.lane.b32.xlu0 %v7975_v4, %s7932_s15 }
  0x39   :  { %840 = vrot.lane.b32.xlu1 %v7984_v7, %s7932_s15 }
  0x3c   :  { %185 = vrot.lane.b32.xlu0 %v7990_v9, %s7931_s14 }
  0x3d   :  { %205 = vrot.lane.b32.xlu1 %v7980_v6, %s7931_s14 }
  0x40   :  { %834 = vrot.lane.b32.xlu0 %v7980_v6, %s7932_s15 }
  0x41   :  { %836 = vrot.lane.b32.xlu1 %v7990_v9, %s7932_s15 }
  0x44   :  { %183 = vrot.lane.b32.xlu0 %v8013_v16, %s7931_s14 }
  0x45   :  { %203 = vrot.lane.b32.xlu1 %v8003_v13, %s7931_s14 }
  0x48   :  { %830 = vrot.lane.b32.xlu0 %v8003_v13, %s7932_s15 }
  0x49   :  { %832 = vrot.lane.b32.xlu1 %v8013_v16, %s7932_s15 }
  0x4c   :  { %181 = vrot.lane.b32.xlu0 %v8030_v24, %s7931_s14 }
  0x4d   :  { %201 = vrot.lane.b32.xlu1 %v8026_v23, %s7931_s14 }
  0x50   :  { %826 = vrot.lane.b32.xlu0 %v8026_v23, %s7932_s15 }
  0x51   :  { %828 = vrot.lane.b32.xlu1 %v8030_v24, %s7932_s15 }
  0x54   :  { %562 = vrot.lane.b32.xlu0 %v7984_v7, %s7933_s18 }
  0x55   :  { %570 = vrot.lane.b32.xlu1 %v7975_v4, %s7933_s18 }
  0x58   :  { %560 = vrot.lane.b32.xlu0 %v7990_v9, %s7933_s18 }
  0x59   :  { %568 = vrot.lane.b32.xlu1 %v7980_v6, %s7933_s18 }
  0x5c   :  { %558 = vrot.lane.b32.xlu0 %v8013_v16, %s7933_s18 }
  0x5d   :  { %566 = vrot.lane.b32.xlu1 %v8003_v13, %s7933_s18 }
  0x60   :  { %556 = vrot.lane.b32.xlu0 %v8030_v24, %s7933_s18 }
  0x61   :  { %564 = vrot.lane.b32.xlu1 %v8026_v23, %s7933_s18 }
  0x64   :  { %441 = vrot.lane.b32.xlu0 %v7984_v7, %s7934_s21 }
  0x65   :  { %449 = vrot.lane.b32.xlu1 %v7975_v4, %s7934_s21 }
  0x68   :  { %439 = vrot.lane.b32.xlu0 %v7990_v9, %s7934_s21 }
  0x69   :  { %447 = vrot.lane.b32.xlu1 %v7980_v6, %s7934_s21 }
  0x6c   :  { %437 = vrot.lane.b32.xlu0 %v8013_v16, %s7934_s21 }
  0x6d   :  { %445 = vrot.lane.b32.xlu1 %v8003_v13, %s7934_s21 }
  0x70   :  { %435 = vrot.lane.b32.xlu0 %v8030_v24, %s7934_s21 }
  0x71   :  { %443 = vrot.lane.b32.xlu1 %v8026_v23, %s7934_s21 }
  0x74   :  { %1080 = vrot.lane.b32.xlu0 %v7975_v4, %s7935_s27 }
  0x75   :  { %1082 = vrot.lane.b32.xlu1 %v7984_v7, %s7935_s27 }
  0x76   :  { %v718_v56 = vpop.permute.xlu0 %717 }
  0x77   :  { %v714_v57 = vpop.permute.xlu1 %713 }
  0x78   :  { %1076 = vrot.lane.b32.xlu0 %v7980_v6, %s7935_s27  ;;  %v989_v6 = vsel %vm149_vm14, 1, %v13441_v19 }
  0x79   :  { %1078 = vrot.lane.b32.xlu1 %v7990_v9, %s7935_s27  ;;  %v368_v9 = vsel %vm367_vm15, 65537, %v13441_v19  ;;  %v993_v11 = vrot.slane %v989_v6, %v8006_v14  ;;  %vm8357_vm15 = vcmp.eq.s32.totalorder %v239_v62, 1 }
  0x7a   :  { %v720_v63 = vpop.permute.xlu0 %719  ;;  %v376_v18 = vrot.slane %v368_v9, %v8184_v49  ;;  %v372_v20 = vrot.slane %v368_v9, %v8006_v14 }
  0x7b   :  { %v716_v0 = vpop.permute.xlu1 %715  ;;  %v8220_v1 = vsel %vm13448_vm9, %v720_v63, %v718_v56  ;;  %v725_v2 = vsel %vm13448_vm9, %v718_v56, %v720_v63  ;;  %vm8277_vm1 = vcmp.eq.s32.totalorder %v993_v11, 1  ;;  %v243_v63 = vrot.slane %v235_v54, %v8009_v15 }
  0x7c   :  { %7294 = vmatprep.subr.msk.bf16.mxu1 %vm8203_vm10, %v8220_v1  ;;  %1072 = vrot.lane.b32.xlu0 %v8003_v13, %s7935_s27  ;;  %v8230_v3 = vsel %vm8207_vm11, %v725_v2, 0  ;;  %v8240_v4 = vsel %vm13448_vm9, %v716_v0, %v714_v57  ;;  %v724_v5 = vsel %vm13448_vm9, %v714_v57, %v716_v0  ;;  %vm8288_vm4 = vcmp.ne.s16.totalorder %v376_v18, 0 }
  0x7d   :  { %1074 = vrot.lane.b32.xlu1 %v8013_v16, %s7935_s27  ;;  %1960 = vmatpush1.bf16.msra.mxu1 %v8230_v3  ;;  %v8252_v10 = vsel %vm8207_vm11, %v724_v5, 0  ;;  %v997_v16 = vrot.slane %v989_v6, %v8009_v15  ;;  %v13782_v31 = vsel %vm8288_vm4, 4294967295, %v13781_v31  ;;  %vm8292_vm5 = vcmp.ne.s16.totalorder %v372_v20, 0 }
  0x7e   :  { %7295 = vmatprep.subr.msk.bf16.mxu1 %vm8203_vm10, %v8240_v4  ;;  %v710_v7 = vpop.permute.xlu0 %709  ;;  %13783 = vst [vmem:[#allocation6_spill] sm:$0xff] %v13782_v31  ;;  %v13785_v34 = vsel %vm8292_vm5, 4294967295, %v13784_v34  ;;  %v868_v0 = vsel %vm146_vm8, 1, %v13441_v19  ;;  %v13787_v5 = vmov 0  ;;  %v13790_v6 = vmov 0 }
  0x7f   :  { %v712_v8 = vpop.permute.xlu1 %711  ;;  %vm8281_vm2 = vcmp.eq.s32.totalorder %v997_v16, 1  ;;  %13786 = vst [vmem:[#allocation7_spill] sm:$0xff] %v13785_v34  ;;  %v872_v16 = vrot.slane %v868_v0, %v8006_v14 }
  0x80   :  { %1068 = vrot.lane.b32.xlu0 %v8026_v23, %s7935_s27  ;;  %v8259_v12 = vsel %vm13448_vm9, %v712_v8, %v710_v7  ;;  %v723_v13 = vsel %vm13448_vm9, %v710_v7, %v712_v8  ;;  %vm1000_vm6 = vmpackc.low %vm8281_vm2, %vm8277_vm1  ;;  %vm8365_vm1 = vcmp.eq.s32.totalorder %v243_v63, 1 }
  0x81   :  { %1070 = vrot.lane.b32.xlu1 %v8030_v24, %s7935_s27  ;;  %1962 = vmatpush1.bf16.msra.mxu1 %v8252_v10  ;;  %v8270_v22 = vsel %vm8207_vm11, %v723_v13, 0  ;;  %v1001_v50 = vsel %vm1000_vm6, 65537, %v13441_v19  ;;  %vm246_vm2 = vmpackc.low %vm8365_vm1, %vm8357_vm15  ;;  %vm8400_vm6 = vcmp.eq.s32.totalorder %v872_v16, 1  ;;  %vm13478_vm15 = vcmask 138240  }
  0x82   :  { %7296 = vmatprep.subr.msk.bf16.mxu1 %vm8203_vm10, %v8259_v12  ;;  %v706_v17 = vpop.permute.xlu0 %705  ;;  %v1009_v57 = vrot.slane %v1001_v50, %v8184_v49  ;;  %v1005_v58 = vrot.slane %v1001_v50, %v8006_v14  ;;  %v13807_v13 = vmov 0 }
  0x83   :  { %v708_v21 = vpop.permute.xlu1 %707 }
  0x84   :  { %v8274_v23 = vsel %vm13448_vm9, %v708_v21, %v706_v17  ;;  %v722_v24 = vsel %vm13448_vm9, %v706_v17, %v708_v21  ;;  %vm8349_vm13 = vcmp.ne.s16.totalorder %v1009_v57, 0  ;;  %vm8353_vm14 = vcmp.ne.s16.totalorder %v1005_v58, 0 }
  0x85   :  { %1964 = vmatpush1.bf16.msra.mxu1 %v8270_v22  ;;  %v8302_v42 = vsel %vm8207_vm11, %v722_v24, 0  ;;  %v13788_v5 = vsel %vm8349_vm13, 4294967295, %v13787_v5  ;;  %v13791_v6 = vsel %vm8353_vm14, 4294967295, %v13790_v6  ;;  %v876_v21 = vrot.slane %v868_v0, %v8009_v15 }
  0x86   :  { %v321_v30 = vpop.permute.xlu0 %320  ;;  %7297 = vmatprep.subr.msk.bf16.mxu1 %vm8203_vm10, %v8274_v23  ;;  %13789 = vst [vmem:[#allocation8_spill] sm:$0xff] %v13788_v5  ;;  %13792 = vst [vmem:[#allocation9_spill] sm:$0xff] %v13791_v6 }
  0x87   :  { %v329_v35 = vpop.permute.xlu1 %328  ;;  %vm8404_vm7 = vcmp.eq.s32.totalorder %v876_v21, 1 }
  0x88   :  { %v8297_v38 = vsel %vm13445_vm0, %v329_v35, %v321_v30  ;;  %v354_v39 = vsel %vm13445_vm0, %v321_v30, %v329_v35  ;;  %vm879_vm8 = vmpackc.low %vm8404_vm7, %vm8400_vm6  ;;  %vm13477_vm6 = vcmask 924672  }
  0x89   :  { %7278 = vmatprep.subr.msk.bf16.mxu0 %vm8288_vm4, %v8297_v38  ;;  %v8316_v44 = vsel %vm8292_vm5, %v354_v39, 0  ;;  %1966 = vmatpush1.bf16.msra.mxu1 %v8302_v42  ;;  %v880_v63 = vsel %vm879_vm8, 65537, %v13441_v19 }
  0x8a   :  { %1847 = vmatpush1.bf16.msra.mxu0 %v8316_v44  ;;  %v960_v45 = vpop.permute.xlu0 %959  ;;  %1967 = vmatprep.subr.bf16.mxu1 %v8042_v28  ;;  %v888_v16 = vrot.slane %v880_v63, %v8184_v49 }
  0x8b   :  { %v962_v46 = vpop.permute.xlu1 %961 }
  0x8c   :  { %v8379_v18 = vsel %vm13440_vm12, %v962_v46, %v960_v45  ;;  %v967_v20 = vsel %vm13440_vm12, %v960_v45, %v962_v46  ;;  %vm8482_vm7 = vcmp.ne.s16.totalorder %v888_v16, 0 }
  0x8d   :  { %1968 = vmatpush1.bf16.msra.mxu1 %v8044_v29  ;;  %v8389_v27 = vsel %vm8353_vm14, %v967_v20, 0  ;;  %v884_v20 = vrot.slane %v880_v63, %v8006_v14 }
  0x8e   :  { %v319_v47 = vpop.permute.xlu0 %318  ;;  %1969 = vmatprep.subr.bf16.mxu1 %v8052_v32 }
  0x8f   :  { %v327_v48 = vpop.permute.xlu1 %326  ;;  %vm8486_vm8 = vcmp.ne.s16.totalorder %v884_v20, 0 }
  0x90   :  { %v8328_v52 = vsel %vm13445_vm0, %v327_v48, %v319_v47  ;;  %v350_v53 = vsel %vm13445_vm0, %v319_v47, %v327_v48  ;;  %v247_v47 = vsel %vm246_vm2, 65537, %v13441_v19 }
  0x91   :  { %7279 = vmatprep.subr.msk.bf16.mxu0 %vm8288_vm4, %v8328_v52  ;;  %v8337_v55 = vsel %vm8292_vm5, %v350_v53, 0  ;;  %1970 = vmatpush1.bf16.msra.mxu1 %v8054_v33  ;;  %v255_v58 = vrot.slane %v247_v47, %v8184_v49 }
  0x92   :  { %1849 = vmatpush1.bf16.msra.mxu0 %v8337_v55  ;;  %v956_v56 = vpop.permute.xlu0 %955  ;;  %1971 = vmatprep.subr.bf16.mxu1 %v8060_v36 }
  0x93   :  { %v958_v61 = vpop.permute.xlu1 %957  ;;  %vm8455_vm1 = vcmp.ne.s16.totalorder %v255_v58, 0 }
  0x94   :  { %v8397_v30 = vsel %vm13440_vm12, %v958_v61, %v956_v56  ;;  %v966_v35 = vsel %vm13440_vm12, %v956_v56, %v958_v61  ;;  %v251_v61 = vrot.slane %v247_v47, %v8006_v14 }
  0x95   :  { %1972 = vmatpush1.bf16.msra.mxu1 %v8062_v37  ;;  %v8418_v51 = vsel %vm8353_vm14, %v966_v35, 0 }
  0x96   :  { %v317_v2 = vpop.permute.xlu0 %316  ;;  %1973 = vmatprep.subr.bf16.mxu1 %v8072_v40  ;;  %vm8459_vm2 = vcmp.ne.s16.totalorder %v251_v61, 0 }
  0x97   :  { %v325_v7 = vpop.permute.xlu1 %324  ;;  %v13808_v13 = vsel %vm8459_vm2, 4294967295, %v13807_v13 }
  0x98   :  { %v8362_v9 = vsel %vm13445_vm0, %v325_v7, %v317_v2  ;;  %v346_v11 = vsel %vm13445_vm0, %v317_v2, %v325_v7  ;;  %13809 = vst [vmem:[#allocation14_spill] sm:$0xff] %v13808_v13  ;;  %v7032_v13 = vld [vmem:[%s13434_s0 + $0x50] sm:$0xff] }
  0x99   :  { %7280 = vmatprep.subr.msk.bf16.mxu0 %vm8288_vm4, %v8362_v9  ;;  %v8375_v17 = vsel %vm8292_vm5, %v346_v11, 0  ;;  %1974 = vmatpush1.bf16.msra.mxu1 %v8076_v41  ;;  %v13804_v11 = vmov 0 }
  0x9a   :  { %1851 = vmatpush1.bf16.msra.mxu0 %v8375_v17  ;;  %v952_v24 = vpop.permute.xlu0 %951  ;;  %7298 = vmatprep.subr.msk.bf16.mxu1 %vm8349_vm13, %v8379_v18  ;;  %v13805_v11 = vsel %vm8455_vm1, 4294967295, %v13804_v11 }
  0x9b   :  { %v954_v26 = vpop.permute.xlu1 %953  ;;  %13806 = vst [vmem:[#allocation13_spill] sm:$0xff] %v13805_v11 }
  0x9c   :  { %v8433_v54 = vsel %vm13440_vm12, %v954_v26, %v952_v24  ;;  %v965_v56 = vsel %vm13440_vm12, %v952_v24, %v954_v26 }
  0x9d   :  { %1976 = vmatpush2.bf16.msra.mxu1 %v8389_v27  ;;  %13801 = vst [vmem:[#allocation10_spill] sm:$0xff] %v8433_v54  ;;  %v8445_v0 = vsel %vm8353_vm14, %v965_v56, 0 }
  0x9e   :  { %v315_v45 = vpop.permute.xlu0 %314  ;;  %7299 = vmatprep.subr.msk.bf16.mxu1 %vm8349_vm13, %v8397_v30  ;;  %13802 = vst [vmem:[#allocation11_spill] sm:$0xff] %v8445_v0 }
  0x9f   :  { %v323_v46 = vpop.permute.xlu1 %322 }
  0xa0   :  { %v8413_v48 = vsel %vm13445_vm0, %v323_v46, %v315_v45  ;;  %v342_v50 = vsel %vm13445_vm0, %v315_v45, %v323_v46  ;;  %v13811_v45 = vmov 0  ;;  %v13814_v46 = vmov 0 }
  0xa1   :  { %7281 = vmatprep.subr.msk.bf16.mxu0 %vm8288_vm4, %v8413_v48  ;;  %v8429_v53 = vsel %vm8292_vm5, %v342_v50, 0  ;;  %1978 = vmatpush2.bf16.msra.mxu1 %v8418_v51  ;;  %v13812_v45 = vsel %vm8482_vm7, 4294967295, %v13811_v45  ;;  %v13815_v46 = vsel %vm8486_vm8, 4294967295, %v13814_v46  ;;  %v6716_v50 = vld [vmem:[%s13435_s1 + $0x3] ss:$8 sm:$0x3] }
  0xa2   :  { %1853 = vmatpush1.bf16.msra.mxu0 %v8429_v53  ;;  %v948_v57 = vpop.permute.xlu0 %947  ;;  %7300 = vmatprep.subr.msk.bf16.mxu1 %vm8349_vm13, %v8433_v54  ;;  %13813 = vst [vmem:[#allocation16_spill] sm:$0xff] %v13812_v45  ;;  %13816 = vst [vmem:[#allocation17_spill] sm:$0xff] %v13815_v46  ;;  %v13830_v45 = vmov 0 }
  0xa3   :  { %v950_v62 = vpop.permute.xlu1 %949 }
  0xa4   :  { %v8449_v2 = vsel %vm13440_vm12, %v950_v62, %v948_v57  ;;  %v964_v7 = vsel %vm13440_vm12, %v948_v57, %v950_v62  ;;  %vm137_vm12 = vcmp.ne.f32.partialorder %v6716_v50, 0.0  ;;  %v7036_v50 = vld [vmem:[%s13434_s0 + $0x70] sm:$0xff] }
  0xa5   :  { %1980 = vmatpush2.bf16.msra.mxu1 %v8445_v0  ;;  %13803 = vst [vmem:[#allocation12_spill] sm:$0xff] %v8449_v2  ;;  %v8471_v35 = vsel %vm8353_vm14, %v964_v7, 0  ;;  %v598_v16 = vsel %vm137_vm12, 1, %v13441_v19 }
  0xa6   :  { %v188_v8 = vpop.permute.xlu0 %187  ;;  %7301 = vmatprep.subr.msk.bf16.mxu1 %vm8349_vm13, %v8449_v2  ;;  %13810 = vst [vmem:[#allocation15_spill] sm:$0xff] %v8471_v35 }
  0xa7   :  { %v208_v21 = vpop.permute.xlu1 %207 }
  0xa8   :  { %v8466_v24 = vsel %vm13478_vm15, %v208_v21, %v188_v8  ;;  %v233_v26 = vsel %vm13478_vm15, %v188_v8, %v208_v21 }
  0xa9   :  { %7282 = vmatprep.subr.msk.bf16.mxu0 %vm8455_vm1, %v8466_v24  ;;  %v8478_v39 = vsel %vm8459_vm2, %v233_v26, 0  ;;  %1982 = vmatpush2.bf16.msra.mxu1 %v8471_v35 }
  0xaa   :  { %1855 = vmatpush1.bf16.msra.mxu0 %v8478_v39  ;;  %v839_v43 = vpop.permute.xlu0 %838 }
  0xab   :  { %v841_v47 = vpop.permute.xlu1 %840 }
  0xac   :  { %v8494_v56 = vsel %vm13477_vm6, %v841_v47, %v839_v43  ;;  %v846_v57 = vsel %vm13477_vm6, %v839_v43, %v841_v47  ;;  %v602_v47 = vrot.slane %v598_v16, %v8006_v14 }
  0xad   :  { %13817 = vst [vmem:[#allocation18_spill] sm:$0xff] %v8494_v56  ;;  %7302 = vmatprep.subr.msk.bf16.mxu1 %vm8482_vm7, %v8494_v56  ;;  %v8502_v58 = vsel %vm8486_vm8, %v846_v57, 0  ;;  %v7037_v57 = vld [vmem:[%s13434_s0 + $0x78] sm:$0xff] }
  0xae   :  { %13818 = vst [vmem:[#allocation19_spill] sm:$0xff] %v8502_v58  ;;  %1984 = vmatpush2.bf16.msra.mxu1 %v8502_v58  ;;  %v186_v61 = vpop.permute.xlu0 %185  ;;  %vm8557_vm12 = vcmp.eq.s32.totalorder %v602_v47, 1 }
  0xaf   :  { %v206_v62 = vpop.permute.xlu1 %205 }
  0xb0   :  { %v8506_v63 = vsel %vm13478_vm15, %v206_v62, %v186_v61  ;;  %v229_v7 = vsel %vm13478_vm15, %v186_v61, %v206_v62  ;;  %v606_v62 = vrot.slane %v598_v16, %v8009_v15 }
  0xb1   :  { %7283 = vmatprep.subr.msk.bf16.mxu0 %vm8455_vm1, %v8506_v63  ;;  %v8514_v8 = vsel %vm8459_vm2, %v229_v7, 0  ;;  %v8537_v7 = vcombine.high %v7036_v50, %v7037_v57 }
  0xb2   :  { %1857 = vmatpush1.bf16.msra.mxu0 %v8514_v8  ;;  %v835_v20 = vpop.permute.xlu0 %834  ;;  %vm8561_vm0 = vcmp.eq.s32.totalorder %v606_v62, 1 }
  0xb3   :  { %v837_v21 = vpop.permute.xlu1 %836  ;;  %3916 = vrot.lane.b32.xlu0 %v8537_v7, %s7929_s12  ;;  %vm609_vm9 = vmpackc.low %vm8561_vm0, %vm8557_vm12 }
  0xb4   :  { %v845_v26 = vsel %vm13477_vm6, %v835_v20, %v837_v21  ;;  %v8520_v43 = vsel %vm13477_vm6, %v837_v21, %v835_v20  ;;  %v8539_v20 = vcombine.low %v7036_v50, %v7037_v57 }
  0xb5   :  { %13819 = vst [vmem:[#allocation20_spill] sm:$0xff] %v8520_v43  ;;  %7303 = vmatprep.subr.msk.bf16.mxu1 %vm8482_vm7, %v8520_v43  ;;  %v8534_v61 = vsel %vm8486_vm8, %v845_v26, 0 }
  0xb6   :  { %13820 = vst [vmem:[#allocation21_spill] sm:$0xff] %v8534_v61  ;;  %1986 = vmatpush2.bf16.msra.mxu1 %v8534_v61  ;;  %v184_v21 = vpop.permute.xlu0 %183  ;;  %3924 = vrot.lane.b32.xlu1 %v8539_v20, %s7929_s12  ;;  %v13827_v61 = vmov 0  }
  0xb7   :  { %v204_v19 = vpop.permute.xlu1 %203  ;;  %4226 = vrot.lane.b32.xlu0 %v8539_v20, %s7927_s26  ;;  %v610_v43 = vsel %vm609_vm9, 65537, %v13827_v61  ;;  %vm13487_vm9 = vcmask 7168  }
  0xb8   :  { %v8547_v25 = vsel %vm13478_vm15, %v204_v19, %v184_v21  ;;  %v225_v26 = vsel %vm13478_vm15, %v184_v21, %v204_v19  ;;  %v6715_v21 = vld [vmem:[%s13435_s1 + $0x2] ss:$8 sm:$0x3]  ;;  %v614_v58 = vrot.slane %v610_v43, %v8006_v14 }
  0xb9   :  { %7284 = vmatprep.subr.msk.bf16.mxu0 %vm8455_vm1, %v8547_v25  ;;  %v8555_v16 = vsel %vm8459_vm2, %v225_v26, 0  ;;  %v7034_v26 = vld [vmem:[%s13434_s0 + $0x60] sm:$0xff]  ;;  %vm134_vm0 = vcmp.ne.f32.partialorder %v6715_v21, 0.0 }
  0xba   :  { %1859 = vmatpush1.bf16.msra.mxu0 %v8555_v16  ;;  %v831_v6 = vpop.permute.xlu0 %830  ;;  %4228 = vrot.lane.b32.xlu1 %v8537_v7, %s7927_s26  ;;  %v8594_v50 = vcombine.high %v7034_v26, %v7035_v60  ;;  %v8596_v57 = vcombine.low %v7034_v26, %v7035_v60  ;;  %v477_v21 = vsel %vm134_vm0, 1, %v13827_v61  ;;  %vm8654_vm0 = vcmp.ne.s16.totalorder %v614_v58, 0 }
  0xbb   :  { %v833_v19 = vpop.permute.xlu1 %832 }
  0xbc   :  { %v844_v47 = vsel %vm13477_vm6, %v831_v6, %v833_v19  ;;  %v8575_v62 = vsel %vm13477_vm6, %v833_v19, %v831_v6  ;;  %3914 = vrot.lane.b32.xlu0 %v8594_v50, %s7929_s12 }
  0xbd   :  { %13825 = vst [vmem:[#allocation22_spill] sm:$0xff] %v8575_v62  ;;  %7304 = vmatprep.subr.msk.bf16.mxu1 %vm8482_vm7, %v8575_v62  ;;  %v8592_v6 = vsel %vm8486_vm8, %v844_v47, 0 }
  0xbe   :  { %13826 = vst [vmem:[#allocation23_spill] sm:$0xff] %v8592_v6  ;;  %1988 = vmatpush2.bf16.msra.mxu1 %v8592_v6  ;;  %v182_v19 = vpop.permute.xlu0 %181  ;;  %3922 = vrot.lane.b32.xlu1 %v8596_v57, %s7929_s12  ;;  %v618_v6 = vrot.slane %v610_v43, %v8184_v49  ;;  %v7033_v43 = vld [vmem:[%s13434_s0 + $0x58] sm:$0xff] }
  0xbf   :  { %v202_v34 = vpop.permute.xlu1 %201  ;;  %v8645_v2 = vcombine.high %v7032_v13, %v7033_v43  ;;  %v8647_v0 = vcombine.low %v7032_v13, %v7033_v43  ;;  %v7458_v13 = vld [vmem:[%s13436_s2 + $0x34] ss:$20 sps:$4 sm:$0xff]  }
  0xc0   :  { %v8605_v47 = vsel %vm13478_vm15, %v202_v34, %v182_v19  ;;  %v221_v62 = vsel %vm13478_vm15, %v182_v19, %v202_v34  ;;  %4222 = vrot.lane.b32.xlu0 %v8596_v57, %s7927_s26  ;;  %v481_v19 = vrot.slane %v477_v21, %v8006_v14  ;;  %vm8650_vm12 = vcmp.ne.s16.totalorder %v618_v6, 0 }
  0xc1   :  { %7285 = vmatprep.subr.msk.bf16.mxu0 %vm8455_vm1, %v8605_v47  ;;  %v8613_v60 = vsel %vm8459_vm2, %v221_v62, 0  ;;  %v13831_v45 = vsel %vm8650_vm12, 4294967295, %v13830_v45 }
  0xc2   :  { %1861 = vmatpush1.bf16.msra.mxu0 %v8613_v60  ;;  %v827_v26 = vpop.permute.xlu0 %826  ;;  %4224 = vrot.lane.b32.xlu1 %v8594_v50, %s7927_s26  ;;  %13832 = vst [vmem:[#allocation26_spill] sm:$0xff] %v13831_v45 }
  0xc3   :  { %v829_v56 = vpop.permute.xlu1 %828 }
  0xc4   :  { %v843_v34 = vsel %vm13477_vm6, %v827_v26, %v829_v56  ;;  %v8625_v62 = vsel %vm13477_vm6, %v829_v56, %v827_v26  ;;  %v7455_v56 = vld [vmem:[%s13436_s2 + $0x8] ss:$20 sps:$4 sm:$0xff]   ;;  %v485_v26 = vrot.slane %v477_v21, %v8009_v15  ;;  %3912 = vrot.lane.b32.xlu0 %v8645_v2, %s7929_s12  ;;  %vm8679_vm6 = vcmp.eq.s32.totalorder %v481_v19, 1  ;;  %v6721_v19 = vld [vmem:[%s13435_s1 + $0x10] ss:$8 sm:$0x3] }
  0xc5   :  { %13828 = vst [vmem:[#allocation24_spill] sm:$0xff] %v8625_v62  ;;  %7305 = vmatprep.subr.msk.bf16.mxu1 %vm8482_vm7, %v8625_v62  ;;  %v8639_v35 = vsel %vm8486_vm8, %v843_v34, 0  ;;  %v13833_v34 = vmov 0  ;;  %vm13840_vm8 = vcmask 7168  }
  0xc6   :  { %13829 = vst [vmem:[#allocation25_spill] sm:$0xff] %v8639_v35  ;;  %1990 = vmatpush2.bf16.msra.mxu1 %v8639_v35  ;;  %v563_v54 = vpop.permute.xlu0 %562  ;;  %v13834_v34 = vsel %vm8654_vm0, 4294967295, %v13833_v34  ;;  %3920 = vrot.lane.b32.xlu1 %v8647_v0, %s7929_s12  ;;  %vm8683_vm15 = vcmp.eq.s32.totalorder %v485_v26, 1  ;;  %vm13841_vm14 = vmmov %vm13840_vm8 }
  0xc7   :  { %13835 = vst [vmem:[#allocation27_spill] sm:$0xff] %v13834_v34  ;;  %7310 = vmatprep.subr.msk.bf16.mxu1 %vm8288_vm4, %v8297_v38  ;;  %v571_v21 = vpop.permute.xlu1 %570  ;;  %vm488_vm3 = vmpackc.low %vm8683_vm15, %vm8679_vm6  ;;  %vm13495_vm15 = vcmask 121856  }
  0xc8   :  { %v8667_v6 = vsel %vm13487_vm9, %v571_v21, %v563_v54  ;;  %v596_v58 = vsel %vm13487_vm9, %v563_v54, %v571_v21  ;;  %4218 = vrot.lane.b32.xlu0 %v8647_v0, %s7927_s26 }
  0xc9   :  { %7286 = vmatprep.subr.msk.bf16.mxu0 %vm8650_vm12, %v8667_v6  ;;  %1992 = vmatmul.mubr.bf16.vlgmr.msra.gmra.mxu1 %v7455_v56  ;;  %v8677_v38 = vsel %vm8654_vm0, %v596_v58, 0  ;;  %v7460_v58 = vld [vmem:[%s13436_s2 + $0x30] ss:$20 sps:$4 sm:$0xff]  }
  0xca   :  { %1863 = vmatpush2.bf16.msra.mxu0 %v8677_v38  ;;  %2410 = vmatpush1.bf16.msra.mxu1 %v8316_v44  ;;  %v561_v54 = vpop.permute.xlu0 %560  ;;  %v7030_v44 = vld [vmem:[%s13434_s0 + $0x40] sm:$0xff] }
  0xcb   :  { %7311 = vmatprep.subr.msk.bf16.mxu1 %vm8288_vm4, %v8328_v52  ;;  %v569_v56 = vpop.permute.xlu1 %568  ;;  %2001 = vmatprep.mubr.bf16.mxu1 %v7458_v13  ;;  %v7031_v52 = vld [vmem:[%s13434_s0 + $0x48] sm:$0xff] }
  0xcc   :  { %v8696_v26 = vsel %vm13487_vm9, %v569_v56, %v561_v54  ;;  %v592_v21 = vsel %vm13487_vm9, %v561_v54, %v569_v56  ;;  %4220 = vrot.lane.b32.xlu1 %v8645_v2, %s7927_s26  ;;  %v8723_v54 = vcombine.high %v7030_v44, %v7031_v52  ;;  %v8725_v56 = vcombine.low %v7030_v44, %v7031_v52 }
  0xcd   :  { %7287 = vmatprep.subr.msk.bf16.mxu0 %vm8650_vm12, %v8696_v26  ;;  %v8718_v13 = vsel %vm8654_vm0, %v592_v21, 0  ;;  %v7461_v21 = vld [vmem:[%s13436_s2 + $0x5c] ss:$20 sps:$4 sm:$0xff]   ;;  %v489_v44 = vsel %vm488_vm3, 65537, %v13827_v61  ;;  %vm152_vm9 = vcmp.ne.f32.partialorder %v6721_v19, 0.0  ;;  %vm13842_vm3 = vmmov %vm13840_vm8 }
  0xce   :  { %1865 = vmatpush2.bf16.msra.mxu0 %v8718_v13  ;;  %2412 = vmatpush1.bf16.msra.mxu1 %v8337_v55  ;;  %v559_v35 = vpop.permute.xlu0 %558  ;;  %v497_v46 = vrot.slane %v489_v44, %v8184_v49  ;;  %v1110_v43 = vsel %vm152_vm9, 1, %v13827_v61 }
  0xcf   :  { %7312 = vmatprep.subr.msk.bf16.mxu1 %vm8288_vm4, %v8362_v9  ;;  %v567_v62 = vpop.permute.xlu1 %566  ;;  %3910 = vrot.lane.b32.xlu0 %v8723_v54, %s7929_s12 }
  0xd0   :  { %v8742_v55 = vsel %vm13840_vm8, %v567_v62, %v559_v35  ;;  %v588_v52 = vsel %vm13841_vm14, %v559_v35, %v567_v62  ;;  %3918 = vrot.lane.b32.xlu1 %v8725_v56, %s7929_s12  ;;  %v493_v62 = vrot.slane %v489_v44, %v8006_v14  ;;  %vm13843_vm14 = vmmov %vm13842_vm3  ;;  %v1118_v44 = vrot.slane %v1110_v43, %v8009_v15  ;;  %v7464_v15 = vld [vmem:[%s13436_s2 + $0x84] ss:$20 sps:$4 sm:$0xff]  }
  0xd1   :  { %7288 = vmatprep.subr.msk.bf16.mxu0 %vm8650_vm12, %v8742_v55  ;;  %2002 = vmatmul.mubr.bf16.gmra.mxu1 %v7460_v58  ;;  %v8754_v9 = vsel %vm8654_vm0, %v588_v52, 0  ;;  %vm8786_vm6 = vcmp.ne.s16.totalorder %v497_v46, 0 }
  0xd2   :  { %1867 = vmatpush2.bf16.msra.mxu0 %v8754_v9  ;;  %2414 = vmatpush1.bf16.msra.mxu1 %v8375_v17  ;;  %v557_v35 = vpop.permute.xlu0 %556  ;;  %vm8790_vm8 = vcmp.ne.s16.totalorder %v493_v62, 0  ;;  %v7470_v62 = vld [vmem:[%s13436_s2 + $0xac] ss:$20 sps:$4 sm:$0xff]  }
  0xd3   :  { %7313 = vmatprep.subr.msk.bf16.mxu1 %vm8288_vm4, %v8413_v48  ;;  %v565_v19 = vpop.permute.xlu1 %564  ;;  %2011 = vmatprep.mubr.bf16.mxu1 %v7461_v21  ;;  %v7463_v48 = vld [vmem:[%s13436_s2 + $0x58] ss:$20 sps:$4 sm:$0xff]   ;;  %v1114_v21 = vrot.slane %v1110_v43, %v8006_v14 }
  0xd4   :  { %v8765_v58 = vsel %vm13842_vm3, %v565_v19, %v557_v35  ;;  %v584_v52 = vsel %vm13843_vm14, %v557_v35, %v565_v19  ;;  %4214 = vrot.lane.b32.xlu0 %v8725_v56, %s7927_s26  ;;  %4216 = vrot.lane.b32.xlu1 %v8723_v54, %s7927_s26  ;;  %v13844_v19 = vmov 0  ;;  %vm8819_vm3 = vcmp.eq.s32.totalorder %v1118_v44, 1 }
  0xd5   :  { %7289 = vmatprep.subr.msk.bf16.mxu0 %vm8650_vm12, %v8765_v58  ;;  %v8777_v17 = vsel %vm8654_vm0, %v584_v52, 0  ;;  %v13845_v19 = vsel %vm8786_vm6, 4294967295, %v13844_v19  ;;  %vm8815_vm9 = vcmp.eq.s32.totalorder %v1114_v21, 1 }
  0xd6   :  { %1869 = vmatpush2.bf16.msra.mxu0 %v8777_v17  ;;  %2416 = vmatpush1.bf16.msra.mxu1 %v8429_v53  ;;  %v442_v35 = vpop.permute.xlu0 %441  ;;  %13846 = vst [vmem:[#allocation28_spill] sm:$0xff] %v13845_v19  ;;  %vm1121_vm14 = vmpackc.low %vm8819_vm3, %vm8815_vm9  ;;  %vm13494_vm9 = vcmask 908288  }
  0xd7   :  { %7314 = vmatprep.subr.msk.bf16.mxu1 %vm8455_vm1, %v8466_v24  ;;  %v450_v34 = vpop.permute.xlu1 %449 }
  0xd8   :  { %v8801_v53 = vsel %vm13495_vm15, %v450_v34, %v442_v35  ;;  %v475_v46 = vsel %vm13495_vm15, %v442_v35, %v450_v34  ;;  %3808 = vrot.lane.b32.xlu0 %v8537_v7, %s7931_s14  ;;  %3828 = vrot.lane.b32.xlu1 %v8539_v20, %s7931_s14 }
  0xd9   :  { %7290 = vmatprep.subr.msk.bf16.mxu0 %vm8786_vm6, %v8801_v53  ;;  %2012 = vmatmul.mubr.bf16.gmra.mxu1 %v7463_v48  ;;  %v8813_v24 = vsel %vm8790_vm8, %v475_v46, 0  ;;  %v1122_v46 = vsel %vm1121_vm14, 65537, %v13827_v61 }
  0xda   :  { %1871 = vmatpush2.bf16.msra.mxu0 %v8813_v24  ;;  %2418 = vmatpush1.bf16.msra.mxu1 %v8478_v39  ;;  %v440_v43 = vpop.permute.xlu0 %439 }
  0xdb   :  { %7315 = vmatprep.subr.msk.bf16.mxu1 %vm8455_vm1, %v8506_v63  ;;  %v448_v48 = vpop.permute.xlu1 %447  ;;  %2021 = vmatprep.mubr.bf16.mxu1 %v7464_v15  ;;  %v7466_v63 = vld [vmem:[%s13436_s2 + $0x80] ss:$20 sps:$4 sm:$0xff]  }
  0xdc   :  { %v8829_v21 = vsel %vm13495_vm15, %v448_v48, %v440_v43  ;;  %v471_v35 = vsel %vm13495_vm15, %v440_v43, %v448_v48  ;;  %3806 = vrot.lane.b32.xlu0 %v8594_v50, %s7931_s14  ;;  %3826 = vrot.lane.b32.xlu1 %v8596_v57, %s7931_s14  ;;  %v1126_v48 = vrot.slane %v1122_v46, %v8006_v14 }
  0xdd   :  { %7291 = vmatprep.subr.msk.bf16.mxu0 %vm8786_vm6, %v8829_v21  ;;  %v8845_v39 = vsel %vm8790_vm8, %v471_v35, 0 }
  0xde   :  { %1873 = vmatpush2.bf16.msra.mxu0 %v8845_v39  ;;  %2420 = vmatpush1.bf16.msra.mxu1 %v8514_v8  ;;  %v438_v44 = vpop.permute.xlu0 %437  ;;  %vm8904_vm3 = vcmp.ne.s16.totalorder %v1126_v48, 0  ;;  %v7475_v48 = vld [vmem:[%s13436_s2 + $0xd4] ss:$20 sps:$4 sm:$0xff]  }
  0xdf   :  { %7316 = vmatprep.subr.msk.bf16.mxu1 %vm8455_vm1, %v8547_v25  ;;  %v446_v15 = vpop.permute.xlu1 %445 }
  0xe0   :  { %v8860_v34 = vsel %vm13495_vm15, %v446_v15, %v438_v44  ;;  %v467_v43 = vsel %vm13495_vm15, %v438_v44, %v446_v15  ;;  %3804 = vrot.lane.b32.xlu0 %v8645_v2, %s7931_s14  ;;  %3824 = vrot.lane.b32.xlu1 %v8647_v0, %s7931_s14  ;;  %v1130_v44 = vrot.slane %v1122_v46, %v8184_v49  ;;  %v7467_v49 = vld [vmem:[%s13436_s2] ss:$20 sps:$4 sm:$0xff]   ;;  %v13853_v46 = vmov 0 }
  0xe1   :  { %7292 = vmatprep.subr.msk.bf16.mxu0 %vm8786_vm6, %v8860_v34  ;;  %2022 = vmatmul.mubr.bf16.gmra.mxu1 %v7466_v63  ;;  %v8872_v25 = vsel %vm8790_vm8, %v467_v43, 0  ;;  %v13854_v46 = vsel %vm8904_vm3, 4294967295, %v13853_v46 }
  0xe2   :  { %1875 = vmatpush2.bf16.msra.mxu0 %v8872_v25  ;;  %2422 = vmatpush1.bf16.msra.mxu1 %v8555_v16  ;;  %v436_v8 = vpop.permute.xlu0 %435  ;;  %v7472_v16 = vld [vmem:[%s13436_s2 + $0xa8] ss:$20 sps:$4 sm:$0xff]   ;;  %13855 = vst [vmem:[#allocation29_spill] sm:$0xff] %v13854_v46  ;;  %vm8911_vm14 = vcmp.ne.s16.totalorder %v1130_v44, 0 }
  0xe3   :  { %7317 = vmatprep.subr.msk.bf16.mxu1 %vm8455_vm1, %v8605_v47  ;;  %v444_v35 = vpop.permute.xlu1 %443  ;;  %2031 = vmatprep.mubr.bf16.mxu1 %v7470_v62  ;;  %v13856_v62 = vmov 0 }
  0xe4   :  { %v8882_v63 = vsel %vm13495_vm15, %v444_v35, %v436_v8  ;;  %v463_v15 = vsel %vm13495_vm15, %v436_v8, %v444_v35  ;;  %3802 = vrot.lane.b32.xlu0 %v8723_v54, %s7931_s14  ;;  %3822 = vrot.lane.b32.xlu1 %v8725_v56, %s7931_s14  ;;  %v13857_v62 = vsel %vm8911_vm14, 4294967295, %v13856_v62  ;;  %vm13859_vm15 = vcmask 1039360  }
  0xe5   :  { %7293 = vmatprep.subr.msk.bf16.mxu0 %vm8786_vm6, %v8882_v63  ;;  %v8894_v14 = vsel %vm8790_vm8, %v463_v15, 0  ;;  %13858 = vst [vmem:[#allocation30_spill] sm:$0xff] %v13857_v62 }
  0xe6   :  { %1877 = vmatpush2.bf16.msra.mxu0 %v8894_v14  ;;  %2424 = vmatpush1.bf16.msra.mxu1 %v8613_v60  ;;  %v1081_v47 = vpop.permute.xlu0 %1080  ;;  %v7473_v60 = vld [vmem:[%s13436_s2 + $0x2c] ss:$20 sps:$4 sm:$0xff]  }
  0xe7   :  { %7318 = vmatprep.subr.msk.bf16.mxu1 %vm8650_vm12, %v8667_v6  ;;  %v1083_v43 = vpop.permute.xlu1 %1082 }
  0xe8   :  { %v1088_v8 = vsel %vm13494_vm9, %v1081_v47, %v1083_v43  ;;  %v8917_v35 = vsel %vm13494_vm9, %v1083_v43, %v1081_v47  ;;  %4108 = vrot.lane.b32.xlu0 %v8537_v7, %s7933_s18  ;;  %4116 = vrot.lane.b32.xlu1 %v8539_v20, %s7933_s18 }
  0xe9   :  { %v8931_v6 = vsel %vm8904_vm3, %v1088_v8, 0  ;;  %1879 = vmatmul.mubr.bf16.vlgmr.msra.gmra.mxu0 %v7467_v49  ;;  %2032 = vmatmul.mubr.bf16.gmra.mxu1 %v7472_v16 }
  0xea   :  { %7306 = vmatprep.subr.msk.bf16.mxu0 %vm8911_vm14, %v8917_v35  ;;  %2426 = vmatpush2.bf16.msra.mxu1 %v8677_v38  ;;  %v1077_v44 = vpop.permute.xlu0 %1076  ;;  %v7477_v38 = vld [vmem:[%s13436_s2 + $0x28] ss:$20 sps:$4 sm:$0xff]  }
  0xeb   :  { %2081 = vmatpush1.bf16.msra.mxu0 %v8931_v6  ;;  %7319 = vmatprep.subr.msk.bf16.mxu1 %vm8650_vm12, %v8696_v26  ;;  %v1079_v15 = vpop.permute.xlu1 %1078  ;;  %v7478_v26 = vld [vmem:[%s13436_s2 + $0xd0] ss:$20 sps:$4 sm:$0xff]  }
  0xec   :  { %v1087_v47 = vsel %vm13494_vm9, %v1077_v44, %v1079_v15  ;;  %v8943_v43 = vsel %vm13494_vm9, %v1079_v15, %v1077_v44  ;;  %1888 = vmatprep.mubr.bf16.mxu0 %v7473_v60  ;;  %2041 = vmatprep.mubr.bf16.mxu1 %v7475_v48  ;;  %v7481_v44 = vld [vmem:[%s13436_s2 + $0xfc] ss:$20 sps:$4 sm:$0xff]  }
  0xed   :  { %v8947_v49 = vsel %vm8904_vm3, %v1087_v47, 0  ;;  %7307 = vmatprep.subr.msk.bf16.mxu0 %vm8911_vm14, %v8943_v43  ;;  %4418 = vrot.lane.b32.xlu0 %v8539_v20, %s7930_s13 }
  0xee   :  { %2428 = vmatpush2.bf16.msra.mxu1 %v8718_v13  ;;  %v1073_v16 = vpop.permute.xlu0 %1072  ;;  %4420 = vrot.lane.b32.xlu1 %v8537_v7, %s7930_s13  ;;  %v7479_v13 = vld [vmem:[%s13436_s2 + $0x54] ss:$20 sps:$4 sm:$0xff]  }
  0xef   :  { %2083 = vmatpush1.bf16.msra.mxu0 %v8947_v49  ;;  %7320 = vmatprep.subr.msk.bf16.mxu1 %vm8650_vm12, %v8742_v55  ;;  %v1075_v8 = vpop.permute.xlu1 %1074 }
  0xf0   :  { %v1086_v60 = vsel %vm13494_vm9, %v1073_v16, %v1075_v8  ;;  %v8969_v48 = vsel %vm13494_vm9, %v1075_v8, %v1073_v16 }
  0xf1   :  { %v8979_v15 = vsel %vm8904_vm3, %v1086_v60, 0  ;;  %1889 = vmatmul.mubr.bf16.gmra.mxu0 %v7477_v38  ;;  %2042 = vmatmul.mubr.bf16.gmra.mxu1 %v7478_v26  ;;  %v7485_v26 = vld [vmem:[%s13436_s2 + $0x7c] ss:$20 sps:$4 sm:$0xff]   ;;  %v7487_v60 = vld [vmem:[%s13436_s2 + $0x124] ss:$20 sps:$4 sm:$0xff]  }
  0xf2   :  { %7308 = vmatprep.subr.msk.bf16.mxu0 %vm8911_vm14, %v8969_v48  ;;  %2430 = vmatpush2.bf16.msra.mxu1 %v8754_v9  ;;  %v1069_v55 = vpop.permute.xlu0 %1068  ;;  %v7483_v9 = vld [vmem:[%s13436_s2 + $0x50] ss:$20 sps:$4 sm:$0xff]  }
  0xf3   :  { %2085 = vmatpush1.bf16.msra.mxu0 %v8979_v15  ;;  %7321 = vmatprep.subr.msk.bf16.mxu1 %vm8650_vm12, %v8765_v58  ;;  %v1071_v47 = vpop.permute.xlu1 %1070  ;;  %v7484_v58 = vld [vmem:[%s13436_s2 + $0xf8] ss:$20 sps:$4 sm:$0xff]  }
  0xf4   :  { %v1085_v16 = vsel %vm13494_vm9, %v1069_v55, %v1071_v47  ;;  %v8991_v8 = vsel %vm13494_vm9, %v1071_v47, %v1069_v55  ;;  %1898 = vmatprep.mubr.bf16.mxu0 %v7479_v13  ;;  %2051 = vmatprep.mubr.bf16.mxu1 %v7481_v44  ;;  %v7503_v13 = vld [vmem:[%s13436_s2 + $0xf4] ss:$20 sps:$4 sm:$0xff]   ;;  %v7507_v55 = vld [vmem:[%s13436_s2 + $0xf0] ss:$20 sps:$4 sm:$0xff]   ;;  %vm13496_vm9 = vcmask 523264  }
  0xf5   :  { %v8995_v38 = vsel %vm8904_vm3, %v1085_v16, 0  ;;  %7309 = vmatprep.subr.msk.bf16.mxu0 %vm8911_vm14, %v8991_v8  ;;  %4106 = vrot.lane.b32.xlu0 %v8594_v50, %s7933_s18  ;;  %v7505_v44 = vld [vmem:[%s13437_s3 + $0x54] ss:$20 sps:$4 sm:$0xff]   ;;  %v7508_v47 = vld [vmem:[%s13437_s3 + $0x50] ss:$20 sps:$4 sm:$0xff]   ;;  %vm13863_vm3 = vcmask 523264  }
  0xf6   :  { %2432 = vmatpush2.bf16.msra.mxu1 %v8777_v17  ;;  %4114 = vrot.lane.b32.xlu1 %v8596_v57, %s7933_s18  ;;  %v7489_v17 = vld [vmem:[%s13436_s2 + $0x78] ss:$20 sps:$4 sm:$0xff]   ;;  %v7509_v16 = vld [vmem:[%s13436_s2 + $0x11c] ss:$20 sps:$4 sm:$0xff]  }
  0xf7   :  { %2087 = vmatpush1.bf16.msra.mxu0 %v8995_v38  ;;  %7322 = vmatprep.subr.msk.bf16.mxu1 %vm8786_vm6, %v8801_v53  ;;  %v7490_v53 = vld [vmem:[%s13436_s2 + $0x120] ss:$20 sps:$4 sm:$0xff]  }
  0xf8   :  { %7326 = vmatprep.subr.msk.bf16.mxu0 %vm8203_vm10, %v8220_v1 }
  0xf9   :  { %1899 = vmatmul.mubr.bf16.gmra.mxu0 %v7483_v9  ;;  %2052 = vmatmul.mubr.bf16.gmra.mxu1 %v7484_v58  ;;  %v7511_v9 = vld [vmem:[%s13437_s3 + $0x7c] ss:$20 sps:$4 sm:$0xff]   ;;  %v7513_v58 = vld [vmem:[%s13436_s2 + $0x118] ss:$20 sps:$4 sm:$0xff]  }
  0xfa   :  { %2434 = vmatpush2.bf16.msra.mxu1 %v8813_v24  ;;  %1908 = vmatprep.mubr.bf16.mxu0 %v7485_v26  ;;  %v7491_v24 = vld [vmem:[%s13436_s2 + $0xa4] ss:$20 sps:$4 sm:$0xff]  }
  0xfb   :  { %7323 = vmatprep.subr.msk.bf16.mxu1 %vm8786_vm6, %v8829_v21  ;;  %2061 = vmatprep.mubr.bf16.mxu1 %v7487_v60  ;;  %v7495_v21 = vld [vmem:[%s13437_s3 + $0x4] ss:$20 sps:$4 sm:$0xff]  }
  0xfc   :  { %4414 = vrot.lane.b32.xlu0 %v8596_v57, %s7930_s13  ;;  %4416 = vrot.lane.b32.xlu1 %v8594_v50, %s7930_s13  ;;  %v7514_v26 = vld [vmem:[%s13437_s3 + $0x78] ss:$20 sps:$4 sm:$0xff]  }
  0xfd   :  { %v7515_v60 = vld [vmem:[%s13437_s3 + $0xa4] ss:$20 sps:$4 sm:$0xff]  }
  0xfe   :  { %2436 = vmatpush2.bf16.msra.mxu1 %v8845_v39  ;;  %v7493_v39 = vld [vmem:[%s13437_s3] ss:$20 sps:$4 sm:$0xff]  }
  0xff   :  { %7324 = vmatprep.subr.msk.bf16.mxu1 %vm8786_vm6, %v8860_v34  ;;  %v7496_v34 = vld [vmem:[%s13436_s2 + $0xa0] ss:$20 sps:$4 sm:$0xff]  }
 0x100   :  { %4104 = vrot.lane.b32.xlu0 %v8645_v2, %s7933_s18  ;;  %4112 = vrot.lane.b32.xlu1 %v8647_v0, %s7933_s18 }
 0x101   :  { %1909 = vmatmul.mubr.bf16.gmra.mxu0 %v7489_v17  ;;  %2062 = vmatmul.mubr.bf16.gmra.mxu1 %v7490_v53  ;;  %v7517_v17 = vld [vmem:[%s13436_s2 + $0x10] ss:$20 sps:$4 sm:$0xff]   ;;  %v7518_v53 = vld [vmem:[%s13437_s3 + $0xa0] ss:$20 sps:$4 sm:$0xff]  }
 0x102   :  { %2438 = vmatpush2.bf16.msra.mxu1 %v8872_v25  ;;  %1918 = vmatprep.mubr.bf16.mxu0 %v7491_v24  ;;  %v7497_v25 = vld [vmem:[%s13436_s2 + $0xcc] ss:$20 sps:$4 sm:$0xff]  }
 0x103   :  { %7325 = vmatprep.subr.msk.bf16.mxu1 %vm8786_vm6, %v8882_v63  ;;  %2441 = vmatprep.mubr.bf16.mxu1 %v7495_v21  ;;  %v7499_v63 = vld [vmem:[%s13437_s3 + $0x2c] ss:$20 sps:$4 sm:$0xff]  }
 0x104   :  { %4410 = vrot.lane.b32.xlu0 %v8647_v0, %s7930_s13  ;;  %4412 = vrot.lane.b32.xlu1 %v8645_v2, %s7930_s13  ;;  %v7519_v24 = vld [vmem:[%s13437_s3 + $0xcc] ss:$20 sps:$4 sm:$0xff]  }
 0x106   :  { %2440 = vmatpush2.bf16.msra.mxu1 %v8894_v14  ;;  %v7502_v14 = vld [vmem:[%s13437_s3 + $0x28] ss:$20 sps:$4 sm:$0xff]  }
 0x107   :  { %7406 = vmatprep.subr.msk.bf16.mxu1 %vm8203_vm10, %v8220_v1  ;;  %v7501_v1 = vld [vmem:[%s13436_s2 + $0xc8] ss:$20 sps:$4 sm:$0xff]  }
 0x108   :  { %4102 = vrot.lane.b32.xlu0 %v8723_v54, %s7933_s18  ;;  %4110 = vrot.lane.b32.xlu1 %v8725_v56, %s7933_s18 }
 0x109   :  { %1919 = vmatmul.mubr.bf16.gmra.mxu0 %v7496_v34  ;;  %2442 = vmatmul.mubr.bf16.vlgmr.msra.gmra.mxu1 %v7493_v39  ;;  %v7521_v34 = vld [vmem:[%s13436_s2 + $0x38] ss:$20 sps:$4 sm:$0xff]  }
 0x10a   :  { %7422 = vmatpush1.bf16.msra.mxu1 %v8230_v3  ;;  %1928 = vmatprep.mubr.bf16.mxu0 %v7497_v25 }
 0x10b   :  { %7407 = vmatprep.subr.msk.bf16.mxu1 %vm8203_vm10, %v8240_v4  ;;  %2451 = vmatprep.mubr.bf16.mxu1 %v7499_v63 }
 0x10c   :  { %4406 = vrot.lane.b32.xlu0 %v8725_v56, %s7930_s13  ;;  %4408 = vrot.lane.b32.xlu1 %v8723_v54, %s7930_s13 }
 0x10e   :  { %7423 = vmatpush1.bf16.msra.mxu1 %v8252_v10 }
 0x10f   :  { %7408 = vmatprep.subr.msk.bf16.mxu1 %vm8203_vm10, %v8259_v12 }
 0x110   :  { %4012 = vrot.lane.b32.xlu0 %v8537_v7, %s7934_s21  ;;  %4020 = vrot.lane.b32.xlu1 %v8539_v20, %s7934_s21 }
 0x111   :  { %1929 = vmatmul.mubr.bf16.gmra.mxu0 %v7501_v1  ;;  %2452 = vmatmul.mubr.bf16.gmra.mxu1 %v7502_v14  ;;  %v13862_v14 = vld [vmem:[#allocation10_spill] sm:$0xff] }
 0x112   :  { %7424 = vmatpush1.bf16.msra.mxu1 %v8270_v22  ;;  %1938 = vmatprep.mubr.bf16.mxu0 %v7503_v13 }
 0x113   :  { %7409 = vmatprep.subr.msk.bf16.mxu1 %vm8203_vm10, %v8274_v23  ;;  %2461 = vmatprep.mubr.bf16.mxu1 %v7505_v44 }
 0x114   :  { %4322 = vrot.lane.b32.xlu0 %v8539_v20, %s7932_s15  ;;  %4324 = vrot.lane.b32.xlu1 %v8537_v7, %s7932_s15 }
 0x116   :  { %7425 = vmatpush1.bf16.msra.mxu1 %v8302_v42 }
 0x117   :  { %7410 = vmatprep.subr.bf16.mxu1 %v8042_v28 }
 0x118   :  { %4010 = vrot.lane.b32.xlu0 %v8594_v50, %s7934_s21  ;;  %4018 = vrot.lane.b32.xlu1 %v8596_v57, %s7934_s21 }
 0x119   :  { %1939 = vmatmul.mubr.bf16.gmra.mxu0 %v7507_v55  ;;  %2462 = vmatmul.mubr.bf16.gmra.mxu1 %v7508_v47  ;;  %v13864_v55 = vld [vmem:[#allocation11_spill] sm:$0xff] }
 0x11a   :  { %7426 = vmatpush1.bf16.msra.mxu1 %v8044_v29  ;;  %1948 = vmatprep.mubr.bf16.mxu0 %v7509_v16  ;;  %v7527_v47 = vld [vmem:[%s13436_s2 + $0x60] ss:$20 sps:$4 sm:$0xff]  }
 0x11b   :  { %7411 = vmatprep.subr.bf16.mxu1 %v8052_v32  ;;  %2471 = vmatprep.mubr.bf16.mxu1 %v7511_v9 }
 0x11c   :  { %4318 = vrot.lane.b32.xlu0 %v8596_v57, %s7932_s15  ;;  %4320 = vrot.lane.b32.xlu1 %v8594_v50, %s7932_s15 }
 0x11e   :  { %7427 = vmatpush1.bf16.msra.mxu1 %v8054_v33 }
 0x11f   :  { %7412 = vmatprep.subr.bf16.mxu1 %v8060_v36 }
 0x120   :  { %4008 = vrot.lane.b32.xlu0 %v8645_v2, %s7934_s21  ;;  %4016 = vrot.lane.b32.xlu1 %v8647_v0, %s7934_s21 }
 0x121   :  { %1949 = vmatmul.mubr.bf16.gmra.mxu0 %v7513_v58  ;;  %2472 = vmatmul.mubr.bf16.gmra.mxu1 %v7514_v26 }
 0x122   :  { %7428 = vmatpush1.bf16.msra.mxu1 %v8062_v37  ;;  %2104 = vmatprep.mubr.bf16.mxu0 %v13827_v61 }
 0x123   :  { %7413 = vmatprep.subr.bf16.mxu1 %v8072_v40  ;;  %2481 = vmatprep.mubr.bf16.mxu1 %v7515_v60  ;;  %v13869_v60 = vld [vmem:[#allocation18_spill] sm:$0xff] }
 0x124   :  { %4314 = vrot.lane.b32.xlu0 %v8647_v0, %s7932_s15  ;;  %4316 = vrot.lane.b32.xlu1 %v8645_v2, %s7932_s15 }
 0x125   :  { %v9180_v21 = vpop.permute.xlu0 %3916 }
 0x126   :  { %7429 = vmatpush1.bf16.msra.mxu1 %v8076_v41 }
 0x127   :  { %7414 = vmatprep.subr.msk.bf16.mxu1 %vm8349_vm13, %v8379_v18 }
 0x128   :  { %4006 = vrot.lane.b32.xlu0 %v8723_v54, %s7934_s21  ;;  %4014 = vrot.lane.b32.xlu1 %v8725_v56, %s7934_s21  ;;  %v9182_v39 = vpop.permute.xlu1 %3924 }
 0x129   :  { %6906 = vmatmul.mubr.msk.bf16.vlgmr.msra.gmra.mxu0 %vm13496_vm9, %v7517_v17  ;;  %2482 = vmatmul.mubr.bf16.gmra.mxu1 %v7518_v53  ;;  %v4227_v25 = vpop.permute.xlu0 %4226  ;;  %vm13860_vm9 = vmmov %vm13859_vm15 }
 0x12a   :  { %2523 = vmatpush1.bf16.msra.mxu0 %v8230_v3  ;;  %7430 = vmatpush2.bf16.msra.mxu1 %v8389_v27  ;;  %v7522_v3 = vld [vmem:[%s13437_s3 + $0xc8] ss:$20 sps:$4 sm:$0xff]  }
 0x12b   :  { %7327 = vmatprep.subr.msk.bf16.mxu0 %vm8203_vm10, %v8240_v4  ;;  %7415 = vmatprep.subr.msk.bf16.mxu1 %vm8349_vm13, %v8397_v30 }
 0x12c   :  { %2114 = vmatprep.mubr.bf16.mxu0 %v13827_v61  ;;  %2491 = vmatprep.mubr.bf16.mxu1 %v7519_v24  ;;  %v4229_v63 = vpop.permute.xlu1 %4228  ;;  %v13872_v24 = vld [vmem:[#allocation20_spill] sm:$0xff] }
 0x12d   :  { %4310 = vrot.lane.b32.xlu0 %v8725_v56, %s7932_s15  ;;  %4312 = vrot.lane.b32.xlu1 %v8723_v54, %s7932_s15  ;;  %v9206_v4 = vsel %vm13859_vm15, %v4227_v25, %v4229_v63  ;;  %v9209_v1 = vsel %vm13860_vm9, %v4229_v63, %v4227_v25  ;;  %vm13867_vm15 = vmmov %vm13860_vm9  ;;  %v13874_v25 = vld [vmem:[#allocation22_spill] sm:$0xff] }
 0x12e   :  { %2525 = vmatpush1.bf16.msra.mxu0 %v8252_v10  ;;  %7431 = vmatpush2.bf16.msra.mxu1 %v8418_v51  ;;  %13861 = vst [vmem:[#allocation31_spill] sm:$0xff] %v9209_v1  ;;  %v7525_v10 = vld [vmem:[%s13437_s3 + $0xf4] ss:$20 sps:$4 sm:$0xff]   ;;  %v9221_v13 = vpop.permute.xlu0 %3914 }
 0x12f   :  { %7328 = vmatprep.subr.msk.bf16.mxu0 %vm8203_vm10, %v8259_v12  ;;  %7416 = vmatprep.subr.msk.bf16.mxu1 %vm8349_vm13, %v13862_v14  ;;  %v13865_v12 = vld [vmem:[#allocation12_spill] sm:$0xff] }
 0x130   :  { %v9223_v44 = vpop.permute.xlu1 %3922 }
 0x131   :  { %6907 = vmatmul.mubr.msk.bf16.gmra.mxu0 %vm13863_vm3, %v7521_v34  ;;  %2492 = vmatmul.mubr.bf16.gmra.mxu1 %v7522_v3 }
 0x132   :  { %2527 = vmatpush1.bf16.msra.mxu0 %v8270_v22  ;;  %7432 = vmatpush2.bf16.msra.mxu1 %v13864_v55  ;;  %v7528_v22 = vld [vmem:[%s13437_s3 + $0xf0] ss:$20 sps:$4 sm:$0xff]   ;;  %v4223_v16 = vpop.permute.xlu0 %4222 }
 0x133   :  { %7329 = vmatprep.subr.msk.bf16.mxu0 %vm8203_vm10, %v8274_v23  ;;  %7417 = vmatprep.subr.msk.bf16.mxu1 %vm8349_vm13, %v13865_v12  ;;  %v13866_v23 = vld [vmem:[#allocation15_spill] sm:$0xff]  ;;  %vm13895_vm10 = vcmask 916480  }
 0x134   :  { %2124 = vmatprep.mubr.bf16.mxu0 %v13827_v61  ;;  %2501 = vmatprep.mubr.bf16.mxu1 %v7525_v10  ;;  %v4225_v9 = vpop.permute.xlu1 %4224 }
 0x135   :  { %4514 = vrot.lane.b32.xlu0 %v8539_v20, %s7935_s27  ;;  %4516 = vrot.lane.b32.xlu1 %v8537_v7, %s7935_s27  ;;  %v9247_v58 = vsel %vm13867_vm15, %v4223_v16, %v4225_v9  ;;  %v9250_v26 = vsel %vm13860_vm9, %v4225_v9, %v4223_v16  ;;  %v7531_v7 = vld [vmem:[%s13437_s3 + $0x11c] ss:$20 sps:$4 sm:$0xff]   ;;  %v13871_v20 = vld [vmem:[#allocation19_spill] sm:$0xff]  ;;  %vm13875_vm15 = vmmov %vm13860_vm9 }
 0x136   :  { %2529 = vmatpush1.bf16.msra.mxu0 %v8302_v42  ;;  %7433 = vmatpush2.bf16.msra.mxu1 %v13866_v23  ;;  %13868 = vst [vmem:[#allocation10_spill] sm:$0xff] %v9250_v26  ;;  %v9260_v42 = vpop.permute.xlu0 %3912 }
 0x137   :  { %7418 = vmatprep.subr.msk.bf16.mxu1 %vm8482_vm7, %v13869_v60  ;;  %2530 = vmatprep.subr.bf16.mxu0 %v8042_v28  ;;  %v7533_v28 = vld [vmem:[%s13436_s2 + $0x88] ss:$20 sps:$4 sm:$0xff]  }
 0x138   :  { %v9264_v53 = vpop.permute.xlu1 %3920 }
 0x139   :  { %6908 = vmatmul.mubr.msk.bf16.gmra.mxu0 %vm13863_vm3, %v7527_v47  ;;  %2502 = vmatmul.mubr.bf16.gmra.mxu1 %v7528_v22  ;;  %v13878_v47 = vld [vmem:[#allocation24_spill] sm:$0xff] }
 0x13a   :  { %2531 = vmatpush1.bf16.msra.mxu0 %v8044_v29  ;;  %7434 = vmatpush2.bf16.msra.mxu1 %v13871_v20  ;;  %v7534_v29 = vld [vmem:[%s13437_s3 + $0x118] ss:$20 sps:$4 sm:$0xff]   ;;  %v4219_v34 = vpop.permute.xlu0 %4218 }
 0x13b   :  { %7419 = vmatprep.subr.msk.bf16.mxu1 %vm8482_vm7, %v13872_v24  ;;  %2532 = vmatprep.subr.bf16.mxu0 %v8052_v32  ;;  %v13873_v32 = vld [vmem:[#allocation21_spill] sm:$0xff]  ;;  %v7537_v22 = vld [vmem:[%s13437_s3 + $0xf8] ss:$20 sps:$4 sm:$0xff]  }
 0x13c   :  { %2134 = vmatprep.mubr.bf16.mxu0 %v13827_v61  ;;  %2511 = vmatprep.mubr.bf16.mxu1 %v7531_v7 }
 0x13d   :  { %4510 = vrot.lane.b32.xlu0 %v8596_v57, %s7935_s27  ;;  %4512 = vrot.lane.b32.xlu1 %v8594_v50, %s7935_s27  ;;  %v13877_v50 = vld [vmem:[#allocation23_spill] sm:$0xff] }
 0x13e   :  { %2533 = vmatpush1.bf16.msra.mxu0 %v8054_v33  ;;  %7435 = vmatpush2.bf16.msra.mxu1 %v13873_v32  ;;  %v4221_v3 = vpop.permute.xlu1 %4220  ;;  %v7539_v33 = vld [vmem:[%s13437_s3 + $0xfc] ss:$20 sps:$4 sm:$0xff]  }
 0x13f   :  { %7420 = vmatprep.subr.msk.bf16.mxu1 %vm8482_vm7, %v13874_v25  ;;  %2534 = vmatprep.subr.bf16.mxu0 %v8060_v36  ;;  %v9288_v63 = vsel %vm13875_vm15, %v4219_v34, %v4221_v3  ;;  %v9291_v57 = vsel %vm13860_vm9, %v4221_v3, %v4219_v34  ;;  %vm13880_vm15 = vmmov %vm13860_vm9 }
 0x140   :  { %13876 = vst [vmem:[#allocation11_spill] sm:$0xff] %v9291_v57 }
 0x141   :  { %6909 = vmatmul.mubr.msk.bf16.gmra.mxu0 %vm13863_vm3, %v7533_v28  ;;  %2512 = vmatmul.mubr.bf16.gmra.mxu1 %v7534_v29  ;;  %v9299_v10 = vpop.permute.xlu0 %3910 }
 0x142   :  { %2535 = vmatpush1.bf16.msra.mxu0 %v8062_v37  ;;  %7436 = vmatpush2.bf16.msra.mxu1 %v13877_v50  ;;  %v9301_v36 = vpop.permute.xlu1 %3918  ;;  %v7540_v37 = vld [vmem:[%s13436_s2 + $0xb0] ss:$20 sps:$4 sm:$0xff]  }
 0x143   :  { %7421 = vmatprep.subr.msk.bf16.mxu1 %vm8482_vm7, %v13878_v47  ;;  %2536 = vmatprep.subr.bf16.mxu0 %v8072_v40  ;;  %v13879_v40 = vld [vmem:[#allocation25_spill] sm:$0xff] }
 0x144   :  { %2144 = vmatprep.mubr.bf16.mxu0 %v13827_v61  ;;  %2614 = vmatprep.mubr.bf16.mxu1 %v7539_v33 }
 0x145   :  { %4506 = vrot.lane.b32.xlu0 %v8647_v0, %s7935_s27  ;;  %4508 = vrot.lane.b32.xlu1 %v8645_v2, %s7935_s27 }
 0x146   :  { %2537 = vmatpush1.bf16.msra.mxu0 %v8076_v41  ;;  %7437 = vmatpush2.bf16.msra.mxu1 %v13879_v40  ;;  %v4215_v16 = vpop.permute.xlu0 %4214  ;;  %v4217_v9 = vpop.permute.xlu1 %4216  ;;  %v7543_v41 = vld [vmem:[%s13437_s3 + $0x124] ss:$20 sps:$4 sm:$0xff]  }
 0x147   :  { %7330 = vmatprep.subr.msk.bf16.mxu0 %vm8349_vm13, %v8379_v18  ;;  %7338 = vmatprep.subr.msk.bf16.mxu1 %vm8911_vm14, %v8917_v35  ;;  %v9327_v7 = vsel %vm13880_vm15, %v4215_v16, %v4217_v9  ;;  %v9330_v0 = vsel %vm13860_vm9, %v4217_v9, %v4215_v16  ;;  %v7546_v35 = vld [vmem:[%s13437_s3 + $0x120] ss:$20 sps:$4 sm:$0xff]   ;;  %vm13882_vm15 = vmmov %vm13863_vm3  ;;  %vm13883_vm9 = vcmask 130048   ;;  %v7557_v9 = vld [vmem:[%s13437_s3 + $0x30] ss:$20 sps:$4 sm:$0xff]  }
 0x148   :  { %13881 = vst [vmem:[#allocation12_spill] sm:$0xff] %v9330_v0 }
 0x149   :  { %6910 = vmatmul.mubr.msk.bf16.gmra.mxu0 %vm13863_vm3, %v7540_v37  ;;  %2615 = vmatmul.mubr.bf16.vlgmr.msra.gmra.mxu1 %v7537_v22  ;;  %vm13885_vm3 = vmmov %vm13883_vm9 }
 0x14a   :  { %2539 = vmatpush2.bf16.msra.mxu0 %v8389_v27  ;;  %2644 = vmatpush1.bf16.msra.mxu1 %v8931_v6  ;;  %v9338_v18 = vpop.permute.xlu0 %3808  ;;  %v9340_v2 = vpop.permute.xlu1 %3828  ;;  %v7545_v27 = vld [vmem:[%s13436_s2 + $0xd8] ss:$20 sps:$4 sm:$0xff]   ;;  %v9466_v29 = vsel %vm13885_vm3, %v9264_v53, %v9260_v42 }
 0x14b   :  { %7331 = vmatprep.subr.msk.bf16.mxu0 %vm8349_vm13, %v8397_v30  ;;  %7339 = vmatprep.subr.msk.bf16.mxu1 %vm8911_vm14, %v8943_v43  ;;  %v7547_v43 = vld [vmem:[%s13436_s2 + $0x100] ss:$20 sps:$4 sm:$0xff]   ;;  %13894 = vst [vmem:[#allocation21_spill] sm:$0xff] %v9466_v29 }
 0x14c   :  { %2154 = vmatprep.mubr.bf16.mxu0 %v13827_v61  ;;  %2624 = vmatprep.mubr.bf16.mxu1 %v7543_v41  ;;  %v7558_v41 = vld [vmem:[%s13437_s3 + $0x88] ss:$20 sps:$4 sm:$0xff]  }
 0x14d   :  { %4502 = vrot.lane.b32.xlu0 %v8725_v56, %s7935_s27  ;;  %4504 = vrot.lane.b32.xlu1 %v8723_v54, %s7935_s27  ;;  %v9389_v56 = vsel %vm13883_vm9, %v9182_v39, %v9180_v21  ;;  %vm13886_vm9 = vmmov %vm13882_vm15 }
 0x14e   :  { %2541 = vmatpush2.bf16.msra.mxu0 %v8418_v51  ;;  %2646 = vmatpush1.bf16.msra.mxu1 %v8947_v49  ;;  %v9361_v30 = vpop.permute.xlu0 %3806  ;;  %v9363_v6 = vpop.permute.xlu1 %3826  ;;  %13884 = vst [vmem:[#allocation15_spill] sm:$0xff] %v9389_v56  ;;  %v7548_v49 = vld [vmem:[%s13437_s3 + $0x10] ss:$20 sps:$4 sm:$0xff]  }
 0x14f   :  { %7332 = vmatprep.subr.msk.bf16.mxu0 %vm8349_vm13, %v13862_v14  ;;  %7340 = vmatprep.subr.msk.bf16.mxu1 %vm8911_vm14, %v8969_v48  ;;  %v3948_v48 = vsel %vm13885_vm3, %v9180_v21, %v9182_v39  ;;  %v9423_v21 = vsel %vm13885_vm3, %v9223_v44, %v9221_v13 }
 0x150   :  { %v9416_v14 = vsel %vm8292_vm5, %v3948_v48, 0  ;;  %13889 = vst [vmem:[#allocation19_spill] sm:$0xff] %v9423_v21 }
 0x151   :  { %6911 = vmatmul.mubr.msk.bf16.gmra.mxu0 %vm13882_vm15, %v7545_v27  ;;  %2625 = vmatmul.mubr.bf16.gmra.mxu1 %v7546_v35  ;;  %13888 = vst [vmem:[#allocation18_spill] sm:$0xff] %v9416_v14  ;;  %v7559_v27 = vld [vmem:[%s13437_s3 + $0x5c] ss:$20 sps:$4 sm:$0xff]  }
 0x152   :  { %2543 = vmatpush2.bf16.msra.mxu0 %v13864_v55  ;;  %2648 = vmatpush1.bf16.msra.mxu1 %v8979_v15  ;;  %v9374_v51 = vpop.permute.xlu0 %3804  ;;  %v9376_v54 = vpop.permute.xlu1 %3824 }
 0x153   :  { %7333 = vmatprep.subr.msk.bf16.mxu0 %vm8349_vm13, %v13865_v12  ;;  %7341 = vmatprep.subr.msk.bf16.mxu1 %vm8911_vm14, %v8991_v8  ;;  %vm13890_vm13 = vmmov %vm13885_vm3 }
 0x154   :  { %2164 = vmatprep.mubr.bf16.mxu0 %v13827_v61  ;;  %2667 = vmatprep.mubr.bf16.mxu1 %v13827_v61  ;;  %v3944_v39 = vsel %vm13890_vm13, %v9221_v13, %v9223_v44  ;;  %v7550_v13 = vld [vmem:[%s13437_s3 + $0x38] ss:$20 sps:$4 sm:$0xff]   ;;  %vm13892_vm13 = vmmov %vm13885_vm3 }
 0x155   :  { %v9445_v44 = vsel %vm8292_vm5, %v3944_v39, 0  ;;  %vm13896_vm14 = vmmov %vm13895_vm10 }
 0x156   :  { %2545 = vmatpush2.bf16.msra.mxu0 %v13866_v23  ;;  %2650 = vmatpush1.bf16.msra.mxu1 %v8995_v38  ;;  %v9402_v15 = vpop.permute.xlu0 %3802  ;;  %v9404_v8 = vpop.permute.xlu1 %3822  ;;  %v7549_v23 = vld [vmem:[%s13436_s2 + $0x128] ss:$20 sps:$4 sm:$0xff]   ;;  %13891 = vst [vmem:[#allocation20_spill] sm:$0xff] %v9445_v44 }
 0x157   :  { %7334 = vmatprep.subr.msk.bf16.mxu0 %vm8482_vm7, %v13869_v60  ;;  %7342 = vmatprep.subr.msk.bf16.mxu1 %vm8288_vm4, %v9389_v56  ;;  %v7553_v60 = vld [vmem:[%s13437_s3 + $0xc] ss:$20 sps:$4 sm:$0xff]  }
 0x159   :  { %6912 = vmatmul.mubr.msk.bf16.gmra.mxu0 %vm13882_vm15, %v7547_v43  ;;  %6954 = vmatmul.mubr.msk.bf16.vlgmr.msra.gmra.mxu1 %vm13886_vm9, %v7548_v49  ;;  %vm13893_vm15 = vmmov %vm13886_vm9 }
 0x15a   :  { %2547 = vmatpush2.bf16.msra.mxu0 %v13871_v20  ;;  %2174 = vmatprep.mubr.bf16.mxu0 %v13827_v61  ;;  %v9428_v55 = vpop.permute.xlu0 %4108  ;;  %v9430_v12 = vpop.permute.xlu1 %4116  ;;  %v3940_v20 = vsel %vm13892_vm13, %v9260_v42, %v9264_v53  ;;  %v7551_v53 = vld [vmem:[%s13437_s3 + $0x8] ss:$20 sps:$4 sm:$0xff]   ;;  %vm13903_vm13 = vmmov %vm13886_vm9 }
 0x15b   :  { %7335 = vmatprep.subr.msk.bf16.mxu0 %vm8482_vm7, %v13872_v24  ;;  %2677 = vmatprep.mubr.bf16.mxu1 %v13827_v61  ;;  %v9477_v3 = vsel %vm8292_vm5, %v3940_v20, 0 }
 0x15c   :  { %5031 = vmatpush1.bf16.msra.mxu1 %v9416_v14  ;;  %13898 = vst [vmem:[#allocation23_spill] sm:$0xff] %v9477_v3 }
 0x15d   :  { %7343 = vmatprep.subr.msk.bf16.mxu1 %vm8288_vm4, %v9423_v21 }
 0x15e   :  { %2549 = vmatpush2.bf16.msra.mxu0 %v13873_v32 }
 0x15f   :  { %7336 = vmatprep.subr.msk.bf16.mxu0 %vm8482_vm7, %v13874_v25  ;;  %v4419_v24 = vpop.permute.xlu0 %4418  ;;  %v7554_v25 = vld [vmem:[%s13437_s3 + $0x60] ss:$20 sps:$4 sm:$0xff]  }
 0x160   :  { %5033 = vmatpush1.bf16.msra.mxu1 %v9445_v44  ;;  %v4421_v28 = vpop.permute.xlu1 %4420 }
 0x161   :  { %6913 = vmatmul.mubr.msk.bf16.gmra.mxu0 %vm13893_vm15, %v7549_v23  ;;  %6955 = vmatmul.mubr.msk.bf16.gmra.mxu1 %vm13886_vm9, %v7550_v13  ;;  %v9469_v32 = vsel %vm13895_vm10, %v4419_v24, %v4421_v28  ;;  %v9472_v34 = vsel %vm13896_vm14, %v4421_v28, %v4419_v24  ;;  %vm13899_vm10 = vmmov %vm13885_vm3  ;;  %vm13904_vm15 = vcmask 138240   ;;  %v7561_v13 = vld [vmem:[%s13437_s3 + $0x58] ss:$20 sps:$4 sm:$0xff]  }
 0x162   :  { %13897 = vst [vmem:[#allocation22_spill] sm:$0xff] %v9472_v34  ;;  %2551 = vmatpush2.bf16.msra.mxu0 %v13877_v50  ;;  %2554 = vmatprep.mubr.bf16.mxu0 %v7553_v60  ;;  %v9486_v42 = vsel %vm13899_vm10, %v9301_v36, %v9299_v10  ;;  %vm13901_vm14 = vmmov %vm13885_vm3  ;;  %v7555_v50 = vld [vmem:[%s13437_s3 + $0x34] ss:$20 sps:$4 sm:$0xff]   ;;  %vm13912_vm10 = vcmask 916480   ;;  %v7563_v24 = vld [vmem:[%s13437_s3 + $0x84] ss:$20 sps:$4 sm:$0xff]  }
 0x163   :  { %7337 = vmatprep.subr.msk.bf16.mxu0 %vm8482_vm7, %v13878_v47  ;;  %2687 = vmatprep.mubr.bf16.mxu1 %v13827_v61  ;;  %13900 = vst [vmem:[#allocation24_spill] sm:$0xff] %v9486_v42  ;;  %v3936_v33 = vsel %vm13901_vm14, %v9299_v10, %v9301_v36  ;;  %v9516_v10 = vsel %vm13904_vm15, %v9340_v2, %v9338_v18  ;;  %vm13906_vm9 = vmmov %vm13904_vm15 }
 0x164   :  { %7344 = vmatprep.subr.msk.bf16.mxu1 %vm8288_vm4, %v9466_v29  ;;  %v9510_v47 = vsel %vm8292_vm5, %v3936_v33, 0  ;;  %13905 = vst [vmem:[#allocation7_spill] sm:$0xff] %v9516_v10  ;;  %v3852_v36 = vsel %vm13906_vm9, %v9338_v18, %v9340_v2  ;;  %vm13909_vm5 = vmmov %vm13906_vm9  ;;  %v7573_v33 = vld [vmem:[%s13437_s3 + $0xd0] ss:$20 sps:$4 sm:$0xff]  }
 0x165   :  { %5035 = vmatpush1.bf16.msra.mxu1 %v9477_v3  ;;  %13902 = vst [vmem:[#allocation25_spill] sm:$0xff] %v9510_v47  ;;  %v9525_v16 = vsel %vm8459_vm2, %v3852_v36, 0  ;;  %v9539_v18 = vsel %vm13909_vm5, %v9363_v6, %v9361_v30  ;;  %vm13911_vm3 = vmmov %vm13909_vm5 }
 0x166   :  { %2553 = vmatpush2.bf16.msra.mxu0 %v13879_v40  ;;  %7345 = vmatprep.subr.msk.bf16.mxu1 %vm8288_vm4, %v9486_v42  ;;  %13908 = vst [vmem:[#allocation14_spill] sm:$0xff] %v9525_v16  ;;  %13910 = vst [vmem:[#allocation32_spill] sm:$0xff] %v9539_v18  ;;  %v3848_v2 = vsel %vm13911_vm3, %v9361_v30, %v9363_v6  ;;  %v3840_v60 = vsel %vm13911_vm3, %v9402_v15, %v9404_v8 }
 0x167   :  { %v4107_v22 = vpop.permute.xlu0 %4106  ;;  %vm13913_vm14 = vmmov %vm13912_vm10  ;;  %v9556_v38 = vsel %vm8459_vm2, %v3848_v2, 0  ;;  %v9599_v28 = vsel %vm8459_vm2, %v3840_v60, 0 }
 0x168   :  { %v4115_v37 = vpop.permute.xlu1 %4114  ;;  %13915 = vst [vmem:[#allocation34_spill] sm:$0xff] %v9556_v38  ;;  %vm13916_vm15 = vmmov %vm13911_vm3 }
 0x169   :  { %2555 = vmatmul.mubr.bf16.vlgmr.msra.gmra.mxu0 %v7551_v53  ;;  %6956 = vmatmul.mubr.msk.bf16.gmra.mxu1 %vm13903_vm13, %v7554_v25  ;;  %v9565_v30 = vsel %vm13916_vm15, %v9376_v54, %v9374_v51  ;;  %vm13918_vm9 = vmmov %vm13911_vm3  ;;  %13922 = vst [vmem:[#allocation38_spill] sm:$0xff] %v9599_v28 }
 0x16a   :  { %2564 = vmatprep.mubr.bf16.mxu0 %v7555_v50  ;;  %2697 = vmatprep.mubr.bf16.mxu1 %v13827_v61  ;;  %13917 = vst [vmem:[#allocation35_spill] sm:$0xff] %v9565_v30  ;;  %v3844_v6 = vsel %vm13918_vm9, %v9374_v51, %v9376_v54  ;;  %v7562_v51 = vld [vmem:[%s13437_s3 + $0xb0] ss:$20 sps:$4 sm:$0xff]   ;;  %vm13920_vm5 = vmmov %vm13911_vm3 }
 0x16b   :  { %5037 = vmatpush1.bf16.msra.mxu1 %v9510_v47  ;;  %v9574_v39 = vsel %vm8459_vm2, %v3844_v6, 0  ;;  %v9588_v54 = vsel %vm13920_vm5, %v9404_v8, %v9402_v15  ;;  %v7570_v6 = vld [vmem:[%s13437_s3 + $0x100] ss:$20 sps:$4 sm:$0xff]  }
 0x16c   :  { %7346 = vmatprep.subr.msk.bf16.mxu1 %vm8455_vm1, %v9516_v10  ;;  %13919 = vst [vmem:[#allocation36_spill] sm:$0xff] %v9574_v39  ;;  %13921 = vst [vmem:[#allocation37_spill] sm:$0xff] %v9588_v54 }
 0x16e   :  { %v4415_v35 = vpop.permute.xlu0 %4414  ;;  %v4417_v43 = vpop.permute.xlu1 %4416 }
 0x16f   :  { %v9548_v49 = vsel %vm13912_vm10, %v4415_v35, %v4417_v43  ;;  %v9551_v48 = vsel %vm13913_vm14, %v4417_v43, %v4415_v35  ;;  %5039 = vmatpush1.bf16.msra.mxu1 %v9525_v16  ;;  %vm13923_vm10 = vmmov %vm13903_vm13  ;;  %vm13924_vm14 = vcmask 7168   ;;  %v7569_v43 = vld [vmem:[%s13437_s3 + $0xa8] ss:$20 sps:$4 sm:$0xff]  }
 0x170   :  { %13914 = vst [vmem:[#allocation33_spill] sm:$0xff] %v9551_v48  ;;  %7347 = vmatprep.subr.msk.bf16.mxu1 %vm8455_vm1, %v9539_v18  ;;  %v9608_v15 = vsel %vm13924_vm14, %v9430_v12, %v9428_v55  ;;  %vm13933_vm9 = vmmov %vm13923_vm10 }
 0x171   :  { %2565 = vmatmul.mubr.bf16.gmra.mxu0 %v7557_v9  ;;  %6957 = vmatmul.mubr.msk.bf16.gmra.mxu1 %vm13903_vm13, %v7558_v41  ;;  %13925 = vst [vmem:[#allocation39_spill] sm:$0xff] %v9608_v15  ;;  %vm13926_vm13 = vmmov %vm13924_vm14  ;;  %v7567_v9 = vld [vmem:[%s13437_s3 + $0xac] ss:$20 sps:$4 sm:$0xff]  }
 0x172   :  { %2574 = vmatprep.mubr.bf16.mxu0 %v7559_v27  ;;  %2707 = vmatprep.mubr.bf16.mxu1 %v13827_v61  ;;  %v4105_v23 = vpop.permute.xlu0 %4104  ;;  %v4113_v20 = vpop.permute.xlu1 %4112  ;;  %v4140_v8 = vsel %vm13926_vm13, %v9428_v55, %v9430_v12  ;;  %v7565_v55 = vld [vmem:[%s13437_s3 + $0x80] ss:$20 sps:$4 sm:$0xff]   ;;  %v7566_v12 = vld [vmem:[%s13437_s3 + $0xd8] ss:$20 sps:$4 sm:$0xff]   ;;  %vm13929_vm2 = vmmov %vm13926_vm13 }
 0x173   :  { %5041 = vmatpush1.bf16.msra.mxu1 %v9556_v38  ;;  %v9621_v50 = vsel %vm8654_vm0, %v4140_v8, 0  ;;  %v9633_v36 = vsel %vm13929_vm2, %v4115_v37, %v4107_v22  ;;  %vm13931_vm15 = vmmov %vm13929_vm2 }
 0x174   :  { %7348 = vmatprep.subr.msk.bf16.mxu1 %vm8455_vm1, %v9565_v30  ;;  %13928 = vst [vmem:[#allocation27_spill] sm:$0xff] %v9621_v50  ;;  %13930 = vst [vmem:[#allocation40_spill] sm:$0xff] %v9633_v36  ;;  %v4136_v40 = vsel %vm13931_vm15, %v4107_v22, %v4115_v37 }
 0x175   :  { %v9642_v41 = vsel %vm8654_vm0, %v4136_v40, 0  ;;  %vm13934_vm5 = vmmov %vm13929_vm2 }
 0x176   :  { %v9614_v53 = vpop.permute.xlu0 %4410  ;;  %v9616_v25 = vpop.permute.xlu1 %4412  ;;  %13932 = vst [vmem:[#allocation41_spill] sm:$0xff] %v9642_v41  ;;  %v9649_v22 = vsel %vm13934_vm5, %v4113_v20, %v4105_v23  ;;  %vm13936_vm3 = vmmov %vm13929_vm2 }
 0x177   :  { %5043 = vmatpush1.bf16.msra.mxu1 %v9574_v39  ;;  %13935 = vst [vmem:[#allocation42_spill] sm:$0xff] %v9649_v22  ;;  %v4132_v37 = vsel %vm13936_vm3, %v4105_v23, %v4113_v20  ;;  %vm13940_vm14 = vmmov %vm13929_vm2 }
 0x178   :  { %7349 = vmatprep.subr.msk.bf16.mxu1 %vm8455_vm1, %v9588_v54  ;;  %v9656_v35 = vsel %vm8654_vm0, %v4132_v37, 0  ;;  %vm13942_vm13 = vmmov %vm13933_vm9 }
 0x179   :  { %2575 = vmatmul.mubr.bf16.gmra.mxu0 %v7561_v13  ;;  %6958 = vmatmul.mubr.msk.bf16.gmra.mxu1 %vm13923_vm10, %v7562_v51  ;;  %13937 = vst [vmem:[#allocation43_spill] sm:$0xff] %v9656_v35  ;;  %vm13938_vm10 = vmmov %vm13929_vm2  ;;  %v7571_v51 = vld [vmem:[%s13437_s3 + $0xd4] ss:$20 sps:$4 sm:$0xff]  }
 0x17a   :  { %2584 = vmatprep.mubr.bf16.mxu0 %v7563_v24  ;;  %2717 = vmatprep.mubr.bf16.mxu1 %v13827_v61  ;;  %v4103_v2 = vpop.permute.xlu0 %4102  ;;  %v4111_v27 = vpop.permute.xlu1 %4110  ;;  %vm13947_vm15 = vmmov %vm13933_vm9 }
 0x17b   :  { %5045 = vmatpush1.bf16.msra.mxu1 %v9599_v28  ;;  %v9668_v23 = vsel %vm13938_vm10, %v4111_v27, %v4103_v2  ;;  %v4128_v13 = vsel %vm13940_vm14, %v4103_v2, %v4111_v27 }
 0x17c   :  { %7350 = vmatprep.subr.msk.bf16.mxu1 %vm8650_vm12, %v9608_v15  ;;  %13939 = vst [vmem:[#allocation44_spill] sm:$0xff] %v9668_v23  ;;  %v9677_v24 = vsel %vm8654_vm0, %v4128_v13, 0  ;;  %vm13943_vm0 = vcmask 121856  }
 0x17d   :  { %13941 = vst [vmem:[#allocation45_spill] sm:$0xff] %v9677_v24  ;;  %vm13945_vm2 = vmmov %vm13943_vm0 }
 0x17e   :  { %v4407_v60 = vpop.permute.xlu0 %4406  ;;  %v4409_v20 = vpop.permute.xlu1 %4408  ;;  %vm13954_vm14 = vmmov %vm13943_vm0 }
 0x17f   :  { %5047 = vmatpush2.bf16.msra.mxu1 %v9621_v50 }
 0x180   :  { %7351 = vmatprep.subr.msk.bf16.mxu1 %vm8650_vm12, %v9633_v36 }
 0x181   :  { %2585 = vmatmul.mubr.bf16.gmra.mxu0 %v7565_v55  ;;  %6959 = vmatmul.mubr.msk.bf16.gmra.mxu1 %vm13933_vm9, %v7566_v12  ;;  %vm13948_vm9 = vcmask 916480  }
 0x182   :  { %2594 = vmatprep.mubr.bf16.mxu0 %v7567_v9  ;;  %2727 = vmatprep.mubr.bf16.mxu1 %v13827_v61  ;;  %v4013_v12 = vpop.permute.xlu0 %4012  ;;  %v7574_v9 = vld [vmem:[%s13437_s3 + $0x128] ss:$20 sps:$4 sm:$0xff]   ;;  %v4021_v2 = vpop.permute.xlu1 %4020  ;;  %vm13949_vm5 = vmmov %vm13948_vm9 }
 0x183   :  { %5049 = vmatpush2.bf16.msra.mxu1 %v9642_v41  ;;  %v9692_v37 = vsel %vm13943_vm0, %v4021_v2, %v4013_v12  ;;  %v4044_v27 = vsel %vm13945_vm2, %v4013_v12, %v4021_v2  ;;  %vm13951_vm3 = vmmov %vm13949_vm5 }
 0x184   :  { %7352 = vmatprep.subr.msk.bf16.mxu1 %vm8650_vm12, %v9649_v22  ;;  %13944 = vst [vmem:[#allocation46_spill] sm:$0xff] %v9692_v37  ;;  %v9733_v15 = vsel %vm13951_vm3, %v4407_v60, %v4409_v20  ;;  %vm13952_vm10 = vmmov %vm13951_vm3 }
 0x185   :  { %v9736_v28 = vsel %vm13952_vm10, %v4409_v20, %v4407_v60 }
 0x186   :  { %13953 = vst [vmem:[#allocation49_spill] sm:$0xff] %v9736_v28  ;;  %v4323_v18 = vpop.permute.xlu0 %4322  ;;  %v4325_v16 = vpop.permute.xlu1 %4324 }
 0x187   :  { %5051 = vmatpush2.bf16.msra.mxu1 %v9656_v35 }
 0x188   :  { %7353 = vmatprep.subr.msk.bf16.mxu1 %vm8650_vm12, %v9668_v23 }
 0x189   :  { %v1993_v8 = vpop.f32.mrf.mxu1  ;;  %2595 = vmatmul.mubr.bf16.gmra.mxu0 %v7569_v43  ;;  %6960 = vmatmul.mubr.msk.bf16.gmra.mxu1 %vm13942_vm13, %v7570_v6  ;;  %v9699_v6 = vsel %vm8790_vm8, %v4044_v27, 0  ;;  %vm13956_vm13 = vmmov %vm13943_vm0  ;;  %vm13958_vm0 = vcmask 924672  }
 0x18a   :  { %2604 = vmatprep.mubr.bf16.mxu0 %v7571_v51  ;;  %2737 = vmatprep.mubr.bf16.mxu1 %v13827_v61  ;;  %13946 = vst [vmem:[#allocation47_spill] sm:$0xff] %v9699_v6  ;;  %v7835_v51 = vld [vmem:[%s13436_s2 + $0x4] ss:$20 sps:$4 sm:$0xff]   ;;  %vm13959_vm2 = vmmov %vm13958_vm0 }
 0x18b   :  { %v1995_v55 = vpop.f32.mrf.mxu1  ;;  %5053 = vmatpush2.bf16.msra.mxu1 %v9677_v24  ;;  %v9784_v17 = vsel %vm13959_vm2, %v4325_v16, %v4323_v18  ;;  %vm13986_vm3 = vmmov %vm13958_vm0 }
 0x18c   :  { %7354 = vmatprep.subr.msk.bf16.mxu1 %vm8786_vm6, %v9692_v37  ;;  %13960 = vst [vmem:[#allocation52_spill] sm:$0xff] %v9784_v17 }
 0x18d   :  { %v1997_v40 = vpop.f32.mrf.mxu1 }
 0x18f   :  { %v9695_v43 = vpop.f32.mrf.mxu1  ;;  %5055 = vmatpush2.bf16.msra.mxu1 %v9699_v6 }
 0x191   :  { %v2003_v13 = vpop.f32.mrf.mxu1  ;;  %2605 = vmatmul.mubr.bf16.gmra.mxu0 %v7573_v33  ;;  %6961 = vmatmul.mubr.msk.bf16.gmra.mxu1 %vm13947_vm15, %v7574_v9  ;;  %v9717_v33 = vsel %vm13948_vm9, %v9614_v53, %v9616_v25  ;;  %v9722_v9 = vsel %vm13949_vm5, %v9616_v25, %v9614_v53  ;;  %vm13961_vm15 = vmmov %vm13956_vm13 }
 0x192   :  { %5062 = vmatprep.mubr.bf16.mxu1 %v7835_v51  ;;  %3716 = vmatprep.mubr.bf16.mxu0 %v13827_v61  ;;  %13950 = vst [vmem:[#allocation48_spill] sm:$0xff] %v9722_v9  ;;  %vm13963_vm9 = vmmov %vm13956_vm13 }
 0x193   :  { %v2005_v12 = vpop.f32.mrf.mxu1  ;;  %vm13984_vm5 = vmmov %vm13958_vm0 }
 0x194   :  { %vm13989_vm10 = vmmov %vm13963_vm9 }
 0x195   :  { %v2007_v2 = vpop.f32.mrf.mxu1 }
 0x197   :  { %v9710_v27 = vpop.f32.mrf.mxu1 }
 0x199   :  { %v2013_v24 = vpop.f32.mrf.mxu1 }
 0x19b   :  { %v2015_v23 = vpop.f32.mrf.mxu1 }
 0x19d   :  { %v2017_v37 = vpop.f32.mrf.mxu1 }
 0x19f   :  { %v9712_v35 = vpop.f32.mrf.mxu1 }
 0x1a1   :  { %v2023_v51 = vpop.f32.mrf.mxu1 }
 0x1a3   :  { %v2025_v6 = vpop.f32.mrf.mxu1 }
 0x1a5   :  { %v9724_v22 = vpop.f32.mrf.mxu1 }
 0x1a7   :  { %v9726_v41 = vpop.f32.mrf.mxu1 }
 0x1a9   :  { %v1880_v36 = vpop.f32.mrf.mxu0  ;;  %v9728_v50 = vpop.f32.mrf.mxu1 }
 0x1aa   :  { %v9730_v45 = vadd.f32 %v1993_v8, %v1880_v36 }
 0x1ab   :  { %v1882_v54 = vpop.f32.mrf.mxu0  ;;  %v9738_v53 = vpop.f32.mrf.mxu1 }
 0x1ac   :  { %v9740_v25 = vadd.f32 %v1995_v55, %v1882_v54  ;;  %v4011_v54 = vpop.permute.xlu0 %4010  ;;  %v4019_v55 = vpop.permute.xlu1 %4018 }
 0x1ad   :  { %v1884_v39 = vpop.f32.mrf.mxu0  ;;  %v9742_v30 = vpop.f32.mrf.mxu1 }
 0x1ae   :  { %v9744_v38 = vadd.f32 %v1997_v40, %v1884_v39 }
 0x1af   :  { %v9746_v36 = vpop.f32.mrf.mxu0  ;;  %v9748_v8 = vpop.f32.mrf.mxu1 }
 0x1b1   :  { %v1890_v11 = vpop.f32.mrf.mxu0  ;;  %v2043_v10 = vpop.f32.mrf.mxu1 }
 0x1b2   :  { %v9750_v60 = vadd.f32 %v2003_v13, %v1890_v11  ;;  %v9763_v11 = vsel %vm13954_vm14, %v4019_v55, %v4011_v54  ;;  %v4040_v13 = vsel %vm13956_vm13, %v4011_v54, %v4019_v55  ;;  %v9781_v55 = vsel %vm13958_vm0, %v4323_v18, %v4325_v16  ;;  %vm13991_vm14 = vmmov %vm13963_vm9 }
 0x1b3   :  { %v1892_v20 = vpop.f32.mrf.mxu0  ;;  %v2045_v47 = vpop.f32.mrf.mxu1  ;;  %13955 = vst [vmem:[#allocation50_spill] sm:$0xff] %v9763_v11  ;;  %7355 = vmatprep.subr.msk.bf16.mxu1 %vm8786_vm6, %v9763_v11 }
 0x1b4   :  { %v9752_v42 = vadd.f32 %v2005_v12, %v1892_v20  ;;  %v9766_v12 = vpop.permute.xlu0 %4318  ;;  %v9768_v20 = vpop.permute.xlu1 %4320 }
 0x1b5   :  { %v1894_v3 = vpop.f32.mrf.mxu0  ;;  %v2047_v29 = vpop.f32.mrf.mxu1 }
 0x1b6   :  { %v9754_v39 = vadd.f32 %v2007_v2, %v1894_v3  ;;  %v9772_v2 = vsel %vm8790_vm8, %v4040_v13, 0 }
 0x1b7   :  { %v9756_v40 = vpop.f32.mrf.mxu0  ;;  %v9758_v44 = vpop.f32.mrf.mxu1  ;;  %13957 = vst [vmem:[#allocation51_spill] sm:$0xff] %v9772_v2  ;;  %5057 = vmatpush2.bf16.msra.mxu1 %v9772_v2 }
 0x1b8   :  { %v4009_v48 = vpop.permute.xlu0 %4008  ;;  %v4017_v11 = vpop.permute.xlu1 %4016 }
 0x1b9   :  { %v1900_v21 = vpop.f32.mrf.mxu0  ;;  %v2053_v14 = vpop.f32.mrf.mxu1  ;;  %v9795_v2 = vsel %vm13961_vm15, %v4017_v11, %v4009_v48  ;;  %v4036_v34 = vsel %vm13963_vm9, %v4009_v48, %v4017_v11 }
 0x1ba   :  { %v9760_v31 = vadd.f32 %v2013_v24, %v1900_v21  ;;  %13962 = vst [vmem:[#allocation53_spill] sm:$0xff] %v9795_v2  ;;  %v9800_v18 = vsel %vm8790_vm8, %v4036_v34, 0  ;;  %7356 = vmatprep.subr.msk.bf16.mxu1 %vm8786_vm6, %v9795_v2 }
 0x1bb   :  { %v1902_v56 = vpop.f32.mrf.mxu0  ;;  %v2055_v3 = vpop.f32.mrf.mxu1  ;;  %13964 = vst [vmem:[#allocation54_spill] sm:$0xff] %v9800_v18  ;;  %5059 = vmatpush2.bf16.msra.mxu1 %v9800_v18 }
 0x1bc   :  { %v9777_v21 = vadd.f32 %v2015_v23, %v1902_v56 }
 0x1bd   :  { %v1904_v24 = vpop.f32.mrf.mxu0  ;;  %v2057_v54 = vpop.f32.mrf.mxu1 }
 0x1be   :  { %v9786_v28 = vadd.f32 %v2017_v37, %v1904_v24 }
 0x1bf   :  { %v9788_v13 = vpop.f32.mrf.mxu0  ;;  %v9790_v9 = vpop.f32.mrf.mxu1 }
 0x1c1   :  { %v1910_v56 = vpop.f32.mrf.mxu0  ;;  %v2063_v23 = vpop.f32.mrf.mxu1 }
 0x1c2   :  { %v9792_v5 = vadd.f32 %v2023_v51, %v1910_v56 }
 0x1c3   :  { %v1912_v0 = vpop.f32.mrf.mxu0  ;;  %v2065_v16 = vpop.f32.mrf.mxu1 }
 0x1c4   :  { %v9805_v37 = vadd.f32 %v2025_v6, %v1912_v0 }
 0x1c5   :  { %v1914_v51 = vpop.f32.mrf.mxu0  ;;  %v2067_v24 = vpop.f32.mrf.mxu1 }
 0x1c6   :  { %v9809_v56 = vadd.f32 %v9724_v22, %v1914_v51 }
 0x1c7   :  { %v9811_v48 = vpop.f32.mrf.mxu0  ;;  %v9813_v11 = vpop.f32.mrf.mxu1 }
 0x1c9   :  { %v1920_v17 = vpop.f32.mrf.mxu0  ;;  %v9821_v0 = vpop.f32.mrf.mxu1 }
 0x1ca   :  { %v9816_v34 = vadd.f32 %v9728_v50, %v1920_v17  ;;  %13966 = vst [vmem:[#allocation56_spill] sm:$0xff] %v9821_v0 }
 0x1cb   :  { %v1922_v57 = vpop.f32.mrf.mxu0  ;;  %v9828_v51 = vpop.f32.mrf.mxu1 }
 0x1cc   :  { %v9819_v2 = vadd.f32 %v9738_v53, %v1922_v57  ;;  %13967 = vst [vmem:[#allocation57_spill] sm:$0xff] %v9828_v51 }
 0x1cd   :  { %v1924_v6 = vpop.f32.mrf.mxu0  ;;  %v9834_v50 = vpop.f32.mrf.mxu1 }
 0x1ce   :  { %13965 = vst [vmem:[#allocation55_spill] sm:$0xff] %v9819_v2  ;;  %v9824_v18 = vadd.f32 %v9742_v30, %v1924_v6  ;;  %13970 = vst [vmem:[#allocation60_spill] sm:$0xff] %v9834_v50 }
 0x1cf   :  { %v9826_v22 = vpop.f32.mrf.mxu0  ;;  %v9840_v46 = vpop.f32.mrf.mxu1 }
 0x1d0   :  { %13972 = vst [vmem:[#allocation62_spill] sm:$0xff] %v9840_v46 }
 0x1d1   :  { %v1930_v26 = vpop.f32.mrf.mxu0 }
 0x1d2   :  { %v9830_v59 = vadd.f32 %v2043_v10, %v1930_v26  ;;  %v9846_v26 = vpop.f32.mrf.mxu1 }
 0x1d3   :  { %v1932_v1 = vpop.f32.mrf.mxu0  ;;  %13975 = vst [vmem:[#allocation65_spill] sm:$0xff] %v9846_v26 }
 0x1d4   :  { %13968 = vst [vmem:[#allocation58_spill] sm:$0xff] %v9830_v59  ;;  %v9832_v17 = vadd.f32 %v2045_v47, %v1932_v1  ;;  %v9852_v50 = vpop.f32.mrf.mxu1 }
 0x1d5   :  { %v1934_v57 = vpop.f32.mrf.mxu0  ;;  %13977 = vst [vmem:[#allocation67_spill] sm:$0xff] %v9852_v50 }
 0x1d6   :  { %13969 = vst [vmem:[#allocation59_spill] sm:$0xff] %v9832_v17  ;;  %v9836_v53 = vadd.f32 %v2047_v29, %v1934_v57 }
 0x1d7   :  { %v9838_v62 = vpop.f32.mrf.mxu0 }
 0x1d8   :  { %13971 = vst [vmem:[#allocation61_spill] sm:$0xff] %v9836_v53 }
 0x1d9   :  { %v1940_v30 = vpop.f32.mrf.mxu0 }
 0x1da   :  { %v9842_v6 = vadd.f32 %v2053_v14, %v1940_v30  ;;  %v9858_v14 = vpop.permute.xlu0 %4314  ;;  %v9860_v30 = vpop.permute.xlu1 %4316 }
 0x1db   :  { %v1942_v0 = vpop.f32.mrf.mxu0  ;;  %13980 = vst [vmem:[#allocation70_spill] sm:$0xff] %v9858_v14  ;;  %13981 = vst [vmem:[#allocation71_spill] sm:$0xff] %v9860_v30 }
 0x1dc   :  { %13973 = vst [vmem:[#allocation63_spill] sm:$0xff] %v9842_v6  ;;  %v9844_v51 = vadd.f32 %v2055_v3, %v1942_v0  ;;  %v9862_v3 = vpop.f32.mrf.mxu1 }
 0x1dd   :  { %v1944_v10 = vpop.f32.mrf.mxu0  ;;  %13982 = vst [vmem:[#allocation72_spill] sm:$0xff] %v9862_v3 }
 0x1de   :  { %13974 = vst [vmem:[#allocation64_spill] sm:$0xff] %v9844_v51  ;;  %v9848_v1 = vadd.f32 %v2057_v54, %v1944_v10  ;;  %v9871_v10 = vsel %vm13984_vm5, %v9766_v12, %v9768_v20 }
 0x1df   :  { %v9850_v47 = vpop.f32.mrf.mxu0  ;;  %13985 = vst [vmem:[#allocation74_spill] sm:$0xff] %v9871_v10 }
 0x1e0   :  { %13976 = vst [vmem:[#allocation66_spill] sm:$0xff] %v9848_v1 }
 0x1e1   :  { %v1950_v29 = vpop.f32.mrf.mxu0 }
 0x1e2   :  { %v9854_v57 = vadd.f32 %v2063_v23, %v1950_v29  ;;  %v9876_v23 = vsel %vm13986_vm3, %v9768_v20, %v9766_v12 }
 0x1e3   :  { %v1952_v53 = vpop.f32.mrf.mxu0  ;;  %13987 = vst [vmem:[#allocation75_spill] sm:$0xff] %v9876_v23 }
 0x1e4   :  { %13978 = vst [vmem:[#allocation68_spill] sm:$0xff] %v9854_v57  ;;  %v9856_v46 = vadd.f32 %v2065_v16, %v1952_v53  ;;  %v9878_v16 = vpop.f32.mrf.mxu1 }
 0x1e5   :  { %v1954_v0 = vpop.f32.mrf.mxu0  ;;  %13988 = vst [vmem:[#allocation76_spill] sm:$0xff] %v9878_v16 }
 0x1e6   :  { %13979 = vst [vmem:[#allocation69_spill] sm:$0xff] %v9856_v46  ;;  %v9864_v26 = vadd.f32 %v2067_v24, %v1954_v0  ;;  %v4007_v24 = vpop.permute.xlu0 %4006  ;;  %v4015_v0 = vpop.permute.xlu1 %4014 }
 0x1e7   :  { %v9866_v54 = vpop.f32.mrf.mxu0  ;;  %v9884_v30 = vsel %vm13989_vm10, %v4015_v0, %v4007_v24  ;;  %v4032_v50 = vsel %vm13991_vm14, %v4007_v24, %v4015_v0  ;;  %v9898_v20 = vpop.f32.mrf.mxu1 }
 0x1e8   :  { %13983 = vst [vmem:[#allocation73_spill] sm:$0xff] %v9864_v26  ;;  %13990 = vst [vmem:[#allocation77_spill] sm:$0xff] %v9884_v30  ;;  %v9892_v12 = vsel %vm8790_vm8, %v4032_v50, 0  ;;  %7357 = vmatprep.subr.msk.bf16.mxu1 %vm8786_vm6, %v9884_v30  ;;  %v7837_v50 = vld [vmem:[%s13436_s2 + $0x2c] ss:$20 sps:$4 sm:$0xff]  }
 0x1e9   :  { %v2106_v53 = vpop.f32.mrf.mxu0  ;;  %13992 = vst [vmem:[#allocation78_spill] sm:$0xff] %v9892_v12  ;;  %5061 = vmatpush2.bf16.msra.mxu1 %v9892_v12  ;;  %13993 = vst [vmem:[#allocation79_spill] sm:$0xff] %v9898_v20 }
 0x1ea   :  { %v9881_v29 = vadd.f32 %v2106_v53, %v9730_v45 }
 0x1eb   :  { %v2108_v14 = vpop.f32.mrf.mxu0 }
 0x1ec   :  { %v9888_v10 = vadd.f32 %v2108_v14, %v9740_v25  ;;  %v7836_v25 = vld [vmem:[%s13436_s2] ss:$20 sps:$4 sm:$0xff]   ;;  %v9909_v14 = vpop.f32.mrf.mxu1  ;;  %v9923_v19 = vmul.f32 0.70710677, %v9881_v29 }
 0x1ed   :  { %v2110_v45 = vpop.f32.mrf.mxu0  ;;  %5063 = vmatmul.mubr.bf16.vlgmr.msra.gmra.mxu1 %v7836_v25  ;;  %13994 = vst [vmem:[#allocation80_spill] sm:$0xff] %v9909_v14  ;;  %v7838_v25 = vld [vmem:[%s13436_s2 + $0x28] ss:$20 sps:$4 sm:$0xff]   ;;  %v7840_v14 = vld [vmem:[%s13436_s2 + $0x50] ss:$20 sps:$4 sm:$0xff]  }
 0x1ee   :  { %v9901_v53 = vadd.f32 %v2110_v45, %v9744_v38  ;;  %5072 = vmatprep.mubr.bf16.mxu1 %v7837_v50  ;;  %v9911_v12 = vpop.f32.mrf.mxu1  ;;  %v7839_v50 = vld [vmem:[%s13436_s2 + $0x54] ss:$20 sps:$4 sm:$0xff]   ;;  %vm3420_vm13 = vcmp.ge.f32.partialorder %v9923_v19, 0.0 }
 0x1ef   :  { %v2112_v24 = vpop.f32.mrf.mxu0  ;;  %13995 = vst [vmem:[#allocation81_spill] sm:$0xff] %v9911_v12 }
 0x1f0   :  { %v9928_v23 = vpop.f32.mrf.mxu1 }
 0x1f1   :  { %v2116_v52 = vpop.f32.mrf.mxu0  ;;  %13997 = vst [vmem:[#allocation83_spill] sm:$0xff] %v9928_v23 }
 0x1f2   :  { %v9914_v38 = vadd.f32 %v2116_v52, %v9750_v60  ;;  %v9934_v52 = vand.u32 2147483647, %v9923_v19 }
 0x1f3   :  { %v2118_v0 = vpop.f32.mrf.mxu0 }
 0x1f4   :  { %v9917_v45 = vadd.f32 %v2118_v0, %v9752_v42  ;;  %v9936_v0 = vpop.f32.mrf.mxu1 }
 0x1f5   :  { %v2120_v30 = vpop.f32.mrf.mxu0  ;;  %5073 = vmatmul.mubr.bf16.gmra.mxu1 %v7838_v25  ;;  %13998 = vst [vmem:[#allocation84_spill] sm:$0xff] %v9936_v0  ;;  %v9939_v25 = vmul.f32 0.70710677, %v9888_v10 }
 0x1f6   :  { %13996 = vst [vmem:[#allocation82_spill] sm:$0xff] %v9917_v45  ;;  %5082 = vmatprep.mubr.bf16.mxu1 %v7839_v50  ;;  %v9931_v60 = vadd.f32 %v2120_v30, %v9754_v39  ;;  %v2812_v50 = vmul.f32 0.3275911, %v9934_v52  ;;  %v7841_v39 = vld [vmem:[%s13436_s2 + $0x7c] ss:$20 sps:$4 sm:$0xff]   ;;  %v2000_v30 = vadd.f32 %v9695_v43, %v9746_v36  ;;  %v9950_v23 = vpop.f32.mrf.mxu1 }
 0x1f7   :  { %v2122_v42 = vpop.f32.mrf.mxu0  ;;  %13999 = vst [vmem:[#allocation85_spill] sm:$0xff] %v9950_v23  ;;  %v9953_v0 = vand.u32 2147483647, %v9939_v25  ;;  %v9996_v46 = vmul.f32 0.70710677, %v9917_v45  ;;  %vm3421_vm0 = vcmp.ge.f32.partialorder %v9939_v25, 0.0 }
 0x1f8   :  { %v9961_v20 = vadd.f32 %v2112_v24, %v2000_v30  ;;  %v2844_v3 = vadd.f32 1.0, %v2812_v50  ;;  %v9963_v26 = vpop.f32.mrf.mxu1  ;;  %v7843_v24 = vld [vmem:[%s13436_s2 + $0xa4] ss:$20 sps:$4 sm:$0xff]  }
 0x1f9   :  { %v2126_v16 = vpop.f32.mrf.mxu0  ;;  %14001 = vst [vmem:[#allocation87_spill] sm:$0xff] %v9963_v26  ;;  %14007 = vst [vmem:[#allocation93_spill] sm:$0xff] %v9996_v46 }
 0x1fa   :  { %v9956_v12 = vadd.f32 %v2126_v16, %v9760_v31  ;;  %14000 = vst [vmem:[#allocation86_spill] sm:$0xff] %v9961_v20  ;;  %v9970_v36 = vmul.f32 0.70710677, %v9961_v20  ;;  %v7842_v31 = vld [vmem:[%s13436_s2 + $0x78] ss:$20 sps:$4 sm:$0xff]   ;;  %7579 = vrcp.f32 %v2844_v3  ;;  %v9981_v50 = vpop.f32.mrf.mxu1 }
 0x1fb   :  { %v9976_v16 = vmul.f32 0.70710677, %v9914_v38  ;;  %14004 = vst [vmem:[#allocation90_spill] sm:$0xff] %v9981_v50  ;;  %v9984_v20 = vmul.f32 0.70710677, %v9931_v60 }
 0x1fc   :  { %14002 = vst [vmem:[#allocation88_spill] sm:$0xff] %v9970_v36  ;;  %v9988_v26 = vand.u32 2147483647, %v9970_v36  ;;  %v7844_v36 = vld [vmem:[%s13436_s2 + $0xa0] ss:$20 sps:$4 sm:$0xff]  }
 0x1fd   :  { %5083 = vmatmul.mubr.bf16.gmra.mxu1 %v7840_v14  ;;  %v9959_v14 = vmul.f32 0.70710677, %v9901_v53  ;;  %14003 = vst [vmem:[#allocation89_spill] sm:$0xff] %v9976_v16  ;;  %14005 = vst [vmem:[#allocation91_spill] sm:$0xff] %v9984_v20  ;;  %v9991_v3 = vand.u32 2147483647, %v9976_v16 }
 0x1fe   :  { %5092 = vmatprep.mubr.bf16.mxu1 %v7841_v39  ;;  %v2813_v39 = vmul.f32 0.3275911, %v9953_v0  ;;  %v2815_v57 = vmul.f32 0.3275911, %v9988_v26 }
 0x1ff   :  { %v9967_v43 = vand.u32 2147483647, %v9959_v14  ;;  %vm3422_vm2 = vcmp.ge.f32.partialorder %v9959_v14, 0.0 }
 0x200   :  { %v2845_v30 = vadd.f32 1.0, %v2813_v39  ;;  %v2010_v39 = vadd.f32 %v9710_v27, %v9756_v40  ;;  %v2128_v27 = vpop.f32.mrf.mxu0  ;;  %v10016_v40 = vand.u32 2147483647, %v9996_v46  ;;  %v2847_v51 = vadd.f32 1.0, %v2815_v57 }
 0x201   :  { %v2814_v23 = vmul.f32 0.3275911, %v9967_v43 }
 0x202   :  { %7581 = vrcp.f32 %v2845_v30  ;;  %v7845_v30 = vld [vmem:[%s13436_s2 + $0xcc] ss:$20 sps:$4 sm:$0xff]   ;;  %v10013_v1 = vadd.f32 %v2122_v42, %v2010_v39  ;;  %v10030_v42 = vadd.f32 %v2128_v27, %v9777_v21  ;;  %v10032_v39 = vpop.f32.mrf.mxu0  ;;  %v7847_v21 = vld [vmem:[%s13436_s2 + $0xf4] ss:$20 sps:$4 sm:$0xff]  }
 0x203   :  { %v2846_v50 = vadd.f32 1.0, %v2814_v23 }
 0x204   :  { %14009 = vst [vmem:[#allocation95_spill] sm:$0xff] %v10013_v1  ;;  %14013 = vst [vmem:[#allocation99_spill] sm:$0xff] %v10030_v42  ;;  %v10053_v46 = vpop.f32.mrf.mxu0 }
 0x205   :  { %5093 = vmatmul.mubr.bf16.gmra.mxu1 %v7842_v31  ;;  %v9993_v31 = vpop.f32.mrf.mxu1  ;;  %7583 = vrcp.f32 %v2846_v50 }
 0x206   :  { %5102 = vmatprep.mubr.bf16.mxu1 %v7843_v24  ;;  %14006 = vst [vmem:[#allocation92_spill] sm:$0xff] %v9993_v31  ;;  %v9999_v24 = vand.u32 2147483647, %v9984_v20  ;;  %v2816_v31 = vmul.f32 0.3275911, %v9991_v3  ;;  %7585 = vrcp.f32 %v2847_v51  ;;  %v10070_v16 = vpop.f32.mrf.mxu0 }
 0x207   :  { %v10011_v45 = vpop.f32.mrf.mxu1  ;;  %v10022_v17 = vpop.eup %7579 }
 0x208   :  { %14008 = vst [vmem:[#allocation94_spill] sm:$0xff] %v10011_v45  ;;  %v2818_v23 = vmul.f32 0.3275911, %v9999_v24  ;;  %v2848_v6 = vadd.f32 1.0, %v2816_v31  ;;  %v2817_v45 = vmul.f32 0.3275911, %v10016_v40 }
 0x209   :  { %v10024_v59 = vpop.f32.mrf.mxu1  ;;  %v7846_v31 = vld [vmem:[%s13436_s2 + $0xc8] ss:$20 sps:$4 sm:$0xff]  }
 0x20a   :  { %14011 = vst [vmem:[#allocation97_spill] sm:$0xff] %v10024_v59  ;;  %v2850_v50 = vadd.f32 1.0, %v2818_v23  ;;  %7587 = vrcp.f32 %v2848_v6  ;;  %v10051_v23 = vmul.f32 0.70710677, %v10030_v42 }
 0x20b   :  { %v10045_v27 = vpop.f32.mrf.mxu1 }
 0x20c   :  { %14014 = vst [vmem:[#allocation100_spill] sm:$0xff] %v10045_v27  ;;  %14015 = vst [vmem:[#allocation101_spill] sm:$0xff] %v10051_v23  ;;  %7589 = vrcp.f32 %v2850_v50  ;;  %v10068_v20 = vand.u32 2147483647, %v10051_v23  ;;  %v10086_v50 = vsel %vm8207_vm11, %v9327_v7, 0  ;;  %v14022_v23 = vld [vmem:[#allocation9_spill] sm:$0xff] }
 0x20d   :  { %5103 = vmatmul.mubr.bf16.gmra.mxu1 %v7844_v36  ;;  %v10020_v36 = vmul.f32 0.70710677, %v9956_v12  ;;  %v10064_v2 = vpop.f32.mrf.mxu1  ;;  %14021 = vst [vmem:[#allocation105_spill] sm:$0xff] %v10086_v50  ;;  %vm14023_vm8 = vnez %v14022_v23 }
 0x20e   :  { %5112 = vmatprep.mubr.bf16.mxu1 %v7845_v30  ;;  %v10027_v30 = vmul.f32 0.70710677, %v10013_v1  ;;  %v2940_v1 = vmul.f32 1.0614054, %v10022_v17  ;;  %14018 = vst [vmem:[#allocation102_spill] sm:$0xff] %v10064_v2  ;;  %v10102_v7 = vsel %vm14023_vm8, %v9548_v49, 0 }
 0x20f   :  { %14010 = vst [vmem:[#allocation96_spill] sm:$0xff] %v10020_v36  ;;  %v10036_v57 = vand.u32 2147483647, %v10020_v36  ;;  %v10055_v59 = vpop.eup %7581  ;;  %14025 = vst [vmem:[#allocation106_spill] sm:$0xff] %v10102_v7  ;;  %v10119_v49 = vsel %vm14023_vm8, %v9733_v15, 0 }
 0x210   :  { %14012 = vst [vmem:[#allocation98_spill] sm:$0xff] %v10027_v30  ;;  %v10048_v51 = vand.u32 2147483647, %v10027_v30  ;;  %v6962_v27 = vadd.f32 -1.4531521, %v2940_v1  ;;  %v3228_v1 = vsub.f32 0.0, %v9934_v52 }
 0x211   :  { %v2820_v6 = vmul.f32 0.3275911, %v10036_v57  ;;  %v2941_v30 = vmul.f32 1.0614054, %v10055_v59  ;;  %14028 = vst [vmem:[#allocation109_spill] sm:$0xff] %v10119_v49  ;;  %v3231_v49 = vsub.f32 0.0, %v9988_v26 }
 0x212   :  { %v2819_v42 = vmul.f32 0.3275911, %v10048_v51  ;;  %v3004_v36 = vmul.f32 %v10022_v17, %v6962_v27  ;;  %v2821_v7 = vmul.f32 0.3275911, %v10068_v20  ;;  %v3236_v50 = vsub.f32 0.0, %v10036_v57 }
 0x214   :  { %v2851_v27 = vadd.f32 1.0, %v2819_v42 }
 0x215   :  { %5113 = vmatmul.mubr.bf16.gmra.mxu1 %v7846_v31  ;;  %v2849_v31 = vadd.f32 1.0, %v2817_v45  ;;  %v10075_v45 = vsel %vm8207_vm11, %v9247_v58, 0  ;;  %v3229_v58 = vsub.f32 0.0, %v9953_v0 }
 0x216   :  { %5122 = vmatprep.mubr.bf16.mxu1 %v7847_v21  ;;  %v10061_v21 = vsel %vm8207_vm11, %v9206_v4, 0  ;;  %14019 = vst [vmem:[#allocation103_spill] sm:$0xff] %v10075_v45  ;;  %v10080_v4 = vsel %vm8207_vm11, %v9288_v63, 0  ;;  %v2852_v45 = vadd.f32 1.0, %v2820_v6  ;;  %v7848_v63 = vld [vmem:[%s13436_s2 + $0xf0] ss:$20 sps:$4 sm:$0xff]  }
 0x217   :  { %14017 = vst [vmem:[#allocation5_spill] sm:$0xff] %v10061_v21  ;;  %14020 = vst [vmem:[#allocation104_spill] sm:$0xff] %v10080_v4  ;;  %7591 = vrcp.f32 %v2849_v31  ;;  %v10091_v21 = vsel %vm14023_vm8, %v9469_v32, 0  ;;  %v10097_v4 = vpop.eup %7583  ;;  %v10108_v32 = vsel %vm14023_vm8, %v9717_v33, 0  ;;  %v3230_v31 = vsub.f32 0.0, %v9967_v43  ;;  %v10122_v33 = vpop.f32.mrf.mxu0 }
 0x218   :  { %14024 = vst [vmem:[#allocation9_spill] sm:$0xff] %v10091_v21  ;;  %14026 = vst [vmem:[#allocation107_spill] sm:$0xff] %v10108_v32  ;;  %v7849_v6 = vld [vmem:[%s13436_s2 + $0x11c] ss:$20 sps:$4 sm:$0xff]   ;;  %v10114_v21 = vpop.f32.mrf.mxu1  ;;  %v10126_v32 = vadd.f32 %v9712_v35, %v9788_v13  ;;  %v3261_v42 = vmul.f32 %v3229_v58, %v9953_v0  ;;  %v2942_v23 = vmul.f32 1.0614054, %v10097_v4  ;;  %7593 = vrcp.f32 %v2852_v45  ;;  %v10141_v35 = vpop.eup %7585 }
 0x219   :  { %14027 = vst [vmem:[#allocation108_spill] sm:$0xff] %v10114_v21  ;;  %v14029_v21 = vld [vmem:[#allocation17_spill] sm:$0xff]  ;;  %v10149_v13 = vadd.f32 %v9758_v44, %v9838_v62  ;;  %7595 = vrcp.f32 %v2851_v27  ;;  %v2853_v58 = vadd.f32 1.0, %v2821_v7  ;;  %v10166_v62 = vadd.f32 %v9813_v11, %v9866_v54 }
 0x21a   :  { %vm14030_vm11 = vnez %v14029_v21  ;;  %v10156_v45 = vpop.f32.mrf.mxu1  ;;  %v6964_v7 = vadd.f32 -1.4531521, %v2942_v23 }
 0x21b   :  { %v10136_v15 = vsel %vm14030_vm11, %v9781_v55, 0  ;;  %14032 = vst [vmem:[#allocation111_spill] sm:$0xff] %v10149_v13  ;;  %v3262_v55 = vmul.f32 %v3230_v31, %v9967_v43  ;;  %14033 = vst [vmem:[#allocation112_spill] sm:$0xff] %v10156_v45  ;;  %v10174_v31 = vmul.f32 0.5, %v9888_v10  ;;  %7597 = vrcp.f32 %v2853_v58 }
 0x21c   :  { %14031 = vst [vmem:[#allocation110_spill] sm:$0xff] %v10136_v15  ;;  %v10158_v15 = vpop.f32.mrf.mxu0  ;;  %14035 = vst [vmem:[#allocation114_spill] sm:$0xff] %v10166_v62 }
 0x21d   :  { %5123 = vmatmul.mubr.bf16.gmra.mxu1 %v7848_v63  ;;  %v6963_v63 = vadd.f32 -1.4531521, %v2941_v30  ;;  %v3260_v30 = vmul.f32 %v3228_v1, %v9934_v52  ;;  %v10152_v52 = vpop.eup %7587  ;;  %v3232_v1 = vsub.f32 0.0, %v9991_v3  ;;  %v3296_v27 = vmul.f32 1.442695, %v3262_v55 }
 0x21e   :  { %5132 = vmatprep.mubr.bf16.mxu1 %v7849_v6  ;;  %v10130_v6 = vadd.f32 %v9726_v41, %v9811_v48  ;;  %v10145_v41 = vadd.f32 %v9748_v8, %v9826_v22  ;;  %v3036_v48 = vadd.f32 1.4214138, %v3004_v36  ;;  %v10162_v8 = vadd.f32 %v9790_v9, %v9850_v47  ;;  %v10171_v43 = vpop.eup %7589  ;;  %v7850_v9 = vld [vmem:[%s13436_s2 + $0x118] ss:$20 sps:$4 sm:$0xff]  }
 0x21f   :  { %v3005_v0 = vmul.f32 %v10055_v59, %v6963_v63  ;;  %v3292_v44 = vmul.f32 1.442695, %v3260_v30  ;;  %v10169_v22 = vmul.f32 0.5, %v9881_v29  ;;  %v3294_v36 = vmul.f32 1.442695, %v3261_v42 }
 0x220   :  { %14034 = vst [vmem:[#allocation113_spill] sm:$0xff] %v10162_v8  ;;  %v3263_v63 = vmul.f32 %v3231_v49, %v9988_v26  ;;  %v3068_v11 = vmul.f32 %v10022_v17, %v3036_v48  ;;  %v2943_v47 = vmul.f32 1.0614054, %v10141_v35  ;;  %v2944_v54 = vmul.f32 1.0614054, %v10152_v52  ;;  %v10186_v26 = vpop.f32.mrf.mxu1  ;;  %v10188_v49 = vpop.f32.mrf.mxu0 }
 0x221   :  { %v3233_v29 = vsub.f32 0.0, %v10016_v40  ;;  %v3037_v10 = vadd.f32 1.4214138, %v3005_v0  ;;  %v3264_v30 = vmul.f32 %v3232_v1, %v9991_v3  ;;  %14036 = vst [vmem:[#allocation115_spill] sm:$0xff] %v10186_v26  ;;  %7599 = vpow2.f32 %v3292_v44 }
 0x222   :  { %v10191_v42 = vmul.f32 0.5, %v9901_v53  ;;  %v2946_v23 = vmul.f32 1.0614054, %v10171_v43  ;;  %v3234_v48 = vsub.f32 0.0, %v9999_v24  ;;  %7601 = vpow2.f32 %v3294_v36  ;;  %v10202_v45 = vpop.f32.mrf.mxu1 }
 0x223   :  { %v3006_v55 = vmul.f32 %v10097_v4, %v6964_v7  ;;  %v3298_v0 = vmul.f32 1.442695, %v3263_v63  ;;  %v3235_v3 = vsub.f32 0.0, %v10048_v51  ;;  %v6994_v1 = vadd.f32 -0.28449672, %v3068_v11  ;;  %14037 = vst [vmem:[#allocation116_spill] sm:$0xff] %v10202_v45 }
 0x224   :  { %v6965_v58 = vadd.f32 -1.4531521, %v2943_v47  ;;  %v6966_v21 = vadd.f32 -1.4531521, %v2944_v54  ;;  %v3265_v44 = vmul.f32 %v3233_v29, %v10016_v40  ;;  %v3069_v53 = vmul.f32 %v10055_v59, %v3037_v10 }
 0x225   :  { %5133 = vmatmul.mubr.bf16.gmra.mxu1 %v7850_v9  ;;  %v10195_v9 = vpop.eup %7591  ;;  %7603 = vpow2.f32 %v3296_v27  ;;  %v3300_v26 = vmul.f32 1.442695, %v3264_v30  ;;  %v6968_v7 = vadd.f32 -1.4531521, %v2946_v23  ;;  %v3266_v63 = vmul.f32 %v3234_v48, %v9999_v24 }
 0x226   :  { %5288 = vmatprep.mubr.bf16.mxu1 %v13827_v61  ;;  %v10204_v61 = vpop.f32.mrf.mxu0  ;;  %v2945_v36 = vmul.f32 1.0614054, %v10195_v9  ;;  %v10210_v11 = vadd.f32 %v10032_v39, %v9786_v28  ;;  %v3038_v40 = vadd.f32 1.4214138, %v3006_v55  ;;  %7605 = vpow2.f32 %v3298_v0  ;;  %v10216_v29 = vpop.eup %7593 }
 0x227   :  { %v10213_v47 = vmul.f32 0.5, %v9914_v38  ;;  %v3267_v54 = vmul.f32 %v3235_v3, %v10048_v51  ;;  %v3132_v10 = vmul.f32 %v10022_v17, %v6994_v1  ;;  %v3007_v27 = vmul.f32 %v10141_v35, %v6965_v58  ;;  %v10225_v38 = vpop.f32.mrf.mxu1  ;;  %v10229_v51 = vpop.eup %7595 }
 0x228   :  { %v3008_v30 = vmul.f32 %v10152_v52, %v6966_v21  ;;  %v3302_v24 = vmul.f32 1.442695, %v3265_v44  ;;  %v6995_v23 = vadd.f32 -0.28449672, %v3069_v53  ;;  %7607 = vpow2.f32 %v3300_v26  ;;  %14038 = vst [vmem:[#allocation117_spill] sm:$0xff] %v10225_v38  ;;  %v10227_v48 = vpop.f32.mrf.mxu0  ;;  %v10250_v2 = vpop.eup %7597 }
 0x229   :  { %v10222_v28 = vmul.f32 0.5, %v9931_v60  ;;  %v3268_v39 = vmul.f32 %v3236_v50, %v10036_v57  ;;  %v6967_v55 = vadd.f32 -1.4531521, %v2945_v36  ;;  %v3010_v0 = vmul.f32 %v10171_v43, %v6968_v7 }
 0x22a   :  { %v3304_v3 = vmul.f32 1.442695, %v3266_v63  ;;  %v10233_v21 = vmul.f32 0.70710677, %v10210_v11  ;;  %v3070_v26 = vmul.f32 %v10097_v4, %v3038_v40  ;;  %v3306_v1 = vmul.f32 1.442695, %v3267_v54  ;;  %v10246_v40 = vpop.f32.mrf.mxu1  ;;  %v10248_v54 = vpop.f32.mrf.mxu0 }
 0x22b   :  { %v2948_v60 = vmul.f32 1.0614054, %v10216_v29  ;;  %v10239_v57 = vadd.f32 %v10070_v16, %v9792_v5  ;;  %v3164_v50 = vadd.f32 0.2548296, %v3132_v10  ;;  %v3039_v58 = vadd.f32 1.4214138, %v3007_v27 }
 0x22c   :  { %14039 = vst [vmem:[#allocation118_spill] sm:$0xff] %v10233_v21  ;;  %v3040_v44 = vadd.f32 1.4214138, %v3008_v30  ;;  %7609 = vpow2.f32 %v3302_v24  ;;  %v3133_v53 = vmul.f32 %v10055_v59, %v6995_v23  ;;  %v2947_v36 = vmul.f32 1.0614054, %v10229_v51  ;;  %14040 = vst [vmem:[#allocation119_spill] sm:$0xff] %v10246_v40 }
 0x22d   :  { %v3308_v7 = vmul.f32 1.442695, %v3268_v39  ;;  %v10244_v63 = vmul.f32 0.5, %v9956_v12  ;;  %v3009_v5 = vmul.f32 %v10195_v9, %v6967_v55  ;;  %v3042_v16 = vadd.f32 1.4214138, %v3010_v0 }
 0x22e   :  { %7611 = vpow2.f32 %v3304_v3  ;;  %v10254_v10 = vand.u32 2147483647, %v10233_v21  ;;  %v7600_v27 = vpop.eup %7599  ;;  %v6996_v30 = vadd.f32 -0.28449672, %v3070_v26  ;;  %v6970_v24 = vadd.f32 -1.4531521, %v2948_v60  ;;  %v10269_v60 = vpop.f32.mrf.mxu0 }
 0x22f   :  { %7613 = vpow2.f32 %v3306_v1  ;;  %v10257_v12 = vmul.f32 0.70710677, %v10239_v57  ;;  %v7602_v23 = vpop.eup %7601  ;;  %v3196_v39 = vmul.f32 %v10022_v17, %v3164_v50  ;;  %v3071_v62 = vmul.f32 %v10141_v35, %v3039_v58  ;;  %v10267_v1 = vpop.f32.mrf.mxu1 }
 0x230   :  { %v3072_v8 = vmul.f32 %v10152_v52, %v3040_v44  ;;  %v10264_v55 = vadd.f32 %v10158_v15, %v9809_v56  ;;  %v3165_v0 = vadd.f32 0.2548296, %v3133_v53  ;;  %v6969_v3 = vadd.f32 -1.4531521, %v2947_v36  ;;  %14043 = vst [vmem:[#allocation122_spill] sm:$0xff] %v10267_v1  ;;  %v10300_v38 = vpop.f32.mrf.mxu0 }
 0x231   :  { %14041 = vst [vmem:[#allocation120_spill] sm:$0xff] %v10257_v12  ;;  %7615 = vpow2.f32 %v3308_v7  ;;  %v2949_v26 = vmul.f32 1.0614054, %v10250_v2  ;;  %v3041_v17 = vadd.f32 1.4214138, %v3009_v5  ;;  %v3074_v50 = vmul.f32 %v10171_v43, %v3042_v16 }
 0x232   :  { %14042 = vst [vmem:[#allocation121_spill] sm:$0xff] %v10264_v55  ;;  %v10271_v40 = vpop.eup %7603  ;;  %v2822_v58 = vmul.f32 0.3275911, %v10254_v10  ;;  %v10277_v56 = vadd.f32 %v10122_v33, %v9805_v37  ;;  %v3134_v15 = vmul.f32 %v10097_v4, %v6996_v30  ;;  %v3012_v44 = vmul.f32 %v10216_v29, %v6970_v24 }
 0x233   :  { %v10283_v53 = vadd.f32 %v10053_v46, %v10126_v32  ;;  %v10286_v36 = vand.u32 2147483647, %v10257_v12  ;;  %v10288_v7 = vpop.eup %7605  ;;  %v10290_v5 = vmul.f32 %v7600_v27, %v3196_v39  ;;  %v6997_v16 = vadd.f32 -0.28449672, %v3071_v62  ;;  %v10298_v32 = vpop.f32.mrf.mxu1 }
 0x234   :  { %14044 = vst [vmem:[#allocation123_spill] sm:$0xff] %v10277_v56  ;;  %v6998_v1 = vadd.f32 -0.28449672, %v3072_v8  ;;  %v10293_v37 = vmul.f32 0.70710677, %v10264_v55  ;;  %v3197_v33 = vmul.f32 %v10055_v59, %v3165_v0  ;;  %v3011_v30 = vmul.f32 %v10229_v51, %v6969_v3  ;;  %14047 = vst [vmem:[#allocation126_spill] sm:$0xff] %v10298_v32 }
 0x235   :  { %14045 = vst [vmem:[#allocation124_spill] sm:$0xff] %v10283_v53  ;;  %v6971_v24 = vadd.f32 -1.4531521, %v2949_v26  ;;  %v3237_v46 = vsub.f32 0.0, %v10068_v20  ;;  %v10302_v45 = vpop.eup %7607  ;;  %v3073_v27 = vmul.f32 %v10195_v9, %v3041_v17  ;;  %v7000_v62 = vadd.f32 -0.28449672, %v3074_v50 }
 0x236   :  { %14046 = vst [vmem:[#allocation125_spill] sm:$0xff] %v10293_v37  ;;  %v2854_v8 = vadd.f32 1.0, %v2822_v58  ;;  %v10306_v39 = vmul.f32 0.70710677, %v10277_v56  ;;  %v3166_v12 = vadd.f32 0.2548296, %v3134_v15  ;;  %v10311_v3 = vadd.f32 %v10204_v61, %v9816_v34  ;;  %v10326_v61 = vpop.f32.mrf.mxu1 }
 0x237   :  { %v3044_v59 = vadd.f32 1.4214138, %v3012_v44  ;;  %v2824_v0 = vmul.f32 0.3275911, %v10286_v36  ;;  %v3388_v26 = vsub.f32 1.0, %v10290_v5  ;;  %v3135_v32 = vmul.f32 %v10141_v35, %v6997_v16  ;;  %14051 = vst [vmem:[#allocation130_spill] sm:$0xff] %v10326_v61  ;;  %v10331_v5 = vpop.f32.mrf.mxu0 }
 0x238   :  { %14048 = vst [vmem:[#allocation127_spill] sm:$0xff] %v10306_v39  ;;  %14049 = vst [vmem:[#allocation128_spill] sm:$0xff] %v10311_v3  ;;  %v3136_v13 = vmul.f32 %v10152_v52, %v6998_v1  ;;  %v10317_v17 = vand.u32 2147483647, %v10293_v37  ;;  %v3043_v58 = vadd.f32 1.4214138, %v3011_v30  ;;  %v3013_v15 = vmul.f32 %v10250_v2, %v6971_v24 }
 0x239   :  { %v10319_v50 = vpop.eup %7609  ;;  %v10324_v44 = vmul.f32 0.70710677, %v10283_v53  ;;  %v10329_v34 = vmul.f32 0.70710677, %v10311_v3  ;;  %14053 = vst [vmem:[#allocation132_spill] sm:$0xff] %v10331_v5  ;;  %v3138_v16 = vmul.f32 %v10171_v43, %v7000_v62  ;;  %7617 = vrcp.f32 %v2854_v8 }
 0x23a   :  { %v6999_v1 = vadd.f32 -0.28449672, %v3073_v27  ;;  %v10335_v56 = vand.u32 2147483647, %v10306_v39  ;;  %v10337_v37 = vmul.f32 %v7602_v23, %v3197_v33  ;;  %v3076_v24 = vmul.f32 %v10216_v29, %v3044_v59 }
 0x23b   :  { %14050 = vst [vmem:[#allocation129_spill] sm:$0xff] %v10324_v44  ;;  %14052 = vst [vmem:[#allocation131_spill] sm:$0xff] %v10329_v34  ;;  %v7612_v30 = vpop.eup %7611  ;;  %v2856_v53 = vadd.f32 1.0, %v2824_v0  ;;  %v10342_v61 = vadd.f32 %v10188_v49, %v10130_v6  ;;  %v3198_v27 = vmul.f32 %v10097_v4, %v3166_v12  ;;  %v3168_v3 = vadd.f32 0.2548296, %v3136_v13  ;;  %v10355_v0 = vpop.f32.mrf.mxu1 }
 0x23c   :  { %v10344_v21 = vpop.eup %7613  ;;  %v2826_v62 = vmul.f32 0.3275911, %v10317_v17  ;;  %v10349_v8 = vand.u32 2147483647, %v10329_v34  ;;  %v3452_v39 = vsub.f32 0.0, %v3388_v26  ;;  %v3075_v23 = vmul.f32 %v10229_v51, %v3043_v58  ;;  %14055 = vst [vmem:[#allocation134_spill] sm:$0xff] %v10355_v0  ;;  %v10357_v6 = vpop.f32.mrf.mxu0 }
 0x23d   :  { %14054 = vst [vmem:[#allocation133_spill] sm:$0xff] %v10342_v61  ;;  %v3045_v33 = vadd.f32 1.4214138, %v3013_v15  ;;  %v10353_v59 = vand.u32 2147483647, %v10324_v44  ;;  %14056 = vst [vmem:[#allocation135_spill] sm:$0xff] %v10357_v6  ;;  %v3137_v13 = vmul.f32 %v10195_v9, %v6999_v1  ;;  %v3269_v58 = vmul.f32 %v3237_v46, %v10068_v20  ;;  %v10376_v20 = vpop.f32.mrf.mxu1 }
 0x23e   :  { %v10359_v49 = vpop.eup %7615  ;;  %v3167_v4 = vadd.f32 0.2548296, %v3135_v32  ;;  %v3170_v12 = vadd.f32 0.2548296, %v3138_v16  ;;  %v2825_v34 = vmul.f32 0.3275911, %v10335_v56  ;;  %7619 = vrcp.f32 %v2856_v53  ;;  %v10378_v53 = vpop.f32.mrf.mxu0 }
 0x23f   :  { %v7002_v55 = vadd.f32 -0.28449672, %v3076_v24  ;;  %v10366_v15 = vmul.f32 0.70710677, %v10342_v61  ;;  %v3389_v44 = vsub.f32 1.0, %v10337_v37  ;;  %v3200_v0 = vmul.f32 %v10152_v52, %v3168_v3  ;;  %14058 = vst [vmem:[#allocation137_spill] sm:$0xff] %v10376_v20 }
 0x240   :  { %v2858_v6 = vadd.f32 1.0, %v2826_v62  ;;  %v2828_v32 = vmul.f32 0.3275911, %v10349_v8  ;;  %v10372_v1 = vmul.f32 %v10271_v40, %v3198_v27  ;;  %v7001_v16 = vadd.f32 -0.28449672, %v3075_v23 }
 0x241   :  { %14057 = vst [vmem:[#allocation136_spill] sm:$0xff] %v10366_v15  ;;  %v3077_v5 = vmul.f32 %v10250_v2, %v3045_v33  ;;  %v2823_v24 = vmul.f32 0.3275911, %v10353_v59  ;;  %v3484_v37 = vsel %vm3420_vm13, %v3388_v26, %v3452_v39  ;;  %v3169_v46 = vadd.f32 0.2548296, %v3137_v13  ;;  %v10391_v26 = vpop.f32.mrf.mxu1 }
 0x242   :  { %v3202_v52 = vmul.f32 %v10171_v43, %v3170_v12  ;;  %v2857_v3 = vadd.f32 1.0, %v2825_v34  ;;  %v3199_v62 = vmul.f32 %v10141_v35, %v3167_v4  ;;  %v3140_v40 = vmul.f32 %v10216_v29, %v7002_v55  ;;  %v10397_v55 = vpop.f32.mrf.mxu0  ;;  %v14059_v4 = vld [vmem:[#allocation89_spill] sm:$0xff] }
 0x243   :  { %v3310_v27 = vmul.f32 1.442695, %v3269_v58  ;;  %v10386_v23 = vand.u32 2147483647, %v10366_v15  ;;  %v3453_v33 = vsub.f32 0.0, %v3389_v44  ;;  %v3360_v61 = vmul.f32 %v10302_v45, %v3200_v0 }
 0x244   :  { %7621 = vrcp.f32 %v2858_v6  ;;  %v2860_v20 = vadd.f32 1.0, %v2828_v32  ;;  %v3139_v19 = vmul.f32 %v10229_v51, %v7001_v16  ;;  %v7003_v39 = vadd.f32 -0.28449672, %v3077_v5 }
 0x245   :  { %v2855_v43 = vadd.f32 1.0, %v2823_v24  ;;  %v10395_v35 = vadd.f32 %v10248_v54, %v9824_v18  ;;  %v3390_v34 = vsub.f32 1.0, %v10372_v1  ;;  %v3201_v45 = vmul.f32 %v10195_v9, %v3169_v46  ;;  %v14060_v9 = vld [vmem:[#allocation91_spill] sm:$0xff]  ;;  %v10412_v1 = vpop.f32.mrf.mxu1  ;;  %v10417_v24 = vpop.f32.mrf.mxu0 }
 0x246   :  { %v3362_v0 = vmul.f32 %v7612_v30, %v3202_v52  ;;  %7623 = vrcp.f32 %v2857_v3  ;;  %v10401_v6 = vpop.eup %7617  ;;  %vm3424_vm15 = vcmp.ge.f32.partialorder %v14059_v4, 0.0  ;;  %v3172_v5 = vadd.f32 0.2548296, %v3140_v40 }
 0x247   :  { %7625 = vpow2.f32 %v3310_v27  ;;  %v2827_v13 = vmul.f32 0.3275911, %v10386_v23  ;;  %v10406_v12 = vmul.f32 0.70710677, %v10395_v35  ;;  %v3548_v18 = vadd.f32 1.0, %v3484_v37 }
 0x248   :  { %v3485_v54 = vsel %vm3421_vm0, %v3389_v44, %v3453_v33  ;;  %v3392_v58 = vsub.f32 1.0, %v3360_v61  ;;  %7627 = vrcp.f32 %v2860_v20  ;;  %vm3426_vm9 = vcmp.ge.f32.partialorder %v14060_v9, 0.0 }
 0x249   :  { %v3171_v30 = vadd.f32 0.2548296, %v3139_v19  ;;  %v3141_v32 = vmul.f32 %v10250_v2, %v7003_v39  ;;  %7629 = vrcp.f32 %v2855_v43  ;;  %v10415_v16 = vand.u32 2147483647, %v10406_v12 }
 0x24a   :  { %v3454_v46 = vsub.f32 0.0, %v3390_v34  ;;  %v10420_v37 = vmul.f32 %v10319_v50, %v3201_v45  ;;  %v3394_v25 = vsub.f32 1.0, %v3362_v0  ;;  %v2950_v44 = vmul.f32 1.0614054, %v10401_v6  ;;  %v14064_v50 = vld [vmem:[#allocation55_spill] sm:$0xff]  ;;  %v10439_v45 = vpop.f32.mrf.mxu1  ;;  %v10441_v0 = vpop.f32.mrf.mxu0 }
 0x24b   :  { %v10424_v61 = vmul.f32 %v10288_v7, %v3199_v62  ;;  %v3204_v20 = vmul.f32 %v10216_v29, %v3172_v5  ;;  %v2859_v52 = vadd.f32 1.0, %v2827_v13  ;;  %v2830_v3 = vmul.f32 0.3275911, %v10415_v16  ;;  %v10428_v40 = vpop.eup %7619 }
 0x24c   :  { %14061 = vst [vmem:[#allocation89_spill] sm:$0xff] %v10420_v37  ;;  %v10431_v27 = vmul.f32 %v3548_v18, %v10169_v22  ;;  %v3549_v33 = vadd.f32 1.0, %v3485_v54  ;;  %v3456_v19 = vsub.f32 0.0, %v3392_v58  ;;  %v10435_v39 = vadd.f32 %v10227_v48, %v14064_v50 }
 0x24d   :  { %14062 = vst [vmem:[#allocation91_spill] sm:$0xff] %v10424_v61  ;;  %v3203_v43 = vmul.f32 %v10229_v51, %v3171_v30  ;;  %v3173_v7 = vadd.f32 0.2548296, %v3141_v32  ;;  %v3238_v62 = vsub.f32 0.0, %v10254_v10  ;;  %v2862_v29 = vadd.f32 1.0, %v2830_v3 }
 0x24e   :  { %14063 = vst [vmem:[#allocation138_spill] sm:$0xff] %v10431_v27  ;;  %14065 = vst [vmem:[#allocation55_spill] sm:$0xff] %v10435_v39  ;;  %v3486_v22 = vsel %vm3422_vm2, %v3390_v34, %v3454_v46  ;;  %v13610_v5 = vsub.f32 1.0, %v10420_v37  ;;  %v3458_v13 = vsub.f32 0.0, %v3394_v25  ;;  %v6972_v18 = vadd.f32 -1.4531521, %v2950_v44 }
 0x24f   :  { %v3364_v48 = vmul.f32 %v10359_v49, %v3204_v20  ;;  %v3239_v54 = vsub.f32 0.0, %v10353_v59  ;;  %v2952_v51 = vmul.f32 1.0614054, %v10428_v40  ;;  %7631 = vrcp.f32 %v2859_v52  ;;  %v10467_v52 = vpop.f32.mrf.mxu0 }
 0x250   :  { %v10450_v30 = vmul.f32 %v3549_v33, %v10174_v31  ;;  %v3488_v14 = vsel %vm3424_vm15, %v3392_v58, %v3456_v19  ;;  %v10456_v34 = vmul.f32 0.70710677, %v10435_v39  ;;  %v10461_v49 = vmul.f32 %v10344_v21, %v3203_v43  ;;  %v10465_v31 = vpop.f32.mrf.mxu1  ;;  %v14070_v58 = vld [vmem:[#allocation96_spill] sm:$0xff] }
 0x251   :  { %v10458_v46 = vpop.eup %7621  ;;  %v3205_v44 = vmul.f32 %v10250_v2, %v3173_v7  ;;  %v3270_v20 = vmul.f32 %v3238_v62, %v10254_v10  ;;  %7633 = vrcp.f32 %v2862_v29  ;;  %14069 = vst [vmem:[#allocation142_spill] sm:$0xff] %v10465_v31  ;;  %v3550_v3 = vadd.f32 1.0, %v3486_v22 }
 0x252   :  { %14066 = vst [vmem:[#allocation139_spill] sm:$0xff] %v10450_v30  ;;  %14067 = vst [vmem:[#allocation140_spill] sm:$0xff] %v10456_v34  ;;  %v3490_v4 = vsel %vm3426_vm9, %v3394_v25, %v3458_v13  ;;  %vm3428_vm5 = vcmp.ge.f32.partialorder %v14070_v58, 0.0  ;;  %v3014_v33 = vmul.f32 %v10401_v6, %v6972_v18  ;;  %v10475_v21 = vadd.f32 %v10269_v60, %v10145_v41  ;;  %v14105_v30 = vld [vmem:[#allocation120_spill] sm:$0xff] }
 0x253   :  { %14068 = vst [vmem:[#allocation141_spill] sm:$0xff] %v10461_v49  ;;  %v10477_v2 = vpop.eup %7623  ;;  %v10481_v10 = vsub.f32 0.0, %v13610_v5  ;;  %v3396_v19 = vsub.f32 1.0, %v3364_v48  ;;  %v3271_v50 = vmul.f32 %v3239_v54, %v10353_v59  ;;  %v6974_v43 = vadd.f32 -1.4531521, %v2952_v51  ;;  %v10496_v59 = vpop.f32.mrf.mxu1 }
 0x254   :  { %14071 = vst [vmem:[#allocation96_spill] sm:$0xff] %v10475_v21  ;;  %v7626_v9 = vpop.eup %7625  ;;  %v3552_v25 = vadd.f32 1.0, %v3488_v14  ;;  %v10485_v7 = vmul.f32 0.5, %v10210_v11  ;;  %v2954_v62 = vmul.f32 1.0614054, %v10458_v46  ;;  %v3554_v29 = vadd.f32 1.0, %v3490_v4  ;;  %v10498_v48 = vpop.f32.mrf.mxu0 }
 0x255   :  { %14072 = vst [vmem:[#allocation143_spill] sm:$0xff] %v10481_v10  ;;  %v10489_v41 = vand.u32 2147483647, %v10456_v34  ;;  %v10491_v60 = vpop.eup %7627  ;;  %v10494_v13 = vmul.f32 %v7626_v9, %v3205_v44  ;;  %v3312_v18 = vmul.f32 1.442695, %v3270_v20  ;;  %14074 = vst [vmem:[#allocation145_spill] sm:$0xff] %v10496_v59  ;;  %v10503_v11 = vmul.f32 %v3550_v3, %v10191_v42 }
 0x256   :  { %v10500_v54 = vpop.eup %7629  ;;  %v3046_v51 = vadd.f32 1.4214138, %v3014_v33  ;;  %v2953_v14 = vmul.f32 1.0614054, %v10477_v2  ;;  %v10507_v5 = vmul.f32 0.70710677, %v10475_v21  ;;  %v3016_v44 = vmul.f32 %v10428_v40, %v6974_v43  ;;  %v10522_v43 = vpop.f32.mrf.mxu1 }
 0x257   :  { %14073 = vst [vmem:[#allocation144_spill] sm:$0xff] %v10494_v13  ;;  %14075 = vst [vmem:[#allocation146_spill] sm:$0xff] %v10503_v11  ;;  %v3460_v4 = vsub.f32 0.0, %v3396_v19  ;;  %v3314_v32 = vmul.f32 1.442695, %v3271_v50  ;;  %v3240_v20 = vsub.f32 0.0, %v10286_v36  ;;  %v10512_v9 = vmul.f32 %v3552_v25, %v10213_v47  ;;  %v10524_v61 = vpop.f32.mrf.mxu0 }
 0x258   :  { %14076 = vst [vmem:[#allocation147_spill] sm:$0xff] %v10507_v5  ;;  %v6976_v22 = vadd.f32 -1.4531521, %v2954_v62  ;;  %v2956_v37 = vmul.f32 1.0614054, %v10491_v60  ;;  %v10517_v3 = vmul.f32 %v3554_v29, %v10222_v28  ;;  %v3241_v50 = vsub.f32 0.0, %v10335_v56 }
 0x259   :  { %14077 = vst [vmem:[#allocation148_spill] sm:$0xff] %v10512_v9  ;;  %v2829_v42 = vmul.f32 0.3275911, %v10489_v41  ;;  %v2951_v10 = vmul.f32 1.0614054, %v10500_v54  ;;  %14079 = vst [vmem:[#allocation150_spill] sm:$0xff] %v10522_v43  ;;  %v3078_v47 = vmul.f32 %v10401_v6, %v3046_v51  ;;  %7635 = vpow2.f32 %v3312_v18 }
 0x25a   :  { %14078 = vst [vmem:[#allocation149_spill] sm:$0xff] %v10517_v3  ;;  %v6975_v25 = vadd.f32 -1.4531521, %v2953_v14  ;;  %v10528_v62 = vand.u32 2147483647, %v10507_v5  ;;  %v3492_v28 = vsel %vm3428_vm5, %v3396_v19, %v3460_v4  ;;  %7637 = vpow2.f32 %v3314_v32  ;;  %v10545_v19 = vpop.f32.mrf.mxu1  ;;  %v14089_v5 = vld [vmem:[#allocation132_spill] sm:$0xff] }
 0x25b   :  { %v3048_v29 = vadd.f32 1.4214138, %v3016_v44  ;;  %v3272_v33 = vmul.f32 %v3240_v20, %v10286_v36  ;;  %v3018_v49 = vmul.f32 %v10458_v46, %v6976_v22  ;;  %v3242_v21 = vsub.f32 0.0, %v10317_v17  ;;  %14082 = vst [vmem:[#allocation152_spill] sm:$0xff] %v10545_v19  ;;  %v10547_v36 = vpop.f32.mrf.mxu0 }
 0x25c   :  { %v10533_v39 = vpop.eup %7631  ;;  %v6978_v43 = vadd.f32 -1.4531521, %v2956_v37  ;;  %v2861_v51 = vadd.f32 1.0, %v2829_v42  ;;  %v14080_v18 = vsub.f32 1.0, %v10494_v13  ;;  %v6973_v15 = vadd.f32 -1.4531521, %v2951_v10 }
 0x25d   :  { %v10542_v58 = vmul.f32 0.5, %v10239_v57  ;;  %v3273_v32 = vmul.f32 %v3241_v50, %v10335_v56  ;;  %v3556_v22 = vadd.f32 1.0, %v3492_v28  ;;  %v7004_v44 = vadd.f32 -0.28449672, %v3078_v47 }
 0x25e   :  { %v10539_v14 = vsub.f32 0.0, %v14080_v18  ;;  %v10549_v4 = vpop.eup %7633  ;;  %v3017_v37 = vmul.f32 %v10477_v2, %v6975_v25  ;;  %v2831_v20 = vmul.f32 0.3275911, %v10528_v62  ;;  %v3080_v42 = vmul.f32 %v10428_v40, %v3048_v29  ;;  %v14083_v25 = vld [vmem:[#allocation58_spill] sm:$0xff]  ;;  %v10563_v29 = vpop.f32.mrf.mxu1 }
 0x25f   :  { %v3316_v10 = vmul.f32 1.442695, %v3272_v33  ;;  %v2955_v57 = vmul.f32 1.0614054, %v10533_v39  ;;  %v2958_v18 = vmul.f32 1.0614054, %v10549_v4  ;;  %v3274_v50 = vmul.f32 %v3242_v21, %v10317_v17  ;;  %v10565_v33 = vpop.f32.mrf.mxu0 }
 0x260   :  { %14081 = vst [vmem:[#allocation151_spill] sm:$0xff] %v10539_v14  ;;  %v3050_v56 = vadd.f32 1.4214138, %v3018_v49  ;;  %v3020_v13 = vmul.f32 %v10491_v60, %v6978_v43  ;;  %7639 = vrcp.f32 %v2861_v51  ;;  %v3015_v28 = vmul.f32 %v10500_v54, %v6973_v15  ;;  %14084 = vst [vmem:[#allocation58_spill] sm:$0xff] %v10563_v29 }
 0x261   :  { %v3318_v47 = vmul.f32 1.442695, %v3273_v32  ;;  %v6980_v14 = vadd.f32 -1.4531521, %v2958_v18  ;;  %v10561_v31 = vadd.f32 %v10300_v38, %v14083_v25  ;;  %14085 = vst [vmem:[#allocation153_spill] sm:$0xff] %v10565_v33  ;;  %v3142_v34 = vmul.f32 %v10401_v6, %v7004_v44 }
 0x262   :  { %v3049_v49 = vadd.f32 1.4214138, %v3017_v37  ;;  %v3244_v17 = vsub.f32 0.0, %v10349_v8  ;;  %v2863_v21 = vadd.f32 1.0, %v2831_v20  ;;  %v10570_v43 = vmul.f32 %v3556_v22, %v10244_v63  ;;  %v10581_v63 = vpop.f32.mrf.mxu1  ;;  %v10583_v22 = vpop.f32.mrf.mxu0 }
 0x263   :  { %v7006_v15 = vadd.f32 -0.28449672, %v3080_v42  ;;  %v6977_v51 = vadd.f32 -1.4531521, %v2955_v57  ;;  %v10573_v32 = vmul.f32 0.70710677, %v10561_v31  ;;  %7641 = vpow2.f32 %v3316_v10 }
 0x264   :  { %14086 = vst [vmem:[#allocation154_spill] sm:$0xff] %v10570_v43  ;;  %v3082_v38 = vmul.f32 %v10458_v46, %v3050_v56  ;;  %v3320_v18 = vmul.f32 1.442695, %v3274_v50  ;;  %v3052_v25 = vadd.f32 1.4214138, %v3020_v13  ;;  %v3243_v44 = vsub.f32 0.0, %v10386_v23  ;;  %v10604_v9 = vpop.f32.mrf.mxu0 }
 0x265   :  { %v3047_v29 = vadd.f32 1.4214138, %v3015_v28  ;;  %v3022_v37 = vmul.f32 %v10549_v4, %v6980_v14  ;;  %v10579_v20 = vand.u32 2147483647, %v10573_v32  ;;  %14087 = vst [vmem:[#allocation155_spill] sm:$0xff] %v10581_v63  ;;  %v3081_v57 = vmul.f32 %v10477_v2, %v3049_v49  ;;  %v14088_v28 = vld [vmem:[#allocation59_spill] sm:$0xff] }
 0x266   :  { %v3174_v42 = vadd.f32 0.2548296, %v3142_v34  ;;  %v3276_v10 = vmul.f32 %v3244_v17, %v10349_v8  ;;  %7643 = vrcp.f32 %v2863_v21  ;;  %v7636_v56 = vpop.eup %7635  ;;  %v3144_v13 = vmul.f32 %v10428_v40, %v7006_v15  ;;  %v14091_v34 = vld [vmem:[#allocation121_spill] sm:$0xff] }
 0x267   :  { %v3019_v50 = vmul.f32 %v10533_v39, %v6977_v51  ;;  %v2832_v14 = vmul.f32 0.3275911, %v10579_v20  ;;  %v10592_v19 = vadd.f32 %v14089_v5, %v14088_v28  ;;  %v10594_v59 = vpop.eup %7637  ;;  %v7008_v43 = vadd.f32 -0.28449672, %v3082_v38  ;;  %v10602_v51 = vpop.f32.mrf.mxu1 }
 0x268   :  { %v10597_v3 = vmul.f32 0.5, %v14091_v34  ;;  %v3084_v8 = vmul.f32 %v10491_v60, %v3052_v25  ;;  %v3246_v49 = vsub.f32 0.0, %v10415_v16  ;;  %v3079_v17 = vmul.f32 %v10500_v54, %v3047_v29 }
 0x269   :  { %14090 = vst [vmem:[#allocation59_spill] sm:$0xff] %v10592_v19  ;;  %7645 = vpow2.f32 %v3320_v18  ;;  %v3054_v21 = vadd.f32 1.4214138, %v3022_v37  ;;  %v2864_v15 = vadd.f32 1.0, %v2832_v14  ;;  %v3206_v5 = vmul.f32 %v10401_v6, %v3174_v42  ;;  %v14093_v6 = vld [vmem:[#allocation128_spill] sm:$0xff] }
 0x26a   :  { %v7007_v28 = vadd.f32 -0.28449672, %v3081_v57  ;;  %v3275_v38 = vmul.f32 %v3243_v44, %v10386_v23  ;;  %v3324_v34 = vmul.f32 1.442695, %v3276_v10  ;;  %v3176_v33 = vadd.f32 0.2548296, %v3144_v13  ;;  %v10623_v10 = vpop.f32.mrf.mxu1  ;;  %v10625_v13 = vpop.f32.mrf.mxu0 }
 0x26b   :  { %7647 = vpow2.f32 %v3318_v47  ;;  %v3051_v25 = vadd.f32 1.4214138, %v3019_v50  ;;  %v10609_v11 = vmul.f32 0.70710677, %v10592_v19  ;;  %v3146_v29 = vmul.f32 %v10458_v46, %v7008_v43  ;;  %v14094_v44 = vld [vmem:[#allocation61_spill] sm:$0xff]  ;;  %v14095_v47 = vld [vmem:[#allocation135_spill] sm:$0xff] }
 0x26c   :  { %v7010_v18 = vadd.f32 -0.28449672, %v3084_v8  ;;  %v3278_v37 = vmul.f32 %v3246_v49, %v10415_v16  ;;  %7649 = vrcp.f32 %v2864_v15  ;;  %v7005_v27 = vadd.f32 -0.28449672, %v3079_v17  ;;  %14096 = vst [vmem:[#allocation121_spill] sm:$0xff] %v10623_v10  ;;  %14097 = vst [vmem:[#allocation128_spill] sm:$0xff] %v10625_v13 }
 0x26d   :  { %14092 = vst [vmem:[#allocation132_spill] sm:$0xff] %v10609_v11  ;;  %v10613_v14 = vpop.eup %7639  ;;  %v10616_v42 = vmul.f32 0.5, %v14093_v6  ;;  %v3086_v23 = vmul.f32 %v10549_v4, %v3054_v21  ;;  %v10621_v57 = vadd.f32 %v14095_v47, %v14094_v44  ;;  %v10627_v43 = vmul.f32 %v7636_v56, %v3206_v5  ;;  %v10648_v47 = vpop.f32.mrf.mxu0 }
 0x26e   :  { %v3145_v16 = vmul.f32 %v10477_v2, %v7007_v28  ;;  %v3322_v50 = vmul.f32 1.442695, %v3275_v38  ;;  %7651 = vpow2.f32 %v3324_v34  ;;  %v3208_v8 = vmul.f32 %v10428_v40, %v3176_v33  ;;  %v14099_v28 = vld [vmem:[#allocation118_spill] sm:$0xff] }
 0x26f   :  { %v3083_v49 = vmul.f32 %v10533_v39, %v3051_v25  ;;  %v10633_v17 = vand.u32 2147483647, %v10609_v11  ;;  %v10636_v21 = vmul.f32 0.70710677, %v10621_v57  ;;  %v3178_v15 = vadd.f32 0.2548296, %v3146_v29  ;;  %v10646_v25 = vpop.f32.mrf.mxu1 }
 0x270   :  { %v3148_v6 = vmul.f32 %v10491_v60, %v7010_v18  ;;  %v2957_v56 = vmul.f32 1.0614054, %v10613_v14  ;;  %v3328_v5 = vmul.f32 1.442695, %v3278_v37  ;;  %v7642_v44 = vpop.eup %7641  ;;  %vm3430_vm3 = vcmp.ge.f32.partialorder %v14099_v28, 0.0  ;;  %14100 = vst [vmem:[#allocation135_spill] sm:$0xff] %v10646_v25 }
 0x271   :  { %14098 = vst [vmem:[#allocation61_spill] sm:$0xff] %v10636_v21  ;;  %v3143_v38 = vmul.f32 %v10500_v54, %v7005_v27  ;;  %v3245_v40 = vsub.f32 0.0, %v10489_v41  ;;  %v7012_v33 = vadd.f32 -0.28449672, %v3086_v23  ;;  %v10644_v34 = vand.u32 2147483647, %v10636_v21 }
 0x272   :  { %14101 = vst [vmem:[#allocation118_spill] sm:$0xff] %v10648_v47  ;;  %v3398_v29 = vsub.f32 1.0, %v10627_v43  ;;  %v3177_v18 = vadd.f32 0.2548296, %v3145_v16  ;;  %7653 = vpow2.f32 %v3322_v50  ;;  %v14102_v37 = vld [vmem:[#allocation111_spill] sm:$0xff]  ;;  %v10657_v27 = vmul.f32 %v7642_v44, %v3208_v8  ;;  %v10666_v8 = vpop.f32.mrf.mxu0 }
 0x273   :  { %v10653_v19 = vadd.f32 %v10378_v53, %v14102_v37  ;;  %v10655_v11 = vpop.eup %7643  ;;  %v7009_v23 = vadd.f32 -0.28449672, %v3083_v49  ;;  %v2833_v21 = vmul.f32 0.3275911, %v10633_v17  ;;  %v2834_v10 = vmul.f32 0.3275911, %v10644_v34  ;;  %v10664_v37 = vpop.f32.mrf.mxu1 }
 0x274   :  { %v3210_v25 = vmul.f32 %v10458_v46, %v3178_v15  ;;  %v3180_v47 = vadd.f32 0.2548296, %v3148_v6  ;;  %v6979_v13 = vadd.f32 -1.4531521, %v2957_v56  ;;  %7655 = vpow2.f32 %v3328_v5  ;;  %14104 = vst [vmem:[#allocation156_spill] sm:$0xff] %v10664_v37  ;;  %v14109_v37 = vld [vmem:[#allocation117_spill] sm:$0xff] }
 0x275   :  { %14103 = vst [vmem:[#allocation111_spill] sm:$0xff] %v10653_v19  ;;  %v3175_v43 = vadd.f32 0.2548296, %v3143_v38  ;;  %v3277_v16 = vmul.f32 %v3245_v40, %v10489_v41  ;;  %v3150_v53 = vmul.f32 %v10549_v4, %v7012_v33  ;;  %v2866_v50 = vadd.f32 1.0, %v2834_v10  ;;  %v14107_v40 = vld [vmem:[#allocation116_spill] sm:$0xff] }
 0x276   :  { %v7646_v49 = vpop.eup %7645  ;;  %v3462_v44 = vsub.f32 0.0, %v3398_v29  ;;  %vm3432_vm10 = vcmp.ge.f32.partialorder %v14105_v30, 0.0  ;;  %v3209_v63 = vmul.f32 %v10477_v2, %v3177_v18  ;;  %v2959_v46 = vmul.f32 1.0614054, %v10655_v11 }
 0x277   :  { %v10672_v15 = vmul.f32 0.70710677, %v10653_v19  ;;  %v3400_v41 = vsub.f32 1.0, %v10657_v27  ;;  %v3147_v6 = vmul.f32 %v10533_v39, %v7009_v23  ;;  %v2865_v10 = vadd.f32 1.0, %v2833_v21 }
 0x278   :  { %7657 = vrcp.f32 %v2866_v50  ;;  %v7648_v56 = vpop.eup %7647  ;;  %v10676_v5 = vmul.f32 %v7646_v49, %v3210_v25  ;;  %v3212_v38 = vmul.f32 %v10491_v60, %v3180_v47  ;;  %v10681_v33 = vadd.f32 %v10391_v26, %v14107_v40  ;;  %v10691_v25 = vpop.f32.mrf.mxu1  ;;  %v14116_v40 = vld [vmem:[#allocation119_spill] sm:$0xff] }
 0x279   :  { %14106 = vst [vmem:[#allocation120_spill] sm:$0xff] %v10672_v15  ;;  %v3021_v2 = vmul.f32 %v10613_v14, %v6979_v13  ;;  %v10684_v18 = vpop.eup %7649  ;;  %v3207_v19 = vmul.f32 %v10500_v54, %v3175_v43  ;;  %v3326_v27 = vmul.f32 1.442695, %v3277_v16  ;;  %v10689_v21 = vadd.f32 %v10412_v1, %v14109_v37  ;;  %14111 = vst [vmem:[#allocation157_spill] sm:$0xff] %v10691_v25  ;;  %v10693_v50 = vpop.f32.mrf.mxu0  ;;  %v14114_v1 = vld [vmem:[#allocation125_spill] sm:$0xff] }
 0x27a   :  { %14108 = vst [vmem:[#allocation116_spill] sm:$0xff] %v10681_v33  ;;  %v3182_v23 = vadd.f32 0.2548296, %v3150_v53  ;;  %14112 = vst [vmem:[#allocation158_spill] sm:$0xff] %v10693_v50  ;;  %v3494_v26 = vsel %vm3430_vm3, %v3398_v29, %v3462_v44  ;;  %v6981_v60 = vadd.f32 -1.4531521, %v2959_v46  ;;  %v10701_v16 = vmul.f32 %v7648_v56, %v3209_v63  ;;  %v10714_v63 = vpop.f32.mrf.mxu1 }
 0x27b   :  { %14110 = vst [vmem:[#allocation117_spill] sm:$0xff] %v10689_v21  ;;  %v2960_v13 = vmul.f32 1.0614054, %v10684_v18  ;;  %v10699_v47 = vand.u32 2147483647, %v10672_v15  ;;  %v7652_v54 = vpop.eup %7651  ;;  %v3464_v43 = vsub.f32 0.0, %v3400_v41  ;;  %7659 = vrcp.f32 %v2865_v10  ;;  %v10716_v56 = vpop.f32.mrf.mxu0 }
 0x27c   :  { %14113 = vst [vmem:[#allocation159_spill] sm:$0xff] %v10701_v16  ;;  %vm3434_vm14 = vcmp.ge.f32.partialorder %v14114_v1, 0.0  ;;  %v3179_v53 = vadd.f32 0.2548296, %v3147_v6  ;;  %v3402_v37 = vsub.f32 1.0, %v10676_v5  ;;  %v10705_v49 = vmul.f32 %v7652_v54, %v3212_v38  ;;  %v14129_v21 = vld [vmem:[#allocation113_spill] sm:$0xff] }
 0x27d   :  { %v3053_v28 = vadd.f32 1.4214138, %v3021_v2  ;;  %v6982_v29 = vadd.f32 -1.4531521, %v2960_v13  ;;  %v3558_v44 = vadd.f32 1.0, %v3494_v26  ;;  %v10708_v46 = vmul.f32 %v10594_v59, %v3207_v19 }
 0x27e   :  { %7661 = vpow2.f32 %v3326_v27  ;;  %v10712_v25 = vadd.f32 %v10439_v45, %v14116_v40  ;;  %v3214_v6 = vmul.f32 %v10549_v4, %v3182_v23  ;;  %v3023_v10 = vmul.f32 %v10655_v11, %v6981_v60  ;;  %v14118_v27 = vld [vmem:[#allocation63_spill] sm:$0xff]  ;;  %v10741_v40 = vpop.f32.mrf.mxu1 }
 0x27f   :  { %14115 = vst [vmem:[#allocation125_spill] sm:$0xff] %v10708_v46  ;;  %v3024_v5 = vmul.f32 %v10684_v18, %v6982_v29  ;;  %v2835_v38 = vmul.f32 0.3275911, %v10699_v47  ;;  %v7654_v2 = vpop.eup %7653  ;;  %v3496_v59 = vsel %vm3432_vm10, %v3400_v41, %v3464_v43  ;;  %v3248_v45 = vsub.f32 0.0, %v10579_v20  ;;  %v14119_v60 = vld [vmem:[#allocation131_spill] sm:$0xff]  ;;  %14120 = vst [vmem:[#allocation63_spill] sm:$0xff] %v10741_v40 }
 0x280   :  { %14117 = vst [vmem:[#allocation119_spill] sm:$0xff] %v10712_v25  ;;  %v10728_v26 = vadd.f32 %v10397_v55, %v14118_v27  ;;  %v3466_v13 = vsub.f32 0.0, %v3402_v37  ;;  %v3211_v4 = vmul.f32 %v10533_v39, %v3179_v53  ;;  %v3404_v23 = vsub.f32 1.0, %v10705_v49  ;;  %v10743_v27 = vpop.f32.mrf.mxu0  ;;  %v10770_v50 = vpop.f32.mrf.mxu1  ;;  %v14126_v46 = vld [vmem:[#allocation66_spill] sm:$0xff] }
 0x281   :  { %vm3436_vm8 = vcmp.ge.f32.partialorder %v14119_v60, 0.0  ;;  %v3085_v54 = vmul.f32 %v10613_v14, %v3053_v28  ;;  %v7656_v29 = vpop.eup %7655  ;;  %v10735_v30 = vmul.f32 %v3558_v44, %v10485_v7  ;;  %v10739_v43 = vmul.f32 0.5, %v10395_v35  ;;  %14121 = vst [vmem:[#allocation131_spill] sm:$0xff] %v10743_v27 }
 0x282   :  { %v3056_v55 = vadd.f32 1.4214138, %v3024_v5  ;;  %v3374_v39 = vmul.f32 %v7656_v29, %v3214_v6  ;;  %v3055_v53 = vadd.f32 1.4214138, %v3023_v10  ;;  %v3247_v49 = vsub.f32 0.0, %v10528_v62  ;;  %v10772_v1 = vpop.f32.mrf.mxu0 }
 0x283   :  { %v2867_v19 = vadd.f32 1.0, %v2835_v38  ;;  %v10746_v28 = vadd.f32 1.0, %v3496_v59  ;;  %v14122_v7 = vsub.f32 1.0, %v10701_v16  ;;  %v3280_v41 = vmul.f32 %v3248_v45, %v10579_v20  ;;  %v14125_v45 = vld [vmem:[#allocation64_spill] sm:$0xff] }
 0x284   :  { %v10754_v35 = vmul.f32 0.70710677, %v10728_v26  ;;  %v3498_v6 = vsel %vm3434_vm14, %v3402_v37, %v3466_v13  ;;  %v10760_v10 = vmul.f32 %v7654_v2, %v3211_v4  ;;  %v3468_v29 = vsub.f32 0.0, %v3404_v23 }
 0x285   :  { %v10750_v44 = vsub.f32 0.0, %v14122_v7  ;;  %v10756_v5 = vpop.eup %7657  ;;  %v7011_v38 = vadd.f32 -0.28449672, %v3085_v54  ;;  %vm3438_vm13 = vcmp.ge.f32.partialorder %v10406_v12, 0.0  ;;  %v3088_v59 = vmul.f32 %v10684_v18, %v3056_v55 }
 0x286   :  { %14124 = vst [vmem:[#allocation161_spill] sm:$0xff] %v10760_v10  ;;  %v3249_v7 = vsub.f32 0.0, %v10633_v17  ;;  %v2962_v20 = vmul.f32 1.0614054, %v10756_v5  ;;  %v10768_v40 = vadd.f32 %v10417_v24, %v14125_v45  ;;  %v3406_v37 = vsub.f32 1.0, %v3374_v39 }
 0x287   :  { %14123 = vst [vmem:[#allocation160_spill] sm:$0xff] %v10750_v44  ;;  %v3087_v2 = vmul.f32 %v10655_v11, %v3055_v53  ;;  %v3250_v13 = vsub.f32 0.0, %v10644_v34  ;;  %7663 = vrcp.f32 %v2867_v19  ;;  %v3562_v4 = vadd.f32 1.0, %v3498_v6  ;;  %v10794_v6 = vpop.f32.mrf.mxu0 }
 0x288   :  { %v3279_v54 = vmul.f32 %v3247_v49, %v10528_v62  ;;  %v3332_v55 = vmul.f32 1.442695, %v3280_v41  ;;  %v2804_v27 = vand.u32 2147483647, %v10754_v35  ;;  %v10778_v16 = vpop.eup %7659  ;;  %v3149_v45 = vmul.f32 %v10613_v14, %v7011_v38  ;;  %v10792_v49 = vpop.f32.mrf.mxu1  ;;  %14128 = vst [vmem:[#allocation66_spill] sm:$0xff] %v10794_v6 }
 0x289   :  { %v6984_v44 = vadd.f32 -1.4531521, %v2962_v20  ;;  %v10784_v39 = vadd.f32 %v10441_v0, %v14126_v46  ;;  %v3500_v19 = vsel %vm3436_vm8, %v3404_v23, %v3468_v29  ;;  %v7014_v53 = vadd.f32 -0.28449672, %v3088_v59  ;;  %14127 = vst [vmem:[#allocation64_spill] sm:$0xff] %v10792_v49 }
 0x28a   :  { %v3281_v62 = vmul.f32 %v3249_v7, %v10633_v17  ;;  %v10790_v41 = vmul.f32 0.70710677, %v10768_v40  ;;  %v3470_v38 = vsub.f32 0.0, %v3406_v37  ;;  %v7013_v20 = vadd.f32 -0.28449672, %v3087_v2 }
 0x28b   :  { %v7662_v24 = vpop.eup %7661  ;;  %v3282_v10 = vmul.f32 %v3250_v13, %v10644_v34  ;;  %v3251_v0 = vsub.f32 0.0, %v10699_v47  ;;  %v3330_v46 = vmul.f32 1.442695, %v3279_v54  ;;  %7665 = vpow2.f32 %v3332_v55  ;;  %v10808_v54 = vpop.f32.mrf.mxu1 }
 0x28c   :  { %v2961_v23 = vmul.f32 1.0614054, %v10778_v16  ;;  %v3252_v60 = vsub.f32 0.0, %v2804_v27  ;;  %v3181_v17 = vadd.f32 0.2548296, %v3149_v45  ;;  %v10800_v29 = vmul.f32 0.5, %v10561_v31  ;;  %v10810_v55 = vpop.f32.mrf.mxu0 }
 0x28d   :  { %v3026_v59 = vmul.f32 %v10756_v5, %v6984_v44  ;;  %v10804_v7 = vmul.f32 0.70710677, %v10784_v39  ;;  %v3564_v49 = vadd.f32 1.0, %v3500_v19  ;;  %v3152_v2 = vmul.f32 %v10684_v18, %v7014_v53 }
 0x28e   :  { %v3334_v34 = vmul.f32 1.442695, %v3281_v62  ;;  %v2805_v13 = vand.u32 2147483647, %v10790_v41  ;;  %v3502_v45 = vsel %vm3438_vm13, %v3406_v37, %v3470_v38  ;;  %v3151_v31 = vmul.f32 %v10655_v11, %v7013_v20  ;;  %v10832_v20 = vpop.f32.mrf.mxu1 }
 0x28f   :  { %v3336_v6 = vmul.f32 1.442695, %v3282_v10  ;;  %v3283_v44 = vmul.f32 %v3251_v0, %v10699_v47  ;;  %v6983_v15 = vadd.f32 -1.4531521, %v2961_v23  ;;  %v2836_v25 = vmul.f32 0.3275911, %v2804_v27 }
 0x290   :  { %v3284_v19 = vmul.f32 %v3252_v60, %v2804_v27  ;;  %v10818_v53 = vadd.f32 %v10467_v52, %v14129_v21  ;;  %v10822_v62 = vmul.f32 %v10746_v28, %v10542_v58  ;;  %v10825_v33 = vmul.f32 %v3562_v4, %v10597_v3  ;;  %14131 = vst [vmem:[#allocation162_spill] sm:$0xff] %v10832_v20  ;;  %v10834_v52 = vpop.f32.mrf.mxu0 }
 0x291   :  { %v3058_v12 = vadd.f32 1.4214138, %v3026_v59  ;;  %v2806_v37 = vand.u32 2147483647, %v10804_v7  ;;  %v3213_v10 = vmul.f32 %v10613_v14, %v3181_v17  ;;  %v3184_v47 = vadd.f32 0.2548296, %v3152_v2 }
 0x292   :  { %14130 = vst [vmem:[#allocation113_spill] sm:$0xff] %v10818_v53  ;;  %v10830_v38 = vmul.f32 0.5, %v10621_v57  ;;  %v3253_v27 = vsub.f32 0.0, %v2805_v13  ;;  %14132 = vst [vmem:[#allocation163_spill] sm:$0xff] %v10834_v52  ;;  %v3566_v21 = vadd.f32 1.0, %v3502_v45  ;;  %v10839_v3 = vmul.f32 0.5, %v10728_v26  ;;  %v10853_v20 = vpop.f32.mrf.mxu0 }
 0x293   :  { %v10836_v58 = vadd.f32 0.2548296, %v3151_v31  ;;  %v2837_v28 = vmul.f32 0.3275911, %v2805_v13  ;;  %v3025_v14 = vmul.f32 %v10778_v16, %v6983_v15  ;;  %v3338_v0 = vmul.f32 1.442695, %v3283_v44  ;;  %v10851_v31 = vpop.f32.mrf.mxu1 }
 0x294   :  { %v10841_v4 = vpop.eup %7663  ;;  %v3340_v23 = vmul.f32 1.442695, %v3284_v19  ;;  %v10845_v57 = vmul.f32 0.70710677, %v10818_v53  ;;  %7667 = vpow2.f32 %v3330_v46  ;;  %v3090_v60 = vmul.f32 %v10756_v5, %v3058_v12  ;;  %v14133_v19 = vld [vmem:[#allocation68_spill] sm:$0xff] }
 0x295   :  { %v2868_v17 = vadd.f32 1.0, %v2836_v25  ;;  %v3254_v59 = vsub.f32 0.0, %v2806_v37  ;;  %v10848_v2 = vmul.f32 %v7662_v24, %v3213_v10  ;;  %v3216_v26 = vmul.f32 %v10684_v18, %v3184_v47 }
 0x296   :  { %7669 = vpow2.f32 %v3334_v34  ;;  %v3285_v45 = vmul.f32 %v3253_v27, %v2805_v13  ;;  %v2963_v15 = vmul.f32 1.0614054, %v10841_v4  ;;  %v2869_v44 = vadd.f32 1.0, %v2837_v28  ;;  %v10869_v27 = vpop.f32.mrf.mxu1 }
 0x297   :  { %7671 = vpow2.f32 %v3336_v6  ;;  %v10858_v46 = vadd.f32 %v10498_v48, %v14133_v19  ;;  %v10861_v25 = vmul.f32 %v3564_v49, %v10616_v42  ;;  %v3057_v24 = vadd.f32 1.4214138, %v3025_v14  ;;  %14135 = vst [vmem:[#allocation164_spill] sm:$0xff] %v10869_v27  ;;  %v10871_v42 = vpop.f32.mrf.mxu0  ;;  %v14137_v14 = vld [vmem:[#allocation69_spill] sm:$0xff]  ;;  %v10890_v19 = vpop.permute.xlu1 %4312 }
 0x298   :  { %7673 = vpow2.f32 %v3338_v0  ;;  %v2807_v18 = vand.u32 2147483647, %v10845_v57  ;;  %v7666_v34 = vpop.eup %7665  ;;  %v10865_v13 = vmul.f32 %v3566_v21, %v10739_v43  ;;  %v7016_v12 = vadd.f32 -0.28449672, %v3090_v60  ;;  %14136 = vst [vmem:[#allocation165_spill] sm:$0xff] %v10871_v42  ;;  %v14139_v21 = vld [vmem:[#allocation57_spill] sm:$0xff] }
 0x299   :  { %14134 = vst [vmem:[#allocation68_spill] sm:$0xff] %v10858_v46  ;;  %7675 = vrcp.f32 %v2868_v17  ;;  %v2838_v6 = vmul.f32 0.3275911, %v2806_v37  ;;  %v10867_v10 = vmul.f32 %v7666_v34, %v3216_v26  ;;  %v3342_v47 = vmul.f32 1.442695, %v3285_v45  ;;  %v10898_v34 = vpop.f32.mrf.mxu0 }
 0x29a   :  { %7677 = vpow2.f32 %v3340_v23  ;;  %v3286_v48 = vmul.f32 %v3254_v59, %v2806_v37  ;;  %v6985_v49 = vadd.f32 -1.4531521, %v2963_v15  ;;  %v10874_v28 = vmul.f32 0.70710677, %v10858_v46  ;;  %v14140_v37 = vld [vmem:[#allocation56_spill] sm:$0xff] }
 0x29b   :  { %v10878_v43 = vadd.f32 %v10524_v61, %v14137_v14  ;;  %v2559_v0 = vadd.f32 %v10604_v9, %v14139_v21  ;;  %v3089_v60 = vmul.f32 %v10778_v16, %v3057_v24  ;;  %7679 = vrcp.f32 %v2869_v44  ;;  %v10888_v61 = vpop.permute.xlu0 %4310  ;;  %14142 = vst [vmem:[#allocation56_spill] sm:$0xff] %v10890_v19  ;;  %v14144_v14 = vld [vmem:[#allocation73_spill] sm:$0xff]  ;;  %v14168_v46 = vld [vmem:[#allocation148_spill] sm:$0xff] }
 0x29c   :  { %v3255_v23 = vsub.f32 0.0, %v2807_v18  ;;  %v2557_v17 = vadd.f32 %v10583_v22, %v14140_v37  ;;  %vm3440_vm0 = vcmp.ge.f32.partialorder %v10573_v32, 0.0  ;;  %v3154_v59 = vmul.f32 %v10756_v5, %v7016_v12  ;;  %14141 = vst [vmem:[#allocation57_spill] sm:$0xff] %v10888_v61  ;;  %v10896_v22 = vpop.f32.mrf.mxu1  ;;  %v14149_v37 = vld [vmem:[#allocation60_spill] sm:$0xff]  ;;  %v14164_v32 = vld [vmem:[#allocation79_spill] sm:$0xff] }
 0x29d   :  { %14138 = vst [vmem:[#allocation69_spill] sm:$0xff] %v10878_v43  ;;  %v2870_v26 = vadd.f32 1.0, %v2838_v6  ;;  %v2839_v45 = vmul.f32 0.3275911, %v2807_v18  ;;  %v2672_v15 = vadd.f32 %v10602_v51, %v2559_v0  ;;  %v3408_v9 = vsub.f32 1.0, %v10867_v10  ;;  %v14150_v61 = vld [vmem:[#allocation128_spill] sm:$0xff] }
 0x29e   :  { %7681 = vpow2.f32 %v3342_v47  ;;  %v10894_v44 = vmul.f32 0.5, %v10768_v40  ;;  %v3344_v24 = vmul.f32 1.442695, %v3286_v48  ;;  %v3027_v12 = vmul.f32 %v10841_v4, %v6985_v49  ;;  %v14146_v40 = vld [vmem:[#allocation155_spill] sm:$0xff] }
 0x29f   :  { %v10902_v6 = vand.u32 2147483647, %v10874_v28  ;;  %v10905_v51 = vmul.f32 0.70710677, %v10878_v43  ;;  %v10909_v10 = vadd.f32 %v10547_v36, %v14144_v14  ;;  %v3287_v47 = vmul.f32 %v3255_v23, %v2807_v18  ;;  %v14147_v48 = vld [vmem:[#allocation139_spill] sm:$0xff]  ;;  %v14151_v18 = vld [vmem:[#allocation121_spill] sm:$0xff] }
 0x2a0   :  { %v2670_v21 = vadd.f32 %v14146_v40, %v2557_v17  ;;  %v10913_v0 = vmul.f32 %v14147_v48, %v2672_v15  ;;  %v2561_v19 = vadd.f32 %v14150_v61, %v14149_v37  ;;  %v7015_v49 = vadd.f32 -0.28449672, %v3089_v60  ;;  %v10923_v17 = vpop.f32.mrf.mxu1  ;;  %v10925_v15 = vpop.f32.mrf.mxu0  ;;  %v14157_v37 = vld [vmem:[#allocation138_spill] sm:$0xff] }
 0x2a1   :  { %14143 = vst [vmem:[#allocation166_spill] sm:$0xff] %v10905_v51  ;;  %14145 = vst [vmem:[#allocation73_spill] sm:$0xff] %v10909_v10  ;;  %v3186_v27 = vadd.f32 0.2548296, %v3154_v59  ;;  %7683 = vrcp.f32 %v2870_v26  ;;  %v2871_v52 = vadd.f32 1.0, %v2839_v45  ;;  %v10917_v42 = vpop.eup %7667  ;;  %v3472_v43 = vsub.f32 0.0, %v3408_v9  ;;  %v4515_v61 = vpop.permute.xlu0 %4514 }
 0x2a2   :  { %14148 = vst [vmem:[#allocation155_spill] sm:$0xff] %v10913_v0  ;;  %7685 = vpow2.f32 %v3344_v24  ;;  %v10920_v36 = vmul.f32 0.5, %v10784_v39  ;;  %v2674_v23 = vadd.f32 %v14151_v18, %v2561_v19  ;;  %14152 = vst [vmem:[#allocation139_spill] sm:$0xff] %v10923_v17  ;;  %v2840_v60 = vmul.f32 0.3275911, %v10902_v6  ;;  %v14156_v45 = vld [vmem:[#allocation65_spill] sm:$0xff]  ;;  %v4517_v24 = vpop.permute.xlu1 %4516 }
 0x2a3   :  { %14153 = vst [vmem:[#allocation60_spill] sm:$0xff] %v10925_v15  ;;  %v10927_v14 = vpop.eup %7669  ;;  %v10931_v59 = vand.u32 2147483647, %v10905_v51  ;;  %v10934_v26 = vmul.f32 0.70710677, %v10909_v10  ;;  %v2567_v39 = vadd.f32 %v10666_v8, %v14156_v45  ;;  %v10939_v18 = vmul.f32 %v14157_v37, %v2670_v21  ;;  %v14159_v0 = vld [vmem:[#allocation146_spill] sm:$0xff]  ;;  %v2596_v10 = vpop.f32.mrf.mxu0 }
 0x2a4   :  { %14154 = vst [vmem:[#allocation128_spill] sm:$0xff] %v10927_v14  ;;  %v7672_v19 = vpop.eup %7671  ;;  %v3059_v40 = vadd.f32 1.4214138, %v3027_v12  ;;  %v3346_v48 = vmul.f32 1.442695, %v3287_v47  ;;  %v10942_v17 = vmul.f32 %v14159_v0, %v2674_v23  ;;  %v10947_v53 = vmul.f32 %v10778_v16, %v7015_v49  ;;  %v14162_v21 = vld [vmem:[#allocation156_spill] sm:$0xff]  ;;  %v10960_v49 = vpop.f32.mrf.mxu1 }
 0x2a5   :  { %14155 = vst [vmem:[#allocation121_spill] sm:$0xff] %v10934_v26  ;;  %14158 = vst [vmem:[#allocation65_spill] sm:$0xff] %v10939_v18  ;;  %v10944_v15 = vpop.eup %7673  ;;  %v3218_v51 = vmul.f32 %v10756_v5, %v3186_v27  ;;  %7687 = vrcp.f32 %v2871_v52  ;;  %v3256_v8 = vsub.f32 0.0, %v10902_v6  ;;  %v3504_v12 = vsel %vm3440_vm0, %v3408_v9, %v3472_v43  ;;  %v14163_v23 = vld [vmem:[#allocation72_spill] sm:$0xff]  ;;  %v14166_v18 = vld [vmem:[#allocation114_spill] sm:$0xff] }
 0x2a6   :  { %14160 = vst [vmem:[#allocation138_spill] sm:$0xff] %v10942_v17  ;;  %14161 = vst [vmem:[#allocation146_spill] sm:$0xff] %v10944_v15  ;;  %v10951_v45 = vpop.eup %7675  ;;  %v2680_v0 = vadd.f32 %v14162_v21, %v2567_v39  ;;  %v2571_v37 = vadd.f32 %v10716_v56, %v14163_v23  ;;  %v2872_v52 = vadd.f32 1.0, %v2840_v60  ;;  %v2841_v27 = vmul.f32 0.3275911, %v10931_v59  ;;  %v14165_v56 = vld [vmem:[#allocation81_spill] sm:$0xff] }
 0x2a7   :  { %v10962_v5 = vpop.eup %7677  ;;  %v10966_v15 = vand.u32 2147483647, %v10934_v26  ;;  %v2577_v43 = vadd.f32 %v10772_v1, %v14164_v32  ;;  %v3091_v9 = vmul.f32 %v10841_v4, %v3059_v40  ;;  %7689 = vpow2.f32 %v3346_v48  ;;  %v14167_v17 = vld [vmem:[#allocation153_spill] sm:$0xff]  ;;  %v4511_v32 = vpop.permute.xlu0 %4510 }
 0x2a8   :  { %v2684_v39 = vadd.f32 %v10714_v63, %v2571_v37  ;;  %v2581_v21 = vadd.f32 %v10810_v55, %v14165_v56  ;;  %v10974_v23 = vpop.eup %7679  ;;  %v10976_v47 = vmul.f32 %v7672_v19, %v3218_v51  ;;  %v3257_v60 = vsub.f32 0.0, %v10931_v59  ;;  %v4513_v40 = vpop.permute.xlu1 %4512  ;;  %v14170_v37 = vld [vmem:[#allocation149_spill] sm:$0xff] }
 0x2a9   :  { %v10981_v26 = vadd.f32 %v14167_v17, %v14166_v18  ;;  %v2690_v1 = vadd.f32 %v10770_v50, %v2577_v43  ;;  %v3568_v48 = vadd.f32 1.0, %v3504_v12  ;;  %v10985_v63 = vmul.f32 %v14168_v46, %v2680_v0  ;;  %v10990_v56 = vpop.f32.mrf.mxu1  ;;  %v10993_v19 = vpop.f32.mrf.mxu0  ;;  %v14172_v12 = vld [vmem:[#allocation154_spill] sm:$0xff] }
 0x2aa   :  { %v10988_v55 = vmul.f32 %v14170_v37, %v2684_v39  ;;  %v2694_v51 = vadd.f32 %v10808_v54, %v2581_v21  ;;  %7691 = vrcp.f32 %v2872_v52  ;;  %v3288_v50 = vmul.f32 %v3256_v8, %v10902_v6  ;;  %v14175_v54 = vld [vmem:[#allocation84_spill] sm:$0xff]  ;;  %v14176_v52 = vld [vmem:[#allocation61_spill] sm:$0xff]  ;;  %v14184_v46 = vld [vmem:[#allocation30_spill] sm:$0xff] }
 0x2ab   :  { %14169 = vst [vmem:[#allocation156_spill] sm:$0xff] %v10985_v63  ;;  %v10995_v14 = vpop.eup %7681  ;;  %v2873_v17 = vadd.f32 1.0, %v2841_v27  ;;  %v2842_v18 = vmul.f32 0.3275911, %v10966_v15  ;;  %v11002_v0 = vmul.f32 %v14172_v12, %v2690_v1  ;;  %v2587_v39 = vadd.f32 %v10853_v20, %v14175_v54  ;;  %v2713_v37 = vpop.f32.mrf.mxu1  ;;  %v14183_v12 = vld [vmem:[#allocation87_spill] sm:$0xff] }
 0x2ac   :  { %14171 = vst [vmem:[#allocation72_spill] sm:$0xff] %v10988_v55  ;;  %v11005_v43 = vmul.f32 %v10735_v30, %v2694_v51  ;;  %v3410_v21 = vsub.f32 1.0, %v10976_v47  ;;  %vm3442_vm2 = vcmp.ge.f32.partialorder %v14176_v52, 0.0  ;;  %v11012_v6 = vmul.f32 0.70710677, %v10981_v26  ;;  %v14180_v51 = vld [vmem:[#allocation29_spill] sm:$0xff]  ;;  %v4509_v63 = vpop.permute.xlu1 %4508 }
 0x2ad   :  { %14173 = vst [vmem:[#allocation79_spill] sm:$0xff] %v11002_v0  ;;  %vm14177_vm15 = vcmask 908288   ;;  %v2700_v20 = vadd.f32 %v10851_v31, %v2587_v39  ;;  %vm14181_vm5 = vnez %v14180_v51  ;;  %v2591_v54 = vadd.f32 %v10898_v34, %v14183_v12  ;;  %v14190_v55 = vld [vmem:[#allocation92_spill] sm:$0xff] }
 0x2ae   :  { %14174 = vst [vmem:[#allocation81_spill] sm:$0xff] %v11005_v43  ;;  %v4521_v8 = vsel %vm14177_vm15, %v4515_v61, %v4517_v24  ;;  %vm14178_vm9 = vmmov %vm14177_vm15  ;;  %v11018_v1 = vpop.eup %7683  ;;  %vm14185_vm3 = vnez %v14184_v46  ;;  %7693 = vrcp.f32 %v2873_v17  ;;  %v3289_v30 = vmul.f32 %v3257_v60, %v10931_v59  ;;  %v7851_v46 = vld [vmem:[%s13436_s2 + $0x10] ss:$20 sps:$4 sm:$0xff]  }
 0x2af   :  { %v11016_v27 = vsel %vm14178_vm9, %v4517_v24, %v4515_v61  ;;  %v11025_v47 = vsel %vm14181_vm5, %v4521_v8, 0  ;;  %v2600_v61 = vpop.f32.mrf.mxu0  ;;  %v11032_v24 = vpop.eup %7685  ;;  %vm14186_vm10 = vmmov %vm14178_vm9  ;;  %v2874_v34 = vadd.f32 1.0, %v2842_v18  ;;  %v2704_v12 = vadd.f32 %v10896_v22, %v2591_v54 }
 0x2b0   :  { %14179 = vst [vmem:[#allocation114_spill] sm:$0xff] %v11016_v27  ;;  %14182 = vst [vmem:[#allocation153_spill] sm:$0xff] %v11025_v47  ;;  %7370 = vmatprep.subr.msk.bf16.mxu1 %vm14185_vm3, %v11016_v27  ;;  %v4520_v31 = vsel %vm14186_vm10, %v4511_v32, %v4513_v40  ;;  %v4507_v8 = vpop.permute.xlu0 %4506  ;;  %v2597_v17 = vadd.f32 %v2596_v10, %v14190_v55  ;;  %v11050_v59 = vmul.f32 %v3568_v48, %v10800_v29 }
 0x2b1   :  { %5265 = vmatpush1.bf16.msra.mxu1 %v11025_v47  ;;  %vm14187_vm14 = vmmov %vm14178_vm9  ;;  %v11043_v27 = vsel %vm14181_vm5, %v4520_v31, 0  ;;  %v11052_v60 = vadd.f32 -0.28449672, %v3091_v9  ;;  %v3474_v22 = vsub.f32 0.0, %v3410_v21  ;;  %v11058_v54 = vand.u32 2147483647, %v11012_v6  ;;  %v11060_v31 = vpop.f32.mrf.mxu1  ;;  %v11068_v29 = vpop.f32.mrf.mxu0 }
 0x2b2   :  { %v11038_v39 = vsel %vm14187_vm14, %v4513_v40, %v4511_v32  ;;  %14189 = vst [vmem:[#allocation149_spill] sm:$0xff] %v11043_v27  ;;  %v3348_v32 = vmul.f32 1.442695, %v3288_v50  ;;  %v2964_v40 = vmul.f32 1.0614054, %v10951_v45  ;;  %v11055_v18 = vpop.eup %7687  ;;  %v11063_v10 = vmul.f32 %v10822_v62, %v2700_v20  ;;  %vm14193_vm8 = vmmov %vm14178_vm9 }
 0x2b3   :  { %14188 = vst [vmem:[#allocation148_spill] sm:$0xff] %v11038_v39  ;;  %7371 = vmatprep.subr.msk.bf16.mxu1 %vm14185_vm3, %v11038_v39  ;;  %v11066_v55 = vmul.f32 %v10825_v33, %v2704_v12  ;;  %v3350_v9 = vmul.f32 1.442695, %v3289_v30  ;;  %v2965_v50 = vmul.f32 1.0614054, %v10974_v23  ;;  %v4519_v39 = vsel %vm14193_vm8, %v4507_v8, %v4509_v63  ;;  %vm14194_vm13 = vmmov %vm14193_vm8 }
 0x2b4   :  { %14191 = vst [vmem:[#allocation154_spill] sm:$0xff] %v11063_v10  ;;  %v6986_v48 = vadd.f32 -1.4531521, %v2964_v40  ;;  %7695 = vrcp.f32 %v2874_v34  ;;  %v2710_v62 = vadd.f32 %v10960_v49, %v2597_v17  ;;  %v11077_v20 = vsel %vm14194_vm13, %v4509_v63, %v4507_v8  ;;  %v11079_v33 = vpop.eup %7689  ;;  %v4503_v34 = vpop.permute.xlu0 %4502  ;;  %vm14199_vm0 = vmmov %vm14193_vm8 }
 0x2b5   :  { %14192 = vst [vmem:[#allocation84_spill] sm:$0xff] %v11066_v55  ;;  %5267 = vmatpush1.bf16.msra.mxu1 %v11043_v27  ;;  %14195 = vst [vmem:[#allocation61_spill] sm:$0xff] %v11077_v20  ;;  %v6987_v12 = vadd.f32 -1.4531521, %v2965_v50  ;;  %v11084_v40 = vsel %vm14181_vm5, %v4519_v39, 0  ;;  %v14197_v27 = vld [vmem:[#allocation97_spill] sm:$0xff]  ;;  %v4505_v49 = vpop.permute.xlu1 %4504  ;;  %v3506_v63 = vsel %vm3442_vm2, %v3410_v21, %v3474_v22  ;;  %7697 = vpow2.f32 %v3348_v32  ;;  %v2719_v17 = vpop.f32.mrf.mxu1 }
 0x2b6   :  { %v3028_v30 = vmul.f32 %v10951_v45, %v6986_v48  ;;  %14196 = vst [vmem:[#allocation29_spill] sm:$0xff] %v11084_v40  ;;  %v2601_v0 = vadd.f32 %v2600_v61, %v14197_v27  ;;  %7372 = vmatprep.subr.msk.bf16.mxu1 %vm14185_vm3, %v11077_v20  ;;  %v2843_v8 = vmul.f32 0.3275911, %v11058_v54  ;;  %v2966_v48 = vmul.f32 1.0614054, %v11018_v1  ;;  %v2606_v50 = vpop.f32.mrf.mxu0  ;;  %vm14201_vm2 = vmmov %vm14199_vm0 }
 0x2b7   :  { %v3258_v39 = vsub.f32 0.0, %v10966_v15  ;;  %v3029_v27 = vmul.f32 %v10974_v23, %v6987_v12  ;;  %v11097_v20 = vpop.eup %7691  ;;  %v11100_v52 = vmul.f32 %v10861_v25, %v2710_v62  ;;  %v2967_v32 = vmul.f32 1.0614054, %v11055_v18  ;;  %v11111_v12 = vpop.f32.mrf.mxu1 }
 0x2b8   :  { %v3060_v47 = vadd.f32 1.4214138, %v3028_v30  ;;  %v2714_v61 = vadd.f32 %v2713_v37, %v2601_v0  ;;  %v6988_v21 = vadd.f32 -1.4531521, %v2966_v48  ;;  %v4518_v22 = vsel %vm14199_vm0, %v4503_v34, %v4505_v49 }
 0x2b9   :  { %5269 = vmatpush1.bf16.msra.mxu1 %v11084_v40  ;;  %14198 = vst [vmem:[#allocation87_spill] sm:$0xff] %v11100_v52  ;;  %v3061_v10 = vadd.f32 1.4214138, %v3029_v27  ;;  %v11109_v0 = vsel %vm14201_vm2, %v4505_v49, %v4503_v34  ;;  %v2875_v37 = vadd.f32 1.0, %v2843_v8  ;;  %v6989_v62 = vadd.f32 -1.4531521, %v2967_v32 }
 0x2ba   :  { %v3092_v43 = vmul.f32 %v10951_v45, %v3060_v47  ;;  %v11106_v30 = vmul.f32 %v10865_v13, %v2714_v61  ;;  %14202 = vst [vmem:[#allocation97_spill] sm:$0xff] %v11109_v0  ;;  %v3030_v25 = vmul.f32 %v11018_v1, %v6988_v21  ;;  %v11116_v48 = vsel %vm14181_vm5, %v4518_v22, 0  ;;  %7373 = vmatprep.subr.msk.bf16.mxu1 %vm14185_vm3, %v11109_v0  ;;  %v11121_v47 = vpop.f32.mrf.mxu0  ;;  %v14204_v8 = vld [vmem:[#allocation102_spill] sm:$0xff]  ;;  %v14205_v22 = vld [vmem:[#allocation31_spill] sm:$0xff]  ;;  %v14206_v0 = vld [vmem:[#allocation4_spill] sm:$0xff] }
 0x2bb   :  { %14203 = vst [vmem:[#allocation167_spill] sm:$0xff] %v11116_v48  ;;  %v3093_v34 = vmul.f32 %v10974_v23, %v3061_v10  ;;  %v2607_v27 = vadd.f32 %v2606_v50, %v14204_v8  ;;  %v11128_v61 = vpop.eup %7693  ;;  %7699 = vpow2.f32 %v3350_v9  ;;  %v3031_v21 = vmul.f32 %v11055_v18, %v6989_v62 }
 0x2bc   :  { %14200 = vst [vmem:[#allocation92_spill] sm:$0xff] %v11106_v30  ;;  %v7018_v13 = vadd.f32 -0.28449672, %v3092_v43  ;;  %v3062_v51 = vadd.f32 1.4214138, %v3030_v25  ;;  %vm14207_vm15 = vnez %v14206_v0  ;;  %v3570_v43 = vadd.f32 1.0, %v3506_v63  ;;  %v2610_v62 = vpop.f32.mrf.mxu0 }
 0x2bd   :  { %5271 = vmatpush1.bf16.msra.mxu1 %v11116_v48  ;;  %v2968_v32 = vmul.f32 1.0614054, %v11097_v20  ;;  %v7019_v50 = vadd.f32 -0.28449672, %v3093_v34  ;;  %v3290_v8 = vmul.f32 %v3258_v39, %v10966_v15  ;;  %v2723_v48 = vpop.f32.mrf.mxu1  ;;  %v3063_v25 = vadd.f32 1.4214138, %v3031_v21 }
 0x2be   :  { %7390 = vmatprep.subr.msk.bf16.mxu1 %vm14207_vm15, %v14205_v22  ;;  %v3156_v49 = vmul.f32 %v10951_v45, %v7018_v13  ;;  %v3094_v9 = vmul.f32 %v11018_v1, %v3062_v51  ;;  %vm14208_vm9 = vcmask 523264   ;;  %7701 = vrcp.f32 %v2875_v37  ;;  %v14209_v34 = vld [vmem:[#allocation5_spill] sm:$0xff]  ;;  %v14211_v22 = vld [vmem:[#allocation10_spill] sm:$0xff] }
 0x2bf   :  { %v6990_v40 = vadd.f32 -1.4531521, %v2968_v32  ;;  %v3157_v10 = vmul.f32 %v10974_v23, %v7019_v50  ;;  %v2720_v13 = vadd.f32 %v2719_v17, %v2607_v27  ;;  %v14210_v15 = vmov 0   ;;  %v14212_v27 = vld [vmem:[#allocation112_spill] sm:$0xff]  ;;  %vm14215_vm8 = vmmov %vm14208_vm9  ;;  %v7874_v0 = vld [vmem:[%s13437_s3 + $0x80] ss:$20 sps:$4 sm:$0xff]  }
 0x2c0   :  { %7182 = vmatmul.mubr.msk.bf16.vlgmr.msra.gmra.mxu1 %vm14208_vm9, %v7851_v46  ;;  %v3188_v63 = vadd.f32 0.2548296, %v3156_v49  ;;  %vm3444_vm5 = vcmp.ge.f32.partialorder %v10754_v35, 0.0  ;;  %v7020_v39 = vadd.f32 -0.28449672, %v3094_v9  ;;  %v3095_v51 = vmul.f32 %v11055_v18, %v3063_v25  ;;  %v11159_v9 = vpop.f32.mrf.mxu1  ;;  %vm14222_vm13 = vmmov %vm14215_vm8 }
 0x2c1   :  { %5483 = vmatpush1.bf16.msra.mxu1 %v14209_v34  ;;  %5298 = vmatprep.mubr.bf16.mxu1 %v14210_v15  ;;  %v3032_v21 = vmul.f32 %v11097_v20, %v6990_v40  ;;  %v2969_v32 = vmul.f32 1.0614054, %v11128_v61  ;;  %v11153_v46 = vpop.eup %7695  ;;  %v3602_v17 = vmul.f32 %v3570_v43, %v10830_v38  ;;  %v3189_v49 = vadd.f32 0.2548296, %v3157_v10  ;;  %v14213_v43 = vld [vmem:[#allocation103_spill] sm:$0xff]  ;;  %vm14230_vm2 = vmmov %vm14215_vm8 }
 0x2c2   :  { %7391 = vmatprep.subr.msk.bf16.mxu1 %vm14207_vm15, %v14211_v22  ;;  %v3220_v37 = vmul.f32 %v10951_v45, %v3188_v63  ;;  %v2611_v50 = vadd.f32 %v2610_v62, %v14212_v27  ;;  %vm3445_vm10 = vcmp.ge.f32.partialorder %v10790_v41, 0.0  ;;  %v3158_v40 = vmul.f32 %v11018_v1, %v7020_v39  ;;  %v11162_v52 = vpop.eup %7697 }
 0x2c3   :  { %v7021_v25 = vadd.f32 -0.28449672, %v3095_v51  ;;  %v3064_v34 = vadd.f32 1.4214138, %v3032_v21  ;;  %v6991_v55 = vadd.f32 -1.4531521, %v2969_v32  ;;  %v3221_v38 = vmul.f32 %v10974_v23, %v3189_v49  ;;  %v2729_v21 = vpop.f32.mrf.mxu1 }
 0x2c4   :  { %v3352_v22 = vmul.f32 1.442695, %v3290_v8  ;;  %v3380_v30 = vmul.f32 %v10962_v5, %v3220_v37  ;;  %v2724_v45 = vadd.f32 %v2723_v48, %v2611_v50  ;;  %v3190_v10 = vadd.f32 0.2548296, %v3158_v40  ;;  %v14214_v51 = vld [vmem:[#allocation11_spill] sm:$0xff]  ;;  %v14216_v49 = vld [vmem:[#allocation104_spill] sm:$0xff] }
 0x2c5   :  { %5485 = vmatpush1.bf16.msra.mxu1 %v14213_v43  ;;  %v11168_v62 = vmul.f32 %v11050_v59, %v2720_v13  ;;  %v3096_v63 = vmul.f32 %v11097_v20, %v3064_v34  ;;  %v3033_v39 = vmul.f32 %v11128_v61, %v6991_v55  ;;  %vm3446_vm14 = vcmp.ge.f32.partialorder %v10804_v7, 0.0  ;;  %v7852_v32 = vld [vmem:[%s13436_s2 + $0x38] ss:$20 sps:$4 sm:$0xff]  }
 0x2c6   :  { %7392 = vmatprep.subr.msk.bf16.mxu1 %vm14207_vm15, %v14214_v51  ;;  %v3412_v5 = vsub.f32 1.0, %v3380_v30  ;;  %v3381_v23 = vmul.f32 %v10995_v14, %v3221_v38  ;;  %v11177_v48 = vmul.f32 %v3602_v17, %v2724_v45  ;;  %v2970_v8 = vmul.f32 1.0614054, %v11153_v46  ;;  %v14219_v14 = vld [vmem:[#allocation105_spill] sm:$0xff] }
 0x2c7   :  { %v3222_v59 = vmul.f32 %v11018_v1, %v3190_v10  ;;  %v3159_v13 = vmul.f32 %v11055_v18, %v7021_v25  ;;  %v7022_v34 = vadd.f32 -0.28449672, %v3096_v63  ;;  %v3065_v55 = vadd.f32 1.4214138, %v3033_v39  ;;  %v14217_v25 = vld [vmem:[#allocation12_spill] sm:$0xff] }
 0x2c8   :  { %7183 = vmatmul.mubr.msk.bf16.gmra.mxu1 %vm14215_vm8, %v7852_v32  ;;  %v3476_v30 = vsub.f32 0.0, %v3412_v5  ;;  %v3413_v37 = vsub.f32 1.0, %v3381_v23  ;;  %v6992_v17 = vadd.f32 -1.4531521, %v2970_v8  ;;  %v3155_v1 = vmul.f32 %v10841_v4, %v11052_v60  ;;  %v7700_v38 = vpop.eup %7699  ;;  %v2731_v60 = vpop.f32.mrf.mxu1 }
 0x2c9   :  { %5487 = vmatpush1.bf16.msra.mxu1 %v14216_v49  ;;  %5308 = vmatprep.mubr.bf16.mxu1 %v14210_v15  ;;  %v3382_v27 = vmul.f32 %v11032_v24, %v3222_v59  ;;  %v3160_v50 = vmul.f32 %v11097_v20, %v7022_v34  ;;  %v3097_v40 = vmul.f32 %v11128_v61, %v3065_v55  ;;  %7703 = vpow2.f32 %v3352_v22 }
 0x2ca   :  { %7393 = vmatprep.subr.msk.bf16.mxu1 %vm14207_vm15, %v14217_v25  ;;  %v3508_v45 = vsel %vm3444_vm5, %v3412_v5, %v3476_v30  ;;  %v3477_v10 = vsub.f32 0.0, %v3413_v37  ;;  %v3034_v63 = vmul.f32 %v11153_v46, %v6992_v17  ;;  %v3191_v24 = vadd.f32 0.2548296, %v3159_v13  ;;  %v14220_v5 = vld [vmem:[#allocation116_spill] sm:$0xff] }
 0x2cb   :  { %v3572_v39 = vadd.f32 1.0, %v3508_v45  ;;  %v3414_v23 = vsub.f32 1.0, %v3382_v27  ;;  %v3192_v8 = vadd.f32 0.2548296, %v3160_v50  ;;  %v14218_v59 = vsub.f32 0.0, %v11058_v54  ;;  %v11207_v35 = vpop.eup %7701  ;;  %v14221_v50 = vld [vmem:[#allocation117_spill] sm:$0xff] }
 0x2cc   :  { %v3509_v55 = vsel %vm3445_vm10, %v3413_v37, %v3477_v10  ;;  %v7023_v32 = vadd.f32 -0.28449672, %v3097_v40  ;;  %v3066_v22 = vadd.f32 1.4214138, %v3034_v63  ;;  %v2730_v30 = vadd.f32 %v2729_v21, %v14220_v5  ;;  %v2733_v10 = vpop.f32.mrf.mxu1  ;;  %v7853_v63 = vld [vmem:[%s13436_s2 + $0x60] ss:$20 sps:$4 sm:$0xff]  }
 0x2cd   :  { %v3291_v34 = vmul.f32 %v14218_v59, %v11058_v54  ;;  %5489 = vmatpush1.bf16.msra.mxu1 %v14219_v14  ;;  %v3604_v17 = vmul.f32 %v3572_v39, %v10839_v3  ;;  %v3573_v27 = vadd.f32 1.0, %v3509_v55  ;;  %v3478_v13 = vsub.f32 0.0, %v3414_v23 }
 0x2ce   :  { %v2732_v45 = vadd.f32 %v2731_v60, %v14221_v50  ;;  %v3224_v25 = vmul.f32 %v11097_v20, %v3192_v8  ;;  %v3161_v54 = vmul.f32 %v11128_v61, %v7023_v32  ;;  %v3098_v41 = vmul.f32 %v11153_v46, %v3066_v22 }
 0x2cf   :  { %v11215_v37 = vmul.f32 %v3604_v17, %v2730_v30  ;;  %v3605_v40 = vmul.f32 %v3573_v27, %v10894_v44  ;;  %v3510_v21 = vsel %vm3446_vm14, %v3414_v23, %v3478_v13  ;;  %v3223_v3 = vmul.f32 %v11055_v18, %v3191_v24  ;;  %v14223_v24 = vld [vmem:[#allocation119_spill] sm:$0xff]  ;;  %v11240_v17 = vpop.f32.mrf.mxu1  ;;  %vm14236_vm14 = vmmov %vm14230_vm2 }
 0x2d0   :  { %7184 = vmatmul.mubr.msk.bf16.gmra.mxu1 %vm14222_vm13, %v7853_v63  ;;  %v3574_v20 = vadd.f32 1.0, %v3510_v21  ;;  %v3384_v39 = vmul.f32 %v11162_v52, %v3224_v25  ;;  %v3193_v60 = vadd.f32 0.2548296, %v3161_v54  ;;  %v7024_v8 = vadd.f32 -0.28449672, %v3098_v41  ;;  %v14224_v52 = vld [vmem:[#allocation126_spill] sm:$0xff] }
 0x2d1   :  { %5318 = vmatprep.mubr.bf16.mxu1 %v14210_v15  ;;  %v3215_v44 = vmul.f32 %v10655_v11, %v10836_v58  ;;  %v3354_v7 = vmul.f32 1.442695, %v3291_v34  ;;  %v11229_v23 = vmul.f32 %v3605_v40, %v2732_v45  ;;  %v2971_v18 = vmul.f32 1.0614054, %v11207_v35  ;;  %v14225_v25 = vld [vmem:[#allocation145_spill] sm:$0xff]  ;;  %v14226_v54 = vld [vmem:[#allocation134_spill] sm:$0xff] }
 0x2d2   :  { %v2734_v59 = vadd.f32 %v2733_v10, %v14223_v24  ;;  %v3606_v55 = vmul.f32 %v3574_v20, %v10920_v36  ;;  %v3416_v32 = vsub.f32 1.0, %v3384_v39  ;;  %v3225_v22 = vmul.f32 %v11128_v61, %v3193_v60  ;;  %v14227_v41 = vld [vmem:[#allocation152_spill] sm:$0xff]  ;;  %v14228_v39 = vld [vmem:[#allocation3_spill] sm:$0xff] }
 0x2d3   :  { %v11237_v5 = vadd.f32 %v14225_v25, %v14224_v52  ;;  %v3185_v30 = vadd.f32 0.2548296, %v10947_v53  ;;  %v3162_v11 = vmul.f32 %v11153_v46, %v7024_v8  ;;  %v6993_v58 = vadd.f32 -1.4531521, %v2971_v18  ;;  %v7856_v8 = vld [vmem:[%s13434_s0 + $0x78] sm:$0xff]  ;;  %v14231_v25 = vld [vmem:[#allocation128_spill] sm:$0xff] }
 0x2d4   :  { %v13664_v34 = vsub.f32 1.0, %v10848_v2  ;;  %v3187_v27 = vadd.f32 0.2548296, %v3155_v1  ;;  %v11244_v13 = vmul.f32 %v3606_v55, %v2734_v59  ;;  %v11247_v36 = vmul.f32 %v11079_v33, %v3223_v3  ;;  %v11262_v3 = vpop.f32.mrf.mxu1  ;;  %v7857_v55 = vld [vmem:[%s13434_s0 + $0x60] sm:$0xff] }
 0x2d5   :  { %7705 = vpow2.f32 %v3354_v7  ;;  %v3480_v61 = vsub.f32 0.0, %v3416_v32  ;;  %v3194_v50 = vadd.f32 0.2548296, %v3162_v11  ;;  %v3035_v45 = vmul.f32 %v11207_v35, %v6993_v58  ;;  %v14232_v11 = vld [vmem:[#allocation68_spill] sm:$0xff] }
 0x2d6   :  { %v11251_v53 = vmul.f32 %v10917_v42, %v3215_v44  ;;  %v11255_v40 = vadd.f32 %v14227_v41, %v14226_v54  ;;  %v11259_v10 = vmul.f32 %v7700_v38, %v3225_v22  ;;  %v7704_v21 = vpop.eup %7703  ;;  %v3217_v33 = vmul.f32 %v10778_v16, %v3185_v30  ;;  %v7854_v42 = vld [vmem:[%s13434_s0 + $0x70] sm:$0xff]  ;;  %v7855_v38 = vld [vmem:[%s13436_s2 + $0x88] ss:$20 sps:$4 sm:$0xff]  }
 0x2d7   :  { %v3226_v63 = vmul.f32 %v11153_v46, %v3194_v50  ;;  %v3067_v20 = vadd.f32 1.4214138, %v3035_v45  ;;  %vm14229_vm0 = vnez %v14228_v39  ;;  %v3219_v16 = vmul.f32 %v10841_v4, %v3187_v27  ;;  %v11304_v27 = vpop.f32.mrf.mxu1  ;;  %v14233_v45 = vld [vmem:[#allocation146_spill] sm:$0xff] }
 0x2d8   :  { %v4204_v60 = vsel %vm14229_vm0, %v7854_v42, 0  ;;  %7185 = vmatmul.mubr.msk.bf16.gmra.mxu1 %vm14230_vm2, %v7855_v38  ;;  %vm3448_vm9 = vcmp.ge.f32.partialorder %v10874_v28, 0.0  ;;  %v3415_v46 = vsub.f32 1.0, %v11247_v36  ;;  %v4205_v44 = vsel %vm14229_vm0, %v7856_v8, 0  ;;  %v14246_v36 = vld [vmem:[#allocation136_spill] sm:$0xff] }
 0x2d9   :  { %5328 = vmatprep.mubr.bf16.mxu1 %v14210_v15  ;;  %v3512_v7 = vsel %vm3448_vm9, %v3416_v32, %v3480_v61  ;;  %v3386_v18 = vmul.f32 %v7704_v21, %v3226_v63  ;;  %v3099_v24 = vmul.f32 %v11207_v35, %v3067_v20  ;;  %v11284_v59 = vcombine.low %v4204_v60, %v4205_v44  ;;  %v7858_v32 = vld [vmem:[%s13434_s0 + $0x68] sm:$0xff]  ;;  %v7859_v21 = vld [vmem:[%s13434_s0 + $0x50] sm:$0xff] }
 0x2da   :  { %vm3447_vm5 = vcmp.ge.f32.partialorder %v10845_v57, 0.0  ;;  %v3417_v4 = vsub.f32 1.0, %v11259_v10  ;;  %v11288_v28 = vcombine.high %v4204_v60, %v4205_v44  ;;  %v4202_v22 = vsel %vm14229_vm0, %v7857_v55, 0  ;;  %v7860_v60 = vld [vmem:[%s13434_s0 + $0x58] sm:$0xff] }
 0x2db   :  { %v4203_v52 = vsel %vm14229_vm0, %v7858_v32, 0  ;;  %v11301_v30 = vmul.f32 %v14231_v25, %v3217_v33  ;;  %v3544_v58 = vmul.f32 0.5, %v14232_v11  ;;  %v3418_v61 = vsub.f32 1.0, %v3386_v18  ;;  %v2743_v18 = vpop.f32.mrf.mxu1  ;;  %v7863_v11 = vld [vmem:[%s13436_s2 + $0xb0] ss:$20 sps:$4 sm:$0xff]  }
 0x2dc   :  { %v7025_v50 = vadd.f32 -0.28449672, %v3099_v24  ;;  %v11307_v54 = vmul.f32 %v14233_v45, %v3219_v16  ;;  %v3576_v41 = vadd.f32 1.0, %v3512_v7  ;;  %5490 = vmatprep.subr.bf16.mxu1 %v11288_v28  ;;  %v11310_v10 = vcombine.high %v4202_v22, %v4203_v52  ;;  %v14234_v16 = vld [vmem:[#allocation121_spill] sm:$0xff] }
 0x2dd   :  { %v4200_v33 = vsel %vm14229_vm0, %v7859_v21, 0  ;;  %v3482_v63 = vsub.f32 0.0, %v3418_v61  ;;  %5491 = vmatpush1.bf16.msra.mxu1 %v11284_v59  ;;  %v11319_v42 = vcombine.low %v4202_v22, %v4203_v52  ;;  %v4201_v38 = vsel %vm14229_vm0, %v7860_v60, 0  ;;  %v7861_v22 = vld [vmem:[%s13434_s0 + $0x40] sm:$0xff]  ;;  %v7862_v52 = vld [vmem:[%s13434_s0 + $0x48] sm:$0xff]  ;;  %v14238_v60 = vld [vmem:[#allocation166_spill] sm:$0xff] }
 0x2de   :  { %v3163_v20 = vmul.f32 %v11207_v35, %v7025_v50  ;;  %vm3450_vm10 = vcmp.ge.f32.partialorder %v14234_v16, 0.0  ;;  %v3479_v8 = vsub.f32 0.0, %v3415_v46  ;;  %v3481_v44 = vsub.f32 0.0, %v3417_v4  ;;  %5492 = vmatprep.subr.bf16.mxu1 %v11310_v10  ;;  %v14237_v50 = vld [vmem:[#allocation73_spill] sm:$0xff] }
 0x2df   :  { %v11330_v7 = vcombine.high %v4200_v33, %v4201_v38  ;;  %v3514_v24 = vsel %vm3450_vm10, %v3418_v61, %v3482_v63  ;;  %v4198_v32 = vsel %vm14229_vm0, %v7861_v22, 0  ;;  %v4199_v25 = vsel %vm14229_vm0, %v7862_v52, 0  ;;  %v14240_v52 = vld [vmem:[#allocation147_spill] sm:$0xff]  ;;  %vm14250_vm10 = vmmov %vm14236_vm14 }
 0x2e0   :  { %v3195_v55 = vadd.f32 0.2548296, %v3163_v20  ;;  %7186 = vmatmul.mubr.msk.bf16.gmra.mxu1 %vm14236_vm14, %v7863_v11  ;;  %v3411_v61 = vsub.f32 1.0, %v11307_v54  ;;  %v3546_v45 = vmul.f32 0.5, %v14237_v50  ;;  %v3608_v21 = vmul.f32 %v3576_v41, %v3544_v58  ;;  %v14243_v11 = vld [vmem:[#allocation122_spill] sm:$0xff] }
 0x2e1   :  { %14235 = vst [vmem:[#allocation102_spill] sm:$0xff] %v11330_v7  ;;  %v3578_v63 = vadd.f32 1.0, %v3514_v24  ;;  %5338 = vmatprep.mubr.bf16.mxu1 %v14210_v15  ;;  %v3409_v20 = vsub.f32 1.0, %v11301_v30  ;;  %vm3449_vm8 = vcmp.ge.f32.partialorder %v14238_v60, 0.0  ;;  %5493 = vmatpush1.bf16.msra.mxu1 %v11319_v42  ;;  %v11353_v16 = vcombine.low %v4200_v33, %v4201_v38 }
 0x2e2   :  { %v3227_v39 = vmul.f32 %v11207_v35, %v3195_v55  ;;  %v7706_v22 = vpop.eup %7705  ;;  %vm3439_vm13 = vcmp.ge.f32.partialorder %v14240_v52, 0.0  ;;  %v2740_v54 = vadd.f32 %v11262_v3, %v11237_v5  ;;  %v2744_v58 = vadd.f32 %v2743_v18, %v11255_v40  ;;  %5494 = vmatprep.subr.bf16.mxu1 %v11330_v7  ;;  %v14242_v55 = vld [vmem:[#allocation140_spill] sm:$0xff]  ;;  %v14244_v5 = vld [vmem:[#allocation142_spill] sm:$0xff]  ;;  %v14266_v52 = vld [vmem:[#allocation111_spill] sm:$0xff] }
 0x2e3   :  { %14239 = vst [vmem:[#allocation4_spill] sm:$0xff] %v11353_v16  ;;  %v3610_v41 = vmul.f32 %v3578_v63, %v3546_v45  ;;  %v11360_v30 = vcombine.high %v4198_v32, %v4199_v25  ;;  %v3407_v24 = vsub.f32 1.0, %v11251_v53  ;;  %v3511_v35 = vsel %vm3447_vm5, %v3415_v46, %v3479_v8  ;;  %v14245_v45 = vld [vmem:[#allocation132_spill] sm:$0xff]  ;;  %v14247_v46 = vld [vmem:[#allocation130_spill] sm:$0xff] }
 0x2e4   :  { %v3513_v33 = vsel %vm3449_vm8, %v3417_v4, %v3481_v44  ;;  %v3387_v38 = vmul.f32 %v7706_v22, %v3227_v39  ;;  %vm3437_vm0 = vcmp.ge.f32.partialorder %v14242_v55, 0.0  ;;  %v2623_v3 = vadd.f32 %v14244_v5, %v14243_v11  ;;  %v14248_v4 = vld [vmem:[#allocation150_spill] sm:$0xff]  ;;  %v14253_v11 = vld [vmem:[#allocation69_spill] sm:$0xff]  ;;  %v14259_v7 = vld [vmem:[#allocation8_spill] sm:$0xff] }
 0x2e5   :  { %14241 = vst [vmem:[#allocation112_spill] sm:$0xff] %v11360_v30  ;;  %v3475_v40 = vsub.f32 0.0, %v3411_v61  ;;  %v11370_v18 = vmul.f32 %v3608_v21, %v2740_v54  ;;  %v11372_v50 = vmul.f32 %v3610_v41, %v2744_v58  ;;  %vm3441_vm2 = vcmp.ge.f32.partialorder %v14245_v45, 0.0  ;;  %5495 = vmatpush1.bf16.msra.mxu1 %v11353_v16  ;;  %v14249_v54 = vld [vmem:[#allocation120_spill] sm:$0xff]  ;;  %v14251_v41 = vld [vmem:[#allocation127_spill] sm:$0xff]  ;;  %v14258_v16 = vld [vmem:[#allocation22_spill] sm:$0xff] }
 0x2e6   :  { %v3473_v53 = vsub.f32 0.0, %v3409_v20  ;;  %v3419_v63 = vsub.f32 1.0, %v3387_v38  ;;  %v11376_v57 = vcombine.low %v4198_v32, %v4199_v25  ;;  %vm3435_vm9 = vcmp.ge.f32.partialorder %v14246_v36, 0.0  ;;  %5496 = vmatprep.subr.bf16.mxu1 %v11360_v30  ;;  %v2612_v32 = vpop.f32.mrf.mxu0  ;;  %v7864_v58 = vld [vmem:[%s13436_s2 + $0xd8] ss:$20 sps:$4 sm:$0xff]  }
 0x2e7   :  { %v2629_v8 = vadd.f32 %v14248_v4, %v14247_v46  ;;  %v3575_v44 = vadd.f32 1.0, %v3511_v35  ;;  %v3577_v60 = vadd.f32 1.0, %v3513_v33  ;;  %v3469_v39 = vsub.f32 0.0, %v13664_v34  ;;  %v14252_v33 = vld [vmem:[#allocation113_spill] sm:$0xff]  ;;  %v14278_v36 = vld [vmem:[#allocation160_spill] sm:$0xff] }
 0x2e8   :  { %v3471_v22 = vsub.f32 0.0, %v3407_v24  ;;  %vm3443_vm5 = vcmp.ge.f32.partialorder %v14249_v54, 0.0  ;;  %v3483_v25 = vsub.f32 0.0, %v3419_v63  ;;  %7187 = vmatmul.mubr.msk.bf16.gmra.mxu1 %vm14250_vm10, %v7864_v58  ;;  %vm3433_vm14 = vcmp.ge.f32.partialorder %v14251_v41, 0.0  ;;  %v14254_v4 = vld [vmem:[#allocation137_spill] sm:$0xff]  ;;  %v14255_v54 = vld [vmem:[#allocation58_spill] sm:$0xff]  ;;  %v2745_v58 = vpop.f32.mrf.mxu1 }
 0x2e9   :  { %v3507_v35 = vsel %vm3443_vm5, %v3411_v61, %v3475_v40  ;;  %v3543_v38 = vmul.f32 0.5, %v14252_v33  ;;  %v3545_v5 = vmul.f32 0.5, %v14253_v11  ;;  %vm3451_vm8 = vcmp.ge.f32.partialorder %v11012_v6, 0.0  ;;  %5348 = vmatprep.mubr.bf16.mxu1 %v14210_v15  ;;  %5497 = vmatpush1.bf16.msra.mxu1 %v11376_v57  ;;  %v14256_v61 = vld [vmem:[#allocation101_spill] sm:$0xff]  ;;  %v14257_v11 = vld [vmem:[#allocation115_spill] sm:$0xff] }
 0x2ea   :  { %v3505_v46 = vsel %vm3441_vm2, %v3409_v20, %v3473_v53  ;;  %v2633_v1 = vadd.f32 %v14255_v54, %v14254_v4  ;;  %v3547_v21 = vmul.f32 0.5, %v10981_v26  ;;  %v3515_v34 = vsel %vm3451_vm8, %v3419_v63, %v3483_v25  ;;  %v14261_v20 = vld [vmem:[#allocation161_spill] sm:$0xff] }
 0x2eb   :  { %vm3429_vm5 = vcmp.ge.f32.partialorder %v14256_v61, 0.0  ;;  %v3607_v40 = vmul.f32 %v3575_v44, %v3543_v38  ;;  %v3609_v33 = vmul.f32 %v3577_v60, %v3545_v5  ;;  %v2613_v6 = vadd.f32 %v2612_v32, %v14257_v11  ;;  %v14263_v4 = vld [vmem:[#allocation129_spill] sm:$0xff]  ;;  %v14264_v44 = vld [vmem:[#allocation108_spill] sm:$0xff] }
 0x2ec   :  { %v3579_v30 = vadd.f32 1.0, %v3515_v34  ;;  %vm14260_vm10 = vnez %v14259_v7  ;;  %v14262_v45 = vsub.f32 1.0, %v14261_v20  ;;  %v3503_v26 = vsel %vm3439_vm13, %v3407_v24, %v3471_v22  ;;  %v14267_v22 = vld [vmem:[#allocation100_spill] sm:$0xff]  ;;  %v14286_v41 = vld [vmem:[#allocation141_spill] sm:$0xff] }
 0x2ed   :  { %7394 = vmatprep.subr.msk.bf16.mxu1 %vm14260_vm10, %v14258_v16  ;;  %v3571_v63 = vadd.f32 1.0, %v3507_v35  ;;  %v2736_v25 = vadd.f32 %v11240_v17, %v2623_v3  ;;  %vm3431_vm2 = vcmp.ge.f32.partialorder %v14263_v4, 0.0  ;;  %v2609_v60 = vadd.f32 %v11121_v47, %v14264_v44  ;;  %v14268_v3 = vld [vmem:[#allocation9_spill] sm:$0xff]  ;;  %v14269_v35 = vld [vmem:[#allocation98_spill] sm:$0xff] }
 0x2ee   :  { %v3467_v53 = vsub.f32 0.0, %v14262_v45  ;;  %v2742_v34 = vadd.f32 %v11304_v27, %v2629_v8  ;;  %v2746_v32 = vadd.f32 %v2745_v58, %v2633_v1  ;;  %v3611_v38 = vmul.f32 %v3579_v30, %v3547_v21  ;;  %5499 = vmatpush2.bf16.msra.mxu1 %v14268_v3  ;;  %v14270_v30 = vld [vmem:[#allocation33_spill] sm:$0xff] }
 0x2ef   :  { %v14265_v5 = vsub.f32 1.0, %v10848_v2  ;;  %v3569_v11 = vadd.f32 1.0, %v3505_v46  ;;  %v3539_v24 = vmul.f32 0.5, %v14266_v52  ;;  %v2603_v17 = vadd.f32 %v11068_v29, %v14267_v22  ;;  %7395 = vmatprep.subr.msk.bf16.mxu1 %vm14260_vm10, %v14270_v30  ;;  %v14271_v2 = vld [vmem:[#allocation125_spill] sm:$0xff]  ;;  %v14274_v46 = vld [vmem:[#allocation59_spill] sm:$0xff]  ;;  %v14282_v52 = vld [vmem:[#allocation60_spill] sm:$0xff] }
 0x2f0   :  { %vm3427_vm13 = vcmp.ge.f32.partialorder %v14269_v35, 0.0  ;;  %v3639_v47 = vmul.f32 %v3607_v40, %v2736_v25  ;;  %v3641_v45 = vmul.f32 %v3609_v33, %v2742_v34  ;;  %v2726_v1 = vadd.f32 %v11159_v9, %v2613_v6  ;;  %v7865_v9 = vld [vmem:[%s13436_s2 + $0x100] ss:$20 sps:$4 sm:$0xff]   ;;  %v14277_v6 = vld [vmem:[#allocation94_spill] sm:$0xff] }
 0x2f1   :  { %v3501_v54 = vsel %vm3437_vm0, %v14265_v5, %v3469_v39  ;;  %v3643_v27 = vmul.f32 %v3611_v38, %v2746_v32  ;;  %v14272_v55 = vsub.f32 1.0, %v14271_v2  ;;  %v14273_v21 = vsub.f32 1.0, %v14261_v20  ;;  %v14276_v40 = vld [vmem:[#allocation93_spill] sm:$0xff]  ;;  %v14281_v5 = vld [vmem:[#allocation90_spill] sm:$0xff] }
 0x2f2   :  { %v3567_v39 = vadd.f32 1.0, %v3503_v26  ;;  %v3537_v58 = vmul.f32 0.5, %v14274_v46  ;;  %vm14275_vm0 = vcmask 523264   ;;  %vm3425_vm8 = vcmp.ge.f32.partialorder %v14276_v40, 0.0  ;;  %v7883_v7 = vld [vmem:[%s13437_s3 + $0x120] ss:$20 sps:$4 sm:$0xff]  }
 0x2f3   :  { %v3463_v8 = vsub.f32 0.0, %v14272_v55  ;;  %v3499_v29 = vsel %vm3435_vm9, %v14273_v21, %v3467_v53  ;;  %7188 = vmatmul.mubr.msk.bf16.gmra.mxu1 %vm14275_vm0, %v7865_v9  ;;  %v3603_v33 = vmul.f32 %v3571_v63, %v3539_v24  ;;  %v2599_v25 = vadd.f32 %v10993_v19, %v14277_v6  ;;  %v14279_v53 = vld [vmem:[#allocation159_spill] sm:$0xff]  ;;  %v14283_v63 = vld [vmem:[#allocation106_spill] sm:$0xff]  ;;  %v14284_v24 = vld [vmem:[#allocation96_spill] sm:$0xff] }
 0x2f4   :  { %v2722_v20 = vadd.f32 %v11111_v12, %v2609_v60  ;;  %v3659_v44 = vpack.c.bf16 %v3643_v27, %v3641_v45  ;;  %5358 = vmatprep.mubr.bf16.mxu1 %v14210_v15  ;;  %v14280_v26 = vsub.f32 1.0, %v14279_v53  ;;  %v3565_v32 = vadd.f32 1.0, %v3501_v54  ;;  %5501 = vmatpush2.bf16.msra.mxu1 %v14283_v63  ;;  %v14285_v27 = vld [vmem:[#allocation48_spill] sm:$0xff]  ;;  %v14288_v55 = vld [vmem:[#allocation151_spill] sm:$0xff]  ;;  %vm14307_vm9 = vmmov %vm14275_vm0 }
 0x2f5   :  { %v3601_v38 = vmul.f32 %v3569_v11, %v3537_v58  ;;  %v2593_v22 = vadd.f32 %v14282_v52, %v14281_v5  ;;  %v3535_v19 = vmul.f32 0.5, %v14284_v24  ;;  %v2716_v12 = vadd.f32 %v11060_v31, %v2603_v17  ;;  %7396 = vmatprep.subr.msk.bf16.mxu1 %vm14260_vm10, %v14285_v27  ;;  %v14289_v21 = vld [vmem:[#allocation144_spill] sm:$0xff]  ;;  %v14291_v6 = vld [vmem:[#allocation55_spill] sm:$0xff] }
 0x2f6   :  { %v3497_v34 = vsel %vm3433_vm14, %v14280_v26, %v14278_v36  ;;  %v3635_v60 = vmul.f32 %v3603_v33, %v2726_v1  ;;  %3684 = vmatprep.subr.bf16.mxu0 %v3659_v44  ;;  %v3657_v45 = vpack.c.bf16 %v3639_v47, %v11229_v23  ;;  %v14287_v54 = vsub.f32 1.0, %v14286_v41  ;;  %v14293_v47 = vld [vmem:[#allocation85_spill] sm:$0xff]  ;;  %v14297_v24 = vld [vmem:[#allocation107_spill] sm:$0xff] }
 0x2f7   :  { %v14290_v46 = vsub.f32 1.0, %v14289_v21  ;;  %v3563_v9 = vadd.f32 1.0, %v3499_v29  ;;  %v3533_v31 = vmul.f32 0.5, %v14291_v6  ;;  %v14292_v17 = vpack.c.bf16 %v11372_v50, %v11370_v18  ;;  %v14294_v1 = vld [vmem:[#allocation165_spill] sm:$0xff]  ;;  %v14298_v18 = vld [vmem:[#allocation83_spill] sm:$0xff]  ;;  %v14308_v21 = vld [vmem:[#allocation80_spill] sm:$0xff] }
 0x2f8   :  { %v3459_v11 = vsub.f32 0.0, %v14287_v54  ;;  %v3599_v23 = vmul.f32 %v3567_v39, %v3535_v19  ;;  %v2589_v33 = vadd.f32 %v14294_v1, %v14293_v47  ;;  %v2712_v44 = vadd.f32 %v10990_v56, %v2599_v25  ;;  %v14296_v26 = vld [vmem:[#allocation133_spill] sm:$0xff]  ;;  %5503 = vmatpush2.bf16.msra.mxu1 %v14297_v24  ;;  %v14299_v50 = vld [vmem:[#allocation163_spill] sm:$0xff]  ;;  %v14310_v6 = vld [vmem:[#allocation164_spill] sm:$0xff] }
 0x2f9   :  { %v3493_v58 = vsel %vm3429_vm5, %v14290_v46, %v14288_v55  ;;  %3685 = vmatpush1.bf16.msra.mxu0 %v14292_v17  ;;  %v3633_v36 = vmul.f32 %v3601_v38, %v2722_v20  ;;  %v14295_v53 = vsub.f32 1.0, %v14271_v2  ;;  %v3561_v29 = vadd.f32 1.0, %v3497_v34  ;;  %v14300_v19 = vld [vmem:[#allocation139_spill] sm:$0xff]  ;;  %v14301_v25 = vld [vmem:[#allocation49_spill] sm:$0xff]  ;;  %v14309_v46 = vld [vmem:[#allocation66_spill] sm:$0xff] }
 0x2fa   :  { %3686 = vmatprep.subr.bf16.mxu0 %v3657_v45  ;;  %v3531_v5 = vmul.f32 0.5, %v14296_v26  ;;  %v3597_v52 = vmul.f32 %v3565_v32, %v3533_v31  ;;  %v2583_v39 = vadd.f32 %v14299_v50, %v14298_v18  ;;  %v2706_v54 = vadd.f32 %v14300_v19, %v2593_v22  ;;  %7397 = vmatprep.subr.msk.bf16.mxu1 %vm14260_vm10, %v14301_v25  ;;  %v14302_v2 = vld [vmem:[#allocation91_spill] sm:$0xff]  ;;  %v14314_v47 = vld [vmem:[#allocation124_spill] sm:$0xff]  ;;  %v14318_v26 = vld [vmem:[#allocation162_spill] sm:$0xff] }
 0x2fb   :  { %v3495_v61 = vsel %vm3431_vm2, %v14295_v53, %v3463_v8  ;;  %v3631_v55 = vmul.f32 %v3599_v23, %v2716_v12  ;;  %v3655_v56 = vpack.c.bf16 %v3635_v60, %v3633_v36  ;;  %v14303_v4 = vsub.f32 1.0, %v14302_v2  ;;  %v14305_v32 = vld [vmem:[#allocation123_spill] sm:$0xff]  ;;  %v7866_v12 = vld [vmem:[%s13436_s2 + $0x128] ss:$20 sps:$4 sm:$0xff]   ;;  %v14315_v53 = vld [vmem:[#allocation109_spill] sm:$0xff] }
 0x2fc   :  { %v14304_v20 = vsub.f32 1.0, %v14286_v41  ;;  %v3529_v38 = vmul.f32 0.5, %v14305_v32  ;;  %v3595_v45 = vmul.f32 %v3563_v9, %v3531_v5  ;;  %v14306_v22 = vpack.c.bf16 %v11244_v13, %v11215_v37  ;;  %7189 = vmatmul.mubr.msk.bf16.gmra.mxu1 %vm14307_vm9, %v7866_v12  ;;  %v7867_v9 = vld [vmem:[%s13437_s3 + $0xc] ss:$20 sps:$4 sm:$0xff]   ;;  %v14312_v13 = vld [vmem:[#allocation89_spill] sm:$0xff] }
 0x2fd   :  { %v3455_v8 = vsub.f32 0.0, %v14303_v4  ;;  %v3559_v60 = vadd.f32 1.0, %v3495_v61  ;;  %v2579_v41 = vadd.f32 %v14309_v46, %v14308_v21  ;;  %v2702_v35 = vadd.f32 %v14310_v6, %v2589_v33  ;;  %5514 = vmatprep.mubr.bf16.mxu1 %v7867_v9  ;;  %v14311_v37 = vld [vmem:[#allocation143_spill] sm:$0xff]  ;;  %5505 = vmatpush2.bf16.msra.mxu1 %v14315_v53  ;;  %v14316_v33 = vld [vmem:[#allocation76_spill] sm:$0xff] }
 0x2fe   :  { %v3491_v34 = vsel %vm3427_vm13, %v14304_v20, %v3459_v11  ;;  %3687 = vmatpush1.bf16.msra.mxu0 %v14306_v22  ;;  %v3629_v11 = vmul.f32 %v3597_v52, %v2712_v44  ;;  %v14313_v31 = vsub.f32 1.0, %v14312_v13  ;;  %v3557_v23 = vadd.f32 1.0, %v3493_v58  ;;  %v14317_v44 = vld [vmem:[#allocation131_spill] sm:$0xff]  ;;  %v14319_v50 = vld [vmem:[#allocation52_spill] sm:$0xff]  ;;  %v14323_v20 = vld [vmem:[#allocation74_spill] sm:$0xff] }
 0x2ff   :  { %3688 = vmatprep.subr.bf16.mxu0 %v3655_v56  ;;  %v3527_v1 = vmul.f32 0.5, %v14314_v47  ;;  %v3593_v36 = vmul.f32 %v3561_v29, %v3529_v38  ;;  %v2573_v61 = vadd.f32 %v14317_v44, %v14316_v33  ;;  %v2696_v5 = vadd.f32 %v14318_v26, %v2583_v39  ;;  %7398 = vmatprep.subr.msk.bf16.mxu1 %vm8482_vm7, %v14319_v50  ;;  %v14321_v56 = vld [vmem:[#allocation88_spill] sm:$0xff]  ;;  %v14322_v58 = vld [vmem:[#allocation99_spill] sm:$0xff]  ;;  %v14331_v13 = vld [vmem:[#allocation110_spill] sm:$0xff] }
 0x300   :  { %v3489_v17 = vsel %vm3425_vm8, %v14313_v31, %v14311_v37  ;;  %v3627_v52 = vmul.f32 %v3595_v45, %v2706_v54  ;;  %v3653_v18 = vpack.c.bf16 %v3631_v55, %v3629_v11  ;;  %vm3423_vm14 = vcmp.ge.f32.partialorder %v14321_v56, 0.0  ;;  %v14326_v54 = vld [vmem:[#allocation67_spill] sm:$0xff]  ;;  %v14327_v55 = vld [vmem:[#allocation158_spill] sm:$0xff]  ;;  %v14328_v22 = vld [vmem:[#allocation64_spill] sm:$0xff] }
 0x301   :  { %v3555_v40 = vadd.f32 1.0, %v3491_v34  ;;  %v3525_v4 = vmul.f32 0.5, %v14322_v58  ;;  %v11523_v32 = vsel %vm14030_vm11, %v14323_v20, 0  ;;  %v14325_v38 = vpack.c.bf16 %v11177_v48, %v11168_v62  ;;  %v14330_v11 = vld [vmem:[#allocation95_spill] sm:$0xff]  ;;  %5507 = vmatpush2.bf16.msra.mxu1 %v14331_v13  ;;  %v14332_v31 = vld [vmem:[#allocation62_spill] sm:$0xff]  ;;  %v14375_v19 = vld [vmem:[#allocation20_spill] sm:$0xff] }
 0x302   :  { %v3591_v39 = vmul.f32 %v3559_v60, %v3527_v1  ;;  %v2569_v45 = vadd.f32 %v14327_v55, %v14326_v54  ;;  %v2692_v12 = vadd.f32 %v14328_v22, %v2579_v41  ;;  %v3625_v21 = vmul.f32 %v3593_v36, %v2702_v35  ;;  %v14333_v62 = vld [vmem:[#allocation118_spill] sm:$0xff]  ;;  %v14334_v60 = vld [vmem:[#allocation63_spill] sm:$0xff]  ;;  %v14341_v36 = vld [vmem:[#allocation92_spill] sm:$0xff] }
 0x303   :  { %3689 = vmatpush1.bf16.msra.mxu0 %v14325_v38  ;;  %v14329_v34 = vsub.f32 1.0, %v14302_v2  ;;  %v3553_v6 = vadd.f32 1.0, %v3489_v17  ;;  %v3523_v9 = vmul.f32 0.5, %v14330_v11  ;;  %v3589_v37 = vmul.f32 %v3557_v23, %v3525_v4  ;;  %v14335_v44 = vld [vmem:[#allocation75_spill] sm:$0xff]  ;;  %v14336_v41 = vld [vmem:[#allocation82_spill] sm:$0xff] }
 0x304   :  { %3690 = vmatprep.subr.bf16.mxu0 %v3653_v18  ;;  %v2563_v48 = vadd.f32 %v14333_v62, %v14332_v31  ;;  %v2686_v47 = vadd.f32 %v14334_v60, %v2573_v61  ;;  %v3623_v1 = vmul.f32 %v3591_v39, %v2696_v5  ;;  %v3651_v33 = vpack.c.bf16 %v3627_v52, %v3625_v21  ;;  %v14338_v35 = vld [vmem:[#allocation70_spill] sm:$0xff]  ;;  %v14342_v26 = vld [vmem:[#allocation87_spill] sm:$0xff]  ;;  %v14344_v18 = vld [vmem:[#allocation157_spill] sm:$0xff] }
 0x305   :  { %v3487_v46 = vsel %vm3423_vm14, %v14329_v34, %v3455_v8  ;;  %7399 = vmatprep.subr.msk.bf16.mxu1 %vm8482_vm7, %v14335_v44  ;;  %v3521_v2 = vmul.f32 0.5, %v14336_v41  ;;  %v14337_v8 = vld [vmem:[#allocation71_spill] sm:$0xff]  ;;  %vm14339_vm5 = vcmask 924672   ;;  %v14343_v61 = vpack.c.bf16 %v14341_v36, %v14342_v26  ;;  %v14345_v4 = vld [vmem:[#allocation86_spill] sm:$0xff]  ;;  %v14354_v60 = vld [vmem:[#allocation81_spill] sm:$0xff] }
 0x306   :  { %v4327_v17 = vsel %vm14339_vm5, %v14338_v35, %v14337_v8  ;;  %vm14340_vm2 = vmmov %vm14339_vm5  ;;  %v3551_v5 = vadd.f32 1.0, %v3487_v46  ;;  %v3587_v52 = vmul.f32 %v3555_v40, %v3523_v9  ;;  %v2682_v56 = vadd.f32 %v14344_v18, %v2569_v45  ;;  %5509 = vmatpush2.bf16.msra.mxu1 %v11523_v32  ;;  %v14346_v54 = vld [vmem:[#allocation135_spill] sm:$0xff]  ;;  %v14347_v40 = vld [vmem:[#allocation56_spill] sm:$0xff] }
 0x307   :  { %v11548_v23 = vsel %vm14340_vm2, %v14337_v8, %v14338_v35  ;;  %3691 = vmatpush1.bf16.msra.mxu0 %v14343_v61  ;;  %v3621_v58 = vmul.f32 %v3589_v37, %v2692_v12  ;;  %v3519_v20 = vmul.f32 0.5, %v14345_v4  ;;  %v3585_v38 = vmul.f32 %v3553_v6, %v3521_v2  ;;  %v14348_v45 = vld [vmem:[#allocation57_spill] sm:$0xff]  ;;  %vm14349_vm13 = vmmov %vm14340_vm2  ;;  %v14351_v46 = vld [vmem:[#allocation84_spill] sm:$0xff] }
 0x308   :  { %3692 = vmatprep.subr.bf16.mxu0 %v3651_v33  ;;  %v11558_v39 = vsel %vm14030_vm11, %v4327_v17, 0  ;;  %v2676_v55 = vadd.f32 %v14346_v54, %v2563_v48  ;;  %v3619_v22 = vmul.f32 %v3587_v52, %v2686_v47  ;;  %7400 = vmatprep.subr.msk.bf16.mxu1 %vm8482_vm7, %v11548_v23  ;;  %v4326_v12 = vsel %vm14349_vm13, %v14348_v45, %v14347_v40  ;;  %vm14350_vm0 = vmmov %vm14340_vm2  ;;  %v14352_v6 = vld [vmem:[#allocation154_spill] sm:$0xff]  ;;  %v14355_v47 = vld [vmem:[#allocation79_spill] sm:$0xff] }
 0x309   :  { %v3649_v21 = vpack.c.bf16 %v3623_v1, %v3621_v58  ;;  %v11570_v34 = vsel %vm14350_vm0, %v14347_v40, %v14348_v45  ;;  %v14353_v11 = vpack.c.bf16 %v14351_v46, %v14352_v6  ;;  %v3583_v9 = vmul.f32 %v3551_v5, %v3519_v20  ;;  %v14357_v33 = vld [vmem:[#allocation155_spill] sm:$0xff]  ;;  %v14358_v2 = vld [vmem:[#allocation72_spill] sm:$0xff]  ;;  %v14361_v26 = vld [vmem:[#allocation138_spill] sm:$0xff] }
 0x30a   :  { %v3617_v37 = vmul.f32 %v3585_v38, %v2682_v56  ;;  %5511 = vmatpush2.bf16.msra.mxu1 %v11558_v39  ;;  %v11578_v62 = vsel %vm14030_vm11, %v4326_v12, 0  ;;  %v14356_v1 = vpack.c.bf16 %v14354_v60, %v14355_v47  ;;  %v14359_v8 = vld [vmem:[#allocation156_spill] sm:$0xff]  ;;  %v7575_v36 = vld [vmem:[%s13438_s4] sm:$0xff]   ;;  %v14362_v61 = vld [vmem:[#allocation65_spill] sm:$0xff] }
 0x30b   :  { %3693 = vmatpush1.bf16.msra.mxu0 %v14353_v11  ;;  %v3615_v31 = vmul.f32 %v3583_v9, %v2676_v55  ;;  %7401 = vmatprep.subr.msk.bf16.mxu1 %vm8482_vm7, %v11570_v34  ;;  %v14360_v35 = vpack.c.bf16 %v14358_v2, %v14359_v8  ;;  %v7868_v29 = vld [vmem:[%s13437_s3 + $0x8] ss:$20 sps:$4 sm:$0xff]   ;;  %v14363_v5 = vpack.c.bf16 %v14361_v26, %v14362_v61  ;;  %v14364_v52 = vld [vmem:[#allocation31_spill] sm:$0xff]  ;;  %v14365_v18 = vld [vmem:[#allocation5_spill] sm:$0xff] }
 0x30c   :  { %3694 = vmatprep.subr.bf16.mxu0 %v3649_v21  ;;  %v3647_v48 = vpack.c.bf16 %v3619_v22, %v3617_v37  ;;  %v7869_v17 = vld [vmem:[%s13437_s3 + $0x34] ss:$20 sps:$4 sm:$0xff]   ;;  %v14366_v56 = vld [vmem:[#allocation10_spill] sm:$0xff]  ;;  %v7870_v58 = vld [vmem:[%s13437_s3 + $0x30] ss:$20 sps:$4 sm:$0xff]  }
 0x30d   :  { %v3645_v41 = vpack.c.bf16 %v3615_v31, %v14357_v33  ;;  %v7871_v4 = vld [vmem:[%s13437_s3 + $0x5c] ss:$20 sps:$4 sm:$0xff]   ;;  %v7576_v20 = vld [vmem:[%s13438_s4 + $0x8] sm:$0xff]   ;;  %v14380_v9 = vld [vmem:[#allocation7_spill] sm:$0xff] }
 0x30e   :  { %5513 = vmatpush2.bf16.msra.mxu1 %v11578_v62  ;;  %v14367_v38 = vld [vmem:[#allocation12_spill] sm:$0xff]  ;;  %v7879_v21 = vld [vmem:[%s13437_s3 + $0xd0] ss:$20 sps:$4 sm:$0xff]  }
 0x30f   :  { %3695 = vmatpush1.bf16.msra.mxu0 %v14356_v1  ;;  %v7872_v54 = vld [vmem:[%s13437_s3 + $0x58] ss:$20 sps:$4 sm:$0xff]   ;;  %v7877_v22 = vld [vmem:[%s13437_s3 + $0xa8] ss:$20 sps:$4 sm:$0xff]   ;;  %v14379_v6 = vld [vmem:[#allocation25_spill] sm:$0xff] }
 0x310   :  { %3696 = vmatprep.subr.bf16.mxu0 %v3647_v48  ;;  %v14370_v55 = vld [vmem:[#allocation112_spill] sm:$0xff]  ;;  %v7880_v40 = vld [vmem:[%s13437_s3 + $0xfc] ss:$20 sps:$4 sm:$0xff]   ;;  %v7889_v60 = vld [vmem:[%s13436_s2 + $0x84] ss:$20 sps:$4 sm:$0xff]  }
 0x311   :  { %5515 = vmatmul.mubr.bf16.vlgmr.msra.gmra.mxu1 %v7868_v29  ;;  %v7887_v45 = vld [vmem:[%s13436_s2 + $0x5c] ss:$20 sps:$4 sm:$0xff]   ;;  %v14383_v1 = vld [vmem:[#allocation32_spill] sm:$0xff]  ;;  %v14385_v8 = vld [vmem:[#allocation35_spill] sm:$0xff] }
 0x312   :  { %5524 = vmatprep.mubr.bf16.mxu1 %v7869_v17  ;;  %v14382_v48 = vld [vmem:[#allocation14_spill] sm:$0xff]  ;;  %v7890_v29 = vld [vmem:[%s13436_s2 + $0x80] ss:$20 sps:$4 sm:$0xff]   ;;  %v14386_v17 = vld [vmem:[#allocation36_spill] sm:$0xff] }
 0x313   :  { %3697 = vmatpush1.bf16.msra.mxu0 %v14360_v35  ;;  %v14387_v61 = vld [vmem:[#allocation37_spill] sm:$0xff] }
 0x314   :  { %3698 = vmatprep.subr.bf16.mxu0 %v3645_v41  ;;  %v14384_v41 = vld [vmem:[#allocation34_spill] sm:$0xff] }
 0x317   :  { %3699 = vmatpush1.bf16.msra.mxu0 %v14363_v5 }
 0x318   :  { %7358 = vmatprep.subr.msk.bf16.mxu0 %vm14207_vm15, %v14364_v52  ;;  %v14388_v52 = vld [vmem:[#allocation38_spill] sm:$0xff] }
 0x319   :  { %5525 = vmatmul.mubr.bf16.gmra.mxu1 %v7870_v58  ;;  %v14418_v58 = vld [vmem:[#allocation97_spill] sm:$0xff] }
 0x31a   :  { %3717 = vmatmul.mubr.bf16.vlgmr.msra.gmra.mxu0 %v7575_v36  ;;  %5534 = vmatprep.mubr.bf16.mxu1 %v7871_v4  ;;  %v7891_v36 = vld [vmem:[%s13436_s2 + $0xac] ss:$20 sps:$4 sm:$0xff]  }
 0x31b   :  { %5144 = vmatpush1.bf16.msra.mxu0 %v14365_v18  ;;  %3726 = vmatprep.mubr.bf16.mxu0 %v14210_v15 }
 0x31c   :  { %7359 = vmatprep.subr.msk.bf16.mxu0 %vm14207_vm15, %v14366_v56  ;;  %v14389_v56 = vld [vmem:[#allocation39_spill] sm:$0xff] }
 0x31f   :  { %5146 = vmatpush1.bf16.msra.mxu0 %v14213_v43  ;;  %v7873_v43 = vld [vmem:[%s13437_s3 + $0x84] ss:$20 sps:$4 sm:$0xff]  }
 0x320   :  { %7360 = vmatprep.subr.msk.bf16.mxu0 %vm14207_vm15, %v14214_v51  ;;  %v7577_v51 = vld [vmem:[%s13438_s4 + $0x10] sm:$0xff]  }
 0x321   :  { %5535 = vmatmul.mubr.bf16.gmra.mxu1 %v7872_v54  ;;  %v7893_v54 = vld [vmem:[%s13436_s2 + $0xd4] ss:$20 sps:$4 sm:$0xff]  }
 0x322   :  { %3727 = vmatmul.mubr.bf16.gmra.mxu0 %v7576_v20  ;;  %5544 = vmatprep.mubr.bf16.mxu1 %v7873_v43  ;;  %v7892_v20 = vld [vmem:[%s13436_s2 + $0xa8] ss:$20 sps:$4 sm:$0xff]  }
 0x323   :  { %5148 = vmatpush1.bf16.msra.mxu0 %v14216_v49  ;;  %3736 = vmatprep.mubr.bf16.mxu0 %v14210_v15  ;;  %v7875_v49 = vld [vmem:[%s13437_s3 + $0xac] ss:$20 sps:$4 sm:$0xff]  }
 0x324   :  { %7361 = vmatprep.subr.msk.bf16.mxu0 %vm14207_vm15, %v14367_v38  ;;  %v14391_v38 = vld [vmem:[#allocation27_spill] sm:$0xff] }
 0x327   :  { %5150 = vmatpush1.bf16.msra.mxu0 %v14219_v14  ;;  %v7578_v14 = vld [vmem:[%s13438_s4 + $0x18] sm:$0xff]  }
 0x328   :  { %5151 = vmatprep.subr.bf16.mxu0 %v11288_v28  ;;  %v14369_v28 = vld [vmem:[#allocation4_spill] sm:$0xff] }
 0x329   :  { %5545 = vmatmul.mubr.bf16.gmra.mxu1 %v7874_v0 }
 0x32a   :  { %3737 = vmatmul.mubr.bf16.gmra.mxu0 %v7577_v51  ;;  %5554 = vmatprep.mubr.bf16.mxu1 %v7875_v49  ;;  %v14392_v51 = vld [vmem:[#allocation40_spill] sm:$0xff]  ;;  %v14393_v49 = vld [vmem:[#allocation41_spill] sm:$0xff] }
 0x32b   :  { %5152 = vmatpush1.bf16.msra.mxu0 %v11284_v59  ;;  %3746 = vmatprep.mubr.bf16.mxu0 %v14210_v15  ;;  %v14368_v59 = vld [vmem:[#allocation102_spill] sm:$0xff] }
 0x32c   :  { %5153 = vmatprep.subr.bf16.mxu0 %v11310_v10  ;;  %v7876_v10 = vld [vmem:[%s13436_s2 + $0xc] ss:$20 sps:$4 sm:$0xff]  }
 0x32f   :  { %5154 = vmatpush1.bf16.msra.mxu0 %v11319_v42  ;;  %v7878_v42 = vld [vmem:[%s13437_s3 + $0xd4] ss:$20 sps:$4 sm:$0xff]  }
 0x330   :  { %5155 = vmatprep.subr.bf16.mxu0 %v14368_v59  ;;  %v7894_v59 = vld [vmem:[%s13436_s2 + $0xd0] ss:$20 sps:$4 sm:$0xff]  }
 0x331   :  { %5555 = vmatmul.mubr.bf16.gmra.mxu1 %v7877_v22  ;;  %v14396_v22 = vld [vmem:[#allocation44_spill] sm:$0xff] }
 0x332   :  { %3747 = vmatmul.mubr.bf16.gmra.mxu0 %v7578_v14  ;;  %5564 = vmatprep.mubr.bf16.mxu1 %v7878_v42  ;;  %v14394_v14 = vld [vmem:[#allocation42_spill] sm:$0xff] }
 0x333   :  { %5156 = vmatpush1.bf16.msra.mxu0 %v14369_v28  ;;  %5175 = vmatprep.mubr.bf16.mxu0 %v7876_v10  ;;  %v14395_v10 = vld [vmem:[#allocation43_spill] sm:$0xff] }
 0x334   :  { %5157 = vmatprep.subr.bf16.mxu0 %v14370_v55  ;;  %v7895_v55 = vld [vmem:[%s13436_s2 + $0xfc] ss:$20 sps:$4 sm:$0xff]  }
 0x337   :  { %5158 = vmatpush1.bf16.msra.mxu0 %v11376_v57  ;;  %v7882_v57 = vld [vmem:[%s13437_s3 + $0x124] ss:$20 sps:$4 sm:$0xff]  }
 0x338   :  { %7362 = vmatprep.subr.msk.bf16.mxu0 %vm14260_vm10, %v14258_v16  ;;  %v7881_v16 = vld [vmem:[%s13437_s3 + $0xf8] ss:$20 sps:$4 sm:$0xff]  }
 0x339   :  { %5565 = vmatmul.mubr.bf16.gmra.mxu1 %v7879_v21  ;;  %v14397_v21 = vld [vmem:[#allocation45_spill] sm:$0xff] }
 0x33a   :  { %5574 = vmatprep.mubr.bf16.mxu1 %v7880_v40  ;;  %v14398_v40 = vld [vmem:[#allocation46_spill] sm:$0xff] }
 0x33b   :  { %5160 = vmatpush2.bf16.msra.mxu0 %v14268_v3  ;;  %v14371_v3 = vld [vmem:[#allocation15_spill] sm:$0xff] }
 0x33c   :  { %7363 = vmatprep.subr.msk.bf16.mxu0 %vm14260_vm10, %v14270_v30  ;;  %v7897_v30 = vld [vmem:[%s13436_s2 + $0x124] ss:$20 sps:$4 sm:$0xff]  }
 0x33f   :  { %5162 = vmatpush2.bf16.msra.mxu0 %v14283_v63  ;;  %v7884_v63 = vld [vmem:[%s13436_s2 + $0x8] ss:$20 sps:$4 sm:$0xff]  }
 0x340   :  { %7364 = vmatprep.subr.msk.bf16.mxu0 %vm14260_vm10, %v14285_v27  ;;  %v14373_v27 = vld [vmem:[#allocation18_spill] sm:$0xff] }
 0x341   :  { %5575 = vmatmul.mubr.bf16.gmra.mxu1 %v7881_v16  ;;  %v7909_v16 = vld [vmem:[%s13437_s3 + $0xcc] ss:$20 sps:$4 sm:$0xff]  }
 0x342   :  { %5584 = vmatprep.mubr.bf16.mxu1 %v7882_v57  ;;  %v7896_v57 = vld [vmem:[%s13436_s2 + $0xf8] ss:$20 sps:$4 sm:$0xff]  }
 0x343   :  { %5164 = vmatpush2.bf16.msra.mxu0 %v14297_v24  ;;  %v7885_v24 = vld [vmem:[%s13436_s2 + $0x34] ss:$20 sps:$4 sm:$0xff]  }
 0x344   :  { %7365 = vmatprep.subr.msk.bf16.mxu0 %vm14260_vm10, %v14301_v25  ;;  %v11724_v25 = vpop.f32.mrf.mxu1 }
 0x347   :  { %5166 = vmatpush2.bf16.msra.mxu0 %v14315_v53  ;;  %v14374_v53 = vld [vmem:[#allocation19_spill] sm:$0xff] }
 0x348   :  { %7366 = vmatprep.subr.msk.bf16.mxu0 %vm8482_vm7, %v14319_v50  ;;  %v11729_v50 = vpop.f32.mrf.mxu1 }
 0x349   :  { %5585 = vmatmul.mubr.bf16.gmra.mxu1 %v7883_v7 }
 0x34a   :  { %6652 = vmatprep.mubr.bf16.mxu1 %v14210_v15 }
 0x34b   :  { %5168 = vmatpush2.bf16.msra.mxu0 %v14331_v13  ;;  %v14376_v13 = vld [vmem:[#allocation21_spill] sm:$0xff] }
 0x34c   :  { %7367 = vmatprep.subr.msk.bf16.mxu0 %vm8482_vm7, %v14335_v44 }
 0x34f   :  { %5170 = vmatpush2.bf16.msra.mxu0 %v11523_v32  ;;  %v11732_v32 = vpop.f32.mrf.mxu1 }
 0x350   :  { %7368 = vmatprep.subr.msk.bf16.mxu0 %vm8482_vm7, %v11548_v23  ;;  %v7886_v23 = vld [vmem:[%s13436_s2 + $0x30] ss:$20 sps:$4 sm:$0xff]  }
 0x351   :  { %v11737_v44 = vpop.f32.mrf.mxu1 }
 0x353   :  { %5172 = vmatpush2.bf16.msra.mxu0 %v11558_v39  ;;  %v14377_v39 = vld [vmem:[#allocation23_spill] sm:$0xff]  ;;  %v11746_v12 = vpop.f32.mrf.mxu1 }
 0x354   :  { %7369 = vmatprep.subr.msk.bf16.mxu0 %vm8482_vm7, %v11570_v34  ;;  %v14378_v34 = vld [vmem:[#allocation24_spill] sm:$0xff] }
 0x355   :  { %v11751_v46 = vpop.f32.mrf.mxu1 }
 0x357   :  { %5174 = vmatpush2.bf16.msra.mxu0 %v11578_v62  ;;  %v11754_v11 = vpop.f32.mrf.mxu1  ;;  %v7888_v62 = vld [vmem:[%s13436_s2 + $0x58] ss:$20 sps:$4 sm:$0xff]  }
 0x358   :  { %7374 = vmatprep.subr.msk.bf16.mxu0 %vm8288_vm4, %v14371_v3  ;;  %v14400_v3 = vld [vmem:[#allocation47_spill] sm:$0xff] }
 0x359   :  { %v11759_v31 = vpop.f32.mrf.mxu1 }
 0x35a   :  { %5176 = vmatmul.mubr.bf16.vlgmr.msra.gmra.mxu0 %v7884_v63  ;;  %v14401_v63 = vld [vmem:[#allocation50_spill] sm:$0xff] }
 0x35b   :  { %5370 = vmatpush1.bf16.msra.mxu0 %v14373_v27  ;;  %5185 = vmatprep.mubr.bf16.mxu0 %v7885_v24  ;;  %v11768_v47 = vpop.f32.mrf.mxu1  ;;  %v14402_v24 = vld [vmem:[#allocation51_spill] sm:$0xff] }
 0x35c   :  { %7375 = vmatprep.subr.msk.bf16.mxu0 %vm8288_vm4, %v14374_v53  ;;  %v14403_v53 = vld [vmem:[#allocation53_spill] sm:$0xff] }
 0x35d   :  { %v11773_v33 = vpop.f32.mrf.mxu1 }
 0x35f   :  { %5372 = vmatpush1.bf16.msra.mxu0 %v14375_v19  ;;  %v11776_v2 = vpop.f32.mrf.mxu1  ;;  %v7898_v19 = vld [vmem:[%s13436_s2 + $0x120] ss:$20 sps:$4 sm:$0xff]  }
 0x360   :  { %7376 = vmatprep.subr.msk.bf16.mxu0 %vm8288_vm4, %v14376_v13 }
 0x361   :  { %v11781_v35 = vpop.f32.mrf.mxu1 }
 0x362   :  { %5186 = vmatmul.mubr.bf16.gmra.mxu0 %v7886_v23  ;;  %v14404_v23 = vld [vmem:[#allocation54_spill] sm:$0xff] }
 0x363   :  { %5374 = vmatpush1.bf16.msra.mxu0 %v14377_v39  ;;  %5195 = vmatprep.mubr.bf16.mxu0 %v7887_v45  ;;  %v11790_v26 = vpop.f32.mrf.mxu1  ;;  %v7899_v39 = vld [vmem:[%s13437_s3 + $0x4] ss:$20 sps:$4 sm:$0xff]   ;;  %v14405_v45 = vld [vmem:[#allocation77_spill] sm:$0xff] }
 0x364   :  { %7377 = vmatprep.subr.msk.bf16.mxu0 %vm8288_vm4, %v14378_v34  ;;  %vm14425_vm4 = vmmov %vm14307_vm9 }
 0x365   :  { %v11795_v5 = vpop.f32.mrf.mxu1 }
 0x367   :  { %5376 = vmatpush1.bf16.msra.mxu0 %v14379_v6  ;;  %v11798_v18 = vpop.f32.mrf.mxu1  ;;  %v14407_v6 = vld [vmem:[#allocation78_spill] sm:$0xff] }
 0x368   :  { %7378 = vmatprep.subr.msk.bf16.mxu0 %vm8455_vm1, %v14380_v9  ;;  %v14408_v9 = vld [vmem:[#allocation114_spill] sm:$0xff] }
 0x369   :  { %v11803_v4 = vpop.f32.mrf.mxu1 }
 0x36a   :  { %5196 = vmatmul.mubr.bf16.gmra.mxu0 %v7888_v62  ;;  %v7900_v62 = vld [vmem:[%s13437_s3] ss:$20 sps:$4 sm:$0xff]  }
 0x36b   :  { %5378 = vmatpush1.bf16.msra.mxu0 %v14382_v48  ;;  %5205 = vmatprep.mubr.bf16.mxu0 %v7889_v60  ;;  %v11812_v43 = vpop.f32.mrf.mxu1  ;;  %v14411_v60 = vld [vmem:[#allocation153_spill] sm:$0xff] }
 0x36c   :  { %7379 = vmatprep.subr.msk.bf16.mxu0 %vm8455_vm1, %v14383_v1  ;;  %v7901_v1 = vld [vmem:[%s13437_s3 + $0x2c] ss:$20 sps:$4 sm:$0xff]  }
 0x36d   :  { %v11817_v0 = vpop.f32.mrf.mxu1 }
 0x36f   :  { %5380 = vmatpush1.bf16.msra.mxu0 %v14384_v41  ;;  %v11826_v28 = vpop.f32.mrf.mxu1  ;;  %v14412_v41 = vld [vmem:[#allocation148_spill] sm:$0xff] }
 0x370   :  { %7380 = vmatprep.subr.msk.bf16.mxu0 %vm8455_vm1, %v14385_v8 }
 0x371   :  { %v11835_v42 = vpop.f32.mrf.mxu1 }
 0x372   :  { %5206 = vmatmul.mubr.bf16.gmra.mxu0 %v7890_v29  ;;  %v14414_v29 = vld [vmem:[#allocation149_spill] sm:$0xff] }
 0x373   :  { %5382 = vmatpush1.bf16.msra.mxu0 %v14386_v17  ;;  %5215 = vmatprep.mubr.bf16.mxu0 %v7891_v36  ;;  %v11844_v7 = vpop.f32.mrf.mxu1  ;;  %v14415_v17 = vld [vmem:[#allocation61_spill] sm:$0xff]  ;;  %v7902_v36 = vld [vmem:[%s13437_s3 + $0x28] ss:$20 sps:$4 sm:$0xff]  }
 0x374   :  { %7381 = vmatprep.subr.msk.bf16.mxu0 %vm8455_vm1, %v14387_v61  ;;  %vm14426_vm1 = vmmov %vm14425_vm4 }
 0x375   :  { %v11853_v27 = vpop.f32.mrf.mxu1  ;;  %vm14427_vm7 = vmmov %vm14426_vm1 }
 0x376   :  { %vm14430_vm11 = vmmov %vm14426_vm1 }
 0x377   :  { %5384 = vmatpush1.bf16.msra.mxu0 %v14388_v52  ;;  %v11862_v13 = vpop.f32.mrf.mxu1  ;;  %v14417_v52 = vld [vmem:[#allocation29_spill] sm:$0xff]  ;;  %vm14433_vm15 = vmmov %vm14426_vm1 }
 0x378   :  { %7382 = vmatprep.subr.msk.bf16.mxu0 %vm8650_vm12, %v14389_v56  ;;  %v7903_v56 = vld [vmem:[%s13437_s3 + $0x54] ss:$20 sps:$4 sm:$0xff]  }
 0x379   :  { %v11871_v34 = vpop.f32.mrf.mxu1 }
 0x37a   :  { %5216 = vmatmul.mubr.bf16.gmra.mxu0 %v7892_v20  ;;  %14406 = vst [vmem:[#allocation103_spill] sm:$0xff] %v11871_v34 }
 0x37b   :  { %5386 = vmatpush2.bf16.msra.mxu0 %v14391_v38  ;;  %5225 = vmatprep.mubr.bf16.mxu0 %v7893_v54  ;;  %v11880_v48 = vpop.f32.mrf.mxu1  ;;  %v14420_v38 = vld [vmem:[#allocation167_spill] sm:$0xff] }
 0x37c   :  { %7383 = vmatprep.subr.msk.bf16.mxu0 %vm8650_vm12, %v14392_v51  ;;  %14410 = vst [vmem:[#allocation11_spill] sm:$0xff] %v11880_v48  ;;  %v7904_v54 = vld [vmem:[%s13437_s3 + $0x50] ss:$20 sps:$4 sm:$0xff]  }
 0x37d   :  { %v11889_v8 = vpop.f32.mrf.mxu1 }
 0x37e   :  { %14413 = vst [vmem:[#allocation104_spill] sm:$0xff] %v11889_v8 }
 0x37f   :  { %5388 = vmatpush2.bf16.msra.mxu0 %v14393_v49  ;;  %v11898_v61 = vpop.f32.mrf.mxu1  ;;  %v7905_v49 = vld [vmem:[%s13437_s3 + $0x7c] ss:$20 sps:$4 sm:$0xff]  }
 0x380   :  { %7384 = vmatprep.subr.msk.bf16.mxu0 %vm8650_vm12, %v14394_v14  ;;  %14416 = vst [vmem:[#allocation105_spill] sm:$0xff] %v11898_v61 }
 0x381   :  { %v11907_v20 = vpop.f32.mrf.mxu1 }
 0x382   :  { %5226 = vmatmul.mubr.bf16.gmra.mxu0 %v7894_v59  ;;  %14419 = vst [vmem:[#allocation116_spill] sm:$0xff] %v11907_v20  ;;  %v7906_v59 = vld [vmem:[%s13437_s3 + $0x78] ss:$20 sps:$4 sm:$0xff]  }
 0x383   :  { %5390 = vmatpush2.bf16.msra.mxu0 %v14395_v10  ;;  %5235 = vmatprep.mubr.bf16.mxu0 %v7895_v55  ;;  %v11913_v51 = vpop.f32.mrf.mxu1  ;;  %v7907_v55 = vld [vmem:[%s13437_s3 + $0xa4] ss:$20 sps:$4 sm:$0xff]  }
 0x384   :  { %7385 = vmatprep.subr.msk.bf16.mxu0 %vm8650_vm12, %v14396_v22  ;;  %14421 = vst [vmem:[#allocation117_spill] sm:$0xff] %v11913_v51  ;;  %vm14428_vm12 = vmmov %vm14426_vm1 }
 0x385   :  { %v11918_v14 = vpop.f32.mrf.mxu1 }
 0x386   :  { %14422 = vst [vmem:[#allocation119_spill] sm:$0xff] %v11918_v14 }
 0x387   :  { %5392 = vmatpush2.bf16.msra.mxu0 %v14397_v21  ;;  %v11923_v10 = vpop.f32.mrf.mxu1  ;;  %v7908_v21 = vld [vmem:[%s13437_s3 + $0xa0] ss:$20 sps:$4 sm:$0xff]  }
 0x388   :  { %7386 = vmatprep.subr.msk.bf16.mxu0 %vm8786_vm6, %v14398_v40  ;;  %14423 = vst [vmem:[#allocation126_spill] sm:$0xff] %v11923_v10 }
 0x389   :  { %v11928_v22 = vpop.f32.mrf.mxu1 }
 0x38a   :  { %5236 = vmatmul.mubr.bf16.gmra.mxu0 %v7896_v57  ;;  %14424 = vst [vmem:[#allocation145_spill] sm:$0xff] %v11928_v22 }
 0x38b   :  { %5394 = vmatpush2.bf16.msra.mxu0 %v14400_v3  ;;  %5245 = vmatprep.mubr.bf16.mxu0 %v7897_v30  ;;  %v11933_v40 = vpop.f32.mrf.mxu1  ;;  %v7910_v3 = vld [vmem:[%s13437_s3 + $0xc8] ss:$20 sps:$4 sm:$0xff]  }
 0x38c   :  { %7387 = vmatprep.subr.msk.bf16.mxu0 %vm8786_vm6, %v14401_v63  ;;  %v7911_v63 = vld [vmem:[%s13437_s3 + $0xf4] ss:$20 sps:$4 sm:$0xff]  }
 0x38d   :  { %v11938_v57 = vpop.f32.mrf.mxu1 }
 0x38f   :  { %5396 = vmatpush2.bf16.msra.mxu0 %v14402_v24  ;;  %v11943_v30 = vpop.f32.mrf.mxu1 }
 0x390   :  { %7388 = vmatprep.subr.msk.bf16.mxu0 %vm8786_vm6, %v14403_v53  ;;  %v7912_v53 = vld [vmem:[%s13437_s3 + $0xf0] ss:$20 sps:$4 sm:$0xff]  }
 0x391   :  { %v11948_v24 = vpop.f32.mrf.mxu1 }
 0x392   :  { %5246 = vmatmul.mubr.bf16.gmra.mxu0 %v7898_v19 }
 0x393   :  { %5398 = vmatpush2.bf16.msra.mxu0 %v14404_v23  ;;  %5401 = vmatprep.mubr.bf16.mxu0 %v7899_v39  ;;  %v11953_v19 = vpop.f32.mrf.mxu1  ;;  %v7913_v23 = vld [vmem:[%s13437_s3 + $0x11c] ss:$20 sps:$4 sm:$0xff]  }
 0x394   :  { %7389 = vmatprep.subr.msk.bf16.mxu0 %vm8786_vm6, %v14405_v45  ;;  %v7914_v45 = vld [vmem:[%s13437_s3 + $0x118] ss:$20 sps:$4 sm:$0xff]   ;;  %vm14429_vm6 = vmmov %vm14426_vm1 }
 0x395   :  { %v11958_v39 = vpop.f32.mrf.mxu1 }
 0x397   :  { %5400 = vmatpush2.bf16.msra.mxu0 %v14407_v6  ;;  %v11963_v6 = vpop.f32.mrf.mxu1 }
 0x398   :  { %7402 = vmatprep.subr.msk.bf16.mxu0 %vm14185_vm3, %v14408_v9 }
 0x399   :  { %v11966_v9 = vpop.f32.mrf.mxu1 }
 0x39a   :  { %5402 = vmatmul.mubr.bf16.vlgmr.msra.gmra.mxu0 %v7900_v62  ;;  %v7915_v62 = vld [vmem:[%s13437_s3 + $0x10] ss:$20 sps:$4 sm:$0xff]  }
 0x39b   :  { %5604 = vmatpush1.bf16.msra.mxu0 %v14411_v60  ;;  %5411 = vmatprep.mubr.bf16.mxu0 %v7901_v1  ;;  %v11972_v60 = vpop.f32.mrf.mxu1 }
 0x39c   :  { %7403 = vmatprep.subr.msk.bf16.mxu0 %vm14185_vm3, %v14412_v41 }
 0x39f   :  { %5606 = vmatpush1.bf16.msra.mxu0 %v14414_v29  ;;  %v11981_v29 = vpop.f32.mrf.mxu1 }
 0x3a0   :  { %7404 = vmatprep.subr.msk.bf16.mxu0 %vm14185_vm3, %v14415_v17 }
 0x3a2   :  { %5412 = vmatmul.mubr.bf16.gmra.mxu0 %v7902_v36  ;;  %v7916_v36 = vld [vmem:[%s13437_s3 + $0x38] ss:$20 sps:$4 sm:$0xff]  }
 0x3a3   :  { %5608 = vmatpush1.bf16.msra.mxu0 %v14417_v52  ;;  %5421 = vmatprep.mubr.bf16.mxu0 %v7903_v56  ;;  %v11993_v56 = vpop.f32.mrf.mxu1 }
 0x3a4   :  { %7405 = vmatprep.subr.msk.bf16.mxu0 %vm14185_vm3, %v14418_v58  ;;  %vm14431_vm3 = vmmov %vm14426_vm1 }
 0x3a7   :  { %5610 = vmatpush1.bf16.msra.mxu0 %v14420_v38 }
 0x3aa   :  { %5422 = vmatmul.mubr.bf16.gmra.mxu0 %v7904_v54  ;;  %v12002_v54 = vpop.f32.mrf.mxu1 }
 0x3ab   :  { %5431 = vmatprep.mubr.bf16.mxu0 %v7905_v49 }
 0x3b2   :  { %5432 = vmatmul.mubr.bf16.gmra.mxu0 %v7906_v59  ;;  %v7917_v59 = vld [vmem:[%s13437_s3 + $0x60] ss:$20 sps:$4 sm:$0xff]  }
 0x3b3   :  { %5441 = vmatprep.mubr.bf16.mxu0 %v7907_v55 }
 0x3ba   :  { %5442 = vmatmul.mubr.bf16.gmra.mxu0 %v7908_v21  ;;  %v12014_v21 = vpop.f32.mrf.mxu1 }
 0x3bb   :  { %5451 = vmatprep.mubr.bf16.mxu0 %v7909_v16 }
 0x3c2   :  { %5452 = vmatmul.mubr.bf16.gmra.mxu0 %v7910_v3 }
 0x3c3   :  { %5461 = vmatprep.mubr.bf16.mxu0 %v7911_v63  ;;  %v12023_v63 = vpop.f32.mrf.mxu1 }
 0x3ca   :  { %5462 = vmatmul.mubr.bf16.gmra.mxu0 %v7912_v53 }
 0x3cb   :  { %5471 = vmatprep.mubr.bf16.mxu0 %v7913_v23  ;;  %v7918_v23 = vld [vmem:[%s13437_s3 + $0x88] ss:$20 sps:$4 sm:$0xff]  }
 0x3d2   :  { %5472 = vmatmul.mubr.bf16.gmra.mxu0 %v7914_v45 }
 0x3d3   :  { %5627 = vmatprep.mubr.bf16.mxu0 %v14210_v15 }
 0x3da   :  { %v3718_v37 = vpop.f32.mrf.mxu0  ;;  %7190 = vmatmul.mubr.msk.bf16.vlgmr.msra.gmra.mxu0 %vm14425_vm4, %v7915_v62 }
 0x3db   :  { %3757 = vst [vmem:[%s13439_s5] sm:$0xff] %v3718_v37  ;;  %5637 = vmatprep.mubr.bf16.mxu0 %v14210_v15  ;;  %v12035_v37 = vpop.f32.mrf.mxu1 }
 0x3dc   :  { %v3720_v1 = vpop.f32.mrf.mxu0 }
 0x3dd   :  { %3758 = vst [vmem:[%s13439_s5 + $0x8] sm:$0xff] %v3720_v1 }
 0x3de   :  { %v3722_v41 = vpop.f32.mrf.mxu0 }
 0x3df   :  { %3759 = vst [vmem:[%s13439_s5 + $0x10] sm:$0xff] %v3722_v41  ;;  %v12044_v41 = vpop.f32.mrf.mxu1 }
 0x3e0   :  { %v3724_v17 = vpop.f32.mrf.mxu0 }
 0x3e1   :  { %3760 = vst [vmem:[%s13439_s5 + $0x18] sm:$0xff] %v3724_v17 }
 0x3e2   :  { %7191 = vmatmul.mubr.msk.bf16.gmra.mxu0 %vm14426_vm1, %v7916_v36  ;;  %v3728_v52 = vpop.f32.mrf.mxu0  ;;  %v7919_v36 = vld [vmem:[%s13437_s3 + $0xb0] ss:$20 sps:$4 sm:$0xff]  }
 0x3e3   :  { %5647 = vmatprep.mubr.bf16.mxu0 %v14210_v15  ;;  %3761 = vst [vmem:[%s13439_s5 + $0x20] sm:$0xff] %v3728_v52  ;;  %v12056_v52 = vpop.f32.mrf.mxu1 }
 0x3e4   :  { %v3730_v58 = vpop.f32.mrf.mxu0 }
 0x3e5   :  { %3762 = vst [vmem:[%s13439_s5 + $0x28] sm:$0xff] %v3730_v58  ;;  %v12059_v58 = vpop.f32.mrf.mxu1 }
 0x3e6   :  { %v3732_v38 = vpop.f32.mrf.mxu0 }
 0x3e7   :  { %3763 = vst [vmem:[%s13439_s5 + $0x30] sm:$0xff] %v3732_v38  ;;  %v7920_v38 = vld [vmem:[%s13437_s3 + $0xd8] ss:$20 sps:$4 sm:$0xff]  }
 0x3e8   :  { %v3734_v49 = vpop.f32.mrf.mxu0 }
 0x3e9   :  { %3764 = vst [vmem:[%s13439_s5 + $0x38] sm:$0xff] %v3734_v49  ;;  %v12065_v49 = vpop.f32.mrf.mxu1 }
 0x3ea   :  { %7192 = vmatmul.mubr.msk.bf16.gmra.mxu0 %vm14427_vm7, %v7917_v59  ;;  %v3738_v55 = vpop.f32.mrf.mxu0 }
 0x3eb   :  { %5657 = vmatprep.mubr.bf16.mxu0 %v14210_v15  ;;  %3765 = vst [vmem:[%s13439_s5 + $0x40] sm:$0xff] %v3738_v55  ;;  %v12068_v59 = vpop.f32.mrf.mxu1  ;;  %v7921_v55 = vld [vmem:[%s13437_s3 + $0x100] ss:$20 sps:$4 sm:$0xff]  }
 0x3ec   :  { %v3740_v16 = vpop.f32.mrf.mxu0 }
 0x3ed   :  { %3766 = vst [vmem:[%s13439_s5 + $0x48] sm:$0xff] %v3740_v16  ;;  %v12074_v16 = vpop.f32.mrf.mxu1 }
 0x3ee   :  { %v3742_v3 = vpop.f32.mrf.mxu0 }
 0x3ef   :  { %3767 = vst [vmem:[%s13439_s5 + $0x50] sm:$0xff] %v3742_v3  ;;  %v12077_v3 = vpop.f32.mrf.mxu1 }
 0x3f0   :  { %v3744_v53 = vpop.f32.mrf.mxu0  ;;  %14432 = vst [vmem:[#allocation134_spill] sm:$0xff] %v12077_v3 }
 0x3f1   :  { %3768 = vst [vmem:[%s13439_s5 + $0x58] sm:$0xff] %v3744_v53  ;;  %v7922_v53 = vld [vmem:[%s13437_s3 + $0x128] ss:$20 sps:$4 sm:$0xff]  }
 0x3f2   :  { %7193 = vmatmul.mubr.msk.bf16.gmra.mxu0 %vm14428_vm12, %v7918_v23  ;;  %v3748_v45 = vpop.f32.mrf.mxu0  ;;  %v12083_v23 = vpop.f32.mrf.mxu1 }
 0x3f3   :  { %5667 = vmatprep.mubr.bf16.mxu0 %v14210_v15  ;;  %3769 = vst [vmem:[%s13439_s5 + $0x60] sm:$0xff] %v3748_v45  ;;  %14434 = vst [vmem:[#allocation152_spill] sm:$0xff] %v12083_v23 }
 0x3f4   :  { %v3750_v62 = vpop.f32.mrf.mxu0  ;;  %v12085_v45 = vpop.f32.mrf.mxu1 }
 0x3f5   :  { %3770 = vst [vmem:[%s13439_s5 + $0x68] sm:$0xff] %v3750_v62  ;;  %14435 = vst [vmem:[#allocation3_spill] sm:$0xff] %v12085_v45 }
 0x3f6   :  { %v3752_v1 = vpop.f32.mrf.mxu0 }
 0x3f7   :  { %3771 = vst [vmem:[%s13439_s5 + $0x70] sm:$0xff] %v3752_v1  ;;  %v12087_v1 = vpop.f32.mrf.mxu1 }
 0x3f8   :  { %v3754_v17 = vpop.f32.mrf.mxu0  ;;  %14436 = vst [vmem:[#allocation128_spill] sm:$0xff] %v12087_v1 }
 0x3f9   :  { %3772 = vst [vmem:[%s13439_s5 + $0x78] sm:$0xff] %v3754_v17  ;;  %v12094_v22 = vpop.f32.mrf.mxu1 }
 0x3fa   :  { %7194 = vmatmul.mubr.msk.bf16.gmra.mxu0 %vm14429_vm6, %v7919_v36  ;;  %14437 = vst [vmem:[#allocation68_spill] sm:$0xff] %v12094_v22 }
 0x3fb   :  { %5677 = vmatprep.mubr.bf16.mxu0 %v14210_v15 }
 0x402   :  { %7195 = vmatmul.mubr.msk.bf16.gmra.mxu0 %vm14430_vm11, %v7920_v38 }
 0x403   :  { %5687 = vmatprep.mubr.bf16.mxu0 %v14210_v15 }
 0x40a   :  { %7196 = vmatmul.mubr.msk.bf16.gmra.mxu0 %vm14431_vm3, %v7921_v55 }
 0x40b   :  { %5697 = vmatprep.mubr.bf16.mxu0 %v14210_v15 }
 0x412   :  { %7197 = vmatmul.mubr.msk.bf16.gmra.mxu0 %vm14433_vm15, %v7922_v53 }
 0x41a   :  { %v5177_v62 = vpop.f32.mrf.mxu0 }
 0x41b   :  { %v5178_v17 = vadd.f32 %v5177_v62, %v11724_v25 }
 0x41c   :  { %v5179_v36 = vpop.f32.mrf.mxu0 }
 0x41d   :  { %v12091_v38 = vadd.f32 %v11933_v40, %v5178_v17  ;;  %v5180_v55 = vadd.f32 %v5179_v36, %v11729_v50  ;;  %v12110_v17 = vpop.f32.mrf.mxu1 }
 0x41e   :  { %v5181_v15 = vpop.f32.mrf.mxu0  ;;  %14440 = vst [vmem:[#allocation73_spill] sm:$0xff] %v12110_v17 }
 0x41f   :  { %v12097_v53 = vadd.f32 %v11938_v57, %v5180_v55  ;;  %v5182_v10 = vadd.f32 %v5181_v15, %v11732_v32  ;;  %v12101_v14 = vmul.f32 0.70710677, %v12091_v38 }
 0x420   :  { %v5183_v51 = vpop.f32.mrf.mxu0 }
 0x421   :  { %14438 = vst [vmem:[#allocation146_spill] sm:$0xff] %v12101_v14  ;;  %v12104_v25 = vmul.f32 0.70710677, %v12097_v53  ;;  %v12107_v40 = vadd.f32 %v11943_v30, %v5182_v10  ;;  %v5184_v50 = vadd.f32 %v5183_v51, %v11737_v44  ;;  %v5740_v57 = vand.u32 2147483647, %v12101_v14  ;;  %v12121_v30 = vpop.f32.mrf.mxu1 }
 0x422   :  { %v5187_v62 = vpop.f32.mrf.mxu0  ;;  %14442 = vst [vmem:[#allocation147_spill] sm:$0xff] %v12121_v30 }
 0x423   :  { %14439 = vst [vmem:[#allocation121_spill] sm:$0xff] %v12104_v25  ;;  %v12114_v15 = vmul.f32 0.70710677, %v12107_v40  ;;  %v12117_v32 = vadd.f32 %v11948_v24, %v5184_v50  ;;  %v5188_v55 = vadd.f32 %v5187_v62, %v11746_v12  ;;  %v5741_v20 = vand.u32 2147483647, %v12104_v25  ;;  %v12131_v12 = vpop.f32.mrf.mxu1 }
 0x424   :  { %v5189_v36 = vpop.f32.mrf.mxu0  ;;  %v6188_v44 = vsub.f32 0.0, %v5740_v57  ;;  %14444 = vst [vmem:[#allocation122_spill] sm:$0xff] %v12131_v12  ;;  %v5772_v62 = vmul.f32 0.3275911, %v5740_v57 }
 0x425   :  { %14441 = vst [vmem:[#allocation166_spill] sm:$0xff] %v12114_v15  ;;  %v5742_v17 = vand.u32 2147483647, %v12114_v15  ;;  %v12125_v14 = vmul.f32 0.70710677, %v12117_v32  ;;  %v12128_v61 = vadd.f32 %v11953_v19, %v5188_v55  ;;  %v5190_v24 = vadd.f32 %v5189_v36, %v11751_v46  ;;  %v12142_v12 = vpop.f32.mrf.mxu1 }
 0x426   :  { %v5191_v10 = vpop.f32.mrf.mxu0  ;;  %v6189_v50 = vsub.f32 0.0, %v5741_v20  ;;  %v6220_v30 = vmul.f32 %v6188_v44, %v5740_v57  ;;  %v5773_v1 = vmul.f32 0.3275911, %v5741_v20  ;;  %14446 = vst [vmem:[#allocation132_spill] sm:$0xff] %v12142_v12  ;;  %v5804_v48 = vadd.f32 1.0, %v5772_v62 }
 0x427   :  { %14443 = vst [vmem:[#allocation140_spill] sm:$0xff] %v12125_v14  ;;  %v12134_v25 = vmul.f32 0.70710677, %v12128_v61  ;;  %v12137_v8 = vadd.f32 %v11958_v39, %v5190_v24  ;;  %v6190_v45 = vsub.f32 0.0, %v5742_v17  ;;  %v5743_v19 = vand.u32 2147483647, %v12125_v14  ;;  %v12155_v12 = vpop.f32.mrf.mxu1 }
 0x428   :  { %v5193_v51 = vpop.f32.mrf.mxu0  ;;  %v5192_v55 = vadd.f32 %v5191_v10, %v11754_v11  ;;  %v6221_v46 = vmul.f32 %v6189_v50, %v5741_v20  ;;  %v6252_v39 = vmul.f32 1.442695, %v6220_v30  ;;  %v5774_v44 = vmul.f32 0.3275911, %v5742_v17  ;;  %14448 = vst [vmem:[#allocation130_spill] sm:$0xff] %v12155_v12 }
 0x429   :  { %14445 = vst [vmem:[#allocation142_spill] sm:$0xff] %v12134_v25  ;;  %v5194_v36 = vadd.f32 %v5193_v51, %v11759_v31  ;;  %v5744_v34 = vand.u32 2147483647, %v12134_v25  ;;  %v12146_v57 = vmul.f32 0.70710677, %v12137_v8  ;;  %v5805_v20 = vadd.f32 1.0, %v5773_v1 }
 0x42a   :  { %v5197_v22 = vpop.f32.mrf.mxu0  ;;  %v12149_v24 = vadd.f32 %v11963_v6, %v5192_v55  ;;  %v6222_v31 = vmul.f32 %v6190_v45, %v5742_v17  ;;  %v6191_v10 = vsub.f32 0.0, %v5743_v19  ;;  %v6254_v50 = vmul.f32 1.442695, %v6221_v46  ;;  %v12171_v46 = vpop.f32.mrf.mxu1 }
 0x42b   :  { %14447 = vst [vmem:[#allocation136_spill] sm:$0xff] %v12146_v57  ;;  %v12152_v14 = vadd.f32 %v11966_v9, %v5194_v36  ;;  %v5198_v51 = vadd.f32 %v5197_v22, %v11768_v47  ;;  %v5775_v62 = vmul.f32 0.3275911, %v5743_v19  ;;  %7707 = vrcp.f32 %v5804_v48  ;;  %14451 = vst [vmem:[#allocation127_spill] sm:$0xff] %v12171_v46 }
 0x42c   :  { %v5199_v15 = vpop.f32.mrf.mxu0  ;;  %v6192_v30 = vsub.f32 0.0, %v5744_v34  ;;  %v5745_v3 = vand.u32 2147483647, %v12146_v57  ;;  %v12159_v6 = vmul.f32 0.70710677, %v12149_v24  ;;  %7709 = vpow2.f32 %v6252_v39 }
 0x42d   :  { %v5806_v9 = vadd.f32 1.0, %v5774_v44  ;;  %v12162_v1 = vmul.f32 0.70710677, %v12152_v14  ;;  %7711 = vrcp.f32 %v5805_v20  ;;  %v6256_v47 = vmul.f32 1.442695, %v6222_v31 }
 0x42e   :  { %v5201_v23 = vpop.f32.mrf.mxu0  ;;  %14449 = vst [vmem:[#allocation150_spill] sm:$0xff] %v12159_v6  ;;  %v6223_v22 = vmul.f32 %v6191_v10, %v5743_v19  ;;  %v12167_v17 = vadd.f32 %v11972_v60, %v5198_v51  ;;  %7713 = vpow2.f32 %v6254_v50  ;;  %v5776_v48 = vmul.f32 0.3275911, %v5744_v34 }
 0x42f   :  { %14450 = vst [vmem:[#allocation120_spill] sm:$0xff] %v12162_v1  ;;  %v5807_v36 = vadd.f32 1.0, %v5775_v62  ;;  %v6224_v39 = vmul.f32 %v6192_v30, %v5744_v34  ;;  %v6193_v44 = vsub.f32 0.0, %v5745_v3  ;;  %v5746_v57 = vand.u32 2147483647, %v12159_v6  ;;  %v12187_v30 = vpop.f32.mrf.mxu1 }
 0x430   :  { %v5203_v11 = vpop.f32.mrf.mxu0  ;;  %7715 = vrcp.f32 %v5806_v9  ;;  %v5747_v12 = vand.u32 2147483647, %v12162_v1  ;;  %v5200_v20 = vadd.f32 %v5199_v15, %v11773_v33  ;;  %v6258_v60 = vmul.f32 1.442695, %v6223_v22  ;;  %14453 = vst [vmem:[#allocation69_spill] sm:$0xff] %v12187_v30 }
 0x431   :  { %7717 = vpow2.f32 %v6256_v47  ;;  %v12179_v31 = vmul.f32 0.70710677, %v12167_v17  ;;  %v5808_v10 = vadd.f32 1.0, %v5776_v48  ;;  %v5777_v51 = vmul.f32 0.3275911, %v5745_v3 }
 0x432   :  { %v5207_v25 = vpop.f32.mrf.mxu0  ;;  %v12182_v50 = vadd.f32 %v11981_v29, %v5200_v20  ;;  %v5202_v34 = vadd.f32 %v5201_v23, %v11776_v2  ;;  %7719 = vrcp.f32 %v5807_v36  ;;  %v6260_v33 = vmul.f32 1.442695, %v6224_v39 }
 0x433   :  { %14452 = vst [vmem:[#allocation113_spill] sm:$0xff] %v12179_v31  ;;  %v6225_v15 = vmul.f32 %v6193_v44, %v5745_v3  ;;  %v6194_v9 = vsub.f32 0.0, %v5746_v57  ;;  %v5778_v47 = vmul.f32 0.3275911, %v5746_v57  ;;  %v5779_v22 = vmul.f32 0.3275911, %v5747_v12  ;;  %v12204_v44 = vpop.f32.mrf.mxu1 }
 0x434   :  { %v12164_v45 = vpop.f32.mrf.mxu0  ;;  %v12190_v1 = vmul.f32 0.70710677, %v12182_v50  ;;  %v12193_v48 = vadd.f32 %v11993_v56, %v5202_v34  ;;  %7721 = vpow2.f32 %v6258_v60  ;;  %v6195_v2 = vsub.f32 0.0, %v5747_v12  ;;  %14456 = vst [vmem:[#allocation101_spill] sm:$0xff] %v12204_v44 }
 0x435   :  { %v5748_v23 = vand.u32 2147483647, %v12179_v31  ;;  %v5204_v20 = vadd.f32 %v5203_v11, %v11781_v35  ;;  %7723 = vrcp.f32 %v5808_v10  ;;  %v5809_v36 = vadd.f32 1.0, %v5777_v51 }
 0x436   :  { %v12169_v55 = vpop.f32.mrf.mxu0  ;;  %14454 = vst [vmem:[#allocation137_spill] sm:$0xff] %v12190_v1  ;;  %v12200_v3 = vmul.f32 0.70710677, %v12193_v48  ;;  %v6262_v6 = vmul.f32 1.442695, %v6225_v15  ;;  %v6226_v56 = vmul.f32 %v6194_v9, %v5746_v57  ;;  %v5208_v60 = vadd.f32 %v5207_v25, %v11790_v26 }
 0x437   :  { %v12207_v34 = vadd.f32 %v12002_v54, %v5204_v20  ;;  %7725 = vpow2.f32 %v6260_v33  ;;  %v5810_v35 = vadd.f32 1.0, %v5778_v47  ;;  %v5811_v11 = vadd.f32 1.0, %v5779_v22  ;;  %v12228_v33 = vpop.f32.mrf.mxu1 }
 0x438   :  { %v12176_v19 = vpop.f32.mrf.mxu0  ;;  %14455 = vst [vmem:[#allocation58_spill] sm:$0xff] %v12200_v3  ;;  %v12210_v30 = vpop.eup %7707  ;;  %v5749_v10 = vand.u32 2147483647, %v12190_v1  ;;  %v6227_v46 = vmul.f32 %v6195_v2, %v5747_v12  ;;  %v6196_v44 = vsub.f32 0.0, %v5748_v23  ;;  %v5750_v57 = vand.u32 2147483647, %v12200_v3 }
 0x439   :  { %v12215_v31 = vpop.eup %7709  ;;  %v12219_v54 = vmul.f32 0.70710677, %v12207_v34  ;;  %7727 = vrcp.f32 %v5809_v36  ;;  %v12224_v26 = vadd.f32 %v12014_v21, %v5208_v60  ;;  %v6264_v12 = vmul.f32 1.442695, %v6226_v56 }
 0x43a   :  { %v12185_v62 = vpop.f32.mrf.mxu0  ;;  %14457 = vst [vmem:[#allocation115_spill] sm:$0xff] %v12215_v31  ;;  %v12221_v15 = vpop.eup %7711  ;;  %7729 = vpow2.f32 %v6262_v6  ;;  %v5780_v47 = vmul.f32 0.3275911, %v5748_v23  ;;  %v6197_v22 = vsub.f32 0.0, %v5749_v10  ;;  %v6266_v21 = vmul.f32 1.442695, %v6227_v46 }
 0x43b   :  { %14458 = vst [vmem:[#allocation22_spill] sm:$0xff] %v12219_v54  ;;  %14459 = vst [vmem:[#allocation8_spill] sm:$0xff] %v12221_v15  ;;  %v12230_v9 = vpop.eup %7713  ;;  %7731 = vrcp.f32 %v5810_v35  ;;  %v5751_v2 = vand.u32 2147483647, %v12219_v54  ;;  %v6228_v36 = vmul.f32 %v6196_v44, %v5748_v23  ;;  %v6198_v60 = vsub.f32 0.0, %v5750_v57  ;;  %v12248_v54 = vpop.f32.mrf.mxu1 }
 0x43c   :  { %v12195_v29 = vpop.f32.mrf.mxu0  ;;  %14460 = vst [vmem:[#allocation161_spill] sm:$0xff] %v12230_v9  ;;  %7733 = vrcp.f32 %v5811_v11  ;;  %v5781_v31 = vmul.f32 0.3275911, %v5749_v10  ;;  %v12240_v9 = vmul.f32 0.70710677, %v12224_v26  ;;  %v5210_v6 = vadd.f32 %v12164_v45, %v11795_v5 }
 0x43d   :  { %v12235_v3 = vpop.eup %7715  ;;  %v5212_v56 = vadd.f32 %v12169_v55, %v11798_v18  ;;  %v12251_v46 = vmul.f32 0.5, %v12091_v38  ;;  %7735 = vpow2.f32 %v6264_v12  ;;  %v5812_v23 = vadd.f32 1.0, %v5780_v47 }
 0x43e   :  { %v12202_v39 = vpop.f32.mrf.mxu0  ;;  %14461 = vst [vmem:[#allocation129_spill] sm:$0xff] %v12235_v3  ;;  %v12237_v1 = vpop.eup %7717  ;;  %14463 = vst [vmem:[#allocation111_spill] sm:$0xff] %v12240_v9  ;;  %v6229_v11 = vmul.f32 %v6197_v22, %v5749_v10  ;;  %v12256_v3 = vadd.f32 %v12023_v63, %v5210_v6  ;;  %v6268_v45 = vmul.f32 1.442695, %v6228_v36  ;;  %v5782_v55 = vmul.f32 0.3275911, %v5750_v57 }
 0x43f   :  { %14462 = vst [vmem:[#allocation108_spill] sm:$0xff] %v12237_v1  ;;  %14464 = vst [vmem:[#allocation100_spill] sm:$0xff] %v12251_v46  ;;  %v12253_v44 = vpop.eup %7719  ;;  %v6199_v1 = vsub.f32 0.0, %v5751_v2  ;;  %v12259_v5 = vadd.f32 %v12035_v37, %v5212_v56  ;;  %v6230_v15 = vmul.f32 %v6198_v60, %v5750_v57  ;;  %v5214_v38 = vadd.f32 %v12176_v19, %v11803_v4  ;;  %v12273_v37 = vpop.f32.mrf.mxu1 }
 0x440   :  { %v12213_v51 = vpop.f32.mrf.mxu0  ;;  %7737 = vpow2.f32 %v6266_v21  ;;  %v5813_v47 = vadd.f32 1.0, %v5781_v31  ;;  %v5752_v10 = vand.u32 2147483647, %v12240_v9  ;;  %v12269_v63 = vmul.f32 0.70710677, %v12256_v3 }
 0x441   :  { %v12265_v12 = vpop.eup %7721  ;;  %v5783_v36 = vmul.f32 0.3275911, %v5751_v2  ;;  %v12278_v57 = vmul.f32 0.70710677, %v12259_v5  ;;  %v12281_v4 = vadd.f32 %v12044_v41, %v5214_v38  ;;  %v5218_v19 = vadd.f32 %v12185_v62, %v11812_v43 }
 0x442   :  { %v12226_v25 = vpop.f32.mrf.mxu0  ;;  %14465 = vst [vmem:[#allocation9_spill] sm:$0xff] %v12265_v12  ;;  %14466 = vst [vmem:[#allocation98_spill] sm:$0xff] %v12269_v63  ;;  %v12275_v6 = vpop.eup %7723  ;;  %v12286_v31 = vmul.f32 0.5, %v12097_v53  ;;  %7739 = vrcp.f32 %v5812_v23  ;;  %v6270_v21 = vmul.f32 1.442695, %v6229_v11  ;;  %v6231_v60 = vmul.f32 %v6199_v1, %v5751_v2 }
 0x443   :  { %14467 = vst [vmem:[#allocation33_spill] sm:$0xff] %v12275_v6  ;;  %14468 = vst [vmem:[#allocation125_spill] sm:$0xff] %v12278_v57  ;;  %7741 = vpow2.f32 %v6268_v45  ;;  %v5814_v46 = vadd.f32 1.0, %v5782_v55  ;;  %v6272_v12 = vmul.f32 1.442695, %v6230_v15  ;;  %v6200_v38 = vsub.f32 0.0, %v5752_v10  ;;  %v12301_v1 = vpop.f32.mrf.mxu1 }
 0x444   :  { %v12233_v20 = vpop.f32.mrf.mxu0  ;;  %14469 = vst [vmem:[#allocation59_spill] sm:$0xff] %v12286_v31  ;;  %v12290_v9 = vpop.eup %7725  ;;  %v12293_v6 = vmul.f32 0.70710677, %v12281_v4  ;;  %v5784_v41 = vmul.f32 0.3275911, %v5752_v10  ;;  %v12297_v53 = vadd.f32 %v12056_v52, %v5218_v19  ;;  %v12306_v23 = vmul.f32 0.5, %v12107_v40 }
 0x445   :  { %14470 = vst [vmem:[#allocation93_spill] sm:$0xff] %v12290_v9  ;;  %v5753_v43 = vand.u32 2147483647, %v12269_v63  ;;  %7743 = vrcp.f32 %v5813_v47  ;;  %v5815_v15 = vadd.f32 1.0, %v5783_v36  ;;  %v5754_v11 = vand.u32 2147483647, %v12278_v57 }
 0x446   :  { %v12246_v35 = vpop.f32.mrf.mxu0  ;;  %14471 = vst [vmem:[#allocation94_spill] sm:$0xff] %v12293_v6  ;;  %v12303_v2 = vpop.eup %7727  ;;  %14473 = vst [vmem:[#allocation159_spill] sm:$0xff] %v12306_v23  ;;  %v12312_v55 = vmul.f32 0.5, %v12117_v32  ;;  %7745 = vpow2.f32 %v6270_v21  ;;  %v6274_v52 = vmul.f32 1.442695, %v6231_v60  ;;  %v12322_v40 = vmul.f32 0.5, %v12128_v61 }
 0x447   :  { %14472 = vst [vmem:[#allocation160_spill] sm:$0xff] %v12303_v2  ;;  %v12309_v45 = vpop.eup %7729  ;;  %v12315_v19 = vmul.f32 0.70710677, %v12297_v53  ;;  %v12325_v47 = vmul.f32 0.5, %v12137_v8  ;;  %7747 = vrcp.f32 %v5814_v46  ;;  %v5755_v36 = vand.u32 2147483647, %v12293_v6  ;;  %v12332_v23 = vpop.f32.mrf.mxu1 }
 0x448   :  { %v12261_v18 = vpop.f32.mrf.mxu0  ;;  %14474 = vst [vmem:[#allocation90_spill] sm:$0xff] %v12309_v45  ;;  %14475 = vst [vmem:[#allocation60_spill] sm:$0xff] %v12312_v55  ;;  %v12319_v31 = vpop.eup %7731  ;;  %7749 = vpow2.f32 %v6272_v12  ;;  %v5816_v21 = vadd.f32 1.0, %v5784_v41  ;;  %v6232_v60 = vmul.f32 %v6200_v38, %v5752_v10  ;;  %v6201_v57 = vsub.f32 0.0, %v5753_v43  ;;  %v14537_v9 = vld [vmem:[#allocation122_spill] sm:$0xff] }
 0x449   :  { %14476 = vst [vmem:[#allocation106_spill] sm:$0xff] %v12315_v19  ;;  %14477 = vst [vmem:[#allocation96_spill] sm:$0xff] %v12319_v31  ;;  %v12328_v32 = vpop.eup %7733  ;;  %v12335_v45 = vmul.f32 0.5, %v12149_v24  ;;  %v12338_v61 = vmul.f32 0.5, %v12152_v14  ;;  %7751 = vrcp.f32 %v5815_v15  ;;  %v6202_v8 = vsub.f32 0.0, %v5754_v11 }
 0x44a   :  { %v12271_v22 = vpop.f32.mrf.mxu0  ;;  %14478 = vst [vmem:[#allocation48_spill] sm:$0xff] %v12322_v40  ;;  %14479 = vst [vmem:[#allocation141_spill] sm:$0xff] %v12325_v47  ;;  %v12340_v46 = vpop.eup %7735  ;;  %7753 = vpow2.f32 %v6274_v52  ;;  %v5785_v6 = vmul.f32 0.3275911, %v5753_v43  ;;  %v5756_v12 = vand.u32 2147483647, %v12315_v19  ;;  %v5220_v10 = vadd.f32 %v12195_v29, %v11817_v0 }
 0x44b   :  { %14480 = vst [vmem:[#allocation151_spill] sm:$0xff] %v12328_v32  ;;  %14481 = vst [vmem:[#allocation144_spill] sm:$0xff] %v12335_v45  ;;  %v5786_v38 = vmul.f32 0.3275911, %v5754_v11  ;;  %v6203_v32 = vsub.f32 0.0, %v5755_v36  ;;  %v5222_v24 = vadd.f32 %v12202_v39, %v11826_v28  ;;  %v5224_v14 = vadd.f32 %v12213_v51, %v11835_v42  ;;  %v12356_v45 = vpop.f32.mrf.mxu1 }
 0x44c   :  { %v12288_v56 = vpop.f32.mrf.mxu0  ;;  %14482 = vst [vmem:[#allocation55_spill] sm:$0xff] %v12338_v61  ;;  %14483 = vst [vmem:[#allocation85_spill] sm:$0xff] %v12340_v46  ;;  %7755 = vrcp.f32 %v5816_v21  ;;  %v6276_v15 = vmul.f32 1.442695, %v6232_v60  ;;  %v6233_v61 = vmul.f32 %v6201_v57, %v5753_v43  ;;  %v12352_v52 = vadd.f32 %v12059_v58, %v5220_v10 }
 0x44d   :  { %v12358_v0 = vpop.eup %7737  ;;  %v6234_v29 = vmul.f32 %v6202_v8, %v5754_v11  ;;  %v12361_v47 = vadd.f32 %v12065_v49, %v5222_v24  ;;  %v12364_v28 = vadd.f32 %v12068_v59, %v5224_v14  ;;  %v5228_v42 = vadd.f32 %v12226_v25, %v11844_v7  ;;  %v12389_v14 = vpop.f32.mrf.mxu1 }
 0x44e   :  { %v12299_v62 = vpop.f32.mrf.mxu0  ;;  %14484 = vst [vmem:[#allocation165_spill] sm:$0xff] %v12358_v0  ;;  %v5817_v39 = vadd.f32 1.0, %v5785_v6  ;;  %v5787_v51 = vmul.f32 0.3275911, %v5755_v36  ;;  %v6204_v58 = vsub.f32 0.0, %v5756_v12  ;;  %v5818_v11 = vadd.f32 1.0, %v5786_v38 }
 0x44f   :  { %v12369_v57 = vmul.f32 0.70710677, %v12352_v52  ;;  %v12373_v21 = vpop.eup %7739  ;;  %v6235_v60 = vmul.f32 %v6203_v32, %v5755_v36  ;;  %v12376_v49 = vmul.f32 0.70710677, %v12361_v47  ;;  %v12379_v59 = vmul.f32 0.70710677, %v12364_v28 }
 0x450   :  { %v12317_v63 = vpop.f32.mrf.mxu0  ;;  %14486 = vst [vmem:[#allocation107_spill] sm:$0xff] %v12373_v21  ;;  %v12381_v8 = vpop.eup %7741  ;;  %v6278_v7 = vmul.f32 1.442695, %v6233_v61  ;;  %v5788_v25 = vmul.f32 0.3275911, %v5756_v12  ;;  %v12385_v10 = vadd.f32 %v12074_v16, %v5228_v42  ;;  %v12392_v36 = vmul.f32 0.5, %v12167_v17 }
 0x451   :  { %14485 = vst [vmem:[#allocation133_spill] sm:$0xff] %v12369_v57  ;;  %14487 = vst [vmem:[#allocation83_spill] sm:$0xff] %v12376_v49  ;;  %v5757_v6 = vand.u32 2147483647, %v12369_v57  ;;  %7757 = vpow2.f32 %v6276_v15  ;;  %v6280_v32 = vmul.f32 1.442695, %v6234_v29 }
 0x452   :  { %v12330_v55 = vpop.f32.mrf.mxu0  ;;  %14488 = vst [vmem:[#allocation163_spill] sm:$0xff] %v12379_v59  ;;  %14489 = vst [vmem:[#allocation139_spill] sm:$0xff] %v12381_v8  ;;  %v5758_v38 = vand.u32 2147483647, %v12376_v49  ;;  %v12395_v0 = vpop.eup %7743  ;;  %7759 = vrcp.f32 %v5817_v39  ;;  %v5819_v61 = vadd.f32 1.0, %v5787_v51  ;;  %v6236_v8 = vmul.f32 %v6204_v58, %v5756_v12 }
 0x453   :  { %14490 = vst [vmem:[#allocation49_spill] sm:$0xff] %v12392_v36  ;;  %14491 = vst [vmem:[#allocation91_spill] sm:$0xff] %v12395_v0  ;;  %v12398_v57 = vmul.f32 0.70710677, %v12385_v10  ;;  %v12402_v42 = vpop.eup %7745  ;;  %v12405_v21 = vmul.f32 0.5, %v12182_v50  ;;  %7761 = vrcp.f32 %v5818_v11  ;;  %v5820_v39 = vadd.f32 1.0, %v5788_v25  ;;  %v12412_v49 = vpop.f32.mrf.mxu1 }
 0x454   :  { %v12345_v41 = vpop.f32.mrf.mxu0  ;;  %14493 = vst [vmem:[#allocation80_spill] sm:$0xff] %v12402_v42  ;;  %v6282_v17 = vmul.f32 1.442695, %v6235_v60  ;;  %v5759_v15 = vand.u32 2147483647, %v12379_v59  ;;  %v12408_v29 = vpop.eup %7747  ;;  %7763 = vpow2.f32 %v6278_v7  ;;  %v6205_v51 = vsub.f32 0.0, %v5757_v6 }
 0x455   :  { %14492 = vst [vmem:[#allocation123_spill] sm:$0xff] %v12398_v57  ;;  %14494 = vst [vmem:[#allocation66_spill] sm:$0xff] %v12405_v21  ;;  %v6206_v12 = vsub.f32 0.0, %v5758_v38  ;;  %v12414_v36 = vpop.eup %7749  ;;  %v12417_v42 = vmul.f32 0.5, %v12193_v48  ;;  %v12420_v50 = vmul.f32 0.5, %v12207_v34  ;;  %7765 = vpow2.f32 %v6280_v32 }
 0x456   :  { %v12354_v19 = vpop.f32.mrf.mxu0  ;;  %14495 = vst [vmem:[#allocation164_spill] sm:$0xff] %v12408_v29  ;;  %14496 = vst [vmem:[#allocation143_spill] sm:$0xff] %v12414_v36  ;;  %v5760_v11 = vand.u32 2147483647, %v12398_v57  ;;  %v12423_v60 = vpop.eup %7751  ;;  %v12426_v7 = vmul.f32 0.5, %v12224_v26  ;;  %7767 = vrcp.f32 %v5819_v61  ;;  %v5230_v34 = vadd.f32 %v12233_v20, %v11853_v27  ;;  %v14505_v27 = vld [vmem:[#allocation11_spill] sm:$0xff] }
 0x457   :  { %14497 = vst [vmem:[#allocation89_spill] sm:$0xff] %v12417_v42  ;;  %14498 = vst [vmem:[#allocation124_spill] sm:$0xff] %v12420_v50  ;;  %v6284_v25 = vmul.f32 1.442695, %v6236_v8  ;;  %v5789_v59 = vmul.f32 0.3275911, %v5757_v6  ;;  %v12430_v36 = vpop.eup %7753  ;;  %7769 = vpow2.f32 %v6282_v17  ;;  %v6237_v32 = vmul.f32 %v6205_v51, %v5757_v6  ;;  %v12438_v8 = vpop.f32.mrf.mxu1 }
 0x458   :  { %v12371_v43 = vpop.f32.mrf.mxu0  ;;  %14499 = vst [vmem:[#allocation109_spill] sm:$0xff] %v12423_v60  ;;  %14500 = vst [vmem:[#allocation76_spill] sm:$0xff] %v12426_v7  ;;  %v5790_v48 = vmul.f32 0.3275911, %v5758_v38  ;;  %v6207_v42 = vsub.f32 0.0, %v5759_v15  ;;  %7771 = vrcp.f32 %v5820_v39  ;;  %v6238_v57 = vmul.f32 %v6206_v12, %v5758_v38  ;;  %v14504_v60 = vld [vmem:[#allocation103_spill] sm:$0xff] }
 0x459   :  { %14501 = vst [vmem:[#allocation131_spill] sm:$0xff] %v12430_v36  ;;  %v5232_v26 = vadd.f32 %v12246_v35, %v11862_v13  ;;  %v12440_v61 = vpop.eup %7755  ;;  %v6208_v50 = vsub.f32 0.0, %v5760_v11  ;;  %v14503_v36 = vld [vmem:[#allocation134_spill] sm:$0xff]  ;;  %v5234_v29 = vadd.f32 %v12261_v18, %v14504_v60  ;;  %v5238_v20 = vadd.f32 %v12271_v22, %v14505_v27  ;;  %v14506_v13 = vld [vmem:[#allocation152_spill] sm:$0xff]  ;;  %v12468_v27 = vpop.f32.mrf.mxu1 }
 0x45a   :  { %v12387_v24 = vpop.f32.mrf.mxu0  ;;  %14502 = vst [vmem:[#allocation162_spill] sm:$0xff] %v12440_v61  ;;  %v12443_v17 = vadd.f32 %v14503_v36, %v5230_v34  ;;  %7773 = vpow2.f32 %v6284_v25  ;;  %v5821_v6 = vadd.f32 1.0, %v5789_v59  ;;  %v5791_v38 = vmul.f32 0.3275911, %v5759_v15  ;;  %v14508_v36 = vld [vmem:[#allocation3_spill] sm:$0xff]  ;;  %v14510_v59 = vld [vmem:[#allocation128_spill] sm:$0xff] }
 0x45b   :  { %v12450_v35 = vadd.f32 %v14506_v13, %v5232_v26  ;;  %v5822_v51 = vadd.f32 1.0, %v5790_v48  ;;  %v6239_v12 = vmul.f32 %v6207_v42, %v5759_v15  ;;  %v12458_v34 = vadd.f32 %v14508_v36, %v5234_v29 }
 0x45c   :  { %v12400_v16 = vpop.f32.mrf.mxu0  ;;  %v12455_v61 = vmul.f32 0.70710677, %v12443_v17  ;;  %v6286_v18 = vmul.f32 1.442695, %v6237_v32  ;;  %v5792_v60 = vmul.f32 0.3275911, %v5760_v11  ;;  %v12464_v25 = vadd.f32 %v14510_v59, %v5238_v20 }
 0x45d   :  { %v12461_v22 = vmul.f32 0.70710677, %v12450_v35  ;;  %v6288_v48 = vmul.f32 1.442695, %v6238_v57  ;;  %v6240_v42 = vmul.f32 %v6208_v50, %v5760_v11  ;;  %v12472_v13 = vmul.f32 0.70710677, %v12458_v34 }
 0x45e   :  { %v12410_v58 = vpop.f32.mrf.mxu0  ;;  %14507 = vst [vmem:[#allocation52_spill] sm:$0xff] %v12455_v61  ;;  %v5761_v15 = vand.u32 2147483647, %v12455_v61  ;;  %v12474_v29 = vpop.eup %7757  ;;  %v12477_v32 = vmul.f32 0.5, %v12256_v3  ;;  %7775 = vrcp.f32 %v5821_v6  ;;  %v5823_v36 = vadd.f32 1.0, %v5791_v38 }
 0x45f   :  { %14509 = vst [vmem:[#allocation16_spill] sm:$0xff] %v12461_v22  ;;  %14511 = vst [vmem:[#allocation88_spill] sm:$0xff] %v12472_v13  ;;  %v5762_v20 = vand.u32 2147483647, %v12461_v22  ;;  %v12482_v0 = vpop.eup %7759  ;;  %v12485_v57 = vmul.f32 0.5, %v12259_v5  ;;  %7777 = vrcp.f32 %v5822_v51  ;;  %v5824_v3 = vadd.f32 1.0, %v5792_v60 }
 0x460   :  { %v12428_v21 = vpop.f32.mrf.mxu0  ;;  %14512 = vst [vmem:[#allocation99_spill] sm:$0xff] %v12474_v29  ;;  %14513 = vst [vmem:[#allocation74_spill] sm:$0xff] %v12477_v32  ;;  %v6290_v50 = vmul.f32 1.442695, %v6239_v12  ;;  %v12488_v11 = vmul.f32 0.70710677, %v12464_v25  ;;  %v12490_v61 = vpop.eup %7761  ;;  %7779 = vpow2.f32 %v6286_v18 }
 0x461   :  { %14514 = vst [vmem:[#allocation17_spill] sm:$0xff] %v12482_v0  ;;  %14515 = vst [vmem:[#allocation67_spill] sm:$0xff] %v12485_v57  ;;  %v6209_v6 = vsub.f32 0.0, %v5761_v15  ;;  %v5763_v38 = vand.u32 2147483647, %v12472_v13  ;;  %v12495_v32 = vpop.f32.mrf.mxu1  ;;  %v12497_v29 = vpop.eup %7763  ;;  %7781 = vpow2.f32 %v6288_v48  ;;  %v6210_v51 = vsub.f32 0.0, %v5762_v20 }
 0x462   :  { %v12436_v7 = vpop.f32.mrf.mxu0  ;;  %14516 = vst [vmem:[#allocation158_spill] sm:$0xff] %v12488_v11  ;;  %14517 = vst [vmem:[#allocation64_spill] sm:$0xff] %v12490_v61  ;;  %v6292_v5 = vmul.f32 1.442695, %v6240_v42  ;;  %v14519_v12 = vld [vmem:[#allocation104_spill] sm:$0xff]  ;;  %v12501_v0 = vpop.eup %7765  ;;  %v12504_v18 = vmul.f32 0.5, %v12281_v4  ;;  %7783 = vrcp.f32 %v5823_v36 }
 0x463   :  { %14518 = vst [vmem:[#allocation95_spill] sm:$0xff] %v12497_v29  ;;  %v5240_v57 = vadd.f32 %v12288_v56, %v14519_v12  ;;  %14520 = vst [vmem:[#allocation110_spill] sm:$0xff] %v12501_v0  ;;  %v12507_v60 = vmul.f32 0.5, %v12297_v53  ;;  %v5793_v13 = vmul.f32 0.3275911, %v5761_v15  ;;  %v12511_v40 = vpop.eup %7767  ;;  %v12514_v48 = vmul.f32 0.5, %v12352_v52 }
 0x464   :  { %v12452_v39 = vpop.f32.mrf.mxu0  ;;  %14521 = vst [vmem:[#allocation62_spill] sm:$0xff] %v12504_v18  ;;  %14523 = vst [vmem:[#allocation63_spill] sm:$0xff] %v12511_v40  ;;  %7785 = vpow2.f32 %v6290_v50  ;;  %v5794_v42 = vmul.f32 0.3275911, %v5762_v20  ;;  %v5764_v56 = vand.u32 2147483647, %v12488_v11  ;;  %v12517_v12 = vpop.eup %7769  ;;  %v6241_v53 = vmul.f32 %v6209_v6, %v5761_v15 }
 0x465   :  { %14522 = vst [vmem:[#allocation118_spill] sm:$0xff] %v12507_v60  ;;  %14524 = vst [vmem:[#allocation75_spill] sm:$0xff] %v12514_v48  ;;  %v12520_v4 = vmul.f32 0.5, %v12361_v47  ;;  %7787 = vrcp.f32 %v5824_v3  ;;  %v6211_v36 = vsub.f32 0.0, %v5763_v38  ;;  %v12524_v18 = vpop.f32.mrf.mxu1  ;;  %v12526_v0 = vpop.eup %7771  ;;  %v12529_v52 = vmul.f32 0.5, %v12364_v28  ;;  %v14529_v11 = vld [vmem:[#allocation68_spill] sm:$0xff] }
 0x466   :  { %v12466_v26 = vpop.f32.mrf.mxu0  ;;  %14525 = vst [vmem:[#allocation82_spill] sm:$0xff] %v12517_v12  ;;  %14527 = vst [vmem:[#allocation70_spill] sm:$0xff] %v12526_v0  ;;  %7789 = vpow2.f32 %v6292_v5  ;;  %v6242_v50 = vmul.f32 %v6210_v51, %v5762_v20  ;;  %v12532_v48 = vadd.f32 %v14529_v11, %v5240_v57  ;;  %v5825_v12 = vadd.f32 1.0, %v5793_v13  ;;  %v14531_v3 = vld [vmem:[#allocation116_spill] sm:$0xff]  ;;  %v14534_v20 = vld [vmem:[#allocation117_spill] sm:$0xff] }
 0x467   :  { %14526 = vst [vmem:[#allocation71_spill] sm:$0xff] %v12520_v4  ;;  %14528 = vst [vmem:[#allocation92_spill] sm:$0xff] %v12529_v52  ;;  %v5795_v47 = vmul.f32 0.3275911, %v5763_v38  ;;  %v14530_v4 = vld [vmem:[#allocation105_spill] sm:$0xff]  ;;  %v5244_v6 = vadd.f32 %v12317_v63, %v14531_v3  ;;  %v12540_v29 = vpop.eup %7773  ;;  %v5826_v0 = vadd.f32 1.0, %v5794_v42  ;;  %v5248_v57 = vadd.f32 %v12330_v55, %v14534_v20  ;;  %v12555_v3 = vpop.f32.mrf.mxu1 }
 0x468   :  { %v12480_v59 = vpop.f32.mrf.mxu0  ;;  %v5242_v15 = vadd.f32 %v12299_v62, %v14530_v4  ;;  %14532 = vst [vmem:[#allocation87_spill] sm:$0xff] %v12540_v29  ;;  %v6212_v28 = vsub.f32 0.0, %v5764_v56  ;;  %v12543_v5 = vmul.f32 0.70710677, %v12532_v48  ;;  %v6294_v13 = vmul.f32 1.442695, %v6241_v53 }
 0x469   :  { %v6243_v11 = vmul.f32 %v6211_v36, %v5763_v38  ;;  %v14535_v51 = vld [vmem:[#allocation73_spill] sm:$0xff]  ;;  %v14536_v62 = vld [vmem:[#allocation147_spill] sm:$0xff]  ;;  %v6296_v42 = vmul.f32 1.442695, %v6242_v50  ;;  %v5796_v29 = vmul.f32 0.3275911, %v5764_v56  ;;  %v12559_v31 = vadd.f32 %v14537_v9, %v5248_v57 }
 0x46a   :  { %v12493_v22 = vpop.f32.mrf.mxu0  ;;  %14533 = vst [vmem:[#allocation157_spill] sm:$0xff] %v12543_v5  ;;  %v12548_v52 = vadd.f32 %v14535_v51, %v5242_v15  ;;  %v12551_v4 = vadd.f32 %v14536_v62, %v5244_v6  ;;  %v5765_v46 = vand.u32 2147483647, %v12543_v5  ;;  %7791 = vrcp.f32 %v5825_v12  ;;  %v12580_v62 = vpop.f32.mrf.mxu1 }
 0x46b   :  { %v5827_v55 = vadd.f32 1.0, %v5795_v47  ;;  %v12569_v15 = vpop.eup %7775  ;;  %7793 = vrcp.f32 %v5826_v0  ;;  %v6244_v50 = vmul.f32 %v6212_v28, %v5764_v56  ;;  %v12572_v20 = vmul.f32 0.70710677, %v12559_v31 }
 0x46c   :  { %v12509_v61 = vpop.f32.mrf.mxu0  ;;  %v12562_v38 = vmul.f32 0.70710677, %v12548_v52  ;;  %v12565_v53 = vmul.f32 0.70710677, %v12551_v4  ;;  %14540 = vst [vmem:[#allocation56_spill] sm:$0xff] %v12569_v15  ;;  %v6213_v6 = vsub.f32 0.0, %v5765_v46  ;;  %v12574_v9 = vpop.eup %7777  ;;  %7795 = vpow2.f32 %v6294_v13 }
 0x46d   :  { %14541 = vst [vmem:[#allocation57_spill] sm:$0xff] %v12572_v20  ;;  %14542 = vst [vmem:[#allocation84_spill] sm:$0xff] %v12574_v9  ;;  %v6298_v12 = vmul.f32 1.442695, %v6243_v11  ;;  %v12582_v5 = vpop.eup %7779  ;;  %v12585_v0 = vmul.f32 0.5, %v12385_v10  ;;  %v12588_v56 = vmul.f32 0.5, %v12443_v17  ;;  %7797 = vpow2.f32 %v6296_v42 }
 0x46e   :  { %v12522_v60 = vpop.f32.mrf.mxu0  ;;  %14538 = vst [vmem:[#allocation86_spill] sm:$0xff] %v12562_v38  ;;  %14539 = vst [vmem:[#allocation135_spill] sm:$0xff] %v12565_v53  ;;  %v5766_v47 = vand.u32 2147483647, %v12562_v38  ;;  %v5767_v57 = vand.u32 2147483647, %v12565_v53  ;;  %v12590_v13 = vpop.eup %7781  ;;  %7799 = vrcp.f32 %v5827_v55  ;;  %v6245_v42 = vmul.f32 %v6213_v6, %v5765_v46 }
 0x46f   :  { %14543 = vst [vmem:[#allocation154_spill] sm:$0xff] %v12582_v5  ;;  %14544 = vst [vmem:[#allocation81_spill] sm:$0xff] %v12585_v0  ;;  %v5828_v28 = vadd.f32 1.0, %v5796_v29  ;;  %v5797_v11 = vmul.f32 0.3275911, %v5765_v46  ;;  %v14547_v9 = vld [vmem:[#allocation119_spill] sm:$0xff]  ;;  %v12597_v5 = vpop.eup %7783  ;;  %7801 = vpow2.f32 %v6298_v12 }
 0x470   :  { %v12538_v40 = vpop.f32.mrf.mxu0  ;;  %14545 = vst [vmem:[#allocation79_spill] sm:$0xff] %v12588_v56  ;;  %14546 = vst [vmem:[#allocation155_spill] sm:$0xff] %v12590_v13  ;;  %v6214_v38 = vsub.f32 0.0, %v5766_v47  ;;  %v5768_v53 = vand.u32 2147483647, %v12572_v20  ;;  %v5250_v15 = vadd.f32 %v12345_v41, %v14547_v9  ;;  %v12600_v10 = vmul.f32 0.5, %v12450_v35  ;;  %v12609_v41 = vpop.f32.mrf.mxu1 }
 0x471   :  { %14548 = vst [vmem:[#allocation72_spill] sm:$0xff] %v12597_v5  ;;  %v6300_v17 = vmul.f32 1.442695, %v6244_v50  ;;  %v12602_v29 = vpop.eup %7785  ;;  %v12605_v56 = vmul.f32 0.5, %v12458_v34  ;;  %v5798_v20 = vmul.f32 0.3275911, %v5766_v47  ;;  %7803 = vrcp.f32 %v5828_v28 }
 0x472   :  { %v12553_v63 = vpop.f32.mrf.mxu0  ;;  %14549 = vst [vmem:[#allocation156_spill] sm:$0xff] %v12600_v10  ;;  %14550 = vst [vmem:[#allocation138_spill] sm:$0xff] %v12602_v29  ;;  %v6215_v0 = vsub.f32 0.0, %v5767_v57  ;;  %v12611_v9 = vpop.eup %7787  ;;  %v12614_v35 = vmul.f32 0.5, %v12464_v25  ;;  %v12617_v46 = vmul.f32 0.5, %v12532_v48  ;;  %v5829_v34 = vadd.f32 1.0, %v5797_v11 }
 0x473   :  { %14551 = vst [vmem:[#allocation65_spill] sm:$0xff] %v12605_v56  ;;  %14552 = vst [vmem:[#allocation31_spill] sm:$0xff] %v12611_v9  ;;  %v5799_v55 = vmul.f32 0.3275911, %v5767_v57  ;;  %v12619_v50 = vpop.eup %7789  ;;  %v6246_v6 = vmul.f32 %v6214_v38, %v5766_v47  ;;  %v6216_v12 = vsub.f32 0.0, %v5768_v53  ;;  %v14556_v56 = vld [vmem:[#allocation132_spill] sm:$0xff]  ;;  %7805 = vpow2.f32 %v6300_v17 }
 0x474   :  { %v12567_v36 = vpop.f32.mrf.mxu0  ;;  %14553 = vst [vmem:[#allocation5_spill] sm:$0xff] %v12614_v35  ;;  %14554 = vst [vmem:[#allocation10_spill] sm:$0xff] %v12617_v46  ;;  %v12622_v10 = vadd.f32 %v14556_v56, %v5250_v15  ;;  %v6302_v9 = vmul.f32 1.442695, %v6245_v42  ;;  %v14558_v28 = vld [vmem:[#allocation126_spill] sm:$0xff]  ;;  %v14559_v35 = vld [vmem:[#allocation145_spill] sm:$0xff]  ;;  %v6247_v11 = vmul.f32 %v6215_v0, %v5767_v57  ;;  %v12636_v15 = vpop.f32.mrf.mxu1  ;;  %7807 = vrcp.f32 %v5829_v34 }
 0x475   :  { %14555 = vst [vmem:[#allocation12_spill] sm:$0xff] %v12619_v50  ;;  %v5252_v25 = vadd.f32 %v12354_v19, %v14558_v28  ;;  %v5254_v48 = vadd.f32 %v12371_v43, %v14559_v35  ;;  %v5830_v46 = vadd.f32 1.0, %v5798_v20  ;;  %v12631_v5 = vmul.f32 0.5, %v12548_v52  ;;  %v14562_v42 = vld [vmem:[#allocation130_spill] sm:$0xff]  ;;  %v14564_v19 = vld [vmem:[#allocation127_spill] sm:$0xff] }
 0x476   :  { %v12578_v51 = vpop.f32.mrf.mxu0  ;;  %14557 = vst [vmem:[#allocation102_spill] sm:$0xff] %v12622_v10  ;;  %v12634_v38 = vmul.f32 0.70710677, %v12622_v10  ;;  %v5831_v56 = vadd.f32 1.0, %v5799_v55  ;;  %v5800_v17 = vmul.f32 0.3275911, %v5768_v53  ;;  %v6248_v52 = vmul.f32 %v6216_v12, %v5768_v53  ;;  %v12662_v12 = vpop.f32.mrf.mxu1 }
 0x477   :  { %14560 = vst [vmem:[#allocation4_spill] sm:$0xff] %v12631_v5  ;;  %v12641_v50 = vadd.f32 %v14562_v42, %v5252_v25  ;;  %v12644_v28 = vadd.f32 %v14564_v19, %v5254_v48  ;;  %v6304_v43 = vmul.f32 1.442695, %v6246_v6  ;;  %v12649_v0 = vpop.eup %7791  ;;  %7809 = vpow2.f32 %v6302_v9 }
 0x478   :  { %v12595_v2 = vpop.f32.mrf.mxu0  ;;  %14561 = vst [vmem:[#allocation112_spill] sm:$0xff] %v12634_v38  ;;  %v5769_v20 = vand.u32 2147483647, %v12634_v38  ;;  %14566 = vst [vmem:[#allocation18_spill] sm:$0xff] %v12649_v0  ;;  %v12652_v35 = vmul.f32 0.5, %v12551_v4  ;;  %v12660_v48 = vpop.eup %7793  ;;  %7811 = vrcp.f32 %v5830_v46  ;;  %v5832_v4 = vadd.f32 1.0, %v5800_v17 }
 0x479   :  { %14563 = vst [vmem:[#allocation15_spill] sm:$0xff] %v12641_v50  ;;  %14565 = vst [vmem:[#allocation6_spill] sm:$0xff] %v12644_v28  ;;  %v12655_v55 = vmul.f32 0.70710677, %v12641_v50  ;;  %v12658_v25 = vmul.f32 0.70710677, %v12644_v28  ;;  %v12666_v9 = vpop.eup %7795  ;;  %7813 = vrcp.f32 %v5831_v56 }
 0x47a   :  { %v12607_v13 = vpop.f32.mrf.mxu0  ;;  %14567 = vst [vmem:[#allocation19_spill] sm:$0xff] %v12652_v35  ;;  %14570 = vst [vmem:[#allocation23_spill] sm:$0xff] %v12660_v48  ;;  %v6306_v53 = vmul.f32 1.442695, %v6247_v11  ;;  %v5801_v34 = vmul.f32 0.3275911, %v5769_v20  ;;  %v12670_v28 = vpop.eup %7797  ;;  %7815 = vpow2.f32 %v6304_v43 }
 0x47b   :  { %14568 = vst [vmem:[#allocation20_spill] sm:$0xff] %v12655_v55  ;;  %14569 = vst [vmem:[#allocation21_spill] sm:$0xff] %v12658_v25  ;;  %v6217_v6 = vsub.f32 0.0, %v5769_v20  ;;  %v5770_v19 = vand.u32 2147483647, %v12655_v55  ;;  %v12677_v56 = vmul.f32 0.5, %v12559_v31  ;;  %v12683_v43 = vpop.f32.mrf.mxu1 }
 0x47c   :  { %v12624_v29 = vpop.f32.mrf.mxu0  ;;  %v5771_v50 = vand.u32 2147483647, %v12658_v25  ;;  %14572 = vst [vmem:[#allocation25_spill] sm:$0xff] %v12670_v28  ;;  %v6308_v10 = vmul.f32 1.442695, %v6248_v52  ;;  %v5833_v46 = vadd.f32 1.0, %v5801_v34  ;;  %7817 = vpow2.f32 %v6306_v53 }
 0x47d   :  { %v6249_v11 = vmul.f32 %v6217_v6, %v5769_v20  ;;  %v5802_v35 = vmul.f32 0.3275911, %v5770_v19  ;;  %v6218_v5 = vsub.f32 0.0, %v5770_v19  ;;  %14573 = vst [vmem:[#allocation7_spill] sm:$0xff] %v12677_v56  ;;  %v14574_v25 = vld [vmem:[#allocation69_spill] sm:$0xff]  ;;  %7819 = vrcp.f32 %v5832_v4 }
 0x47e   :  { %v12638_v47 = vpop.f32.mrf.mxu0  ;;  %v5803_v48 = vmul.f32 0.3275911, %v5771_v50  ;;  %v6219_v0 = vsub.f32 0.0, %v5771_v50  ;;  %v12681_v55 = vadd.f32 %v14574_v25, %v12387_v24  ;;  %v14576_v28 = vld [vmem:[#allocation101_spill] sm:$0xff]  ;;  %7821 = vpow2.f32 %v6308_v10 }
 0x47f   :  { %v6310_v17 = vmul.f32 1.442695, %v6249_v11  ;;  %v5834_v34 = vadd.f32 1.0, %v5802_v35  ;;  %v6250_v6 = vmul.f32 %v6218_v5, %v5770_v19  ;;  %v12691_v53 = vadd.f32 %v14576_v28, %v12400_v16 }
 0x480   :  { %v12647_v57 = vpop.f32.mrf.mxu0  ;;  %v5835_v11 = vadd.f32 1.0, %v5803_v48  ;;  %v6251_v56 = vmul.f32 %v6219_v0, %v5771_v50  ;;  %v12697_v24 = vadd.f32 %v12228_v33, %v12410_v58  ;;  %7823 = vrcp.f32 %v5833_v46 }
 0x481   :  { %v12703_v5 = vadd.f32 %v12248_v54, %v12428_v21  ;;  %v12707_v16 = vadd.f32 %v12273_v37, %v12436_v7  ;;  %7825 = vpow2.f32 %v6310_v17  ;;  %v12713_v10 = vadd.f32 %v12301_v1, %v12452_v39  ;;  %v5566_v54 = vpop.f32.mrf.mxu1 }
 0x482   :  { %v12664_v42 = vpop.f32.mrf.mxu0  ;;  %v12717_v33 = vadd.f32 %v12332_v23, %v12466_v26  ;;  %v12721_v58 = vadd.f32 %v12356_v45, %v12480_v59  ;;  %7827 = vrcp.f32 %v5834_v34  ;;  %v12727_v37 = vadd.f32 %v12389_v14, %v12493_v22 }
 0x483   :  { %14571 = vst [vmem:[#allocation24_spill] sm:$0xff] %v12664_v42  ;;  %v12674_v42 = vpop.eup %7799  ;;  %v12731_v1 = vadd.f32 %v12412_v49, %v12509_v61  ;;  %v12735_v23 = vadd.f32 %v12438_v8, %v12522_v60  ;;  %7829 = vrcp.f32 %v5835_v11  ;;  %v6314_v7 = vmul.f32 1.442695, %v6251_v56 }
 0x484   :  { %v12672_v38 = vpop.f32.mrf.mxu0  ;;  %v12687_v20 = vpop.eup %7801  ;;  %v12739_v45 = vadd.f32 %v12468_v27, %v12538_v40  ;;  %v12743_v39 = vadd.f32 %v12495_v32, %v12553_v63  ;;  %v12751_v49 = vadd.f32 %v12524_v18, %v12567_v36  ;;  %v12755_v8 = vadd.f32 %v12555_v3, %v12578_v51  ;;  %v14580_v18 = vld [vmem:[#allocation8_spill] sm:$0xff]  ;;  %v14581_v63 = vld [vmem:[#allocation129_spill] sm:$0xff] }
 0x485   :  { %14575 = vst [vmem:[#allocation13_spill] sm:$0xff] %v12687_v20  ;;  %v12693_v31 = vpop.eup %7803  ;;  %v6312_v20 = vmul.f32 1.442695, %v6250_v6  ;;  %v12759_v40 = vadd.f32 %v12580_v62, %v12595_v2  ;;  %v12765_v26 = vadd.f32 %v12609_v41, %v12607_v13  ;;  %v5568_v27 = vpop.f32.mrf.mxu1  ;;  %v5900_v59 = vmul.f32 1.0614054, %v12210_v30  ;;  %v14583_v62 = vld [vmem:[#allocation33_spill] sm:$0xff] }
 0x486   :  { %v12685_v52 = vpop.f32.mrf.mxu0  ;;  %v12709_v28 = vpop.eup %7805  ;;  %v5901_v60 = vmul.f32 1.0614054, %v14580_v18  ;;  %v5902_v3 = vmul.f32 1.0614054, %v14581_v63  ;;  %v12776_v2 = vadd.f32 %v12636_v15, %v12624_v29  ;;  %v5903_v51 = vmul.f32 1.0614054, %v12253_v44 }
 0x487   :  { %14577 = vst [vmem:[#allocation14_spill] sm:$0xff] %v12709_v28  ;;  %v12747_v22 = vpop.eup %7807  ;;  %7831 = vpow2.f32 %v6312_v20  ;;  %v5904_v13 = vmul.f32 1.0614054, %v14583_v62  ;;  %v14584_v41 = vld [vmem:[#allocation160_spill] sm:$0xff]  ;;  %v7198_v48 = vadd.f32 -1.4531521, %v5900_v59  ;;  %v12789_v29 = vadd.f32 %v12662_v12, %v12638_v47  ;;  %v5570_v20 = vpop.f32.mrf.mxu1 }
 0x488   :  { %v12699_v25 = vpop.f32.mrf.mxu0  ;;  %14578 = vst [vmem:[#allocation32_spill] sm:$0xff] %v12747_v22  ;;  %v12761_v61 = vpop.eup %7809  ;;  %v5905_v50 = vmul.f32 1.0614054, %v14584_v41  ;;  %7833 = vpow2.f32 %v6314_v7  ;;  %v7199_v4 = vadd.f32 -1.4531521, %v5901_v60  ;;  %v14587_v59 = vld [vmem:[#allocation96_spill] sm:$0xff]  ;;  %v12801_v47 = vadd.f32 %v12683_v43, %v12647_v57 }
 0x489   :  { %14579 = vst [vmem:[#allocation34_spill] sm:$0xff] %v12761_v61  ;;  %v12772_v36 = vpop.eup %7811  ;;  %v7200_v19 = vadd.f32 -1.4531521, %v5902_v3  ;;  %v7201_v15 = vadd.f32 -1.4531521, %v5903_v51  ;;  %v5964_v6 = vmul.f32 %v12210_v30, %v7198_v48  ;;  %v12816_v57 = vadd.f32 %v5568_v27, %v12672_v38 }
 0x48a   :  { %v12723_v21 = vpop.f32.mrf.mxu0  ;;  %14582 = vst [vmem:[#allocation35_spill] sm:$0xff] %v12772_v36  ;;  %v12781_v0 = vpop.eup %7813  ;;  %v7202_v56 = vadd.f32 -1.4531521, %v5904_v13  ;;  %v7203_v17 = vadd.f32 -1.4531521, %v5905_v50  ;;  %v5965_v11 = vmul.f32 %v14580_v18, %v7199_v4  ;;  %v14590_v48 = vld [vmem:[#allocation24_spill] sm:$0xff]  ;;  %v12828_v38 = vadd.f32 %v5570_v20, %v12685_v52 }
 0x48b   :  { %14585 = vst [vmem:[#allocation36_spill] sm:$0xff] %v12781_v0  ;;  %v12785_v46 = vpop.eup %7815  ;;  %v5966_v7 = vmul.f32 %v14581_v63, %v7200_v19  ;;  %v5906_v60 = vmul.f32 1.0614054, %v14587_v59  ;;  %v5967_v12 = vmul.f32 %v12253_v44, %v7201_v15  ;;  %v12809_v4 = vadd.f32 %v5566_v54, %v14590_v48  ;;  %v14612_v36 = vld [vmem:[#allocation9_spill] sm:$0xff] }
 0x48c   :  { %v12745_v14 = vpop.f32.mrf.mxu0  ;;  %14586 = vst [vmem:[#allocation37_spill] sm:$0xff] %v12785_v46  ;;  %v12797_v3 = vpop.eup %7817  ;;  %v5968_v51 = vmul.f32 %v14583_v62, %v7202_v56  ;;  %v5969_v13 = vmul.f32 %v14584_v41, %v7203_v17  ;;  %v5996_v46 = vadd.f32 1.4214138, %v5964_v6  ;;  %v5997_v61 = vadd.f32 1.4214138, %v5965_v11  ;;  %14596 = vst [vmem:[#allocation43_spill] sm:$0xff] %v12828_v38 }
 0x48d   :  { %14588 = vst [vmem:[#allocation38_spill] sm:$0xff] %v12797_v3  ;;  %v12806_v50 = vpop.eup %7819  ;;  %v5998_v3 = vadd.f32 1.4214138, %v5966_v7  ;;  %v5999_v43 = vadd.f32 1.4214138, %v5967_v12  ;;  %v5572_v17 = vpop.f32.mrf.mxu1 }
 0x48e   :  { %v12767_v32 = vpop.f32.mrf.mxu0  ;;  %14589 = vst [vmem:[#allocation39_spill] sm:$0xff] %v12806_v50  ;;  %v12813_v28 = vpop.eup %7821  ;;  %v6000_v15 = vadd.f32 1.4214138, %v5968_v51  ;;  %v6001_v56 = vadd.f32 1.4214138, %v5969_v13  ;;  %v6028_v54 = vmul.f32 %v12210_v30, %v5996_v46  ;;  %v6029_v48 = vmul.f32 %v14580_v18, %v5997_v61 }
 0x48f   :  { %14592 = vst [vmem:[#allocation27_spill] sm:$0xff] %v12813_v28  ;;  %v12818_v0 = vpop.eup %7823  ;;  %v6030_v6 = vmul.f32 %v14581_v63, %v5998_v3  ;;  %v7204_v11 = vadd.f32 -1.4531521, %v5906_v60  ;;  %v6031_v27 = vmul.f32 %v12253_v44, %v5999_v43  ;;  %v12841_v52 = vadd.f32 %v5572_v17, %v12699_v25 }
 0x490   :  { %v12783_v35 = vpop.f32.mrf.mxu0  ;;  %14593 = vst [vmem:[#allocation40_spill] sm:$0xff] %v12818_v0  ;;  %v12825_v7 = vpop.eup %7825  ;;  %v6032_v12 = vmul.f32 %v14583_v62, %v6000_v15  ;;  %v6033_v51 = vmul.f32 %v14584_v41, %v6001_v56  ;;  %v7230_v46 = vadd.f32 -0.28449672, %v6028_v54  ;;  %v7231_v61 = vadd.f32 -0.28449672, %v6029_v48  ;;  %v14608_v0 = vld [vmem:[#allocation136_spill] sm:$0xff] }
 0x491   :  { %14595 = vst [vmem:[#allocation42_spill] sm:$0xff] %v12825_v7  ;;  %v12833_v13 = vpop.eup %7827  ;;  %v5970_v60 = vmul.f32 %v14587_v59, %v7204_v11  ;;  %14600 = vst [vmem:[#allocation28_spill] sm:$0xff] %v12841_v52  ;;  %v7233_v20 = vadd.f32 -0.28449672, %v6031_v27  ;;  %vm6385_vm2 = vcmp.ge.f32.partialorder %v14608_v0, 0.0 }
 0x492   :  { %v12791_v34 = vpop.f32.mrf.mxu0  ;;  %14597 = vst [vmem:[#allocation44_spill] sm:$0xff] %v12833_v13  ;;  %v12838_v3 = vpop.eup %7829  ;;  %v7234_v43 = vadd.f32 -0.28449672, %v6032_v12  ;;  %v7235_v7 = vadd.f32 -0.28449672, %v6033_v51  ;;  %v6092_v28 = vmul.f32 %v12210_v30, %v7230_v46  ;;  %v14607_v13 = vld [vmem:[#allocation142_spill] sm:$0xff] }
 0x493   :  { %14599 = vst [vmem:[#allocation46_spill] sm:$0xff] %v12838_v3  ;;  %v6002_v48 = vadd.f32 1.4214138, %v5970_v60  ;;  %v6095_v11 = vmul.f32 %v12253_v44, %v7233_v20  ;;  %vm6384_vm5 = vcmp.ge.f32.partialorder %v14607_v13, 0.0 }
 0x494   :  { %v12811_v19 = vpop.f32.mrf.mxu0  ;;  %v12843_v15 = vpop.eup %7831  ;;  %v6096_v25 = vmul.f32 %v14583_v62, %v7234_v43  ;;  %v6097_v17 = vmul.f32 %v14584_v41, %v7235_v7  ;;  %v6124_v27 = vadd.f32 0.2548296, %v6092_v28  ;;  %v14606_v28 = vld [vmem:[#allocation140_spill] sm:$0xff] }
 0x495   :  { %14591 = vst [vmem:[#allocation26_spill] sm:$0xff] %v12811_v19  ;;  %v7232_v19 = vadd.f32 -0.28449672, %v6030_v6  ;;  %14601 = vst [vmem:[#allocation47_spill] sm:$0xff] %v12843_v15  ;;  %v6034_v46 = vmul.f32 %v14587_v59, %v6002_v48  ;;  %v12855_v3 = vpop.eup %7833  ;;  %v6127_v20 = vadd.f32 0.2548296, %v6095_v11 }
 0x496   :  { %v12820_v50 = vpop.f32.mrf.mxu0  ;;  %14602 = vst [vmem:[#allocation50_spill] sm:$0xff] %v12855_v3  ;;  %v6128_v43 = vadd.f32 0.2548296, %v6096_v25  ;;  %v6129_v7 = vadd.f32 0.2548296, %v6097_v17  ;;  %vm6383_vm14 = vcmp.ge.f32.partialorder %v14606_v28, 0.0 }
 0x497   :  { %14594 = vst [vmem:[#allocation41_spill] sm:$0xff] %v12820_v50  ;;  %v6094_v54 = vmul.f32 %v14581_v63, %v7232_v19  ;;  %v14604_v19 = vld [vmem:[#allocation121_spill] sm:$0xff]  ;;  %v7236_v3 = vadd.f32 -0.28449672, %v6034_v46  ;;  %v6159_v11 = vmul.f32 %v12253_v44, %v6127_v20  ;;  %v14614_v44 = vld [vmem:[#allocation90_spill] sm:$0xff] }
 0x498   :  { %v12835_v50 = vpop.f32.mrf.mxu0  ;;  %vm6381_vm8 = vcmp.ge.f32.partialorder %v14604_v19, 0.0  ;;  %v6160_v25 = vmul.f32 %v14583_v62, %v6128_v43  ;;  %v6161_v17 = vmul.f32 %v14584_v41, %v6129_v7 }
 0x499   :  { %14598 = vst [vmem:[#allocation45_spill] sm:$0xff] %v12835_v50  ;;  %v6093_v50 = vmul.f32 %v14580_v18, %v7231_v61  ;;  %v6126_v15 = vadd.f32 0.2548296, %v6094_v54  ;;  %v14603_v61 = vld [vmem:[#allocation146_spill] sm:$0xff]  ;;  %v6319_v22 = vmul.f32 %v14612_v36, %v6159_v11 }
 0x49a   :  { %v5629_v56 = vpop.f32.mrf.mxu0  ;;  %vm6380_vm10 = vcmp.ge.f32.partialorder %v14603_v61, 0.0  ;;  %v6321_v20 = vmul.f32 %v14614_v44, %v6161_v17  ;;  %v14615_v11 = vld [vmem:[#allocation150_spill] sm:$0xff] }
 0x49b   :  { %v12849_v6 = vadd.f32 %v5629_v56, %v12681_v55  ;;  %v6125_v51 = vadd.f32 0.2548296, %v6093_v50  ;;  %v14605_v55 = vld [vmem:[#allocation166_spill] sm:$0xff]  ;;  %v6156_v50 = vmul.f32 %v12210_v30, %v6124_v27  ;;  %v6158_v48 = vmul.f32 %v14581_v63, %v6126_v15  ;;  %v14610_v27 = vld [vmem:[#allocation161_spill] sm:$0xff] }
 0x49c   :  { %v5631_v12 = vpop.f32.mrf.mxu0  ;;  %vm6382_vm9 = vcmp.ge.f32.partialorder %v14605_v55, 0.0  ;;  %v6098_v15 = vmul.f32 %v14587_v59, %v7236_v3  ;;  %vm6386_vm13 = vcmp.ge.f32.partialorder %v14615_v11, 0.0 }
 0x49d   :  { %v12861_v60 = vadd.f32 %v5631_v12, %v12691_v53  ;;  %v6157_v56 = vmul.f32 %v14580_v18, %v6125_v51  ;;  %v14609_v12 = vld [vmem:[#allocation115_spill] sm:$0xff]  ;;  %v14611_v51 = vld [vmem:[#allocation108_spill] sm:$0xff] }
 0x49e   :  { %v5633_v54 = vpop.f32.mrf.mxu0  ;;  %v6316_v30 = vmul.f32 %v14609_v12, %v6156_v50  ;;  %v6318_v52 = vmul.f32 %v14611_v51, %v6158_v48  ;;  %v6130_v50 = vadd.f32 0.2548296, %v6098_v15  ;;  %v5576_v12 = vpop.f32.mrf.mxu1  ;;  %v6353_v51 = vsub.f32 1.0, %v6321_v20 }
 0x49f   :  { %v5634_v53 = vadd.f32 %v5633_v54, %v12697_v24  ;;  %v6317_v18 = vmul.f32 %v14610_v27, %v6157_v56  ;;  %v14613_v24 = vld [vmem:[#allocation93_spill] sm:$0xff]  ;;  %v6351_v56 = vsub.f32 1.0, %v6319_v22 }
 0x4a0   :  { %v5635_v63 = vpop.f32.mrf.mxu0  ;;  %v6320_v54 = vmul.f32 %v14613_v24, %v6160_v25  ;;  %v6348_v62 = vsub.f32 1.0, %v6316_v30  ;;  %v6350_v41 = vsub.f32 1.0, %v6318_v52  ;;  %v6162_v36 = vmul.f32 %v14587_v59, %v6130_v50  ;;  %v14616_v24 = vld [vmem:[#allocation85_spill] sm:$0xff]  ;;  %v5578_v59 = vpop.f32.mrf.mxu1 }
 0x4a1   :  { %v5636_v46 = vadd.f32 %v5635_v63, %v12703_v5  ;;  %v6349_v43 = vsub.f32 1.0, %v6317_v18  ;;  %v6415_v25 = vsub.f32 0.0, %v6351_v56  ;;  %v6417_v30 = vsub.f32 0.0, %v6353_v51 }
 0x4a2   :  { %v5639_v7 = vpop.f32.mrf.mxu0  ;;  %v6352_v27 = vsub.f32 1.0, %v6320_v54  ;;  %v6412_v3 = vsub.f32 0.0, %v6348_v62  ;;  %v6414_v5 = vsub.f32 0.0, %v6350_v41  ;;  %v6322_v54 = vmul.f32 %v14616_v24, %v6162_v36  ;;  %v5580_v0 = vpop.f32.mrf.mxu1 }
 0x4a3   :  { %v5640_v48 = vadd.f32 %v5639_v7, %v12707_v16  ;;  %v6413_v38 = vsub.f32 0.0, %v6349_v43  ;;  %v12943_v11 = vadd.f32 %v5580_v0, %v12767_v32 }
 0x4a4   :  { %v5641_v63 = vpop.f32.mrf.mxu0  ;;  %v6416_v17 = vsub.f32 0.0, %v6352_v27  ;;  %v6444_v22 = vsel %vm6380_vm10, %v6348_v62, %v6412_v3  ;;  %v6446_v18 = vsel %vm6382_vm9, %v6350_v41, %v6414_v5  ;;  %v14617_v62 = vld [vmem:[#allocation100_spill] sm:$0xff]  ;;  %v14618_v41 = vld [vmem:[#allocation59_spill] sm:$0xff] }
 0x4a5   :  { %v5642_v52 = vadd.f32 %v5641_v63, %v12713_v10  ;;  %v6445_v16 = vsel %vm6381_vm8, %v6349_v43, %v6413_v38  ;;  %v6508_v44 = vadd.f32 1.0, %v6444_v22  ;;  %v6510_v7 = vadd.f32 1.0, %v6446_v18  ;;  %v14619_v5 = vld [vmem:[#allocation159_spill] sm:$0xff]  ;;  %v14620_v22 = vld [vmem:[#allocation60_spill] sm:$0xff] }
 0x4a6   :  { %v5643_v15 = vpop.f32.mrf.mxu0  ;;  %v6509_v20 = vadd.f32 1.0, %v6445_v16  ;;  %v6447_v10 = vsel %vm6383_vm14, %v6351_v56, %v6415_v25  ;;  %v6448_v61 = vsel %vm6384_vm5, %v6352_v27, %v6416_v17  ;;  %v6449_v38 = vsel %vm6385_vm2, %v6353_v51, %v6417_v30  ;;  %v14623_v30 = vld [vmem:[#allocation48_spill] sm:$0xff] }
 0x4a7   :  { %v6511_v50 = vadd.f32 1.0, %v6447_v10  ;;  %v5644_v19 = vadd.f32 %v5643_v15, %v12717_v33  ;;  %v6540_v43 = vmul.f32 %v6508_v44, %v14617_v62  ;;  %v6542_v63 = vmul.f32 %v6510_v7, %v14619_v5  ;;  %v14624_v15 = vld [vmem:[#allocation141_spill] sm:$0xff]  ;;  %v14625_v44 = vld [vmem:[#allocation151_spill] sm:$0xff]  ;;  %v5582_v62 = vpop.f32.mrf.mxu1 }
 0x4a8   :  { %v5645_v55 = vpop.f32.mrf.mxu0  ;;  %v6541_v3 = vmul.f32 %v6509_v20, %v14618_v41  ;;  %v6512_v36 = vadd.f32 1.0, %v6448_v61  ;;  %v6513_v56 = vadd.f32 1.0, %v6449_v38  ;;  %v6354_v25 = vsub.f32 1.0, %v6322_v54  ;;  %v14628_v41 = vld [vmem:[#allocation91_spill] sm:$0xff] }
 0x4a9   :  { %v6543_v28 = vmul.f32 %v6511_v50, %v14620_v22  ;;  %v12904_v13 = vadd.f32 %v5645_v55, %v12721_v58  ;;  %v12907_v51 = vmul.f32 %v6540_v43, %v12849_v6  ;;  %v12912_v17 = vmul.f32 %v6542_v63, %v5634_v53  ;;  %v14627_v53 = vld [vmem:[#allocation107_spill] sm:$0xff]  ;;  %v14629_v63 = vld [vmem:[#allocation164_spill] sm:$0xff] }
 0x4aa   :  { %v5649_v27 = vpop.f32.mrf.mxu0  ;;  %v12910_v33 = vmul.f32 %v6541_v3, %v12861_v60  ;;  %v6544_v16 = vmul.f32 %v6512_v36, %v14623_v30  ;;  %v6545_v24 = vmul.f32 %v6513_v56, %v14624_v15  ;;  %v6418_v54 = vsub.f32 0.0, %v6354_v25  ;;  %v14631_v36 = vld [vmem:[#allocation162_spill] sm:$0xff] }
 0x4ab   :  { %14621 = vst [vmem:[#allocation51_spill] sm:$0xff] %v12907_v51  ;;  %14622 = vst [vmem:[#allocation53_spill] sm:$0xff] %v12912_v17  ;;  %v12915_v18 = vmul.f32 %v6543_v28, %v5636_v46  ;;  %v5907_v58 = vmul.f32 1.0614054, %v14625_v44  ;;  %v12924_v60 = vadd.f32 %v5649_v27, %v12727_v37  ;;  %v5908_v10 = vmul.f32 1.0614054, %v14627_v53 }
 0x4ac   :  { %v5651_v20 = vpop.f32.mrf.mxu0  ;;  %v12921_v6 = vmul.f32 %v6544_v16, %v5640_v48  ;;  %v12928_v50 = vadd.f32 %v5576_v12, %v12723_v21  ;;  %v12930_v46 = vmul.f32 %v6545_v24, %v5642_v52  ;;  %v6450_v61 = vsel %vm6386_vm13, %v6354_v25, %v6418_v54  ;;  %v14630_v12 = vld [vmem:[#allocation109_spill] sm:$0xff]  ;;  %v14632_v28 = vld [vmem:[#allocation144_spill] sm:$0xff] }
 0x4ad   :  { %v7205_v38 = vadd.f32 -1.4531521, %v5907_v58  ;;  %v12935_v55 = vadd.f32 %v5578_v59, %v12745_v14  ;;  %v6514_v48 = vadd.f32 1.0, %v6450_v61  ;;  %v7206_v43 = vadd.f32 -1.4531521, %v5908_v10 }
 0x4ae   :  { %14626 = vst [vmem:[#allocation54_spill] sm:$0xff] %v12921_v6  ;;  %v5909_v37 = vmul.f32 1.0614054, %v14628_v41  ;;  %v5653_v5 = vpop.f32.mrf.mxu0  ;;  %v5910_v21 = vmul.f32 1.0614054, %v14629_v63  ;;  %v12948_v25 = vadd.f32 %v5582_v62, %v12783_v35  ;;  %v12953_v54 = vadd.f32 %v5651_v20, %v12731_v1  ;;  %v14680_v6 = vld [vmem:[#allocation118_spill] sm:$0xff] }
 0x4af   :  { %v5971_v3 = vmul.f32 %v14625_v44, %v7205_v38  ;;  %v5911_v52 = vmul.f32 1.0614054, %v14630_v12  ;;  %v5912_v22 = vmul.f32 1.0614054, %v14631_v36  ;;  %v6546_v14 = vmul.f32 %v6514_v48, %v14632_v28 }
 0x4b0   :  { %v5972_v59 = vmul.f32 %v14627_v53, %v7206_v43  ;;  %v7207_v56 = vadd.f32 -1.4531521, %v5909_v37  ;;  %v7208_v30 = vadd.f32 -1.4531521, %v5910_v21  ;;  %v5655_v10 = vpop.f32.mrf.mxu0  ;;  %v12963_v48 = vadd.f32 %v5653_v5, %v12735_v23 }
 0x4b1   :  { %v6003_v27 = vadd.f32 1.4214138, %v5971_v3  ;;  %v7209_v16 = vadd.f32 -1.4531521, %v5911_v52  ;;  %v12950_v15 = vmul.f32 %v6546_v14, %v5644_v19  ;;  %v7210_v35 = vadd.f32 -1.4531521, %v5912_v22 }
 0x4b2   :  { %v6004_v24 = vadd.f32 1.4214138, %v5972_v59  ;;  %v5973_v32 = vmul.f32 %v14628_v41, %v7207_v56  ;;  %v5974_v58 = vmul.f32 %v14629_v63, %v7208_v30  ;;  %v12968_v52 = vadd.f32 %v5655_v10, %v12739_v45  ;;  %v14633_v22 = vld [vmem:[#allocation17_spill] sm:$0xff]  ;;  %v14635_v10 = vld [vmem:[#allocation120_spill] sm:$0xff] }
 0x4b3   :  { %v6035_v0 = vmul.f32 %v14625_v44, %v6003_v27  ;;  %v5975_v61 = vmul.f32 %v14630_v12, %v7209_v16  ;;  %v5976_v37 = vmul.f32 %v14631_v36, %v7210_v35  ;;  %v5913_v28 = vmul.f32 1.0614054, %v14633_v22  ;;  %v14634_v16 = vld [vmem:[#allocation64_spill] sm:$0xff] }
 0x4b4   :  { %v6036_v19 = vmul.f32 %v14627_v53, %v6004_v24  ;;  %v6005_v62 = vadd.f32 1.4214138, %v5973_v32  ;;  %v6006_v20 = vadd.f32 1.4214138, %v5974_v58  ;;  %v5914_v24 = vmul.f32 1.0614054, %v14634_v16 }
 0x4b5   :  { %v7237_v1 = vadd.f32 -0.28449672, %v6035_v0  ;;  %v6007_v43 = vadd.f32 1.4214138, %v5975_v61  ;;  %v6008_v5 = vadd.f32 1.4214138, %v5976_v37 }
 0x4b6   :  { %v7238_v3 = vadd.f32 -0.28449672, %v6036_v19  ;;  %v6037_v21 = vmul.f32 %v14628_v41, %v6005_v62  ;;  %v6038_v59 = vmul.f32 %v14629_v63, %v6006_v20  ;;  %v7211_v30 = vadd.f32 -1.4531521, %v5913_v28 }
 0x4b7   :  { %v6099_v14 = vmul.f32 %v14625_v44, %v7237_v1  ;;  %v6039_v23 = vmul.f32 %v14630_v12, %v6007_v43  ;;  %v6040_v45 = vmul.f32 %v14631_v36, %v6008_v5  ;;  %vm6387_vm0 = vcmp.ge.f32.partialorder %v14635_v10, 0.0  ;;  %v14636_v1 = vld [vmem:[#allocation113_spill] sm:$0xff] }
 0x4b8   :  { %v6100_v56 = vmul.f32 %v14627_v53, %v7238_v3  ;;  %v7239_v27 = vadd.f32 -0.28449672, %v6037_v21  ;;  %v7240_v0 = vadd.f32 -0.28449672, %v6038_v59  ;;  %v5977_v19 = vmul.f32 %v14633_v22, %v7211_v30  ;;  %v14637_v5 = vld [vmem:[#allocation137_spill] sm:$0xff] }
 0x4b9   :  { %v6131_v32 = vadd.f32 0.2548296, %v6099_v14  ;;  %v7241_v58 = vadd.f32 -0.28449672, %v6039_v23  ;;  %v7212_v62 = vadd.f32 -1.4531521, %v5914_v24  ;;  %v12985_v14 = vpop.f32.mrf.mxu0 }
 0x4ba   :  { %v6132_v61 = vadd.f32 0.2548296, %v6100_v56  ;;  %v6101_v35 = vmul.f32 %v14628_v41, %v7239_v27  ;;  %vm6388_vm4 = vcmp.ge.f32.partialorder %v14636_v1, 0.0  ;;  %v6102_v43 = vmul.f32 %v14629_v63, %v7240_v0  ;;  %v14638_v56 = vld [vmem:[#allocation165_spill] sm:$0xff]  ;;  %v14640_v0 = vld [vmem:[#allocation22_spill] sm:$0xff] }
 0x4bb   :  { %v6163_v20 = vmul.f32 %v14625_v44, %v6131_v32  ;;  %v6103_v37 = vmul.f32 %v14630_v12, %v7241_v58  ;;  %v7242_v3 = vadd.f32 -0.28449672, %v6040_v45  ;;  %v6009_v59 = vadd.f32 1.4214138, %v5977_v19  ;;  %v14639_v32 = vld [vmem:[#allocation58_spill] sm:$0xff]  ;;  %v14641_v58 = vld [vmem:[#allocation139_spill] sm:$0xff]  ;;  %v12999_v7 = vpop.f32.mrf.mxu0 }
 0x4bc   :  { %v6164_v21 = vmul.f32 %v14627_v53, %v6132_v61  ;;  %v6133_v28 = vadd.f32 0.2548296, %v6101_v35  ;;  %v5978_v23 = vmul.f32 %v14634_v16, %v7212_v62  ;;  %vm6389_vm1 = vcmp.ge.f32.partialorder %v14637_v5, 0.0  ;;  %v14649_v1 = vld [vmem:[#allocation49_spill] sm:$0xff] }
 0x4bd   :  { %v6323_v27 = vmul.f32 %v14638_v56, %v6163_v20  ;;  %v6134_v30 = vadd.f32 0.2548296, %v6102_v43  ;;  %v6135_v24 = vadd.f32 0.2548296, %v6103_v37  ;;  %v6104_v44 = vmul.f32 %v14631_v36, %v7242_v3  ;;  %v14642_v56 = vld [vmem:[#allocation80_spill] sm:$0xff] }
 0x4be   :  { %vm6390_vm7 = vcmp.ge.f32.partialorder %v14639_v32, 0.0  ;;  %vm6391_vm12 = vcmp.ge.f32.partialorder %v14640_v0, 0.0  ;;  %v6324_v53 = vmul.f32 %v14641_v58, %v6164_v21  ;;  %v6165_v45 = vmul.f32 %v14628_v41, %v6133_v28  ;;  %v14643_v21 = vld [vmem:[#allocation111_spill] sm:$0xff]  ;;  %v14653_v0 = vld [vmem:[#allocation89_spill] sm:$0xff] }
 0x4bf   :  { %v6041_v61 = vmul.f32 %v14633_v22, %v6009_v59  ;;  %v6010_v35 = vadd.f32 1.4214138, %v5978_v23  ;;  %v6355_v19 = vsub.f32 1.0, %v6323_v27  ;;  %v6166_v62 = vmul.f32 %v14629_v63, %v6134_v30  ;;  %v14644_v28 = vld [vmem:[#allocation143_spill] sm:$0xff] }
 0x4c0   :  { %v6167_v20 = vmul.f32 %v14630_v12, %v6135_v24  ;;  %v6136_v43 = vadd.f32 0.2548296, %v6104_v44  ;;  %v6356_v37 = vsub.f32 1.0, %v6324_v53  ;;  %v6325_v3 = vmul.f32 %v14642_v56, %v6165_v45  ;;  %v14645_v23 = vld [vmem:[#allocation131_spill] sm:$0xff] }
 0x4c1   :  { %v7243_v38 = vadd.f32 -0.28449672, %v6041_v61  ;;  %v6042_v51 = vmul.f32 %v14634_v16, %v6010_v35  ;;  %vm6392_vm6 = vcmp.ge.f32.partialorder %v14643_v21, 0.0  ;;  %v6419_v41 = vsub.f32 0.0, %v6355_v19  ;;  %v14646_v61 = vld [vmem:[#allocation99_spill] sm:$0xff] }
 0x4c2   :  { %v6326_v59 = vmul.f32 %v14644_v28, %v6166_v62  ;;  %v6327_v27 = vmul.f32 %v14645_v23, %v6167_v20  ;;  %v6168_v63 = vmul.f32 %v14631_v36, %v6136_v43  ;;  %v6420_v30 = vsub.f32 0.0, %v6356_v37  ;;  %v5663_v23 = vpop.f32.mrf.mxu0 }
 0x4c3   :  { %v6357_v12 = vsub.f32 1.0, %v6325_v3  ;;  %v6105_v24 = vmul.f32 %v14633_v22, %v7243_v38  ;;  %v7244_v44 = vadd.f32 -0.28449672, %v6042_v51  ;;  %v6451_v58 = vsel %vm6387_vm0, %v6355_v19, %v6419_v41  ;;  %v14647_v38 = vld [vmem:[#allocation98_spill] sm:$0xff]  ;;  %v14648_v51 = vld [vmem:[#allocation55_spill] sm:$0xff] }
 0x4c4   :  { %v6358_v53 = vsub.f32 1.0, %v6326_v59  ;;  %v6359_v45 = vsub.f32 1.0, %v6327_v27  ;;  %v6328_v35 = vmul.f32 %v14646_v61, %v6168_v63  ;;  %v6515_v56 = vadd.f32 1.0, %v6451_v58 }
 0x4c5   :  { %v6452_v62 = vsel %vm6388_vm4, %v6356_v37, %v6420_v30  ;;  %v6421_v28 = vsub.f32 0.0, %v6357_v12  ;;  %v6137_v20 = vadd.f32 0.2548296, %v6105_v24  ;;  %vm6393_vm11 = vcmp.ge.f32.partialorder %v14647_v38, 0.0 }
 0x4c6   :  { %v6516_v36 = vadd.f32 1.0, %v6452_v62  ;;  %v6422_v43 = vsub.f32 0.0, %v6358_v53  ;;  %v6423_v3 = vsub.f32 0.0, %v6359_v45  ;;  %v6360_v17 = vsub.f32 1.0, %v6328_v35  ;;  %v5586_v35 = vpop.f32.mrf.mxu1  ;;  %v14651_v62 = vld [vmem:[#allocation95_spill] sm:$0xff] }
 0x4c7   :  { %v6547_v10 = vmul.f32 %v6515_v56, %v14648_v51  ;;  %v6453_v19 = vsel %vm6389_vm1, %v6357_v12, %v6421_v28  ;;  %v6169_v41 = vmul.f32 %v14633_v22, %v6137_v20  ;;  %v6106_v59 = vmul.f32 %v14634_v16, %v7244_v44  ;;  %v5665_v12 = vpop.f32.mrf.mxu0  ;;  %v14650_v44 = vld [vmem:[#allocation66_spill] sm:$0xff]  ;;  %v14654_v20 = vld [vmem:[#allocation124_spill] sm:$0xff] }
 0x4c8   :  { %v6548_v37 = vmul.f32 %v6516_v36, %v14649_v1  ;;  %v6517_v27 = vadd.f32 1.0, %v6453_v19  ;;  %v6454_v63 = vsel %vm6390_vm7, %v6358_v53, %v6422_v43  ;;  %v6455_v30 = vsel %vm6391_vm12, %v6359_v45, %v6423_v3  ;;  %v14652_v53 = vld [vmem:[#allocation125_spill] sm:$0xff] }
 0x4c9   :  { %v13024_v24 = vmul.f32 %v6547_v10, %v12904_v13  ;;  %v6518_v58 = vadd.f32 1.0, %v6454_v63  ;;  %v6519_v61 = vadd.f32 1.0, %v6455_v30  ;;  %v6424_v5 = vsub.f32 0.0, %v6360_v17  ;;  %v5669_v21 = vpop.f32.mrf.mxu0  ;;  %v14658_v63 = vld [vmem:[#allocation70_spill] sm:$0xff] }
 0x4ca   :  { %v13027_v22 = vmul.f32 %v6548_v37, %v12924_v60  ;;  %v6549_v56 = vmul.f32 %v6517_v27, %v14650_v44  ;;  %v6329_v28 = vmul.f32 %v14651_v62, %v6169_v41  ;;  %v6138_v32 = vadd.f32 0.2548296, %v6106_v59  ;;  %v14657_v37 = vld [vmem:[#allocation110_spill] sm:$0xff] }
 0x4cb   :  { %vm6394_vm3 = vcmp.ge.f32.partialorder %v14652_v53, 0.0  ;;  %v6550_v45 = vmul.f32 %v6518_v58, %v14653_v0  ;;  %v6551_v13 = vmul.f32 %v6519_v61, %v14654_v20  ;;  %v5660_v36 = vadd.f32 %v12985_v14, %v12743_v39  ;;  %v14655_v39 = vld [vmem:[#allocation63_spill] sm:$0xff]  ;;  %v14659_v58 = vld [vmem:[#allocation56_spill] sm:$0xff] }
 0x4cc   :  { %v6456_v43 = vsel %vm6392_vm6, %v6360_v17, %v6424_v5  ;;  %v13039_v60 = vmul.f32 %v6549_v56, %v12953_v54  ;;  %v6361_v51 = vsub.f32 1.0, %v6329_v28  ;;  %v6170_v10 = vmul.f32 %v14634_v16, %v6138_v32  ;;  %v14656_v17 = vld [vmem:[#allocation76_spill] sm:$0xff]  ;;  %v5671_v32 = vpop.f32.mrf.mxu0 }
 0x4cd   :  { %v6520_v3 = vadd.f32 1.0, %v6456_v43  ;;  %v13043_v19 = vadd.f32 %v5586_v35, %v12791_v34  ;;  %v13046_v41 = vmul.f32 %v6550_v45, %v12963_v48  ;;  %v13049_v59 = vmul.f32 %v6551_v13, %v12968_v52  ;;  %v14660_v20 = vld [vmem:[#allocation84_spill] sm:$0xff] }
 0x4ce   :  { %v5915_v14 = vmul.f32 1.0614054, %v14655_v39  ;;  %v6425_v54 = vsub.f32 0.0, %v6361_v51  ;;  %v6330_v27 = vmul.f32 %v14657_v37, %v6170_v10  ;;  %v5916_v30 = vmul.f32 1.0614054, %v14658_v63  ;;  %v5673_v37 = vpop.f32.mrf.mxu0 }
 0x4cf   :  { %v6552_v1 = vmul.f32 %v6520_v3, %v14656_v17  ;;  %v5662_v48 = vadd.f32 %v12999_v7, %v12751_v49  ;;  %v5917_v52 = vmul.f32 1.0614054, %v14659_v58  ;;  %v5664_v62 = vadd.f32 %v5663_v23, %v12755_v8 }
 0x4d0   :  { %v7213_v16 = vadd.f32 -1.4531521, %v5915_v14  ;;  %v6457_v5 = vsel %vm6393_vm11, %v6361_v51, %v6425_v54  ;;  %v6362_v35 = vsub.f32 1.0, %v6330_v27  ;;  %v7214_v44 = vadd.f32 -1.4531521, %v5916_v30  ;;  %v14662_v51 = vld [vmem:[#allocation72_spill] sm:$0xff] }
 0x4d1   :  { %v13060_v61 = vmul.f32 %v6552_v1, %v5660_v36  ;;  %v6521_v56 = vadd.f32 1.0, %v6457_v5  ;;  %v7215_v0 = vadd.f32 -1.4531521, %v5917_v52  ;;  %v13067_v49 = vadd.f32 %v5665_v12, %v12759_v40  ;;  %v14661_v36 = vld [vmem:[#allocation74_spill] sm:$0xff]  ;;  %v14663_v52 = vld [vmem:[#allocation31_spill] sm:$0xff] }
 0x4d2   :  { %v5979_v28 = vmul.f32 %v14655_v39, %v7213_v16  ;;  %v6426_v45 = vsub.f32 0.0, %v6362_v35  ;;  %v5980_v7 = vmul.f32 %v14658_v63, %v7214_v44  ;;  %v5918_v13 = vmul.f32 1.0614054, %v14660_v20  ;;  %v14664_v5 = vld [vmem:[#allocation67_spill] sm:$0xff] }
 0x4d3   :  { %v6553_v38 = vmul.f32 %v6521_v56, %v14661_v36  ;;  %v5981_v3 = vmul.f32 %v14659_v58, %v7215_v0  ;;  %v5919_v10 = vmul.f32 1.0614054, %v14662_v51  ;;  %v13077_v23 = vadd.f32 %v5669_v21, %v12765_v26  ;;  %v13094_v36 = vpop.f32.mrf.mxu0 }
 0x4d4   :  { %v6011_v43 = vadd.f32 1.4214138, %v5979_v28  ;;  %v6458_v8 = vsel %vm6394_vm3, %v6362_v35, %v6426_v45  ;;  %v6012_v14 = vadd.f32 1.4214138, %v5980_v7  ;;  %v7216_v40 = vadd.f32 -1.4531521, %v5918_v13 }
 0x4d5   :  { %v13079_v12 = vmul.f32 %v6553_v38, %v5662_v48  ;;  %v6522_v17 = vadd.f32 1.0, %v6458_v8  ;;  %v6013_v54 = vadd.f32 1.4214138, %v5981_v3  ;;  %v7217_v16 = vadd.f32 -1.4531521, %v5919_v10  ;;  %v14665_v38 = vld [vmem:[#allocation18_spill] sm:$0xff] }
 0x4d6   :  { %v6043_v1 = vmul.f32 %v14655_v39, %v6011_v43  ;;  %v6044_v27 = vmul.f32 %v14658_v63, %v6012_v14  ;;  %v5982_v30 = vmul.f32 %v14660_v20, %v7216_v40  ;;  %v5920_v53 = vmul.f32 1.0614054, %v14663_v52  ;;  %v14677_v8 = vld [vmem:[#allocation138_spill] sm:$0xff] }
 0x4d7   :  { %v6554_v35 = vmul.f32 %v6522_v17, %v14664_v5  ;;  %v13087_v21 = vadd.f32 %v5671_v32, %v12776_v2  ;;  %v6045_v48 = vmul.f32 %v14659_v58, %v6013_v54  ;;  %v5983_v28 = vmul.f32 %v14662_v51, %v7217_v16  ;;  %v14666_v17 = vld [vmem:[#allocation94_spill] sm:$0xff] }
 0x4d8   :  { %v7245_v26 = vadd.f32 -0.28449672, %v6043_v1  ;;  %v7246_v44 = vadd.f32 -0.28449672, %v6044_v27  ;;  %v6014_v56 = vadd.f32 1.4214138, %v5982_v30 }
 0x4d9   :  { %v7218_v0 = vadd.f32 -1.4531521, %v5920_v53  ;;  %v13091_v45 = vmul.f32 %v6554_v35, %v5664_v62  ;;  %v7247_v13 = vadd.f32 -0.28449672, %v6045_v48  ;;  %v5921_v43 = vmul.f32 1.0614054, %v14665_v38 }
 0x4da   :  { %v6107_v7 = vmul.f32 %v14655_v39, %v7245_v26  ;;  %v6108_v3 = vmul.f32 %v14658_v63, %v7246_v44  ;;  %v6046_v2 = vmul.f32 %v14660_v20, %v6014_v56  ;;  %v6015_v32 = vadd.f32 1.4214138, %v5983_v28  ;;  %v14667_v16 = vld [vmem:[#allocation106_spill] sm:$0xff]  ;;  %v13110_v26 = vpop.f32.mrf.mxu0  ;;  %v14668_v44 = vld [vmem:[#allocation133_spill] sm:$0xff] }
 0x4db   :  { %v5984_v10 = vmul.f32 %v14663_v52, %v7218_v0  ;;  %v6109_v62 = vmul.f32 %v14659_v58, %v7247_v13  ;;  %v7219_v40 = vadd.f32 -1.4531521, %v5921_v43  ;;  %vm6395_vm15 = vcmp.ge.f32.partialorder %v14666_v17, 0.0  ;;  %v14669_v13 = vld [vmem:[#allocation82_spill] sm:$0xff] }
 0x4dc   :  { %v6139_v14 = vadd.f32 0.2548296, %v6107_v7  ;;  %v6140_v1 = vadd.f32 0.2548296, %v6108_v3  ;;  %v7248_v54 = vadd.f32 -0.28449672, %v6046_v2  ;;  %v6047_v27 = vmul.f32 %v14662_v51, %v6015_v32 }
 0x4dd   :  { %v6016_v30 = vadd.f32 1.4214138, %v5984_v10  ;;  %vm6396_vm10 = vcmp.ge.f32.partialorder %v14667_v16, 0.0  ;;  %v6141_v5 = vadd.f32 0.2548296, %v6109_v62  ;;  %v13108_v35 = vadd.f32 %v5673_v37, %v12789_v29  ;;  %v14670_v29 = vld [vmem:[#allocation23_spill] sm:$0xff] }
 0x4de   :  { %v6171_v53 = vmul.f32 %v14655_v39, %v6139_v14  ;;  %v5985_v48 = vmul.f32 %v14665_v38, %v7219_v40  ;;  %vm6397_vm8 = vcmp.ge.f32.partialorder %v14668_v44, 0.0  ;;  %v6172_v56 = vmul.f32 %v14658_v63, %v6140_v1  ;;  %v14671_v2 = vld [vmem:[#allocation87_spill] sm:$0xff]  ;;  %v14673_v1 = vld [vmem:[#allocation154_spill] sm:$0xff] }
 0x4df   :  { %v6110_v28 = vmul.f32 %v14660_v20, %v7248_v54  ;;  %v7249_v0 = vadd.f32 -0.28449672, %v6047_v27  ;;  %v6048_v7 = vmul.f32 %v14663_v52, %v6016_v30  ;;  %v6173_v39 = vmul.f32 %v14659_v58, %v6141_v5  ;;  %v14672_v40 = vld [vmem:[#allocation83_spill] sm:$0xff]  ;;  %v13124_v27 = vpop.f32.mrf.mxu0 }
 0x4e0   :  { %v6331_v43 = vmul.f32 %v14669_v13, %v6171_v53  ;;  %v6017_v3 = vadd.f32 1.4214138, %v5985_v48  ;;  %v5922_v37 = vmul.f32 1.0614054, %v14670_v29  ;;  %v6332_v32 = vmul.f32 %v14671_v2, %v6172_v56 }
 0x4e1   :  { %v6142_v10 = vadd.f32 0.2548296, %v6110_v28  ;;  %v6111_v14 = vmul.f32 %v14662_v51, %v7249_v0  ;;  %v7250_v62 = vadd.f32 -0.28449672, %v6048_v7  ;;  %vm6398_vm9 = vcmp.ge.f32.partialorder %v14672_v40, 0.0  ;;  %v14674_v28 = vld [vmem:[#allocation163_spill] sm:$0xff] }
 0x4e2   :  { %v6363_v63 = vsub.f32 1.0, %v6331_v43  ;;  %v6333_v54 = vmul.f32 %v14673_v1, %v6173_v39  ;;  %v6049_v30 = vmul.f32 %v14665_v38, %v6017_v3  ;;  %v7220_v53 = vadd.f32 -1.4531521, %v5922_v37  ;;  %v14675_v39 = vld [vmem:[#allocation155_spill] sm:$0xff] }
 0x4e3   :  { %v6364_v58 = vsub.f32 1.0, %v6332_v32  ;;  %v6174_v5 = vmul.f32 %v14660_v20, %v6142_v10  ;;  %v6143_v48 = vadd.f32 0.2548296, %v6111_v14  ;;  %v6112_v56 = vmul.f32 %v14663_v52, %v7250_v62  ;;  %v5683_v10 = vpop.f32.mrf.mxu0  ;;  %v14676_v62 = vld [vmem:[#allocation123_spill] sm:$0xff] }
 0x4e4   :  { %vm6399_vm14 = vcmp.ge.f32.partialorder %v14674_v28, 0.0  ;;  %v6427_v0 = vsub.f32 0.0, %v6363_v63  ;;  %v6365_v7 = vsub.f32 1.0, %v6333_v54  ;;  %v7251_v13 = vadd.f32 -0.28449672, %v6049_v30  ;;  %v14683_v40 = vld [vmem:[#allocation71_spill] sm:$0xff] }
 0x4e5   :  { %v5986_v43 = vmul.f32 %v14670_v29, %v7220_v53  ;;  %v6428_v2 = vsub.f32 0.0, %v6364_v58  ;;  %v6334_v1 = vmul.f32 %v14675_v39, %v6174_v5  ;;  %v6175_v34 = vmul.f32 %v14662_v51, %v6143_v48  ;;  %v14678_v48 = vld [vmem:[#allocation52_spill] sm:$0xff]  ;;  %v5685_v44 = vpop.f32.mrf.mxu0 }
 0x4e6   :  { %v6144_v3 = vadd.f32 0.2548296, %v6112_v56  ;;  %v6459_v37 = vsel %vm6395_vm15, %v6363_v63, %v6427_v0  ;;  %v6429_v20 = vsub.f32 0.0, %v6365_v7  ;;  %v6113_v32 = vmul.f32 %v14665_v38, %v7251_v13  ;;  %v14679_v56 = vld [vmem:[#allocation62_spill] sm:$0xff] }
 0x4e7   :  { %v6018_v14 = vadd.f32 1.4214138, %v5986_v43  ;;  %vm6400_vm5 = vcmp.ge.f32.partialorder %v14676_v62, 0.0  ;;  %v6523_v54 = vadd.f32 1.0, %v6459_v37  ;;  %v6460_v30 = vsel %vm6396_vm10, %v6364_v58, %v6428_v2  ;;  %v14681_v58 = vld [vmem:[#allocation12_spill] sm:$0xff] }
 0x4e8   :  { %v6366_v53 = vsub.f32 1.0, %v6334_v1  ;;  %v6335_v5 = vmul.f32 %v14677_v8, %v6175_v34  ;;  %v6524_v39 = vadd.f32 1.0, %v6460_v30  ;;  %v6461_v51 = vsel %vm6397_vm8, %v6365_v7, %v6429_v20 }
 0x4e9   :  { %v6176_v17 = vmul.f32 %v14663_v52, %v6144_v3  ;;  %v6145_v63 = vadd.f32 0.2548296, %v6113_v32  ;;  %vm6401_vm2 = vcmp.ge.f32.partialorder %v14678_v48, 0.0  ;;  %v6555_v0 = vmul.f32 %v6523_v54, %v14679_v56  ;;  %v14682_v52 = vld [vmem:[#allocation75_spill] sm:$0xff] }
 0x4ea   :  { %v6525_v13 = vadd.f32 1.0, %v6461_v51  ;;  %v6430_v43 = vsub.f32 0.0, %v6366_v53  ;;  %v6367_v37 = vsub.f32 1.0, %v6335_v5  ;;  %v6556_v16 = vmul.f32 %v6524_v39, %v14680_v6  ;;  %v14690_v48 = vld [vmem:[#allocation79_spill] sm:$0xff] }
 0x4eb   :  { %v6336_v2 = vmul.f32 %v14681_v58, %v6176_v17  ;;  %v6177_v34 = vmul.f32 %v14665_v38, %v6145_v63  ;;  %v6050_v8 = vmul.f32 %v14670_v29, %v6018_v14  ;;  %v13150_v7 = vmul.f32 %v6555_v0, %v13067_v49  ;;  %v5689_v17 = vpop.f32.mrf.mxu0 }
 0x4ec   :  { %v6557_v1 = vmul.f32 %v6525_v13, %v14682_v52  ;;  %v6462_v3 = vsel %vm6398_vm9, %v6366_v53, %v6430_v43  ;;  %v6431_v20 = vsub.f32 0.0, %v6367_v37  ;;  %v13156_v32 = vmul.f32 %v6556_v16, %v13077_v23  ;;  %v14685_v16 = vld [vmem:[#allocation16_spill] sm:$0xff] }
 0x4ed   :  { %v6526_v6 = vadd.f32 1.0, %v6462_v3  ;;  %v6368_v54 = vsub.f32 1.0, %v6336_v2  ;;  %v6337_v30 = vmul.f32 %v12666_v9, %v6177_v34  ;;  %v5676_v49 = vadd.f32 %v13094_v36, %v12801_v47  ;;  %v14684_v36 = vld [vmem:[#allocation92_spill] sm:$0xff]  ;;  %v5691_v62 = vpop.f32.mrf.mxu0 }
 0x4ee   :  { %v13160_v38 = vmul.f32 %v6557_v1, %v13087_v21  ;;  %v6463_v14 = vsel %vm6399_vm14, %v6367_v37, %v6431_v20  ;;  %v7252_v5 = vadd.f32 -0.28449672, %v6050_v8  ;;  %v5680_v63 = vadd.f32 %v13110_v26, %v12809_v4  ;;  %v14686_v8 = vld [vmem:[#allocation81_spill] sm:$0xff] }
 0x4ef   :  { %v6558_v53 = vmul.f32 %v6526_v6, %v14683_v40  ;;  %v6527_v39 = vadd.f32 1.0, %v6463_v14  ;;  %v6432_v51 = vsub.f32 0.0, %v6368_v54  ;;  %v6369_v23 = vsub.f32 1.0, %v6337_v30 }
 0x4f0   :  { %v6114_v9 = vmul.f32 %v14670_v29, %v7252_v5  ;;  %v5923_v21 = vmul.f32 1.0614054, %v12674_v42  ;;  %v5924_v56 = vmul.f32 1.0614054, %v12693_v31  ;;  %v5682_v37 = vadd.f32 %v13124_v27, %v12816_v57  ;;  %v14687_v27 = vld [vmem:[#allocation43_spill] sm:$0xff] }
 0x4f1   :  { %v13173_v47 = vmul.f32 %v6558_v53, %v13108_v35  ;;  %v6559_v28 = vmul.f32 %v6527_v39, %v14684_v36  ;;  %v6464_v0 = vsel %vm6400_vm5, %v6368_v54, %v6432_v51  ;;  %v6433_v13 = vsub.f32 0.0, %v6369_v23  ;;  %v14688_v54 = vld [vmem:[#allocation32_spill] sm:$0xff]  ;;  %v14691_v53 = vld [vmem:[#allocation25_spill] sm:$0xff] }
 0x4f2   :  { %v6528_v43 = vadd.f32 1.0, %v6464_v0  ;;  %v6146_v4 = vadd.f32 0.2548296, %v6114_v9  ;;  %v7221_v26 = vadd.f32 -1.4531521, %v5923_v21  ;;  %vm6402_vm13 = vcmp.ge.f32.partialorder %v14685_v16, 0.0 }
 0x4f3   :  { %v6612_v58 = vpack.c.bf16 %v13173_v47, %v13156_v32  ;;  %v13183_v2 = vmul.f32 %v6559_v28, %v5676_v49  ;;  %v6465_v35 = vsel %vm6401_vm2, %v6369_v23, %v6433_v13  ;;  %v7222_v34 = vadd.f32 -1.4531521, %v5924_v56  ;;  %v14689_v49 = vld [vmem:[#allocation35_spill] sm:$0xff]  ;;  %v14692_v23 = vld [vmem:[#allocation28_spill] sm:$0xff]  ;;  %v5693_v56 = vpop.f32.mrf.mxu0  ;;  %v14731_v32 = vld [vmem:[#allocation54_spill] sm:$0xff] }
 0x4f4   :  { %v6560_v52 = vmul.f32 %v6528_v43, %v14686_v8  ;;  %v6529_v1 = vadd.f32 1.0, %v6465_v35  ;;  %v6178_v3 = vmul.f32 %v14670_v29, %v6146_v4  ;;  %v5987_v57 = vmul.f32 %v12674_v42, %v7221_v26  ;;  %v14693_v13 = vld [vmem:[#allocation36_spill] sm:$0xff] }
 0x4f5   :  { %v5684_v20 = vadd.f32 %v5683_v10, %v14687_v27  ;;  %v5988_v6 = vmul.f32 %v12693_v31, %v7222_v34  ;;  %v5925_v30 = vmul.f32 1.0614054, %v14688_v54  ;;  %v5926_v14 = vmul.f32 1.0614054, %v14689_v49 }
 0x4f6   :  { %v13194_v5 = vmul.f32 %v6560_v52, %v5680_v63  ;;  %v6561_v40 = vmul.f32 %v6529_v1, %v14690_v48  ;;  %v6338_v39 = vmul.f32 %v14691_v53, %v6178_v3  ;;  %v6019_v51 = vadd.f32 1.4214138, %v5987_v57 }
 0x4f7   :  { %v13199_v9 = vadd.f32 %v5685_v44, %v14692_v23  ;;  %v6020_v29 = vadd.f32 1.4214138, %v5988_v6  ;;  %v7223_v21 = vadd.f32 -1.4531521, %v5925_v30  ;;  %v7224_v10 = vadd.f32 -1.4531521, %v5926_v14 }
 0x4f8   :  { %v13201_v36 = vmul.f32 %v6561_v40, %v5682_v37  ;;  %v6370_v28 = vsub.f32 1.0, %v6338_v39  ;;  %v6051_v0 = vmul.f32 %v12674_v42, %v6019_v51  ;;  %v5927_v63 = vmul.f32 1.0614054, %v14693_v13  ;;  %v14694_v30 = vld [vmem:[#allocation39_spill] sm:$0xff]  ;;  %v14695_v51 = vld [vmem:[#allocation88_spill] sm:$0xff] }
 0x4f9   :  { %v13206_v43 = vadd.f32 %v5689_v17, %v12928_v50  ;;  %v6052_v4 = vmul.f32 %v12693_v31, %v6020_v29  ;;  %v5989_v26 = vmul.f32 %v14688_v54, %v7223_v21  ;;  %v5990_v44 = vmul.f32 %v14689_v49, %v7224_v10  ;;  %v5695_v50 = vpop.f32.mrf.mxu0  ;;  %v14696_v23 = vld [vmem:[#allocation156_spill] sm:$0xff] }
 0x4fa   :  { %v6434_v35 = vsub.f32 0.0, %v6370_v28  ;;  %v7253_v34 = vadd.f32 -0.28449672, %v6051_v0  ;;  %v13212_v8 = vadd.f32 %v5691_v62, %v12935_v55  ;;  %v7225_v37 = vadd.f32 -1.4531521, %v5927_v63 }
 0x4fb   :  { %v7254_v52 = vadd.f32 -0.28449672, %v6052_v4  ;;  %v6021_v1 = vadd.f32 1.4214138, %v5989_v26  ;;  %v13215_v3 = vadd.f32 %v5693_v56, %v12943_v11  ;;  %v6022_v57 = vadd.f32 1.4214138, %v5990_v44 }
 0x4fc   :  { %v6466_v17 = vsel %vm6402_vm13, %v6370_v28, %v6434_v35  ;;  %v6115_v27 = vmul.f32 %v12674_v42, %v7253_v34  ;;  %v5991_v6 = vmul.f32 %v14693_v13, %v7225_v37  ;;  %v5928_v14 = vmul.f32 1.0614054, %v14694_v30  ;;  %v14697_v28 = vld [vmem:[#allocation158_spill] sm:$0xff]  ;;  %v14698_v26 = vld [vmem:[#allocation40_spill] sm:$0xff] }
 0x4fd   :  { %v6530_v48 = vadd.f32 1.0, %v6466_v17  ;;  %v6116_v55 = vmul.f32 %v12693_v31, %v7254_v52  ;;  %v6053_v62 = vmul.f32 %v14688_v54, %v6021_v1  ;;  %v6054_v40 = vmul.f32 %v14689_v49, %v6022_v57  ;;  %v14699_v52 = vld [vmem:[#allocation13_spill] sm:$0xff] }
 0x4fe   :  { %v6147_v11 = vadd.f32 0.2548296, %v6115_v27  ;;  %v13226_v53 = vadd.f32 %v5695_v50, %v12948_v25  ;;  %v6023_v39 = vadd.f32 1.4214138, %v5991_v6  ;;  %v7226_v16 = vadd.f32 -1.4531521, %v5928_v14 }
 0x4ff   :  { %vm6403_vm0 = vcmp.ge.f32.partialorder %v14695_v51, 0.0  ;;  %v6562_v29 = vmul.f32 %v6530_v48, %v14696_v23  ;;  %v6148_v21 = vadd.f32 0.2548296, %v6116_v55  ;;  %v7255_v56 = vadd.f32 -0.28449672, %v6053_v62  ;;  %v14700_v27 = vld [vmem:[#allocation14_spill] sm:$0xff] }
 0x500   :  { %v7256_v10 = vadd.f32 -0.28449672, %v6054_v40  ;;  %vm6404_vm4 = vcmp.ge.f32.partialorder %v14697_v28, 0.0  ;;  %v6179_v0 = vmul.f32 %v12674_v42, %v6147_v11  ;;  %v6055_v63 = vmul.f32 %v14693_v13, %v6023_v39  ;;  %v14702_v55 = vld [vmem:[#allocation86_spill] sm:$0xff] }
 0x501   :  { %v5992_v4 = vmul.f32 %v14694_v30, %v7226_v16  ;;  %v5929_v25 = vmul.f32 1.0614054, %v14698_v26  ;;  %v13235_v44 = vmul.f32 %v6562_v29, %v5684_v20  ;;  %v6180_v35 = vmul.f32 %v12693_v31, %v6148_v21  ;;  %v14701_v20 = vld [vmem:[#allocation157_spill] sm:$0xff]  ;;  %v14703_v29 = vld [vmem:[#allocation44_spill] sm:$0xff] }
 0x502   :  { %v6117_v34 = vmul.f32 %v14688_v54, %v7255_v56  ;;  %v6118_v37 = vmul.f32 %v14689_v49, %v7256_v10  ;;  %v6339_v1 = vmul.f32 %v14699_v52, %v6179_v0  ;;  %v7257_v57 = vadd.f32 -0.28449672, %v6055_v63 }
 0x503   :  { %v6024_v50 = vadd.f32 1.4214138, %v5992_v4  ;;  %v7227_v17 = vadd.f32 -1.4531521, %v5929_v25  ;;  %v6614_v42 = vpack.c.bf16 %v13235_v44, %v13194_v5  ;;  %v6340_v6 = vmul.f32 %v14700_v27, %v6180_v35  ;;  %v14704_v4 = vld [vmem:[#allocation135_spill] sm:$0xff]  ;;  %v14705_v35 = vld [vmem:[#allocation34_spill] sm:$0xff] }
 0x504   :  { %v6149_v14 = vadd.f32 0.2548296, %v6117_v34  ;;  %v6150_v48 = vadd.f32 0.2548296, %v6118_v37  ;;  %vm6405_vm1 = vcmp.ge.f32.partialorder %v14701_v20, 0.0  ;;  %vm6406_vm7 = vcmp.ge.f32.partialorder %v14702_v55, 0.0 }
 0x505   :  { %v6371_v31 = vsub.f32 1.0, %v6339_v1  ;;  %v6119_v62 = vmul.f32 %v14693_v13, %v7257_v57  ;;  %v6056_v40 = vmul.f32 %v14694_v30, %v6024_v50  ;;  %v5993_v11 = vmul.f32 %v14698_v26, %v7227_v17  ;;  %v14706_v37 = vld [vmem:[#allocation37_spill] sm:$0xff]  ;;  %v14713_v20 = vld [vmem:[#allocation10_spill] sm:$0xff] }
 0x506   :  { %v6372_v39 = vsub.f32 1.0, %v6340_v6  ;;  %v6181_v16 = vmul.f32 %v14688_v54, %v6149_v14  ;;  %v6182_v23 = vmul.f32 %v14689_v49, %v6150_v48  ;;  %v5930_v21 = vmul.f32 1.0614054, %v14703_v29 }
 0x507   :  { %v6435_v56 = vsub.f32 0.0, %v6371_v31  ;;  %v6151_v10 = vadd.f32 0.2548296, %v6119_v62  ;;  %v7258_v0 = vadd.f32 -0.28449672, %v6056_v40  ;;  %v6613_v63 = vpack.c.bf16 %v13183_v2, %v13160_v38  ;;  %v14707_v62 = vld [vmem:[#allocation38_spill] sm:$0xff] }
 0x508   :  { %vm6407_vm12 = vcmp.ge.f32.partialorder %v14704_v4, 0.0  ;;  %v6436_v25 = vsub.f32 0.0, %v6372_v39  ;;  %v6341_v34 = vmul.f32 %v14705_v35, %v6181_v16  ;;  %v6342_v52 = vmul.f32 %v14706_v37, %v6182_v23  ;;  %v14708_v23 = vld [vmem:[#allocation65_spill] sm:$0xff] }
 0x509   :  { %v6025_v1 = vadd.f32 1.4214138, %v5993_v11  ;;  %v6467_v54 = vsel %vm6403_vm0, %v6371_v31, %v6435_v56  ;;  %v6183_v49 = vmul.f32 %v14693_v13, %v6151_v10  ;;  %v6120_v57 = vmul.f32 %v14694_v30, %v7258_v0  ;;  %v14709_v10 = vld [vmem:[#allocation57_spill] sm:$0xff] }
 0x50a   :  { %v7228_v50 = vadd.f32 -1.4531521, %v5930_v21  ;;  %v6531_v17 = vadd.f32 1.0, %v6467_v54  ;;  %v6468_v27 = vsel %vm6404_vm4, %v6372_v39, %v6436_v25  ;;  %v6373_v6 = vsub.f32 1.0, %v6341_v34  ;;  %v14710_v21 = vld [vmem:[#allocation5_spill] sm:$0xff] }
 0x50b   :  { %v6374_v14 = vsub.f32 1.0, %v6342_v52  ;;  %v6532_v48 = vadd.f32 1.0, %v6468_v27  ;;  %v6343_v40 = vmul.f32 %v14707_v62, %v6183_v49  ;;  %v6152_v16 = vadd.f32 0.2548296, %v6120_v57  ;;  %v14712_v27 = vld [vmem:[#allocation46_spill] sm:$0xff]  ;;  %v14714_v62 = vld [vmem:[#allocation4_spill] sm:$0xff] }
 0x50c   :  { %v6057_v11 = vmul.f32 %v14698_v26, %v6025_v1  ;;  %v6563_v51 = vmul.f32 %v6531_v17, %v14708_v23  ;;  %v6437_v31 = vsub.f32 0.0, %v6373_v6  ;;  %v5994_v13 = vmul.f32 %v14703_v29, %v7228_v50  ;;  %v14711_v50 = vld [vmem:[#allocation27_spill] sm:$0xff] }
 0x50d   :  { %v6438_v56 = vsub.f32 0.0, %v6374_v14  ;;  %vm6408_vm6 = vcmp.ge.f32.partialorder %v14709_v10, 0.0  ;;  %v6564_v0 = vmul.f32 %v6532_v48, %v14710_v21  ;;  %v6375_v28 = vsub.f32 1.0, %v6343_v40  ;;  %v14715_v21 = vld [vmem:[#allocation19_spill] sm:$0xff] }
 0x50e   :  { %v6184_v39 = vmul.f32 %v14694_v30, %v6152_v16  ;;  %v7259_v25 = vadd.f32 -0.28449672, %v6057_v11  ;;  %v13271_v35 = vmul.f32 %v6563_v51, %v13199_v9  ;;  %v6469_v34 = vsel %vm6405_vm1, %v6373_v6, %v6437_v31 }
 0x50f   :  { %v6470_v37 = vsel %vm6406_vm7, %v6374_v14, %v6438_v56  ;;  %v6026_v52 = vadd.f32 1.4214138, %v5994_v13  ;;  %v13278_v1 = vmul.f32 %v6564_v0, %v13206_v43  ;;  %v6533_v54 = vadd.f32 1.0, %v6469_v34  ;;  %v5699_v0 = vpop.f32.mrf.mxu0 }
 0x510   :  { %v6534_v49 = vadd.f32 1.0, %v6470_v37  ;;  %v6439_v57 = vsub.f32 0.0, %v6375_v28  ;;  %v6344_v17 = vmul.f32 %v14711_v50, %v6184_v39  ;;  %v6121_v30 = vmul.f32 %v14698_v26, %v7259_v25 }
 0x511   :  { %v6058_v9 = vmul.f32 %v14703_v29, %v6026_v52  ;;  %v5931_v48 = vmul.f32 1.0614054, %v14712_v27  ;;  %v6565_v6 = vmul.f32 %v6533_v54, %v14713_v20  ;;  %v6615_v43 = vpack.c.bf16 %v13271_v35, %v13201_v36 }
 0x512   :  { %v6566_v55 = vmul.f32 %v6534_v49, %v14714_v62  ;;  %v6471_v14 = vsel %vm6407_vm12, %v6375_v28, %v6439_v57  ;;  %v6376_v16 = vsub.f32 1.0, %v6344_v17  ;;  %v6153_v11 = vadd.f32 0.2548296, %v6121_v30  ;;  %v14716_v49 = vld [vmem:[#allocation42_spill] sm:$0xff] }
 0x513   :  { %v6535_v40 = vadd.f32 1.0, %v6471_v14  ;;  %v7260_v23 = vadd.f32 -0.28449672, %v6058_v9  ;;  %v13291_v51 = vmul.f32 %v6565_v6, %v13212_v8  ;;  %v7229_v56 = vadd.f32 -1.4531521, %v5931_v48  ;;  %v5588_v48 = vpop.f32.mrf.mxu1  ;;  %v5701_v14 = vpop.f32.mrf.mxu0 }
 0x514   :  { %v13294_v31 = vmul.f32 %v6566_v55, %v13215_v3  ;;  %v6611_v13 = vpack.c.bf16 %v13150_v7, %v13079_v12  ;;  %v6440_v28 = vsub.f32 0.0, %v6376_v16  ;;  %v6185_v39 = vmul.f32 %v14698_v26, %v6153_v11 }
 0x515   :  { %v6567_v4 = vmul.f32 %v6535_v40, %v14715_v21  ;;  %v6122_v25 = vmul.f32 %v14703_v29, %v7260_v23  ;;  %v5995_v8 = vmul.f32 %v14712_v27, %v7229_v56  ;;  %v6609_v3 = vpack.c.bf16 %v13049_v59, %v13039_v60  ;;  %v14720_v23 = vld [vmem:[#allocation26_spill] sm:$0xff] }
 0x516   :  { %v6616_v34 = vpack.c.bf16 %v13294_v31, %v13278_v1  ;;  %v6607_v37 = vpack.c.bf16 %v13024_v24, %v12930_v46  ;;  %v6472_v54 = vsel %vm6408_vm6, %v6376_v16, %v6440_v28  ;;  %v6345_v26 = vmul.f32 %v14716_v49, %v6185_v39  ;;  %v14718_v16 = vld [vmem:[#allocation47_spill] sm:$0xff]  ;;  %v7924_v46 = vld [vmem:[%s13438_s4 + $0x8] sm:$0xff]  }
 0x517   :  { %v6599_v52 = vmul.f32 %v6567_v4, %v13226_v53  ;;  %v6154_v57 = vadd.f32 0.2548296, %v6122_v25  ;;  %v5700_v50 = vadd.f32 %v5699_v0, %v13043_v19  ;;  %v6536_v17 = vadd.f32 1.0, %v6472_v54  ;;  %v14717_v53 = vld [vmem:[#allocation7_spill] sm:$0xff]  ;;  %v14719_v19 = vld [vmem:[#allocation112_spill] sm:$0xff]  ;;  %v5590_v0 = vpop.f32.mrf.mxu1  ;;  %v5703_v54 = vpop.f32.mrf.mxu0 }
 0x518   :  { %v6027_v30 = vadd.f32 1.4214138, %v5995_v8  ;;  %v6605_v9 = vpack.c.bf16 %v12915_v18, %v12910_v33  ;;  %v6377_v20 = vsub.f32 1.0, %v6345_v26  ;;  %vm6409_vm11 = vcmp.ge.f32.partialorder %v14719_v19, 0.0  ;;  %v14722_v26 = vld [vmem:[#allocation20_spill] sm:$0xff]  ;;  %v7925_v33 = vld [vmem:[%s13438_s4 + $0x10] sm:$0xff]  }
 0x519   :  { %v6186_v6 = vmul.f32 %v14703_v29, %v6154_v57  ;;  %v6617_v62 = vpack.c.bf16 %v6599_v52, %v13291_v51  ;;  %v6568_v55 = vmul.f32 %v6536_v17, %v14717_v53  ;;  %v5589_v56 = vadd.f32 %v5588_v48, %v14720_v23  ;;  %v14721_v29 = vld [vmem:[#allocation102_spill] sm:$0xff]  ;;  %v14723_v57 = vld [vmem:[#allocation41_spill] sm:$0xff]  ;;  %v14724_v48 = vld [vmem:[#allocation15_spill] sm:$0xff]  ;;  %v5592_v19 = vpop.f32.mrf.mxu1 }
 0x51a   :  { %v6059_v10 = vmul.f32 %v14712_v27, %v6027_v30  ;;  %v6441_v40 = vsub.f32 0.0, %v6377_v20  ;;  %v6505_v25 = vmul.f32 0.5, %v14721_v29  ;;  %vm6410_vm3 = vcmp.ge.f32.partialorder %v14722_v26, 0.0  ;;  %v7926_v18 = vld [vmem:[%s13438_s4 + $0x18] sm:$0xff]  }
 0x51b   :  { %v6346_v11 = vmul.f32 %v14718_v16, %v6186_v6  ;;  %v6600_v21 = vmul.f32 %v6568_v55, %v5700_v50  ;;  %v5702_v51 = vadd.f32 %v5701_v14, %v5589_v56  ;;  %v5591_v17 = vadd.f32 %v5590_v0, %v14723_v57  ;;  %v14725_v16 = vld [vmem:[#allocation50_spill] sm:$0xff]  ;;  %v14726_v0 = vld [vmem:[#allocation21_spill] sm:$0xff] }
 0x51c   :  { %v7261_v4 = vadd.f32 -0.28449672, %v6059_v10  ;;  %v6473_v28 = vsel %vm6409_vm11, %v6377_v20, %v6441_v40  ;;  %v6506_v50 = vmul.f32 0.5, %v14724_v48  ;;  %vm6411_vm15 = vcmp.ge.f32.partialorder %v14726_v0, 0.0 }
 0x51d   :  { %v6378_v39 = vsub.f32 1.0, %v6346_v11  ;;  %v6537_v8 = vadd.f32 1.0, %v6473_v28  ;;  %v5704_v20 = vadd.f32 %v5703_v54, %v5591_v17  ;;  %v5705_v28 = vpop.f32.mrf.mxu0  ;;  %v14729_v36 = vpack.c.bf16 %v13091_v45, %v13060_v61  ;;  %v14733_v61 = vld [vmem:[#allocation53_spill] sm:$0xff]  ;;  %v14734_v45 = vld [vmem:[#allocation51_spill] sm:$0xff] }
 0x51e   :  { %v6123_v52 = vmul.f32 %v14712_v27, %v7261_v4  ;;  %v14730_v38 = vpack.c.bf16 %v13046_v41, %v13027_v22  ;;  %v14732_v12 = vpack.c.bf16 %v12950_v15, %v14731_v32  ;;  %v14735_v60 = vpack.c.bf16 %v14733_v61, %v14734_v45  ;;  %v7923_v22 = vld [vmem:[%s13438_s4] sm:$0xff]  }
 0x51f   :  { %v6442_v49 = vsub.f32 0.0, %v6378_v39  ;;  %v6569_v30 = vmul.f32 %v6537_v8, %v6505_v25  ;;  %v14727_v25 = vld [vmem:[#allocation45_spill] sm:$0xff]  ;;  %v14736_v41 = vmov 0  }
 0x520   :  { %v6155_v6 = vadd.f32 0.2548296, %v6123_v52  ;;  %v5593_v8 = vadd.f32 %v5592_v19, %v14727_v25 }
 0x521   :  { %v6474_v53 = vsel %vm6410_vm3, %v6378_v39, %v6442_v49  ;;  %v6601_v55 = vmul.f32 %v6569_v30, %v5702_v51  ;;  %v14728_v39 = vld [vmem:[#allocation6_spill] sm:$0xff] }
 0x522   :  { %v6538_v10 = vadd.f32 1.0, %v6474_v53  ;;  %v6187_v40 = vmul.f32 %v14712_v27, %v6155_v6  ;;  %v6507_v51 = vmul.f32 0.5, %v14728_v39  ;;  %v5706_v54 = vadd.f32 %v5705_v28, %v5593_v8 }
 0x524   :  { %v6570_v14 = vmul.f32 %v6538_v10, %v6506_v50  ;;  %v6347_v11 = vmul.f32 %v14725_v16, %v6187_v40 }
 0x526   :  { %v6602_v23 = vmul.f32 %v6570_v14, %v5704_v20  ;;  %v6379_v56 = vsub.f32 1.0, %v6347_v11 }
 0x528   :  { %v6618_v4 = vpack.c.bf16 %v6602_v23, %v6600_v21  ;;  %v6443_v29 = vsub.f32 0.0, %v6379_v56 }
 0x52a   :  { %v6475_v52 = vsel %vm6411_vm15, %v6379_v56, %v6443_v29 }
 0x52b   :  { %v6539_v49 = vadd.f32 1.0, %v6475_v52 }
 0x52d   :  { %v6571_v26 = vmul.f32 %v6539_v49, %v6507_v51 }
 0x52f   :  { %v6603_v27 = vmul.f32 %v6571_v26, %v5706_v54 }
 0x531   :  { %v6619_v57 = vpack.c.bf16 %v6603_v27, %v6601_v55 }
 0x533   :  { %6620 = vmatprep.subr.bf16.mxu1 %v6619_v57 }
 0x534   :  { %6621 = vmatpush1.bf16.msra.mxu1 %v6618_v4 }
 0x535   :  { %6622 = vmatprep.subr.bf16.mxu1 %v6617_v62 }
 0x538   :  { %6623 = vmatpush1.bf16.msra.mxu1 %v6616_v34 }
 0x539   :  { %6624 = vmatprep.subr.bf16.mxu1 %v6615_v43 }
 0x53c   :  { %6625 = vmatpush1.bf16.msra.mxu1 %v6614_v42 }
 0x53d   :  { %6626 = vmatprep.subr.bf16.mxu1 %v6613_v63 }
 0x540   :  { %6627 = vmatpush1.bf16.msra.mxu1 %v6612_v58 }
 0x541   :  { %6628 = vmatprep.subr.bf16.mxu1 %v6611_v13 }
 0x544   :  { %6629 = vmatpush1.bf16.msra.mxu1 %v14729_v36 }
 0x545   :  { %6630 = vmatprep.subr.bf16.mxu1 %v6609_v3 }
 0x548   :  { %6631 = vmatpush1.bf16.msra.mxu1 %v14730_v38 }
 0x549   :  { %6632 = vmatprep.subr.bf16.mxu1 %v6607_v37 }
 0x54c   :  { %6633 = vmatpush1.bf16.msra.mxu1 %v14732_v12 }
 0x54d   :  { %6634 = vmatprep.subr.bf16.mxu1 %v6605_v9 }
 0x550   :  { %6635 = vmatpush1.bf16.msra.mxu1 %v14735_v60 }
 0x553   :  { %6653 = vmatmul.mubr.bf16.vlgmr.msra.gmra.mxu1 %v7923_v22 }
 0x554   :  { %6662 = vmatprep.mubr.bf16.mxu1 %v14736_v41 }
 0x55b   :  { %6663 = vmatmul.mubr.bf16.gmra.mxu1 %v7924_v46 }
 0x55c   :  { %6672 = vmatprep.mubr.bf16.mxu1 %v14736_v41 }
 0x563   :  { %6673 = vmatmul.mubr.bf16.gmra.mxu1 %v7925_v33 }
 0x564   :  { %6682 = vmatprep.mubr.bf16.mxu1 %v14736_v41 }
 0x56b   :  { %6683 = vmatmul.mubr.bf16.gmra.mxu1 %v7926_v18 }
 0x613   :  { %v6654_v15 = vpop.f32.mrf.mxu1 }
 0x614   :  { %7262 = vst [vmem:[%s13439_s5 + $0x80] sm:$0xff] %v6654_v15 }
 0x615   :  { %v6656_v24 = vpop.f32.mrf.mxu1 }
 0x616   :  { %7263 = vst [vmem:[%s13439_s5 + $0x88] sm:$0xff] %v6656_v24 }
 0x617   :  { %v6658_v59 = vpop.f32.mrf.mxu1 }
 0x618   :  { %7264 = vst [vmem:[%s13439_s5 + $0x90] sm:$0xff] %v6658_v59 }
 0x619   :  { %v6660_v7 = vpop.f32.mrf.mxu1 }
 0x61a   :  { %7265 = vst [vmem:[%s13439_s5 + $0x98] sm:$0xff] %v6660_v7 }
 0x61b   :  { %v6664_v47 = vpop.f32.mrf.mxu1 }
 0x61c   :  { %7266 = vst [vmem:[%s13439_s5 + $0xa0] sm:$0xff] %v6664_v47 }
 0x61d   :  { %v6666_v58 = vpop.f32.mrf.mxu1 }
 0x61e   :  { %7267 = vst [vmem:[%s13439_s5 + $0xa8] sm:$0xff] %v6666_v58 }
 0x61f   :  { %v6668_v2 = vpop.f32.mrf.mxu1 }
 0x620   :  { %7268 = vst [vmem:[%s13439_s5 + $0xb0] sm:$0xff] %v6668_v2 }
 0x621   :  { %v6670_v5 = vpop.f32.mrf.mxu1 }
 0x622   :  { %7269 = vst [vmem:[%s13439_s5 + $0xb8] sm:$0xff] %v6670_v5 }
 0x623   :  { %v6674_v44 = vpop.f32.mrf.mxu1 }
 0x624   :  { %7270 = vst [vmem:[%s13439_s5 + $0xc0] sm:$0xff] %v6674_v44 }
 0x625   :  { %v6676_v42 = vpop.f32.mrf.mxu1 }
 0x626   :  { %7271 = vst [vmem:[%s13439_s5 + $0xc8] sm:$0xff] %v6676_v42 }
 0x627   :  { %v6678_v63 = vpop.f32.mrf.mxu1 }
 0x628   :  { %7272 = vst [vmem:[%s13439_s5 + $0xd0] sm:$0xff] %v6678_v63 }
 0x629   :  { %v6680_v35 = vpop.f32.mrf.mxu1 }
 0x62a   :  { %7273 = vst [vmem:[%s13439_s5 + $0xd8] sm:$0xff] %v6680_v35 }
 0x62b   :  { %v6684_v1 = vpop.f32.mrf.mxu1 }
 0x62c   :  { %7274 = vst [vmem:[%s13439_s5 + $0xe0] sm:$0xff] %v6684_v1 }
 0x62d   :  { %v6686_v43 = vpop.f32.mrf.mxu1 }
 0x62e   :  { %7275 = vst [vmem:[%s13439_s5 + $0xe8] sm:$0xff] %v6686_v43 }
 0x62f   :  { %v6688_v31 = vpop.f32.mrf.mxu1 }
 0x630   :  { %7276 = vst [vmem:[%s13439_s5 + $0xf0] sm:$0xff] %v6688_v31 }
 0x631   :  { %v6690_v13 = vpop.f32.mrf.mxu1 }
 0x632   :  { %7277 = vst [vmem:[%s13439_s5 + $0xf8] sm:$0xff] %v6690_v13 }

</bundles_post_ra>
